<compile_context>
chip_gen: v7x
topology: tpu7x:2x2x1
jax: 0.10.0
libtpu: 0.0.40
codegen_flags: <defaults>
</compile_context>

<pallas_src>
import jax
import jax.numpy as jnp
import numpy as np
from jax import lax
from jax.experimental import pallas as pl
from jax.experimental.pallas import tpu as pltpu

BN_EPS = 1e-5
LANE = 128


def _round_up(x, m):
    return (x + m - 1) // m * m


# ----------------------------- Pallas kernel --------------------------------
def _conv_bn_relu_kernel(xm_ref, xh_ref, w_ref, shift_ref, o_ref):
    # xm_ref:    (TH, Wp, Cin)   bf16  padded-activation rows [t*TH, t*TH+TH)
    # xh_ref:    (2,  Wp, Cin)   bf16  halo rows            [t*TH+TH, t*TH+TH+2)
    # w_ref:     (G, Kg, CoT)    bf16  BN-scale-folded weights, Kg = (9/G)*Cin
    # shift_ref: (1, CoT)        f32   folded BN shift (includes conv bias)
    # o_ref:     (TH, W2, CoT)   bf16
    TH, Wp, cin = xm_ref.shape
    W2 = o_ref.shape[1]
    co = o_ref.shape[2]
    G = w_ref.shape[0]
    taps_per_dot = 9 // G

    xm = xm_ref[...]
    xh = xh_ref[...]
    # Rows [dy, dy+TH) of the (TH+2)-row window, without materializing the window.
    rows_by_dy = []
    for dy in range(3):
        if dy == 0:
            rows_by_dy.append(xm)
        elif dy < TH:
            rows_by_dy.append(jnp.concatenate([xm[dy:], xh[:dy]], axis=0))
        else:                       # TH == 2, dy == 2: window rows are the halo rows
            rows_by_dy.append(xh)

    acc = jnp.zeros((TH * W2, co), jnp.float32)
    tap = 0
    for g in range(G):              # static unroll: G MXU dots (G in {1, 3, 9})
        chunks = []
        for _ in range(taps_per_dot):
            dy, dx = divmod(tap, 3)
            tap += 1
            chunks.append(rows_by_dy[dy][:, dx:dx + W2, :])
        patch = chunks[0] if taps_per_dot == 1 else jnp.concatenate(chunks, axis=-1)
        patch = patch.reshape(TH * W2, taps_per_dot * cin)
        acc = acc + jnp.dot(patch, w_ref[g], preferred_element_type=jnp.float32)

    y = jnp.maximum(acc + shift_ref[...], 0.0)        # f32 epilogue: shift + ReLU
    o_ref[...] = y.reshape(TH, W2, co).astype(o_ref.dtype)


# ----------------------------- config selection ------------------------------
def _vmem_limit_bytes():
    phys = 64 * 1024 * 1024             # conservative default (v7x per-TC VMEM)
    try:
        info = pltpu.get_tpu_info()
        cap = getattr(info, "vmem_capacity_bytes", None)
        if cap:
            phys = int(cap)
    except Exception:
        pass
    # ~102 MiB on v5e/v6e (128 MiB physical), ~51 MiB on v7x (64 MiB physical).
    return max(32 * 1024 * 1024, min(int(phys * 0.8), 110 * 1024 * 1024))


def _pick_row_tile(H2, W2, Wp, cin, co_tile, G, budget, force_split):
    Kg = (9 // G) * cin

    def working_set(th):
        main = 2 * th * Wp * cin * 2        # double-buffered bf16 activation slab
        halo = 2 * 2 * Wp * cin * 2
        wts = 2 * G * Kg * co_tile * 2      # double-buffered resident weight tile
        outb = 2 * th * W2 * co_tile * 2    # double-buffered bf16 output block
        patch = th * W2 * Kg * 2            # per-group K-fused patch (bf16)
        acc = th * W2 * co_tile * 4         # f32 accumulator
        rows_tmp = 2 * th * Wp * cin * 2    # dy-shifted row copies
        return main + halo + wts + outb + patch + acc + rows_tmp

    cands = [d for d in range(H2, 1, -1) if H2 % d == 0 and d % 2 == 0]
    if force_split:                          # keep >=2 grid slices for v7x's 2 TCs
        halved = [d for d in cands if d <= H2 // 2]
        if halved:
            cands = halved
    for th in cands:
        if working_set(th) <= budget:
            return th
    return cands[-1]


# ----------------------------- pallas_call wrapper ---------------------------
def _conv_bn_relu_pallas(xp, w_taps, shift, H2, W2, TH, co_tile, vmem_limit):
    B, R, Wp, cin = xp.shape
    G, Kg, coutp = w_taps.shape
    T = H2 // TH
    N = coutp // co_tile

    flops = 2 * B * H2 * W2 * 9 * cin * coutp
    bytes_accessed = (B * N * (H2 + 2 * T) * Wp * cin * 2     # activation + halo re-reads
                      + G * Kg * coutp * 2 + coutp * 4        # weights + shift
                      + B * H2 * W2 * coutp * 2)              # bf16 output

    return pl.pallas_call(
        _conv_bn_relu_kernel,
        out_shape=jax.ShapeDtypeStruct((B, H2, W2, coutp), jnp.bfloat16),
        grid_spec=pltpu.PrefetchScalarGridSpec(
            num_scalar_prefetch=0,
            # Cout-tile axis outermost => weight tile fetched once per n; row-tile
            # axis innermost => weights & shift stay resident across (b, t).
            grid=(N, B, T),
            in_specs=[
                # main TH-row slab of the padded activation
                pl.BlockSpec((None, TH, Wp, cin), lambda n, b, t: (b, t, 0, 0)),
                # 2-row halo: element rows [(t+1)*TH, (t+1)*TH + 2); TH is even.
                pl.BlockSpec((None, 2, Wp, cin),
                             lambda n, b, t: (b, (t + 1) * (TH // 2), 0, 0)),
                # BN-folded weights / shift: depend only on n (kept resident)
                pl.BlockSpec((G, Kg, co_tile), lambda n, b, t: (0, 0, n)),
                pl.BlockSpec((1, co_tile), lambda n, b, t: (0, n)),
            ],
            out_specs=pl.BlockSpec((None, TH, W2, co_tile),
                                   lambda n, b, t: (b, t, 0, n)),
        ),
        compiler_params=pltpu.CompilerParams(
            dimension_semantics=("parallel", "parallel", "parallel"),
            vmem_limit_bytes=int(vmem_limit)),
        cost_estimate=pl.CostEstimate(flops=int(flops), transcendentals=0,
                                      bytes_accessed=int(bytes_accessed)),
    )(xp, xp, w_taps, shift)


# ----------------------------- JAX glue --------------------------------------
def _upsample2x_pad_bf16(x_nhwc, rows_out):
    """Bilinear x2 upsample (PyTorch align_corners=False semantics) fused with the
    3x3 conv's zero padding (1 left/right/top + bottom pad up to `rows_out` rows),
    emitted as one gather/blend producing the padded bf16 NHWC activation."""
    B, H, W, C = x_nhwc.shape
    H2, W2 = 2 * H, 2 * W
    cols_out = W2 + 2

    def taps(in_size, out_size, total):
        p = jnp.arange(total, dtype=jnp.float32)
        o = p - 1.0                                     # one zero-pad element in front
        src = jnp.clip((o + 0.5) * (in_size / out_size) - 0.5, 0.0, in_size - 1.0)
        i0 = jnp.floor(src).astype(jnp.int32)
        i1 = jnp.minimum(i0 + 1, in_size - 1)
        w1 = src - i0.astype(jnp.float32)
        w0 = 1.0 - w1
        valid = (o >= 0.0) & (o <= out_size - 1.0)      # pad positions -> zero weight
        zero = jnp.zeros_like(w0)
        return (jnp.where(valid, i0, 0), jnp.where(valid, i1, 0),
                jnp.where(valid, w0, zero), jnp.where(valid, w1, zero))

    i0h, i1h, w0h, w1h = taps(H, H2, rows_out)
    i0w, i1w, w0w, w1w = taps(W, W2, cols_out)

    v = (x_nhwc[:, i0h, :, :] * w0h[None, :, None, None]
         + x_nhwc[:, i1h, :, :] * w1h[None, :, None, None])
    out = (v[:, :, i0w, :] * w0w[None, None, :, None]
           + v[:, :, i1w, :] * w1w[None, None, :, None])
    return out.astype(jnp.bfloat16)


def init_up_conv_params(key, ch_in, ch_out):
    """Deterministic synthetic parameters, PyTorch shapes."""
    k = jax.random.split(key, 6)
    conv_w = jax.random.normal(k[0], (ch_out, ch_in, 3, 3), jnp.float32) * 0.1
    conv_b = jax.random.normal(k[1], (ch_out,), jnp.float32) * 0.1
    bn_gamma = 1.0 + 0.1 * jax.random.normal(k[2], (ch_out,), jnp.float32)
    bn_beta = 0.1 * jax.random.normal(k[3], (ch_out,), jnp.float32)
    bn_mean = 0.1 * jax.random.normal(k[4], (ch_out,), jnp.float32)
    bn_var = jnp.abs(jax.random.normal(k[5], (ch_out,), jnp.float32)) + 0.5
    return dict(conv_w=conv_w, conv_b=conv_b, bn_gamma=bn_gamma,
                bn_beta=bn_beta, bn_mean=bn_mean, bn_var=bn_var)


def up_conv_forward(x_nchw, params, row_tile=None):
    """Forward of up_conv (Upsample x2 bilinear -> 3x3 Conv -> BN inference -> ReLU).
    Input/output NCHW float32 (PyTorch convention)."""
    conv_w = params["conv_w"]                           # (Cout, Cin, 3, 3)
    ch_out, cin = conv_w.shape[0], conv_w.shape[1]
    B, _, H, W = x_nchw.shape
    H2, W2 = 2 * H, 2 * W
    Wp = W2 + 2

    # Fold BN (inference) into the conv weights + a single per-channel shift.
    scale = params["bn_gamma"] / jnp.sqrt(params["bn_var"] + BN_EPS)
    w_folded = conv_w * scale[:, None, None, None]
    shift = params["bn_beta"] + (params["conv_b"] - params["bn_mean"]) * scale

    # Lane-dense output channels.
    coutp = _round_up(ch_out, LANE)
    co_tile = 256 if coutp % 256 == 0 else 128
    N = coutp // co_tile

    # Tap grouping: fuse taps along K when Cin is lane-aligned (all real UNet layers);
    # fall back to the proven per-tap path (9 dots) for tiny / unaligned Cin.
    if cin % LANE == 0:
        G = 1 if cin <= LANE else 3
    else:
        G = 9
    Kg = (9 // G) * cin

    vmem_limit = _vmem_limit_bytes()
    if row_tile is not None:
        TH = int(row_tile)
    else:
        TH = _pick_row_tile(H2, W2, Wp, cin, co_tile, G, budget=vmem_limit // 2,
                            force_split=(B * N == 1))
    assert H2 % TH == 0 and TH % 2 == 0, (H2, TH)       # halo index_map requires even TH
    R = _round_up(H2 + 2, TH)                           # multiple of TH (and of 2)

    # Upsample + conv padding + bf16 cast in one pass; no f32 upsampled tensor in HBM.
    x_nhwc = jnp.transpose(x_nchw, (0, 2, 3, 1)).astype(jnp.float32)
    xp = _upsample2x_pad_bf16(x_nhwc, R)                # (B, R, Wp, Cin) bf16

    # (Cout, Cin, 3, 3) -> (ky, kx, Cin, Coutp) -> (G, Kg, Coutp), bf16 for the MXU.
    w_t = jnp.transpose(w_folded, (2, 3, 1, 0))
    w_t = jnp.pad(w_t, ((0, 0), (0, 0), (0, 0), (0, coutp - ch_out)))
    w_taps = w_t.reshape(G, Kg, coutp).astype(jnp.bfloat16)
    shift_p = jnp.pad(shift, (0, coutp - ch_out)).reshape(1, coutp).astype(jnp.float32)

    out = _conv_bn_relu_pallas(xp, w_taps, shift_p, H2, W2, TH, co_tile, vmem_limit)
    # Single cheap pass over bf16: drop channel padding, to NCHW, cast back to f32.
    return jnp.transpose(out[..., :ch_out], (0, 3, 1, 2)).astype(jnp.float32)


# ----------------------------- reference (pure JAX) ---------------------------
def _bilinear_upsample_x2(x_nhwc):
    """Exact PyTorch nn.Upsample(scale_factor=2, mode='bilinear',
    align_corners=False) semantics, NHWC layout."""
    B, H, W, C = x_nhwc.shape

    def idx_w(in_size, out_size):
        o = jnp.arange(out_size, dtype=jnp.float32)
        src = (o + 0.5) * (in_size / out_size) - 0.5
        src = jnp.clip(src, 0.0, float(in_size - 1))
        i0 = jnp.floor(src).astype(jnp.int32)
        i1 = jnp.minimum(i0 + 1, in_size - 1)
        w1 = src - i0.astype(jnp.float32)
        w0 = 1.0 - w1
        return i0, i1, w0, w1

    i0h, i1h, w0h, w1h = idx_w(H, 2 * H)
    i0w, i1w, w0w, w1w = idx_w(W, 2 * W)
    v = (x_nhwc[:, i0h, :, :] * w0h[None, :, None, None]
         + x_nhwc[:, i1h, :, :] * w1h[None, :, None, None])
    return (v[:, :, i0w, :] * w0w[None, None, :, None]
            + v[:, :, i1w, :] * w1w[None, None, :, None])


def up_conv_reference(x_nchw, params, matmul_dtype=jnp.float32):
    """Reference using lax.conv. With matmul_dtype=bf16 it mirrors the kernel's
    numerics (bf16 operands, f32 accumulation); with f32 it is the exact PyTorch
    math (BN folding is exact algebra)."""
    conv_w = params["conv_w"]
    x = jnp.transpose(x_nchw, (0, 2, 3, 1)).astype(jnp.float32)
    xu = _bilinear_upsample_x2(x)
    scale = params["bn_gamma"] / jnp.sqrt(params["bn_var"] + BN_EPS)
    w_folded = conv_w * scale[:, None, None, None]
    shift = params["bn_beta"] + (params["conv_b"] - params["bn_mean"]) * scale
    w_hwio = jnp.transpose(w_folded, (2, 3, 1, 0)).astype(matmul_dtype)
    y = lax.conv_general_dilated(
        xu.astype(matmul_dtype), w_hwio, window_strides=(1, 1),
        padding=((1, 1), (1, 1)),
        dimension_numbers=("NHWC", "HWIO", "NHWC"),
        preferred_element_type=jnp.float32)
    y = jnp.maximum(y + shift[None, None, None, :], 0.0)
    return jnp.transpose(y, (0, 3, 1, 2))


# ----------------------------- main -------------------------------------------
if __name__ == "__main__":
    key = jax.random.PRNGKey(0)
    k_x, k_p, k_x2, k_p2 = jax.random.split(key, 4)

    fwd = jax.jit(up_conv_forward, static_argnames=("row_tile",))

    # --- Test 1: small shapes (per-tap path, cin=4; B*N=2 grid slices) ----------
    B, ch_in, H, W = 2, 4, 16, 16
    ch_out = 8
    x = jax.random.normal(k_x, (B, ch_in, H, W), jnp.float32)
    params = init_up_conv_params(k_p, ch_in, ch_out)

    out = jax.block_until_ready(fwd(x, params))
    assert out.shape == (B, ch_out, 2 * H, 2 * W), out.shape

    ref_bf16 = up_conv_reference(x, params, jnp.bfloat16)     # kernel-faithful numerics
    np.testing.assert_allclose(np.asarray(out), np.asarray(ref_bf16),
                               atol=2e-2, rtol=2e-2)
    ref_f32 = up_conv_reference(x, params, jnp.float32)       # exact PyTorch math
    np.testing.assert_allclose(np.asarray(out), np.asarray(ref_f32),
                               atol=6e-2, rtol=6e-2)

    # --- Test 2: exercises the K-fused path (cin%128==0, G=3), multiple Cout
    #             tiles (N=3) and the multi-row-tile halo path (T=2). ------------
    B2, ch_in2, ch_out2, H2_, W2_ = 1, 256, 320, 8, 8
    x2 = jax.random.normal(k_x2, (B2, ch_in2, H2_, W2_), jnp.float32) * 0.2
    params2 = init_up_conv_params(k_p2, ch_in2, ch_out2)

    out2 = jax.block_until_ready(fwd(x2, params2, row_tile=8))
    assert out2.shape == (B2, ch_out2, 2 * H2_, 2 * W2_), out2.shape
    ref2 = up_conv_reference(x2, params2, jnp.bfloat16)
    np.testing.assert_allclose(np.asarray(out2), np.asarray(ref2),
                               atol=3e-2, rtol=3e-2)

    print("KERNEL_OK")
</pallas_src>

<mosaic_0001>
module attributes {stable_mosaic.version = 11 : i64} {
  func.func @_conv_bn_relu_kernel(%arg0: i32, %arg1: i32, %arg2: i32, %arg3: memref<1x32x34x4xbf16, #tpu.memory_space<vmem>>, %arg4: memref<1x2x34x4xbf16, #tpu.memory_space<vmem>>, %arg5: memref<9x4x128xbf16, #tpu.memory_space<vmem>>, %arg6: memref<1x128xf32, #tpu.memory_space<vmem>>, %arg7: memref<1x32x32x128xbf16, #tpu.memory_space<vmem>>) attributes {dimension_semantics = [#tpu.dimension_semantics<parallel>, #tpu.dimension_semantics<parallel>, #tpu.dimension_semantics<parallel>], iteration_bounds = array<i64: 1, 2, 1>, scalar_prefetch = 0 : i64, scratch_operands = 0 : i64, tpu.core_type = #tpu.core_type<tc>, window_params = [{transform_indices = @transform_0, window_bounds = array<i64: 1, 32, 34, 4>}, {transform_indices = @transform_1, window_bounds = array<i64: 1, 2, 34, 4>}, {transform_indices = @transform_2, window_bounds = array<i64: 9, 4, 128>}, {transform_indices = @transform_3, window_bounds = array<i64: 1, 128>}, {transform_indices = @transform_4, window_bounds = array<i64: 1, 32, 32, 128>}]} {
    %c0 = arith.constant 0 : index
    %c0_0 = arith.constant 0 : index
    %c0_1 = arith.constant 0 : index
    %c0_2 = arith.constant 0 : index
    %0 = vector.load %arg3[%c0, %c0_0, %c0_1, %c0_2] : memref<1x32x34x4xbf16, #tpu.memory_space<vmem>>, vector<1x32x34x4xbf16>
    %1 = vector.shape_cast %0 : vector<1x32x34x4xbf16> to vector<32x34x4xbf16>
    %c0_3 = arith.constant 0 : index
    %c0_4 = arith.constant 0 : index
    %c0_5 = arith.constant 0 : index
    %c0_6 = arith.constant 0 : index
    %2 = vector.load %arg4[%c0_3, %c0_4, %c0_5, %c0_6] : memref<1x2x34x4xbf16, #tpu.memory_space<vmem>>, vector<1x2x34x4xbf16>
    %3 = vector.shape_cast %2 : vector<1x2x34x4xbf16> to vector<2x34x4xbf16>
    %4 = vector.extract_strided_slice %1 {offsets = [1, 0, 0], sizes = [31, 34, 4], strides = [1, 1, 1]} : vector<32x34x4xbf16> to vector<31x34x4xbf16>
    %5 = vector.extract_strided_slice %3 {offsets = [0, 0, 0], sizes = [1, 34, 4], strides = [1, 1, 1]} : vector<2x34x4xbf16> to vector<1x34x4xbf16>
    %6 = tpu.concatenate %4, %5 in 0 : vector<31x34x4xbf16>, vector<1x34x4xbf16> -> vector<32x34x4xbf16>
    %7 = vector.extract_strided_slice %1 {offsets = [2, 0, 0], sizes = [30, 34, 4], strides = [1, 1, 1]} : vector<32x34x4xbf16> to vector<30x34x4xbf16>
    %8 = tpu.concatenate %7, %3 in 0 : vector<30x34x4xbf16>, vector<2x34x4xbf16> -> vector<32x34x4xbf16>
    %cst = arith.constant 0.000000e+00 : f32
    %9 = vector.broadcast %cst : f32 to vector<1024x128xf32>
    %10 = vector.extract_strided_slice %1 {offsets = [0, 0, 0], sizes = [32, 32, 4], strides = [1, 1, 1]} : vector<32x34x4xbf16> to vector<32x32x4xbf16>
    %11 = vector.shape_cast %10 : vector<32x32x4xbf16> to vector<1024x4xbf16>
    %c0_7 = arith.constant 0 : index
    %c0_8 = arith.constant 0 : index
    %c0_9 = arith.constant 0 : index
    %12 = vector.load %arg5[%c0_7, %c0_8, %c0_9] : memref<9x4x128xbf16, #tpu.memory_space<vmem>>, vector<1x4x128xbf16>
    %13 = vector.shape_cast %12 : vector<1x4x128xbf16> to vector<4x128xbf16>
    %cst_10 = arith.constant dense<0.000000e+00> : vector<1024x128xf32>
    %14 = tpu.matmul %11, %13, %cst_10 {dimension_numbers = #tpu.dot_dimension_numbers<[1], [0], [0], [1], [0, 0, 1, 1], [], []>} : vector<1024x4xbf16>, vector<4x128xbf16>, vector<1024x128xf32> -> vector<1024x128xf32>
    %15 = arith.addf %9, %14 : vector<1024x128xf32>
    %16 = vector.extract_strided_slice %1 {offsets = [0, 1, 0], sizes = [32, 32, 4], strides = [1, 1, 1]} : vector<32x34x4xbf16> to vector<32x32x4xbf16>
    %17 = vector.shape_cast %16 : vector<32x32x4xbf16> to vector<1024x4xbf16>
    %c1 = arith.constant 1 : index
    %c0_11 = arith.constant 0 : index
    %c0_12 = arith.constant 0 : index
    %18 = vector.load %arg5[%c1, %c0_11, %c0_12] : memref<9x4x128xbf16, #tpu.memory_space<vmem>>, vector<1x4x128xbf16>
    %19 = vector.shape_cast %18 : vector<1x4x128xbf16> to vector<4x128xbf16>
    %cst_13 = arith.constant dense<0.000000e+00> : vector<1024x128xf32>
    %20 = tpu.matmul %17, %19, %cst_13 {dimension_numbers = #tpu.dot_dimension_numbers<[1], [0], [0], [1], [0, 0, 1, 1], [], []>} : vector<1024x4xbf16>, vector<4x128xbf16>, vector<1024x128xf32> -> vector<1024x128xf32>
    %21 = arith.addf %15, %20 : vector<1024x128xf32>
    %22 = vector.extract_strided_slice %1 {offsets = [0, 2, 0], sizes = [32, 32, 4], strides = [1, 1, 1]} : vector<32x34x4xbf16> to vector<32x32x4xbf16>
    %23 = vector.shape_cast %22 : vector<32x32x4xbf16> to vector<1024x4xbf16>
    %c2 = arith.constant 2 : index
    %c0_14 = arith.constant 0 : index
    %c0_15 = arith.constant 0 : index
    %24 = vector.load %arg5[%c2, %c0_14, %c0_15] : memref<9x4x128xbf16, #tpu.memory_space<vmem>>, vector<1x4x128xbf16>
    %25 = vector.shape_cast %24 : vector<1x4x128xbf16> to vector<4x128xbf16>
    %cst_16 = arith.constant dense<0.000000e+00> : vector<1024x128xf32>
    %26 = tpu.matmul %23, %25, %cst_16 {dimension_numbers = #tpu.dot_dimension_numbers<[1], [0], [0], [1], [0, 0, 1, 1], [], []>} : vector<1024x4xbf16>, vector<4x128xbf16>, vector<1024x128xf32> -> vector<1024x128xf32>
    %27 = arith.addf %21, %26 : vector<1024x128xf32>
    %28 = vector.extract_strided_slice %6 {offsets = [0, 0, 0], sizes = [32, 32, 4], strides = [1, 1, 1]} : vector<32x34x4xbf16> to vector<32x32x4xbf16>
    %29 = vector.shape_cast %28 : vector<32x32x4xbf16> to vector<1024x4xbf16>
    %c3 = arith.constant 3 : index
    %c0_17 = arith.constant 0 : index
    %c0_18 = arith.constant 0 : index
    %30 = vector.load %arg5[%c3, %c0_17, %c0_18] : memref<9x4x128xbf16, #tpu.memory_space<vmem>>, vector<1x4x128xbf16>
    %31 = vector.shape_cast %30 : vector<1x4x128xbf16> to vector<4x128xbf16>
    %cst_19 = arith.constant dense<0.000000e+00> : vector<1024x128xf32>
    %32 = tpu.matmul %29, %31, %cst_19 {dimension_numbers = #tpu.dot_dimension_numbers<[1], [0], [0], [1], [0, 0, 1, 1], [], []>} : vector<1024x4xbf16>, vector<4x128xbf16>, vector<1024x128xf32> -> vector<1024x128xf32>
    %33 = arith.addf %27, %32 : vector<1024x128xf32>
    %34 = vector.extract_strided_slice %6 {offsets = [0, 1, 0], sizes = [32, 32, 4], strides = [1, 1, 1]} : vector<32x34x4xbf16> to vector<32x32x4xbf16>
    %35 = vector.shape_cast %34 : vector<32x32x4xbf16> to vector<1024x4xbf16>
    %c4 = arith.constant 4 : index
    %c0_20 = arith.constant 0 : index
    %c0_21 = arith.constant 0 : index
    %36 = vector.load %arg5[%c4, %c0_20, %c0_21] : memref<9x4x128xbf16, #tpu.memory_space<vmem>>, vector<1x4x128xbf16>
    %37 = vector.shape_cast %36 : vector<1x4x128xbf16> to vector<4x128xbf16>
    %cst_22 = arith.constant dense<0.000000e+00> : vector<1024x128xf32>
    %38 = tpu.matmul %35, %37, %cst_22 {dimension_numbers = #tpu.dot_dimension_numbers<[1], [0], [0], [1], [0, 0, 1, 1], [], []>} : vector<1024x4xbf16>, vector<4x128xbf16>, vector<1024x128xf32> -> vector<1024x128xf32>
    %39 = arith.addf %33, %38 : vector<1024x128xf32>
    %40 = vector.extract_strided_slice %6 {offsets = [0, 2, 0], sizes = [32, 32, 4], strides = [1, 1, 1]} : vector<32x34x4xbf16> to vector<32x32x4xbf16>
    %41 = vector.shape_cast %40 : vector<32x32x4xbf16> to vector<1024x4xbf16>
    %c5 = arith.constant 5 : index
    %c0_23 = arith.constant 0 : index
    %c0_24 = arith.constant 0 : index
    %42 = vector.load %arg5[%c5, %c0_23, %c0_24] : memref<9x4x128xbf16, #tpu.memory_space<vmem>>, vector<1x4x128xbf16>
    %43 = vector.shape_cast %42 : vector<1x4x128xbf16> to vector<4x128xbf16>
    %cst_25 = arith.constant dense<0.000000e+00> : vector<1024x128xf32>
    %44 = tpu.matmul %41, %43, %cst_25 {dimension_numbers = #tpu.dot_dimension_numbers<[1], [0], [0], [1], [0, 0, 1, 1], [], []>} : vector<1024x4xbf16>, vector<4x128xbf16>, vector<1024x128xf32> -> vector<1024x128xf32>
    %45 = arith.addf %39, %44 : vector<1024x128xf32>
    %46 = vector.extract_strided_slice %8 {offsets = [0, 0, 0], sizes = [32, 32, 4], strides = [1, 1, 1]} : vector<32x34x4xbf16> to vector<32x32x4xbf16>
    %47 = vector.shape_cast %46 : vector<32x32x4xbf16> to vector<1024x4xbf16>
    %c6 = arith.constant 6 : index
    %c0_26 = arith.constant 0 : index
    %c0_27 = arith.constant 0 : index
    %48 = vector.load %arg5[%c6, %c0_26, %c0_27] : memref<9x4x128xbf16, #tpu.memory_space<vmem>>, vector<1x4x128xbf16>
    %49 = vector.shape_cast %48 : vector<1x4x128xbf16> to vector<4x128xbf16>
    %cst_28 = arith.constant dense<0.000000e+00> : vector<1024x128xf32>
    %50 = tpu.matmul %47, %49, %cst_28 {dimension_numbers = #tpu.dot_dimension_numbers<[1], [0], [0], [1], [0, 0, 1, 1], [], []>} : vector<1024x4xbf16>, vector<4x128xbf16>, vector<1024x128xf32> -> vector<1024x128xf32>
    %51 = arith.addf %45, %50 : vector<1024x128xf32>
    %52 = vector.extract_strided_slice %8 {offsets = [0, 1, 0], sizes = [32, 32, 4], strides = [1, 1, 1]} : vector<32x34x4xbf16> to vector<32x32x4xbf16>
    %53 = vector.shape_cast %52 : vector<32x32x4xbf16> to vector<1024x4xbf16>
    %c7 = arith.constant 7 : index
    %c0_29 = arith.constant 0 : index
    %c0_30 = arith.constant 0 : index
    %54 = vector.load %arg5[%c7, %c0_29, %c0_30] : memref<9x4x128xbf16, #tpu.memory_space<vmem>>, vector<1x4x128xbf16>
    %55 = vector.shape_cast %54 : vector<1x4x128xbf16> to vector<4x128xbf16>
    %cst_31 = arith.constant dense<0.000000e+00> : vector<1024x128xf32>
    %56 = tpu.matmul %53, %55, %cst_31 {dimension_numbers = #tpu.dot_dimension_numbers<[1], [0], [0], [1], [0, 0, 1, 1], [], []>} : vector<1024x4xbf16>, vector<4x128xbf16>, vector<1024x128xf32> -> vector<1024x128xf32>
    %57 = arith.addf %51, %56 : vector<1024x128xf32>
    %58 = vector.extract_strided_slice %8 {offsets = [0, 2, 0], sizes = [32, 32, 4], strides = [1, 1, 1]} : vector<32x34x4xbf16> to vector<32x32x4xbf16>
    %59 = vector.shape_cast %58 : vector<32x32x4xbf16> to vector<1024x4xbf16>
    %c8 = arith.constant 8 : index
    %c0_32 = arith.constant 0 : index
    %c0_33 = arith.constant 0 : index
    %60 = vector.load %arg5[%c8, %c0_32, %c0_33] : memref<9x4x128xbf16, #tpu.memory_space<vmem>>, vector<1x4x128xbf16>
    %61 = vector.shape_cast %60 : vector<1x4x128xbf16> to vector<4x128xbf16>
    %cst_34 = arith.constant dense<0.000000e+00> : vector<1024x128xf32>
    %62 = tpu.matmul %59, %61, %cst_34 {dimension_numbers = #tpu.dot_dimension_numbers<[1], [0], [0], [1], [0, 0, 1, 1], [], []>} : vector<1024x4xbf16>, vector<4x128xbf16>, vector<1024x128xf32> -> vector<1024x128xf32>
    %63 = arith.addf %57, %62 : vector<1024x128xf32>
    %c0_35 = arith.constant 0 : index
    %c0_36 = arith.constant 0 : index
    %64 = vector.load %arg6[%c0_35, %c0_36] : memref<1x128xf32, #tpu.memory_space<vmem>>, vector<1x128xf32>
    %65 = vector.broadcast %64 : vector<1x128xf32> to vector<1024x128xf32>
    %66 = arith.addf %63, %65 : vector<1024x128xf32>
    %cst_37 = arith.constant 0.000000e+00 : f32
    %67 = vector.broadcast %cst_37 : f32 to vector<1024x128xf32>
    %68 = arith.maximumf %66, %67 : vector<1024x128xf32>
    %69 = vector.shape_cast %68 : vector<1024x128xf32> to vector<32x32x128xf32>
    %70 = arith.truncf %69 : vector<32x32x128xf32> to vector<32x32x128xbf16>
    %c0_38 = arith.constant 0 : index
    %c0_39 = arith.constant 0 : index
    %c0_40 = arith.constant 0 : index
    %c0_41 = arith.constant 0 : index
    %71 = vector.load %arg7[%c0_38, %c0_39, %c0_40, %c0_41] : memref<1x32x32x128xbf16, #tpu.memory_space<vmem>>, vector<1x32x32x128xbf16>
    %72 = vector.shape_cast %71 : vector<1x32x32x128xbf16> to vector<32x32x128xbf16>
    %73 = vector.shape_cast %70 : vector<32x32x128xbf16> to vector<1x32x32x128xbf16>
    tpu.vector_store %arg7[%c0_38, %c0_39, %c0_40, %c0_41], %73 {strides = array<i32>} : memref<1x32x32x128xbf16, #tpu.memory_space<vmem>>, vector<1x32x32x128xbf16>,
    return
  }
  func.func @transform_0(%arg0: i32, %arg1: i32, %arg2: i32) -> (i32, i32, i32, i32) {
    %c0_i32 = arith.constant 0 : i32
    %c0_i32_0 = arith.constant 0 : i32
    %c0_i32_1 = arith.constant 0 : i32
    return %arg1, %arg2, %c0_i32, %c0_i32_0 : i32, i32, i32, i32
  }
  func.func @transform_1(%arg0: i32, %arg1: i32, %arg2: i32) -> (i32, i32, i32, i32) {
    %c1_i32 = arith.constant 1 : i32
    %0 = arith.addi %arg2, %c1_i32 : i32
    %c16_i32 = arith.constant 16 : i32
    %1 = arith.muli %0, %c16_i32 : i32
    %c0_i32 = arith.constant 0 : i32
    %c0_i32_0 = arith.constant 0 : i32
    %c0_i32_1 = arith.constant 0 : i32
    return %arg1, %1, %c0_i32, %c0_i32_0 : i32, i32, i32, i32
  }
  func.func @transform_2(%arg0: i32, %arg1: i32, %arg2: i32) -> (i32, i32, i32) {
    %c0_i32 = arith.constant 0 : i32
    %c0_i32_0 = arith.constant 0 : i32
    %c0_i32_1 = arith.constant 0 : i32
    return %c0_i32, %c0_i32_0, %arg0 : i32, i32, i32
  }
  func.func @transform_3(%arg0: i32, %arg1: i32, %arg2: i32) -> (i32, i32) {
    %c0_i32 = arith.constant 0 : i32
    %c0_i32_0 = arith.constant 0 : i32
    return %c0_i32, %arg0 : i32, i32
  }
  func.func @transform_4(%arg0: i32, %arg1: i32, %arg2: i32) -> (i32, i32, i32, i32) {
    %c0_i32 = arith.constant 0 : i32
    %c0_i32_0 = arith.constant 0 : i32
    return %arg1, %arg2, %c0_i32, %arg0 : i32, i32, i32, i32
  }
}

</mosaic_0001>

<bundles_post_ra>
// kernel: up_conv_forward.1
= control target key start
LH: loop header
LB: loop body
LE: loop exit
PB: predicated region body
PF: predicated region fallthrough
CT: control target
= control target key end

     0   :  { %s15367_s15 = smov 0   ;;  %s15369_s16 = smov 0   ;;  %s18774_s0 = inlined_call_operand.vmem [shape: bf16[2,64,34,4], index: 0, kind: input, shape index: {}, may-alias: {0,1}]   ;;  %s18775_s1 = inlined_call_operand.vmem [shape: bf16[2,64,34,4], index: 1, kind: input, shape index: {}, may-alias: {0,1}]   ;;  %s18776_s2 = inlined_call_operand.vmem [shape: bf16[9,4,128], index: 2, kind: input, shape index: {}]   ;;  %s18777_s3 = inlined_call_operand.vmem [shape: f32[1,128], index: 3, kind: input, shape index: {}]   ;;  %s18778_s4 = inlined_call_operand.vmem [shape: bf16[2,32,32,128], index: 4, kind: output, shape index: {}]  }
   0x1   :  { %s15371_s17 = smov 0  }
   0x2 LB: > { %s29_s18 = sadd.s32 1, %s15336_s16  ;;  %p10763_p0 = scmp.ge.s32.totalorder %s15340_s17, 1  ;;  %s15340_s17 = sphi %s15371_s17, %s14_s17   ;;  %s15336_s16 = sphi %s15369_s16, %s19659_s16   ;;  %s15332_s15 = sphi %s15367_s15, %s19658_s15  }
   0x3   : > { %p31_p1 = scmp.ge.s32.totalorder %s29_s18, 2  ;;  %p236_p2 = scmp.lt.s32.totalorder %s15340_s17, 3 }
   0x5   : > { %s19661_s18 = smov (%p31_p1, %s29_s18), 0  ;;  %p237_p3 = pnand %p10763_p0, %p236_p2 }
   0x7   : > { %240 = sbr.rel (%p237_p3) target bundleno = 1458 (0x5b2), region = 36 }
   0xe   : > { %v10768_v0 = vld [vmem:[%s18776_s2 + $0x2] sm:$0x3]  ;;  %vm2311_vm0 = vcmask 1041408   ;;  %v11253_v1 = vld [vmem:[%s18776_s2 + $0x8] sm:$0x3]  ;;  %p295_p4 = scmp.lt.s32.totalorder %s15332_s15, 1 }
   0xf   : > { %15016 = vmatprep.subr.msk.bf16.mxu1 %vm2311_vm0, %v10768_v0  ;;  %15020 = vmatprep.subr.msk.bf16.mxu0 %vm2311_vm0, %v11253_v1  ;;  %v2313_v2 = vsel %vm2311_vm0, %v10768_v0, 0  ;;  %v15395_v3 = vsel %vm2311_vm0, %v11253_v1, 0  ;;  %v512_v4 = vld [vmem:[%s18776_s2] sm:$0x3]  ;;  %v11321_v5 = vld [vmem:[%s18776_s2 + $0xa] sm:$0x3] }
  0x10   : > { %19094 = vst [vmem:[#allocation2_spill] sm:$0xff] %v15395_v3  ;;  %12821 = vmatpush3.bf16.msra.mxu1 %v2313_v2  ;;  %13341 = vmatpush3.bf16.msra.mxu0 %v15395_v3  ;;  %s19663_s15 = smov (!%p295_p4, %s15332_s15), 1  ;;  %vm513_vm1 = vsmask.f32 3328  ;;  %vm514_vm2 = vsmask.f32 7440 }
  0x11   : > { %15017 = vmatprep.subr.msk.bf16.mxu1 %vm2311_vm0, %v512_v4  ;;  %15022 = vmatprep.subr.msk.bf16.mxu0 %vm2311_vm0, %v11321_v5  ;;  %s15026_s27 = smul.u32 1280, %s19663_s15  ;;  %v15417_v6 = vsel %vm2311_vm0, %v512_v4, 0  ;;  %vm2118_vm3 = vcmask 31744   ;;  %vm15428_vm4 = vmor %vm513_vm1, %vm514_vm2  ;;  %v19095_v32 = vmov 0  ;;  %v15441_v58 = vsel %vm2311_vm0, %v11321_v5, 0  ;;  %s11723_s29 = sshll.u32 %s19663_s15, 9 }
  0x12   : > { %v19096_v32 = vsel %vm15428_vm4, 4294967295, %v19095_v32  ;;  %vm3952_vm5 = vcmask 1042432   ;;  %vm3953_vm6 = vcmask 1046532   ;;  %s18471_s5 = scalar_lea.vmem %s18778_s4, %s11723_s29 }
  0x13   : > { %s15414_s30 = scalar_lea.vmem %s18774_s0, %s15026_s27  ;;  %19097 = vst [vmem:[#allocation3_spill] sm:$0xff] %v19096_v32  ;;  %vm15832_vm7 = vmor %vm3952_vm5, %vm3953_vm6  ;;  %s11722_s13 = sadd.s32 640, %s15026_s27 }
  0x14   : > { %v342_v7 = vld [vmem:[%s15414_s30] sm:$0xf]  ;;  %v343_v8 = vld [vmem:[%s15414_s30 + $0x4] sm:$0xf]  ;;  %v344_v9 = vld [vmem:[%s15414_s30 + $0x8] sm:$0xf]  ;;  %s17254_s20 = scalar_lea.vmem %s18775_s1, %s11722_s13 }
  0x15   : > { %v517_v10 = vshrl.u32 %v342_v7, 16  ;;  %v520_v11 = vshll.u32 %v342_v7, 16  ;;  %v526_v12 = vshll.u32 %v343_v8, 16  ;;  %v530_v13 = vshrl.u32 %v343_v8, 16  ;;  %v347_v16 = vld [vmem:[%s15414_s30 + $0x14] sm:$0xf] }
  0x16   : > { %v536_v14 = vshll.u32 %v344_v9, 16  ;;  %v540_v15 = vshrl.u32 %v344_v9, 16  ;;  %v348_v17 = vld [vmem:[%s15414_s30 + $0x18] sm:$0xf]  ;;  %v349_v22 = vld [vmem:[%s15414_s30 + $0x1c] sm:$0xf] }
  0x17   : > { %v519_v18 = vrot.slane %v517_v10, 4  ;;  %v522_v19 = vrot.slane %v520_v11, 5  ;;  %v528_v20 = vrot.slane %v526_v12, 5  ;;  %v532_v21 = vrot.slane %v530_v13, 4  ;;  %v345_v31 = vld [vmem:[%s15414_s30 + $0xc] sm:$0xf] }
  0x18   : > { %v538_v23 = vrot.slane %v536_v14, 5  ;;  %v542_v24 = vrot.slane %v540_v15, 4  ;;  %v561_v25 = vshrl.u32 %v347_v16, 16  ;;  %v564_v26 = vshll.u32 %v347_v16, 16  ;;  %v346_v45 = vld [vmem:[%s15414_s30 + $0x10] sm:$0x1] }
  0x19   : > { %v523_v27 = vor.u32 %v522_v19, %v519_v18  ;;  %v533_v28 = vor.u32 %v532_v21, %v528_v20  ;;  %v570_v29 = vshll.u32 %v348_v17, 16  ;;  %v574_v30 = vshrl.u32 %v348_v17, 16  ;;  %v15438_v50 = vld [vmem:[%s15414_s30 + $0x20] sm:$0xf]  ;;  %v15447_v62 = vld [vmem:[%s15414_s30 + $0x24] sm:$0x1] }
  0x1a   : > { %v543_v33 = vor.u32 %v542_v24, %v538_v23  ;;  %v563_v34 = vrot.slane %v561_v25, 4  ;;  %v566_v35 = vrot.slane %v564_v26, 5  ;;  %v580_v36 = vshll.u32 %v349_v22, 16  ;;  %v352_v5 = vld [vmem:[%s15414_s30 + $0x28] sm:$0xf] }
  0x1b   : > { %v524_v37 = vrot.slane %v523_v27, 4  ;;  %v534_v38 = vrot.slane %v533_v28, 4  ;;  %v572_v39 = vrot.slane %v570_v29, 5  ;;  %v576_v40 = vrot.slane %v574_v30, 4  ;;  %v353_v11 = vld [vmem:[%s15414_s30 + $0x2c] sm:$0xf] }
  0x1c   : > { %v544_v41 = vrot.slane %v543_v33, 4  ;;  %v567_v42 = vor.u32 %v566_v35, %v563_v34  ;;  %v582_v43 = vrot.slane %v580_v36, 5  ;;  %v584_v44 = vshrl.u32 %v349_v22, 16  ;;  %v354_v16 = vld [vmem:[%s15414_s30 + $0x30] sm:$0xf] }
  0x1d   : > { %v529_v46 = vsel %vm15428_vm4, %v524_v37, %v528_v20  ;;  %v539_v47 = vsel %vm15428_vm4, %v534_v38, %v538_v23  ;;  %v577_v48 = vor.u32 %v576_v40, %v572_v39  ;;  %v546_v49 = vshll.u32 %v345_v31, 16  ;;  %v355_v25 = vld [vmem:[%s15414_s30 + $0x34] sm:$0xf]  ;;  %v356_v30 = vld [vmem:[%s15414_s30 + $0x38] sm:$0x1] }
  0x1e   : > { %v10769_v51 = vcombine.low %v529_v46, %v539_v47  ;;  %v568_v52 = vrot.slane %v567_v42, 4  ;;  %v586_v53 = vrot.slane %v584_v44, 4  ;;  %v550_v54 = vshrl.u32 %v345_v31, 16  ;;  %v357_v40 = vld [vmem:[%s15414_s30 + $0x3c] sm:$0xf] }
  0x1f   : > { %v578_v55 = vrot.slane %v577_v48, 4  ;;  %v548_v56 = vrot.slane %v546_v49, 5  ;;  %v556_v57 = vshll.u32 %v346_v45, 16  ;;  %v590_v63 = vshll.u32 %v15438_v50, 16  ;;  %v358_v45 = vld [vmem:[%s15414_s30 + $0x40] sm:$0xf] }
  0x20   : > { %12822 = vmatprep.mubr.msk.bf16.mxu1 %vm2118_vm3, %v10769_v51  ;;  %v573_v59 = vsel %vm15428_vm4, %v568_v52, %v572_v39  ;;  %v587_v60 = vor.u32 %v586_v53, %v582_v43  ;;  %v552_v61 = vrot.slane %v550_v54, 4  ;;  %v594_v4 = vshrl.u32 %v15438_v50, 16 }
  0x21   : > { %v583_v0 = vsel %vm15428_vm4, %v578_v55, %v582_v43  ;;  %v549_v1 = vsel %vm15428_vm4, %v544_v41, %v548_v56  ;;  %v558_v2 = vrot.slane %v556_v57, 5  ;;  %v592_v10 = vrot.slane %v590_v63, 5  ;;  %v359_v57 = vld [vmem:[%s15414_s30 + $0x44] sm:$0xf] }
  0x22   : > { %v588_v7 = vrot.slane %v587_v60, 4  ;;  %v10771_v8 = vcombine.low %v573_v59, %v583_v0  ;;  %v553_v9 = vor.u32 %v552_v61, %v548_v56  ;;  %v596_v12 = vrot.slane %v594_v4, 4 }
  0x23   : > { %v600_v13 = vshll.u32 %v15447_v62, 16  ;;  %v3976_v14 = vrot.slane %v15438_v50, 5  ;;  %v3979_v15 = vrot.slane %v15447_v62, 5  ;;  %v605_v19 = vshrl.u32 %v352_v5, 16  ;;  %v431_v50 = vld [vmem:[%s15414_s30 + $0x164] sm:$0x1] }
  0x24   : > { %13342 = vmatprep.mubr.msk.bf16.mxu0 %vm2118_vm3, %v10771_v8  ;;  %v554_v17 = vrot.slane %v553_v9, 4  ;;  %v593_v18 = vsel %vm15428_vm4, %v588_v7, %v592_v10  ;;  %v608_v20 = vshll.u32 %v352_v5, 16  ;;  %v597_v21 = vor.u32 %v596_v12, %v592_v10 }
  0x25   : > { %v602_v22 = vrot.slane %v600_v13, 5  ;;  %v614_v23 = vshll.u32 %v353_v11, 16  ;;  %v618_v24 = vshrl.u32 %v353_v11, 16  ;;  %v607_v27 = vrot.slane %v605_v19, 4  ;;  %v361_v13 = vld [vmem:[%s15414_s30 + $0x4c] sm:$0x1] }
  0x26   : > { %v559_v26 = vsel %vm15428_vm4, %v554_v17, %v558_v2  ;;  %v610_v28 = vrot.slane %v608_v20, 5  ;;  %v624_v29 = vshll.u32 %v354_v16, 16  ;;  %v598_v33 = vrot.slane %v597_v21, 4 }
  0x27   : > { %v10770_v31 = vcombine.low %v549_v1, %v559_v26  ;;  %v616_v34 = vrot.slane %v614_v23, 5  ;;  %v620_v35 = vrot.slane %v618_v24, 4  ;;  %v628_v38 = vshrl.u32 %v354_v16, 16  ;;  %v360_v1 = vld [vmem:[%s15414_s30 + $0x48] sm:$0xf] }
  0x28   : > { %v611_v36 = vor.u32 %v610_v28, %v607_v27  ;;  %v626_v37 = vrot.slane %v624_v29, 5  ;;  %v634_v39 = vshll.u32 %v355_v25, 16  ;;  %v603_v41 = vsel %vm15428_vm4, %v598_v33, %v602_v22  ;;  %v363_v23 = vld [vmem:[%s15414_s30 + $0x54] sm:$0xf] }
  0x29   : > { %12823 = vmatmul.mubr.msk.bf16.vlgmr.msra.gmra.mrb[0].mxu1 %vm2118_vm3, %v10770_v31  ;;  %v621_v42 = vor.u32 %v620_v35, %v616_v34  ;;  %v638_v43 = vshrl.u32 %v355_v25, 16  ;;  %v644_v44 = vshll.u32 %v356_v30, 16  ;;  %v10772_v46 = vcombine.low %v593_v18, %v603_v41  ;;  %v362_v18 = vld [vmem:[%s15414_s30 + $0x50] sm:$0xf]  ;;  %v364_v35 = vld [vmem:[%s15414_s30 + $0x58] sm:$0xf] }
  0x2a   : > { %12951 = vmatpush3.bf16.msra.mxu1 %v15417_v6  ;;  %12826 = vmatprep.mubr.msk.bf16.mxu1 %vm2118_vm3, %v10771_v8  ;;  %v612_v47 = vrot.slane %v611_v36, 4  ;;  %v630_v48 = vrot.slane %v628_v38, 4  ;;  %v636_v49 = vrot.slane %v634_v39, 5  ;;  %v649_v54 = vshrl.u32 %v357_v40, 16 }
  0x2b   : > { %v622_v51 = vrot.slane %v621_v42, 4  ;;  %v640_v52 = vrot.slane %v638_v43, 4  ;;  %v646_v53 = vrot.slane %v644_v44, 5  ;;  %13343 = vmatmul.mubr.msk.bf16.vlgmr.msra.gmra.mrb[0].mxu0 %vm2118_vm3, %v10772_v46  ;;  %v652_v59 = vshll.u32 %v357_v40, 16  ;;  %v365_v42 = vld [vmem:[%s15414_s30 + $0x5c] sm:$0xf] }
  0x2c   : > { %v617_v55 = vsel %vm15428_vm4, %v612_v47, %v616_v34  ;;  %v631_v56 = vor.u32 %v630_v48, %v626_v37  ;;  %v658_v6 = vshll.u32 %v358_v45, 16  ;;  %13471 = vmatpush3.bf16.msra.mxu0 %v15441_v58  ;;  %v651_v63 = vrot.slane %v649_v54, 4 }
  0x2d   : > { %v627_v60 = vsel %vm15428_vm4, %v622_v51, %v626_v37  ;;  %v641_v61 = vor.u32 %v640_v52, %v636_v49  ;;  %v662_v0 = vshrl.u32 %v358_v45, 16  ;;  %v654_v5 = vrot.slane %v652_v59, 5  ;;  %v366_v51 = vld [vmem:[%s15414_s30 + $0x60] sm:$0x1] }
  0x2e   : > { %v15483_v2 = vcombine.low %v617_v55, %v627_v60  ;;  %v632_v4 = vrot.slane %v631_v56, 4  ;;  %v660_v7 = vrot.slane %v658_v6, 5  ;;  %v668_v10 = vshll.u32 %v359_v57, 16 }
  0x2f   : > { %v642_v8 = vrot.slane %v641_v61, 4  ;;  %v664_v9 = vrot.slane %v662_v0, 4  ;;  %v672_v11 = vshrl.u32 %v359_v57, 16  ;;  %v655_v12 = vor.u32 %v654_v5, %v651_v63  ;;  %v367_v57 = vld [vmem:[%s15414_s30 + $0x64] sm:$0xf] }
  0x30   : > { %19098 = vst [vmem:[#allocation4_spill] sm:$0xff] %v15483_v2  ;;  %13346 = vmatprep.mubr.msk.bf16.mxu0 %vm2118_vm3, %v15483_v2  ;;  %v637_v58 = vsel %vm15428_vm4, %v632_v4, %v636_v49  ;;  %v678_v16 = vshll.u32 %v360_v1, 16  ;;  %v682_v17 = vshrl.u32 %v360_v1, 16  ;;  %v670_v21 = vrot.slane %v668_v10, 5  ;;  %v368_v63 = vld [vmem:[%s15414_s30 + $0x68] sm:$0xf] }
  0x31   : > { %12827 = vmatmul.mubr.msk.bf16.gmra.mrb[4].mxu1 %vm2118_vm3, %v10772_v46  ;;  %v647_v19 = vsel %vm15428_vm4, %v642_v8, %v646_v53  ;;  %v665_v20 = vor.u32 %v664_v9, %v660_v7  ;;  %v674_v22 = vrot.slane %v672_v11, 4  ;;  %v656_v25 = vrot.slane %v655_v12, 4  ;;  %v369_v9 = vld [vmem:[%s15414_s30 + $0x6c] sm:$0xf] }
  0x32   : > { %v15495_v24 = vcombine.low %v637_v58, %v647_v19  ;;  %12830 = vmatprep.mubr.msk.bf16.mxu1 %vm2118_vm3, %v15483_v2  ;;  %v680_v26 = vrot.slane %v678_v16, 5  ;;  %v684_v27 = vrot.slane %v682_v17, 4  ;;  %v688_v30 = vshll.u32 %v361_v13, 16 }
  0x33   : > { %v666_v28 = vrot.slane %v665_v20, 4  ;;  %v675_v29 = vor.u32 %v674_v22, %v670_v21  ;;  %v693_v31 = vshrl.u32 %v362_v18, 16  ;;  %v661_v33 = vsel %vm15428_vm4, %v656_v25, %v660_v7 }
  0x34   : > { %19099 = vst [vmem:[#allocation5_spill] sm:$0xff] %v15495_v24  ;;  %13347 = vmatmul.mubr.msk.bf16.gmra.mrb[4].mxu0 %vm2118_vm3, %v15495_v24  ;;  %v685_v34 = vor.u32 %v684_v27, %v680_v26  ;;  %v696_v36 = vshll.u32 %v362_v18, 16  ;;  %v702_v37 = vshll.u32 %v363_v23, 16  ;;  %v690_v40 = vrot.slane %v688_v30, 5  ;;  %v371_v30 = vld [vmem:[%s15414_s30 + $0x74] sm:$0x1] }
  0x35   : > { %v671_v38 = vsel %vm15428_vm4, %v666_v28, %v670_v21  ;;  %v676_v39 = vrot.slane %v675_v29, 4  ;;  %v695_v41 = vrot.slane %v693_v31, 4  ;;  %v706_v48 = vshrl.u32 %v363_v23, 16 }
  0x36   : > { %v15507_v43 = vcombine.low %v661_v33, %v671_v38  ;;  %v686_v44 = vrot.slane %v685_v34, 4  ;;  %v698_v45 = vrot.slane %v696_v36, 5  ;;  %v704_v46 = vrot.slane %v702_v37, 5  ;;  %v372_v33 = vld [vmem:[%s15414_s30 + $0x78] sm:$0xf] }
  0x37   : > { %v681_v47 = vsel %vm15428_vm4, %v676_v39, %v680_v26  ;;  %v712_v49 = vshll.u32 %v364_v35, 16  ;;  %v716_v52 = vshrl.u32 %v364_v35, 16  ;;  %v722_v55 = vshll.u32 %v365_v42, 16  ;;  %v370_v26 = vld [vmem:[%s15414_s30 + $0x70] sm:$0xf] }
  0x38   : > { %19100 = vst [vmem:[#allocation6_spill] sm:$0xff] %v15507_v43  ;;  %13350 = vmatprep.mubr.msk.bf16.mxu0 %vm2118_vm3, %v15507_v43  ;;  %v691_v53 = vsel %vm15428_vm4, %v686_v44, %v690_v40  ;;  %v699_v54 = vor.u32 %v698_v45, %v695_v41  ;;  %v726_v56 = vshrl.u32 %v365_v42, 16  ;;  %v708_v6 = vrot.slane %v706_v48, 4 }
  0x39   : > { %12831 = vmatmul.mubr.msk.bf16.gmra.mrb[8].mxu1 %vm2118_vm3, %v15495_v24  ;;  %v15519_v59 = vcombine.low %v681_v47, %v691_v53  ;;  %v714_v60 = vrot.slane %v712_v49, 5  ;;  %v718_v61 = vrot.slane %v716_v52, 4  ;;  %v724_v1 = vrot.slane %v722_v55, 5  ;;  %v374_v52 = vld [vmem:[%s15414_s30 + $0x80] sm:$0xf] }
  0x3a   : > { %12834 = vmatprep.mubr.msk.bf16.mxu1 %vm2118_vm3, %v15507_v43  ;;  %v700_v0 = vrot.slane %v699_v54, 4  ;;  %v728_v4 = vrot.slane %v726_v56, 4  ;;  %v732_v5 = vshll.u32 %v366_v51, 16  ;;  %v709_v7 = vor.u32 %v708_v6, %v704_v46 }
  0x3b   : > { %19101 = vst [vmem:[#allocation7_spill] sm:$0xff] %v15519_v59  ;;  %v719_v8 = vor.u32 %v718_v61, %v714_v60  ;;  %v737_v10 = vshrl.u32 %v367_v57, 16  ;;  %v740_v11 = vshll.u32 %v367_v57, 16  ;;  %v746_v16 = vshll.u32 %v368_v63, 16 }
  0x3c   : > { %13351 = vmatmul.mubr.msk.bf16.gmra.mrb[8].mxu0 %vm2118_vm3, %v15519_v59  ;;  %v705_v58 = vsel %vm15428_vm4, %v700_v0, %v704_v46  ;;  %v729_v12 = vor.u32 %v728_v4, %v724_v1  ;;  %v734_v13 = vrot.slane %v732_v5, 5  ;;  %v710_v17 = vrot.slane %v709_v7, 4  ;;  %v373_v46 = vld [vmem:[%s15414_s30 + $0x7c] sm:$0xf]  ;;  %v375_v5 = vld [vmem:[%s15414_s30 + $0x84] sm:$0xf] }
  0x3d   : > { %v720_v18 = vrot.slane %v719_v8, 4  ;;  %v739_v19 = vrot.slane %v737_v10, 4  ;;  %v742_v20 = vrot.slane %v740_v11, 5  ;;  %v748_v22 = vrot.slane %v746_v16, 5  ;;  %v376_v7 = vld [vmem:[%s15414_s30 + $0x88] sm:$0x1] }
  0x3e   : > { %v730_v21 = vrot.slane %v729_v12, 4  ;;  %v750_v23 = vshrl.u32 %v368_v63, 16  ;;  %v756_v25 = vshll.u32 %v369_v9, 16  ;;  %v715_v27 = vsel %vm15428_vm4, %v710_v17, %v714_v60  ;;  %v377_v12 = vld [vmem:[%s15414_s30 + $0x8c] sm:$0xf] }
  0x3f   : > { %v725_v28 = vsel %vm15428_vm4, %v720_v18, %v724_v1  ;;  %v743_v29 = vor.u32 %v742_v20, %v739_v19  ;;  %v760_v31 = vshrl.u32 %v369_v9, 16  ;;  %v15536_v34 = vcombine.low %v705_v58, %v715_v27  ;;  %v378_v27 = vld [vmem:[%s15414_s30 + $0x90] sm:$0xf] }
  0x40   : > { %v735_v35 = vsel %vm15428_vm4, %v730_v21, %v734_v13  ;;  %v752_v36 = vrot.slane %v750_v23, 4  ;;  %v758_v37 = vrot.slane %v756_v25, 5  ;;  %v766_v41 = vshll.u32 %v370_v26, 16 }
  0x41   : > { %19102 = vst [vmem:[#allocation8_spill] sm:$0xff] %v15536_v34  ;;  %12835 = vmatmul.mubr.msk.bf16.gmra.mrb[12].mxu1 %vm2118_vm3, %v15519_v59  ;;  %v15542_v38 = vcombine.low %v725_v28, %v735_v35  ;;  %v744_v39 = vrot.slane %v743_v29, 4  ;;  %v762_v40 = vrot.slane %v760_v31, 4  ;;  %13354 = vmatprep.mubr.msk.bf16.mxu0 %vm2118_vm3, %v15536_v34  ;;  %v770_v44 = vshrl.u32 %v370_v26, 16  ;;  %v379_v35 = vld [vmem:[%s15414_s30 + $0x94] sm:$0xf] }
  0x42   : > { %12838 = vmatprep.mubr.msk.bf16.mxu1 %vm2118_vm3, %v15536_v34  ;;  %v753_v42 = vor.u32 %v752_v36, %v748_v22  ;;  %v776_v45 = vshll.u32 %v371_v30, 16  ;;  %v781_v47 = vshrl.u32 %v372_v33, 16  ;;  %v768_v51 = vrot.slane %v766_v41, 5  ;;  %v16426_v59 = vld [vmem:[%s15414_s30 + $0x244] sm:$0xf] }
  0x43   : > { %19103 = vst [vmem:[#allocation9_spill] sm:$0xff] %v15542_v38  ;;  %v749_v48 = vsel %vm15428_vm4, %v744_v39, %v748_v22  ;;  %v763_v49 = vor.u32 %v762_v40, %v758_v37  ;;  %v784_v53 = vshll.u32 %v372_v33, 16  ;;  %v772_v55 = vrot.slane %v770_v44, 4 }
  0x44   : > { %13355 = vmatmul.mubr.msk.bf16.gmra.mrb[12].mxu0 %vm2118_vm3, %v15542_v38  ;;  %v754_v54 = vrot.slane %v753_v42, 4  ;;  %v778_v56 = vrot.slane %v776_v45, 5  ;;  %v783_v57 = vrot.slane %v781_v47, 4  ;;  %v790_v61 = vshll.u32 %v373_v46, 16 }
  0x45   : > { %v764_v6 = vrot.slane %v763_v49, 4  ;;  %v786_v60 = vrot.slane %v784_v53, 5  ;;  %v794_v63 = vshrl.u32 %v373_v46, 16  ;;  %v773_v1 = vor.u32 %v772_v55, %v768_v51  ;;  %v380_v46 = vld [vmem:[%s15414_s30 + $0x98] sm:$0xf] }
  0x46   : > { %v759_v0 = vsel %vm15428_vm4, %v754_v54, %v758_v37  ;;  %v800_v4 = vshll.u32 %v374_v52, 16  ;;  %v804_v8 = vshrl.u32 %v374_v52, 16  ;;  %v792_v58 = vrot.slane %v790_v61, 5 }
  0x47   : > { %v15558_v9 = vcombine.low %v749_v48, %v759_v0  ;;  %v769_v10 = vsel %vm15428_vm4, %v764_v6, %v768_v51  ;;  %v787_v11 = vor.u32 %v786_v60, %v783_v57  ;;  %v774_v13 = vrot.slane %v773_v1, 4  ;;  %v381_v51 = vld [vmem:[%s15414_s30 + $0x9c] sm:$0x1]  ;;  %v382_v57 = vld [vmem:[%s15414_s30 + $0xa0] sm:$0xf] }
  0x48   : > { %v796_v16 = vrot.slane %v794_v63, 4  ;;  %v802_v17 = vrot.slane %v800_v4, 5  ;;  %v806_v18 = vrot.slane %v804_v8, 4  ;;  %v810_v20 = vshll.u32 %v375_v5, 16  ;;  %v15591_v0 = vld [vmem:[%s18776_s2 + $0xc] sm:$0x3] }
  0x49   : > { %19104 = vst [vmem:[#allocation10_spill] sm:$0xff] %v15558_v9  ;;  %13358 = vmatprep.mubr.msk.bf16.mxu0 %vm2118_vm3, %v15558_v9  ;;  %12839 = vmatmul.mubr.msk.bf16.gmra.mrb[16].mxu1 %vm2118_vm3, %v15542_v38  ;;  %v788_v19 = vrot.slane %v787_v11, 4  ;;  %v814_v21 = vshrl.u32 %v375_v5, 16  ;;  %v820_v22 = vshll.u32 %v376_v7, 16  ;;  %v779_v23 = vsel %vm15428_vm4, %v774_v13, %v778_v56  ;;  %v383_v8 = vld [vmem:[%s15414_s30 + $0xa4] sm:$0xf] }
  0x4a   : > { %12842 = vmatprep.mubr.msk.bf16.mxu1 %vm2118_vm3, %v15558_v9  ;;  %v797_v25 = vor.u32 %v796_v16, %v792_v58  ;;  %v807_v26 = vor.u32 %v806_v18, %v802_v17  ;;  %v825_v28 = vshrl.u32 %v377_v12, 16  ;;  %v15572_v29 = vcombine.low %v769_v10, %v779_v23  ;;  %15023 = vmatprep.subr.msk.bf16.mxu0 %vm2311_vm0, %v15591_v0  ;;  %v16402_v38 = vld [vmem:[%s15414_s30 + $0x104] sm:$0xf] }
  0x4b   : > { %v793_v30 = vsel %vm15428_vm4, %v788_v19, %v792_v58  ;;  %v812_v31 = vrot.slane %v810_v20, 5  ;;  %v816_v33 = vrot.slane %v814_v21, 4  ;;  %v822_v39 = vrot.slane %v820_v22, 5  ;;  %v384_v21 = vld [vmem:[%s15414_s30 + $0xa8] sm:$0xf] }
  0x4c   : > { %19105 = vst [vmem:[#allocation11_spill] sm:$0xff] %v15572_v29  ;;  %v798_v36 = vrot.slane %v797_v25, 4  ;;  %v808_v37 = vrot.slane %v807_v26, 4  ;;  %v827_v40 = vrot.slane %v825_v28, 4  ;;  %13359 = vmatmul.mubr.msk.bf16.gmra.mrb[16].mxu0 %vm2118_vm3, %v15572_v29  ;;  %v828_v42 = vshll.u32 %v377_v12, 16 }
  0x4d   : > { %v817_v41 = vor.u32 %v816_v33, %v812_v31  ;;  %v834_v44 = vshll.u32 %v378_v27, 16  ;;  %v838_v45 = vshrl.u32 %v378_v27, 16  ;;  %v844_v49 = vshll.u32 %v379_v35, 16 }
  0x4e   : > { %v803_v47 = vsel %vm15428_vm4, %v798_v36, %v802_v17  ;;  %v813_v48 = vsel %vm15428_vm4, %v808_v37, %v812_v31  ;;  %v848_v52 = vshrl.u32 %v379_v35, 16  ;;  %v830_v55 = vrot.slane %v828_v42, 5  ;;  %v386_v37 = vld [vmem:[%s15414_s30 + $0xb0] sm:$0x1] }
  0x4f   : > { %v15585_v53 = vcombine.low %v793_v30, %v803_v47  ;;  %v818_v54 = vrot.slane %v817_v41, 4  ;;  %v836_v56 = vrot.slane %v834_v44, 5  ;;  %v840_v6 = vrot.slane %v838_v45, 4  ;;  %v385_v30 = vld [vmem:[%s15414_s30 + $0xac] sm:$0xf] }
  0x50   : > { %v846_v60 = vrot.slane %v844_v49, 5  ;;  %v850_v61 = vrot.slane %v848_v52, 4  ;;  %v854_v63 = vshll.u32 %v380_v46, 16  ;;  %v831_v4 = vor.u32 %v830_v55, %v827_v40  ;;  %v388_v55 = vld [vmem:[%s15414_s30 + $0xb8] sm:$0xf] }
  0x51   : > { %19106 = vst [vmem:[#allocation12_spill] sm:$0xff] %v15585_v53  ;;  %13362 = vmatprep.mubr.msk.bf16.mxu0 %vm2118_vm3, %v15585_v53  ;;  %12843 = vmatmul.mubr.msk.bf16.gmra.mrb[20].mxu1 %vm2118_vm3, %v15572_v29  ;;  %v823_v1 = vsel %vm15428_vm4, %v818_v54, %v822_v39  ;;  %v858_v5 = vshrl.u32 %v380_v46, 16  ;;  %v864_v7 = vshll.u32 %v381_v51, 16  ;;  %v841_v11 = vor.u32 %v840_v6, %v836_v56 }
  0x52   : > { %v15600_v10 = vcombine.low %v813_v48, %v823_v1  ;;  %12846 = vmatprep.mubr.msk.bf16.mxu1 %vm2118_vm3, %v15585_v53  ;;  %v851_v58 = vor.u32 %v850_v61, %v846_v60  ;;  %v856_v12 = vrot.slane %v854_v63, 5  ;;  %v832_v13 = vrot.slane %v831_v4, 4  ;;  %v387_v48 = vld [vmem:[%s15414_s30 + $0xb4] sm:$0xf] }
  0x53   : > { %v860_v16 = vrot.slane %v858_v5, 4  ;;  %v866_v17 = vrot.slane %v864_v7, 5  ;;  %v869_v18 = vshrl.u32 %v382_v57, 16  ;;  %v842_v19 = vrot.slane %v841_v11, 4 }
  0x54   : > { %19107 = vst [vmem:[#allocation13_spill] sm:$0xff] %v15600_v10  ;;  %v852_v20 = vrot.slane %v851_v58, 4  ;;  %v872_v22 = vshll.u32 %v382_v57, 16  ;;  %v878_v23 = vshll.u32 %v383_v8, 16  ;;  %13363 = vmatmul.mubr.msk.bf16.gmra.mrb[20].mxu0 %vm2118_vm3, %v15600_v10  ;;  %v837_v25 = vsel %vm15428_vm4, %v832_v13, %v836_v56 }
  0x55   : > { %v861_v26 = vor.u32 %v860_v16, %v856_v12  ;;  %v871_v27 = vrot.slane %v869_v18, 4  ;;  %v882_v28 = vshrl.u32 %v383_v8, 16  ;;  %v847_v31 = vsel %vm15428_vm4, %v842_v19, %v846_v60  ;;  %v389_v8 = vld [vmem:[%s15414_s30 + $0xbc] sm:$0xf]  ;;  %v390_v18 = vld [vmem:[%s15414_s30 + $0xc0] sm:$0xf] }
  0x56   : > { %v857_v33 = vsel %vm15428_vm4, %v852_v20, %v856_v12  ;;  %v874_v35 = vrot.slane %v872_v22, 5  ;;  %v880_v36 = vrot.slane %v878_v23, 5  ;;  %v15617_v39 = vcombine.low %v837_v25, %v847_v31  ;;  %v391_v31 = vld [vmem:[%s15414_s30 + $0xc4] sm:$0x1] }
  0x57   : > { %v862_v40 = vrot.slane %v861_v26, 4  ;;  %v884_v41 = vrot.slane %v882_v28, 4  ;;  %v888_v42 = vshll.u32 %v384_v21, 16  ;;  %v892_v45 = vshrl.u32 %v384_v21, 16 }
  0x58   : > { %19108 = vst [vmem:[#allocation14_spill] sm:$0xff] %v15617_v39  ;;  %v875_v44 = vor.u32 %v874_v35, %v871_v27  ;;  %v898_v46 = vshll.u32 %v385_v30, 16  ;;  %v902_v47 = vshrl.u32 %v385_v30, 16  ;;  %13366 = vmatprep.mubr.msk.bf16.mxu0 %vm2118_vm3, %v15617_v39  ;;  %v908_v54 = vshll.u32 %v386_v37, 16 }
  0x59   : > { %12847 = vmatmul.mubr.msk.bf16.gmra.mrb[24].mxu1 %vm2118_vm3, %v15600_v10  ;;  %v867_v49 = vsel %vm15428_vm4, %v862_v40, %v866_v17  ;;  %v885_v51 = vor.u32 %v884_v41, %v880_v36  ;;  %v890_v52 = vrot.slane %v888_v42, 5  ;;  %v894_v6 = vrot.slane %v892_v45, 4  ;;  %v15178_v10 = vld [vmem:[%s15414_s30 + $0x100] sm:$0x1] }
  0x5a   : > { %v15627_v56 = vcombine.low %v857_v33, %v867_v49  ;;  %12850 = vmatprep.mubr.msk.bf16.mxu1 %vm2118_vm3, %v15617_v39  ;;  %v876_v57 = vrot.slane %v875_v44, 4  ;;  %v900_v60 = vrot.slane %v898_v46, 5  ;;  %v904_v63 = vrot.slane %v902_v47, 4  ;;  %v393_v44 = vld [vmem:[%s15414_s30 + $0xcc] sm:$0xf] }
  0x5b   : > { %v886_v61 = vrot.slane %v885_v51, 4  ;;  %v910_v1 = vrot.slane %v908_v54, 5  ;;  %v913_v4 = vshrl.u32 %v387_v48, 16  ;;  %v895_v7 = vor.u32 %v894_v6, %v890_v52  ;;  %v394_v6 = vld [vmem:[%s15414_s30 + $0xd0] sm:$0xf] }
  0x5c   : > { %19109 = vst [vmem:[#allocation15_spill] sm:$0xff] %v15627_v56  ;;  %v881_v5 = vsel %vm15428_vm4, %v876_v57, %v880_v36  ;;  %v916_v11 = vshll.u32 %v387_v48, 16  ;;  %v922_v58 = vshll.u32 %v388_v55, 16  ;;  %13367 = vmatmul.mubr.msk.bf16.gmra.mrb[24].mxu0 %vm2118_vm3, %v15627_v56  ;;  %v905_v13 = vor.u32 %v904_v63, %v900_v60  ;;  %v392_v36 = vld [vmem:[%s15414_s30 + $0xc8] sm:$0xf] }
  0x5d   : > { %v891_v12 = vsel %vm15428_vm4, %v886_v61, %v890_v52  ;;  %v915_v16 = vrot.slane %v913_v4, 4  ;;  %v926_v17 = vshrl.u32 %v388_v55, 16  ;;  %v896_v20 = vrot.slane %v895_v7, 4  ;;  %v395_v7 = vld [vmem:[%s15414_s30 + $0xd4] sm:$0xf] }
  0x5e   : > { %v15639_v19 = vcombine.low %v881_v5, %v891_v12  ;;  %v918_v21 = vrot.slane %v916_v11, 5  ;;  %v924_v22 = vrot.slane %v922_v58, 5  ;;  %v906_v23 = vrot.slane %v905_v13, 4 }
  0x5f   : > { %v928_v25 = vrot.slane %v926_v17, 4  ;;  %v932_v26 = vshll.u32 %v389_v8, 16  ;;  %v936_v27 = vshrl.u32 %v389_v8, 16  ;;  %v901_v28 = vsel %vm15428_vm4, %v896_v20, %v900_v60 }
  0x60   : > { %19110 = vst [vmem:[#allocation16_spill] sm:$0xff] %v15639_v19  ;;  %13370 = vmatprep.mubr.msk.bf16.mxu0 %vm2118_vm3, %v15639_v19  ;;  %v919_v30 = vor.u32 %v918_v21, %v915_v16  ;;  %v942_v33 = vshll.u32 %v390_v18, 16  ;;  %v946_v35 = vshrl.u32 %v390_v18, 16  ;;  %v911_v37 = vsel %vm15428_vm4, %v906_v23, %v910_v1  ;;  %v396_v18 = vld [vmem:[%s15414_s30 + $0xd8] sm:$0x1] }
  0x61   : > { %12851 = vmatmul.mubr.msk.bf16.gmra.mrb[28].mxu1 %vm2118_vm3, %v15627_v56  ;;  %v929_v40 = vor.u32 %v928_v25, %v924_v22  ;;  %v934_v41 = vrot.slane %v932_v26, 5  ;;  %v938_v42 = vrot.slane %v936_v27, 4  ;;  %v15652_v45 = vcombine.low %v901_v28, %v911_v37  ;;  %v397_v26 = vld [vmem:[%s15414_s30 + $0xdc] sm:$0xf] }
  0x62   : > { %12854 = vmatprep.mubr.msk.bf16.mxu1 %vm2118_vm3, %v15639_v19  ;;  %v920_v46 = vrot.slane %v919_v30, 4  ;;  %v944_v47 = vrot.slane %v942_v33, 5  ;;  %v948_v48 = vrot.slane %v946_v35, 4  ;;  %v952_v52 = vshll.u32 %v391_v31, 16  ;;  %v398_v33 = vld [vmem:[%s15414_s30 + $0xe0] sm:$0xf] }
  0x63   : > { %19111 = vst [vmem:[#allocation17_spill] sm:$0xff] %v15652_v45  ;;  %v930_v49 = vrot.slane %v929_v40, 4  ;;  %v939_v51 = vor.u32 %v938_v42, %v934_v41  ;;  %v957_v54 = vshrl.u32 %v392_v36, 16  ;;  %v960_v60 = vshll.u32 %v392_v36, 16  ;;  %v16353_v19 = vld [vmem:[%s15414_s30 + $0x230] sm:$0xf] }
  0x64   : > { %v925_v55 = vsel %vm15428_vm4, %v920_v46, %v924_v22  ;;  %v949_v57 = vor.u32 %v948_v48, %v944_v47  ;;  %v966_v61 = vshll.u32 %v393_v44, 16  ;;  %13371 = vmatmul.mubr.msk.bf16.gmra.mrb[28].mxu0 %vm2118_vm3, %v15652_v45  ;;  %v954_v4 = vrot.slane %v952_v52, 5 }
  0x65   : > { %v935_v63 = vsel %vm15428_vm4, %v930_v49, %v934_v41  ;;  %v940_v1 = vrot.slane %v939_v51, 4  ;;  %v959_v5 = vrot.slane %v957_v54, 4  ;;  %v962_v58 = vrot.slane %v960_v60, 5 }
  0x66   : > { %v15664_v8 = vcombine.low %v925_v55, %v935_v63  ;;  %v950_v11 = vrot.slane %v949_v57, 4  ;;  %v968_v12 = vrot.slane %v966_v61, 5  ;;  %v970_v16 = vshrl.u32 %v393_v44, 16  ;;  %v399_v44 = vld [vmem:[%s15414_s30 + $0xe4] sm:$0xf] }
  0x67   : > { %v945_v13 = vsel %vm15428_vm4, %v940_v1, %v944_v47  ;;  %v976_v17 = vshll.u32 %v394_v6, 16  ;;  %v980_v20 = vshrl.u32 %v394_v6, 16  ;;  %v963_v22 = vor.u32 %v962_v58, %v959_v5  ;;  %v401_v58 = vld [vmem:[%s15414_s30 + $0xec] sm:$0x1] }
  0x68   : > { %19112 = vst [vmem:[#allocation18_spill] sm:$0xff] %v15664_v8  ;;  %13374 = vmatprep.mubr.msk.bf16.mxu0 %vm2118_vm3, %v15664_v8  ;;  %v955_v21 = vsel %vm15428_vm4, %v950_v11, %v954_v4  ;;  %v986_v23 = vshll.u32 %v395_v7, 16  ;;  %v990_v25 = vshrl.u32 %v395_v7, 16  ;;  %v972_v28 = vrot.slane %v970_v16, 4  ;;  %v400_v4 = vld [vmem:[%s15414_s30 + $0xe8] sm:$0xf] }
  0x69   : > { %12855 = vmatmul.mubr.msk.bf16.gmra.mrb[32].mxu1 %vm2118_vm3, %v15652_v45  ;;  %v15676_v27 = vcombine.low %v945_v13, %v955_v21  ;;  %v978_v30 = vrot.slane %v976_v17, 5  ;;  %v982_v31 = vrot.slane %v980_v20, 4  ;;  %v964_v35 = vrot.slane %v963_v22, 4  ;;  %v402_v13 = vld [vmem:[%s15414_s30 + $0xf0] sm:$0xf] }
  0x6a   : > { %12858 = vmatprep.mubr.msk.bf16.mxu1 %vm2118_vm3, %v15664_v8  ;;  %v988_v36 = vrot.slane %v986_v23, 5  ;;  %v992_v37 = vrot.slane %v990_v25, 4  ;;  %v996_v40 = vshll.u32 %v396_v18, 16  ;;  %v973_v41 = vor.u32 %v972_v28, %v968_v12 }
  0x6b   : > { %19113 = vst [vmem:[#allocation19_spill] sm:$0xff] %v15676_v27  ;;  %v983_v42 = vor.u32 %v982_v31, %v978_v30  ;;  %v1001_v46 = vshrl.u32 %v397_v26, 16  ;;  %v1004_v47 = vshll.u32 %v397_v26, 16  ;;  %v969_v48 = vsel %vm15428_vm4, %v964_v35, %v968_v12  ;;  %v403_v31 = vld [vmem:[%s15414_s30 + $0xf4] sm:$0xf] }
  0x6c   : > { %v993_v49 = vor.u32 %v992_v37, %v988_v36  ;;  %v998_v51 = vrot.slane %v996_v40, 5  ;;  %v1010_v52 = vshll.u32 %v398_v33, 16  ;;  %13375 = vmatmul.mubr.msk.bf16.gmra.mrb[32].mxu0 %vm2118_vm3, %v15676_v27  ;;  %v974_v54 = vrot.slane %v973_v41, 4  ;;  %v404_v40 = vld [vmem:[%s15414_s30 + $0xf8] sm:$0xf] }
  0x6d   : > { %v984_v55 = vrot.slane %v983_v42, 4  ;;  %v1003_v57 = vrot.slane %v1001_v46, 4  ;;  %v1006_v6 = vrot.slane %v1004_v47, 5  ;;  %v1014_v63 = vshrl.u32 %v398_v33, 16 }
  0x6e   : > { %v994_v60 = vrot.slane %v993_v49, 4  ;;  %v1012_v61 = vrot.slane %v1010_v52, 5  ;;  %v1020_v1 = vshll.u32 %v399_v44, 16  ;;  %v979_v5 = vsel %vm15428_vm4, %v974_v54, %v978_v30 }
  0x6f   : > { %v989_v7 = vsel %vm15428_vm4, %v984_v55, %v988_v36  ;;  %v1007_v11 = vor.u32 %v1006_v6, %v1003_v57  ;;  %v1024_v12 = vshrl.u32 %v399_v44, 16  ;;  %v15693_v16 = vcombine.low %v969_v48, %v979_v5  ;;  %v405_v6 = vld [vmem:[%s15414_s30 + $0xfc] sm:$0xf] }
  0x70   : > { %v999_v17 = vsel %vm15428_vm4, %v994_v60, %v998_v51  ;;  %v1016_v18 = vrot.slane %v1014_v63, 4  ;;  %v1022_v20 = vrot.slane %v1020_v1, 5  ;;  %v1030_v25 = vshll.u32 %v400_v4, 16  ;;  %v406_v60 = vld [vmem:[%s15414_s30 + $0x100] sm:$0x1] }
  0x71   : > { %19114 = vst [vmem:[#allocation20_spill] sm:$0xff] %v15693_v16  ;;  %12859 = vmatmul.mubr.msk.bf16.gmra.mrb[36].mxu1 %vm2118_vm3, %v15676_v27  ;;  %v15699_v21 = vcombine.low %v989_v7, %v999_v17  ;;  %v1008_v22 = vrot.slane %v1007_v11, 4  ;;  %v1026_v23 = vrot.slane %v1024_v12, 4  ;;  %13378 = vmatprep.mubr.msk.bf16.mxu0 %vm2118_vm3, %v15693_v16  ;;  %v1034_v28 = vshrl.u32 %v400_v4, 16  ;;  %v407_v7 = vld [vmem:[%s15414_s30 + $0x104] sm:$0xf] }
  0x72   : > { %12862 = vmatprep.mubr.msk.bf16.mxu1 %vm2118_vm3, %v15693_v16  ;;  %v1017_v26 = vor.u32 %v1016_v18, %v1012_v61  ;;  %v1040_v30 = vshll.u32 %v401_v58, 16  ;;  %v1045_v33 = vshrl.u32 %v402_v13, 16  ;;  %v1032_v37 = vrot.slane %v1030_v25, 5  ;;  %v16302_v27 = vld [vmem:[%s15414_s30 + $0x224] sm:$0xf] }
  0x73   : > { %19115 = vst [vmem:[#allocation21_spill] sm:$0xff] %v15699_v21  ;;  %v1013_v35 = vsel %vm15428_vm4, %v1008_v22, %v1012_v61  ;;  %v1027_v36 = vor.u32 %v1026_v23, %v1022_v20  ;;  %v1048_v41 = vshll.u32 %v402_v13, 16  ;;  %v1036_v44 = vrot.slane %v1034_v28, 4  ;;  %v408_v28 = vld [vmem:[%s15414_s30 + $0x108] sm:$0xf] }
  0x74   : > { %v1018_v42 = vrot.slane %v1017_v26, 4  ;;  %v1042_v46 = vrot.slane %v1040_v30, 5  ;;  %v1047_v47 = vrot.slane %v1045_v33, 4  ;;  %13379 = vmatmul.mubr.msk.bf16.gmra.mrb[36].mxu0 %vm2118_vm3, %v15699_v21  ;;  %v1054_v51 = vshll.u32 %v403_v31, 16 }
  0x75   : > { %v1028_v48 = vrot.slane %v1027_v36, 4  ;;  %v1050_v49 = vrot.slane %v1048_v41, 5  ;;  %v1058_v52 = vshrl.u32 %v403_v31, 16  ;;  %v1037_v55 = vor.u32 %v1036_v44, %v1032_v37 }
  0x76   : > { %v1023_v54 = vsel %vm15428_vm4, %v1018_v42, %v1022_v20  ;;  %v1064_v57 = vshll.u32 %v404_v40, 16  ;;  %v1068_v61 = vshrl.u32 %v404_v40, 16  ;;  %v1056_v5 = vrot.slane %v1054_v51, 5  ;;  %v410_v51 = vld [vmem:[%s15414_s30 + $0x110] sm:$0xf] }
  0x77   : > { %v15715_v63 = vcombine.low %v1013_v35, %v1023_v54  ;;  %v1033_v1 = vsel %vm15428_vm4, %v1028_v48, %v1032_v37  ;;  %v1051_v4 = vor.u32 %v1050_v49, %v1047_v47  ;;  %v1038_v11 = vrot.slane %v1037_v55, 4  ;;  %v409_v37 = vld [vmem:[%s15414_s30 + $0x10c] sm:$0xf] }
  0x78   : > { %v1060_v58 = vrot.slane %v1058_v52, 4  ;;  %v1066_v12 = vrot.slane %v1064_v57, 5  ;;  %v1070_v13 = vrot.slane %v1068_v61, 4  ;;  %v1074_v18 = vshll.u32 %v405_v6, 16  ;;  %v411_v57 = vld [vmem:[%s15414_s30 + $0x114] sm:$0x1] }
  0x79   : > { %19116 = vst [vmem:[#allocation22_spill] sm:$0xff] %v15715_v63  ;;  %13382 = vmatprep.mubr.msk.bf16.mxu0 %vm2118_vm3, %v15715_v63  ;;  %12863 = vmatmul.mubr.msk.bf16.gmra.mrb[40].mxu1 %vm2118_vm3, %v15699_v21  ;;  %v1052_v17 = vrot.slane %v1051_v4, 4  ;;  %v1078_v20 = vshrl.u32 %v405_v6, 16  ;;  %v1084_v22 = vshll.u32 %v406_v60, 16  ;;  %v1043_v23 = vsel %vm15428_vm4, %v1038_v11, %v1042_v46 }
  0x7a   : > { %12866 = vmatprep.mubr.msk.bf16.mxu1 %vm2118_vm3, %v15715_v63  ;;  %v1061_v25 = vor.u32 %v1060_v58, %v1056_v5  ;;  %v1071_v26 = vor.u32 %v1070_v13, %v1066_v12  ;;  %v1089_v30 = vshrl.u32 %v407_v7, 16  ;;  %v15729_v31 = vcombine.low %v1033_v1, %v1043_v23  ;;  %v412_v13 = vld [vmem:[%s15414_s30 + $0x118] sm:$0xf] }
  0x7b   : > { %v1057_v33 = vsel %vm15428_vm4, %v1052_v17, %v1056_v5  ;;  %v1076_v35 = vrot.slane %v1074_v18, 5  ;;  %v1080_v36 = vrot.slane %v1078_v20, 4  ;;  %v1086_v42 = vrot.slane %v1084_v22, 5  ;;  %v413_v22 = vld [vmem:[%s15414_s30 + $0x11c] sm:$0xf] }
  0x7c   : > { %19117 = vst [vmem:[#allocation23_spill] sm:$0xff] %v15729_v31  ;;  %v1062_v40 = vrot.slane %v1061_v25, 4  ;;  %v1072_v41 = vrot.slane %v1071_v26, 4  ;;  %v1091_v44 = vrot.slane %v1089_v30, 4  ;;  %13383 = vmatmul.mubr.msk.bf16.gmra.mrb[40].mxu0 %vm2118_vm3, %v15729_v31  ;;  %v1092_v47 = vshll.u32 %v407_v7, 16 }
  0x7d   : > { %v1081_v46 = vor.u32 %v1080_v36, %v1076_v35  ;;  %v1098_v48 = vshll.u32 %v408_v28, 16  ;;  %v1102_v49 = vshrl.u32 %v408_v28, 16  ;;  %v1108_v55 = vshll.u32 %v409_v37, 16 }
  0x7e   : > { %v1067_v52 = vsel %vm15428_vm4, %v1062_v40, %v1066_v12  ;;  %v1077_v54 = vsel %vm15428_vm4, %v1072_v41, %v1076_v35  ;;  %v1112_v6 = vshrl.u32 %v409_v37, 16  ;;  %v1094_v1 = vrot.slane %v1092_v47, 5  ;;  %v414_v41 = vld [vmem:[%s15414_s30 + $0x120] sm:$0xf] }
  0x7f   : > { %v15742_v60 = vcombine.low %v1057_v33, %v1067_v52  ;;  %v1082_v61 = vrot.slane %v1081_v46, 4  ;;  %v1100_v4 = vrot.slane %v1098_v48, 5  ;;  %v1104_v5 = vrot.slane %v1102_v49, 4 }
  0x80   : > { %v1110_v7 = vrot.slane %v1108_v55, 5  ;;  %v1114_v11 = vrot.slane %v1112_v6, 4  ;;  %v1118_v58 = vshll.u32 %v410_v51, 16  ;;  %v1095_v17 = vor.u32 %v1094_v1, %v1091_v44  ;;  %v416_v6 = vld [vmem:[%s15414_s30 + $0x128] sm:$0x1] }
  0x81   : > { %19118 = vst [vmem:[#allocation24_spill] sm:$0xff] %v15742_v60  ;;  %13386 = vmatprep.mubr.msk.bf16.mxu0 %vm2118_vm3, %v15742_v60  ;;  %12867 = vmatmul.mubr.msk.bf16.gmra.mrb[44].mxu1 %vm2118_vm3, %v15729_v31  ;;  %v1087_v12 = vsel %vm15428_vm4, %v1082_v61, %v1086_v42  ;;  %v1122_v18 = vshrl.u32 %v410_v51, 16  ;;  %v1128_v20 = vshll.u32 %v411_v57, 16  ;;  %v1105_v25 = vor.u32 %v1104_v5, %v1100_v4  ;;  %v415_v51 = vld [vmem:[%s15414_s30 + $0x124] sm:$0xf] }
  0x82   : > { %v15752_v23 = vcombine.low %v1077_v54, %v1087_v12  ;;  %12870 = vmatprep.mubr.msk.bf16.mxu1 %vm2118_vm3, %v15742_v60  ;;  %v1115_v26 = vor.u32 %v1114_v11, %v1110_v7  ;;  %v1120_v28 = vrot.slane %v1118_v58, 5  ;;  %v1096_v30 = vrot.slane %v1095_v17, 4  ;;  %v417_v17 = vld [vmem:[%s15414_s30 + $0x12c] sm:$0xf]  ;;  %v15161_v60 = vld [vmem:[%s15414_s30 + $0xbc] sm:$0xf] }
  0x83   : > { %v1124_v33 = vrot.slane %v1122_v18, 4  ;;  %v1130_v35 = vrot.slane %v1128_v20, 5  ;;  %v1133_v36 = vshrl.u32 %v412_v13, 16  ;;  %v1106_v37 = vrot.slane %v1105_v25, 4  ;;  %v418_v25 = vld [vmem:[%s15414_s30 + $0x130] sm:$0xf] }
  0x84   : > { %19119 = vst [vmem:[#allocation25_spill] sm:$0xff] %v15752_v23  ;;  %v1116_v40 = vrot.slane %v1115_v26, 4  ;;  %v1136_v42 = vshll.u32 %v412_v13, 16  ;;  %v1142_v44 = vshll.u32 %v413_v22, 16  ;;  %13387 = vmatmul.mubr.msk.bf16.gmra.mrb[44].mxu0 %vm2118_vm3, %v15752_v23  ;;  %v1101_v46 = vsel %vm15428_vm4, %v1096_v30, %v1100_v4 }
  0x85   : > { %v1125_v47 = vor.u32 %v1124_v33, %v1120_v28  ;;  %v1135_v48 = vrot.slane %v1133_v36, 4  ;;  %v1146_v49 = vshrl.u32 %v413_v22, 16  ;;  %v1111_v52 = vsel %vm15428_vm4, %v1106_v37, %v1110_v7 }
  0x86   : > { %v1121_v54 = vsel %vm15428_vm4, %v1116_v40, %v1120_v28  ;;  %v1138_v55 = vrot.slane %v1136_v42, 5  ;;  %v1144_v57 = vrot.slane %v1142_v44, 5  ;;  %v15767_v61 = vcombine.low %v1101_v46, %v1111_v52  ;;  %v419_v44 = vld [vmem:[%s15414_s30 + $0x134] sm:$0xf] }
  0x87   : > { %v1126_v1 = vrot.slane %v1125_v47, 4  ;;  %v1148_v5 = vrot.slane %v1146_v49, 4  ;;  %v1152_v4 = vshll.u32 %v414_v41, 16  ;;  %v1156_v58 = vshrl.u32 %v414_v41, 16 }
  0x88   : > { %19120 = vst [vmem:[#allocation26_spill] sm:$0xff] %v15767_v61  ;;  %v1139_v11 = vor.u32 %v1138_v55, %v1135_v48  ;;  %v1162_v13 = vshll.u32 %v415_v51, 16  ;;  %v1166_v12 = vshrl.u32 %v415_v51, 16  ;;  %13390 = vmatprep.mubr.msk.bf16.mxu0 %vm2118_vm3, %v15767_v61  ;;  %v1172_v22 = vshll.u32 %v416_v6, 16 }
  0x89   : > { %12871 = vmatmul.mubr.msk.bf16.gmra.mrb[48].mxu1 %vm2118_vm3, %v15752_v23  ;;  %v1131_v7 = vsel %vm15428_vm4, %v1126_v1, %v1130_v35  ;;  %v1149_v18 = vor.u32 %v1148_v5, %v1144_v57  ;;  %v1154_v20 = vrot.slane %v1152_v4, 5  ;;  %v1158_v30 = vrot.slane %v1156_v58, 4 }
  0x8a   : > { %v15777_v26 = vcombine.low %v1121_v54, %v1131_v7  ;;  %12874 = vmatprep.mubr.msk.bf16.mxu1 %vm2118_vm3, %v15767_v61  ;;  %v1140_v28 = vrot.slane %v1139_v11, 4  ;;  %v1164_v33 = vrot.slane %v1162_v13, 5  ;;  %v1168_v37 = vrot.slane %v1166_v12, 4  ;;  %v420_v54 = vld [vmem:[%s15414_s30 + $0x138] sm:$0xf] }
  0x8b   : > { %v1150_v36 = vrot.slane %v1149_v18, 4  ;;  %v1174_v40 = vrot.slane %v1172_v22, 5  ;;  %v1177_v41 = vshrl.u32 %v417_v17, 16  ;;  %v1159_v42 = vor.u32 %v1158_v30, %v1154_v20 }
  0x8c   : > { %19121 = vst [vmem:[#allocation27_spill] sm:$0xff] %v15777_v26  ;;  %v1145_v35 = vsel %vm15428_vm4, %v1140_v28, %v1144_v57  ;;  %v1180_v46 = vshll.u32 %v417_v17, 16  ;;  %v1186_v47 = vshll.u32 %v418_v25, 16  ;;  %13391 = vmatmul.mubr.msk.bf16.gmra.mrb[48].mxu0 %vm2118_vm3, %v15777_v26  ;;  %v1169_v49 = vor.u32 %v1168_v37, %v1164_v33  ;;  %v421_v17 = vld [vmem:[%s15414_s30 + $0x13c] sm:$0x1] }
  0x8d   : > { %v1155_v48 = vsel %vm15428_vm4, %v1150_v36, %v1154_v20  ;;  %v1179_v51 = vrot.slane %v1177_v41, 4  ;;  %v1190_v52 = vshrl.u32 %v418_v25, 16  ;;  %v1160_v6 = vrot.slane %v1159_v42, 4  ;;  %v422_v20 = vld [vmem:[%s15414_s30 + $0x140] sm:$0xf] }
  0x8e   : > { %v15789_v55 = vcombine.low %v1145_v35, %v1155_v48  ;;  %v1182_v57 = vrot.slane %v1180_v46, 5  ;;  %v1188_v1 = vrot.slane %v1186_v47, 5  ;;  %v1170_v5 = vrot.slane %v1169_v49, 4  ;;  %v423_v36 = vld [vmem:[%s15414_s30 + $0x144] sm:$0xf] }
  0x8f   : > { %v1192_v4 = vrot.slane %v1190_v52, 4  ;;  %v1196_v11 = vshll.u32 %v419_v44, 16  ;;  %v1200_v58 = vshrl.u32 %v419_v44, 16  ;;  %v1165_v13 = vsel %vm15428_vm4, %v1160_v6, %v1164_v33  ;;  %v424_v49 = vld [vmem:[%s15414_s30 + $0x148] sm:$0xf] }
  0x90   : > { %19122 = vst [vmem:[#allocation28_spill] sm:$0xff] %v15789_v55  ;;  %13394 = vmatprep.mubr.msk.bf16.mxu0 %vm2118_vm3, %v15789_v55  ;;  %v1183_v12 = vor.u32 %v1182_v57, %v1179_v51  ;;  %v1206_v7 = vshll.u32 %v420_v54, 16  ;;  %v1210_v18 = vshrl.u32 %v420_v54, 16  ;;  %v1175_v22 = vsel %vm15428_vm4, %v1170_v5, %v1174_v40 }
  0x91   : > { %12875 = vmatmul.mubr.msk.bf16.gmra.mrb[52].mxu1 %vm2118_vm3, %v15777_v26  ;;  %v1193_v25 = vor.u32 %v1192_v4, %v1188_v1  ;;  %v1198_v28 = vrot.slane %v1196_v11, 5  ;;  %v1202_v30 = vrot.slane %v1200_v58, 4  ;;  %v15802_v37 = vcombine.low %v1165_v13, %v1175_v22  ;;  %v425_v4 = vld [vmem:[%s15414_s30 + $0x14c] sm:$0xf] }
  0x92   : > { %12878 = vmatprep.mubr.msk.bf16.mxu1 %vm2118_vm3, %v15789_v55  ;;  %v1184_v33 = vrot.slane %v1183_v12, 4  ;;  %v1208_v41 = vrot.slane %v1206_v7, 5  ;;  %v1212_v35 = vrot.slane %v1210_v18, 4  ;;  %v1216_v46 = vshll.u32 %v421_v17, 16  ;;  %v426_v18 = vld [vmem:[%s15414_s30 + $0x150] sm:$0x1] }
  0x93   : > { %19123 = vst [vmem:[#allocation29_spill] sm:$0xff] %v15802_v37  ;;  %v1194_v42 = vrot.slane %v1193_v25, 4  ;;  %v1203_v44 = vor.u32 %v1202_v30, %v1198_v28  ;;  %v1221_v47 = vshrl.u32 %v422_v20, 16  ;;  %v1224_v51 = vshll.u32 %v422_v20, 16  ;;  %v15151_v55 = vld [vmem:[%s15414_s30 + $0x94] sm:$0xf] }
  0x94   : > { %v1189_v40 = vsel %vm15428_vm4, %v1184_v33, %v1188_v1  ;;  %v1213_v48 = vor.u32 %v1212_v35, %v1208_v41  ;;  %v1230_v52 = vshll.u32 %v423_v36, 16  ;;  %13395 = vmatmul.mubr.msk.bf16.gmra.mrb[52].mxu0 %vm2118_vm3, %v15802_v37  ;;  %v1218_v57 = vrot.slane %v1216_v46, 5 }
  0x95   : > { %v1199_v54 = vsel %vm15428_vm4, %v1194_v42, %v1198_v28  ;;  %v1204_v6 = vrot.slane %v1203_v44, 4  ;;  %v1223_v5 = vrot.slane %v1221_v47, 4  ;;  %v1226_v13 = vrot.slane %v1224_v51, 5 }
  0x96   : > { %v15814_v11 = vcombine.low %v1189_v40, %v1199_v54  ;;  %v1214_v58 = vrot.slane %v1213_v48, 4  ;;  %v1232_v1 = vrot.slane %v1230_v52, 5  ;;  %v1234_v17 = vshrl.u32 %v423_v36, 16 }
  0x97   : > { %v1209_v12 = vsel %vm15428_vm4, %v1204_v6, %v1208_v41  ;;  %v1240_v7 = vshll.u32 %v424_v49, 16  ;;  %v1244_v20 = vshrl.u32 %v424_v49, 16  ;;  %v1227_v25 = vor.u32 %v1226_v13, %v1223_v5  ;;  %v427_v49 = vld [vmem:[%s15414_s30 + $0x154] sm:$0xf]  ;;  %v15122_v13 = vld [vmem:[%s15414_s30 + $0x18] sm:$0xf] }
  0x98   : > { %19124 = vst [vmem:[#allocation30_spill] sm:$0xff] %v15814_v11  ;;  %13398 = vmatprep.mubr.msk.bf16.mxu0 %vm2118_vm3, %v15814_v11  ;;  %v1219_v22 = vsel %vm15428_vm4, %v1214_v58, %v1218_v57  ;;  %v1250_v28 = vshll.u32 %v425_v4, 16  ;;  %v1254_v30 = vshrl.u32 %v425_v4, 16  ;;  %v1236_v41 = vrot.slane %v1234_v17, 4  ;;  %v15121_v57 = vld [vmem:[%s15414_s30 + $0x14] sm:$0xf] }
  0x99   : > { %12879 = vmatmul.mubr.msk.bf16.gmra.mrb[56].mxu1 %vm2118_vm3, %v15802_v37  ;;  %v15825_v33 = vcombine.low %v1209_v12, %v1219_v22  ;;  %v1242_v36 = vrot.slane %v1240_v7, 5  ;;  %v1246_v35 = vrot.slane %v1244_v20, 4  ;;  %v1228_v42 = vrot.slane %v1227_v25, 4  ;;  %v15123_v17 = vld [vmem:[%s15414_s30 + $0x1c] sm:$0xf] }
  0x9a   : > { %12882 = vmatprep.mubr.msk.bf16.mxu1 %vm2118_vm3, %v15814_v11  ;;  %v1252_v44 = vrot.slane %v1250_v28, 5  ;;  %v1256_v46 = vrot.slane %v1254_v30, 4  ;;  %v1260_v47 = vshll.u32 %v426_v18, 16  ;;  %v1237_v40 = vor.u32 %v1236_v41, %v1232_v1 }
  0x9b   : > { %19125 = vst [vmem:[#allocation31_spill] sm:$0xff] %v15825_v33  ;;  %v1247_v48 = vor.u32 %v1246_v35, %v1242_v36  ;;  %v1233_v51 = vsel %vm15428_vm4, %v1228_v42, %v1232_v1  ;;  %v19126_v6 = vmov 0  ;;  %v11026_v5 = vrot.slane %v15121_v57, 9  ;;  %v428_v35 = vld [vmem:[%s15414_s30 + $0x158] sm:$0xf] }
  0x9c   : > { %v1257_v52 = vor.u32 %v1256_v46, %v1252_v44  ;;  %v1262_v54 = vrot.slane %v1260_v47, 5  ;;  %v19127_v6 = vsel %vm15832_vm7, 4294967295, %v19126_v6  ;;  %13399 = vmatmul.mubr.msk.bf16.gmra.mrb[56].mxu0 %vm2118_vm3, %v15825_v33  ;;  %v1238_v4 = vrot.slane %v1237_v40, 4  ;;  %v429_v47 = vld [vmem:[%s15414_s30 + $0x15c] sm:$0xf] }
  0x9d   : > { %19128 = vst [vmem:[#allocation32_spill] sm:$0xff] %v19127_v6  ;;  %v1248_v58 = vrot.slane %v1247_v48, 4  ;;  %v3970_v12 = vrot.slane %v15122_v13, 5  ;;  %v3973_v7 = vrot.slane %v15123_v17, 5  ;;  %v3978_v18 = vrot.slane %v3976_v14, 4 }
  0x9e   : > { %v1258_v1 = vrot.slane %v1257_v52, 4  ;;  %v15845_v20 = vsel %vm2311_vm0, %v15591_v0, 0  ;;  %v1265_v22 = vshrl.u32 %v427_v49, 16  ;;  %v1243_v25 = vsel %vm15428_vm4, %v1238_v4, %v1242_v36  ;;  %v430_v57 = vld [vmem:[%s15414_s30 + $0x160] sm:$0xf] }
  0x9f   : > { %v1253_v28 = vsel %vm15428_vm4, %v1248_v58, %v1252_v44  ;;  %v3971_v30 = vsel %vm15832_vm7, %v11026_v5, %v3970_v12  ;;  %v3972_v41 = vrot.slane %v3970_v12, 4  ;;  %v15854_v42 = vcombine.low %v1233_v51, %v1243_v25  ;;  %v15124_v58 = vld [vmem:[%s15414_s30 + $0x28] sm:$0xf] }
  0xa0   : > { %v1263_v46 = vsel %vm15428_vm4, %v1258_v1, %v1262_v54  ;;  %v3975_v0 = vrot.slane %v3973_v7, 4  ;;  %v3980_v36 = vsel %vm15832_vm7, %v3978_v18, %v3979_v15  ;;  %v1267_v48 = vrot.slane %v1265_v22, 4  ;;  %v15126_v18 = vld [vmem:[%s15414_s30 + $0x30] sm:$0xf] }
  0xa1   : > { %19129 = vst [vmem:[#allocation33_spill] sm:$0xff] %v15854_v42  ;;  %12883 = vmatmul.mubr.msk.bf16.gmra.mrb[60].mxu1 %vm2118_vm3, %v15825_v33  ;;  %v15865_v44 = vcombine.low %v1253_v28, %v1263_v46  ;;  %v3974_v40 = vsel %vm15832_vm7, %v3972_v41, %v3973_v7  ;;  %v1268_v51 = vshll.u32 %v427_v49, 16  ;;  %13402 = vmatprep.mubr.msk.bf16.mxu0 %vm2118_vm3, %v15854_v42  ;;  %v1274_v52 = vshll.u32 %v428_v35, 16  ;;  %v15125_v7 = vld [vmem:[%s15414_s30 + $0x2c] sm:$0xf] }
  0xa2   : > { %12886 = vmatprep.mubr.msk.bf16.mxu1 %vm2118_vm3, %v15854_v42  ;;  %v15873_v62 = vcombine.low %v3971_v30, %v3974_v40  ;;  %v3977_v15 = vsel %vm15832_vm7, %v3975_v0, %v3976_v14  ;;  %v1278_v54 = vshrl.u32 %v428_v35, 16  ;;  %v1284_v4 = vshll.u32 %v429_v47, 16  ;;  %v15141_v42 = vld [vmem:[%s15414_s30 + $0x6c] sm:$0xf] }
  0xa3   : > { %19130 = vst [vmem:[#allocation34_spill] sm:$0xff] %v15865_v44  ;;  %v15880_v5 = vcombine.low %v3977_v15, %v3980_v36  ;;  %v1270_v49 = vrot.slane %v1268_v51, 5  ;;  %v11027_v13 = vrot.slane %v15124_v58, 9  ;;  %v1276_v12 = vrot.slane %v1274_v52, 5 }
  0xa4   : > { %19131 = vst [vmem:[#allocation35_spill] sm:$0xff] %v15873_v62  ;;  %v1280_v17 = vrot.slane %v1278_v54, 4  ;;  %v3983_v1 = vrot.slane %v15125_v7, 5  ;;  %v3986_v22 = vrot.slane %v15126_v18, 5  ;;  %13403 = vmatmul.mubr.msk.bf16.gmra.mrb[60].mxu0 %vm2118_vm3, %v15865_v44  ;;  %v1286_v25 = vrot.slane %v1284_v4, 5 }
  0xa5   : > { %19132 = vst [vmem:[#allocation36_spill] sm:$0xff] %v15880_v5  ;;  %v1271_v14 = vor.u32 %v1270_v49, %v1267_v48  ;;  %v1288_v28 = vshrl.u32 %v429_v47, 16  ;;  %v1294_v30 = vshll.u32 %v430_v57, 16  ;;  %13472 = vmatprep.mubr.msk.bf16.mxu0 %vm2118_vm3, %v15873_v62  ;;  %v1298_v0 = vshrl.u32 %v430_v57, 16  ;;  %v432_v49 = vld [vmem:[%s15414_s30 + $0x168] sm:$0xf] }
  0xa6   : > { %v1281_v41 = vor.u32 %v1280_v17, %v1276_v12  ;;  %v3984_v35 = vsel %vm15832_vm7, %v11027_v13, %v3983_v1  ;;  %v3985_v46 = vrot.slane %v3983_v1, 4  ;;  %v1304_v15 = vshll.u32 %v431_v50, 16  ;;  %v433_v17 = vld [vmem:[%s15414_s30 + $0x16c] sm:$0xf]  ;;  %v15127_v18 = vld [vmem:[%s15414_s30 + $0x34] sm:$0xf] }
  0xa7   : > { %v1272_v36 = vrot.slane %v1271_v14, 4  ;;  %v1290_v40 = vrot.slane %v1288_v28, 4  ;;  %v1296_v51 = vrot.slane %v1294_v30, 5  ;;  %v1300_v52 = vrot.slane %v1298_v0, 4 }
  0xa8   : > { %v1282_v48 = vrot.slane %v1281_v41, 4  ;;  %v3987_v47 = vsel %vm15832_vm7, %v3985_v46, %v3986_v22  ;;  %v3988_v54 = vrot.slane %v3986_v22, 4  ;;  %v1306_v13 = vrot.slane %v1304_v15, 5  ;;  %v15128_v22 = vld [vmem:[%s15414_s30 + $0x38] sm:$0x1] }
  0xa9   : > { %12887 = vmatmul.mubr.msk.bf16.gmra.mrb[64].mxu1 %vm2118_vm3, %v15865_v44  ;;  %v1277_v57 = vsel %vm15428_vm4, %v1272_v36, %v1276_v12  ;;  %v15899_v4 = vcombine.low %v3984_v35, %v3987_v47  ;;  %v1291_v58 = vor.u32 %v1290_v40, %v1286_v25  ;;  %v1301_v1 = vor.u32 %v1300_v52, %v1296_v51  ;;  %v434_v41 = vld [vmem:[%s15414_s30 + $0x170] sm:$0xf] }
  0xaa   : > { %v1287_v7 = vsel %vm15428_vm4, %v1282_v48, %v1286_v25  ;;  %v3989_v50 = vrot.slane %v15127_v18, 5  ;;  %v3992_v14 = vrot.slane %v15128_v22, 5  ;;  %v1309_v46 = vshrl.u32 %v432_v49, 16 }
  0xab   : > { %19133 = vst [vmem:[#allocation37_spill] sm:$0xff] %v15899_v4  ;;  %v15906_v28 = vcombine.low %v1277_v57, %v1287_v7  ;;  %v1292_v30 = vrot.slane %v1291_v58, 4  ;;  %v1312_v0 = vshll.u32 %v432_v49, 16  ;;  %v1302_v12 = vrot.slane %v1301_v1, 4 }
  0xac   : > { %v3990_v35 = vsel %vm15832_vm7, %v3988_v54, %v3989_v50  ;;  %v3991_v36 = vrot.slane %v3989_v50, 4  ;;  %v1318_v40 = vshll.u32 %v433_v17, 16  ;;  %13473 = vmatmul.mubr.msk.bf16.vlgmr.msra.gmra.mrb[0].mxu0 %vm2118_vm3, %v15880_v5  ;;  %v1311_v15 = vrot.slane %v1309_v46, 4  ;;  %v15129_v50 = vld [vmem:[%s15414_s30 + $0x3c] sm:$0xf] }
  0xad   : > { %19134 = vst [vmem:[#allocation38_spill] sm:$0xff] %v15906_v28  ;;  %12890 = vmatprep.mubr.msk.bf16.mxu1 %vm2118_vm3, %v15906_v28  ;;  %v1297_v25 = vsel %vm15428_vm4, %v1292_v30, %v1296_v51  ;;  %v1314_v48 = vrot.slane %v1312_v0, 5  ;;  %v1322_v47 = vshrl.u32 %v433_v17, 16  ;;  %13601 = vmatpush3.bf16.msra.mxu0 %v15845_v20  ;;  %v1307_v52 = vsel %vm15428_vm4, %v1302_v12, %v1306_v13  ;;  %v435_v51 = vld [vmem:[%s15414_s30 + $0x174] sm:$0xf] }
  0xae   : > { %13476 = vmatprep.mubr.msk.bf16.mxu0 %vm2118_vm3, %v15899_v4  ;;  %v3993_v54 = vsel %vm15832_vm7, %v3991_v36, %v3992_v14  ;;  %v1320_v49 = vrot.slane %v1318_v40, 5  ;;  %v1328_v57 = vshll.u32 %v434_v41, 16  ;;  %v15925_v58 = vcombine.low %v1297_v25, %v1307_v52  ;;  %v436_v20 = vld [vmem:[%s15414_s30 + $0x178] sm:$0x1]  ;;  %v15130_v30 = vld [vmem:[%s15414_s30 + $0x40] sm:$0xf] }
  0xaf   : > { %v15927_v7 = vcombine.low %v3990_v35, %v3993_v54  ;;  %v1315_v17 = vor.u32 %v1314_v48, %v1311_v15  ;;  %v1324_v1 = vrot.slane %v1322_v47, 4  ;;  %v11028_v22 = vrot.slane %v15129_v50, 9  ;;  %v15131_v13 = vld [vmem:[%s15414_s30 + $0x44] sm:$0xf]  ;;  %v437_v50 = vld [vmem:[%s15414_s30 + $0x17c] sm:$0xf] }
  0xb0   : > { %19135 = vst [vmem:[#allocation39_spill] sm:$0xff] %v15925_v58  ;;  %v1330_v18 = vrot.slane %v1328_v57, 5  ;;  %v3996_v46 = vrot.slane %v15130_v30, 5  ;;  %v3999_v0 = vrot.slane %v15131_v13, 5  ;;  %v1332_v36 = vshrl.u32 %v434_v41, 16 }
  0xb1   : > { %19136 = vst [vmem:[#allocation40_spill] sm:$0xff] %v15927_v7  ;;  %12891 = vmatmul.mubr.msk.bf16.gmra.mrb[68].mxu1 %vm2118_vm3, %v15925_v58  ;;  %v1316_v14 = vrot.slane %v1315_v17, 4  ;;  %v1325_v12 = vor.u32 %v1324_v1, %v1320_v49  ;;  %v1338_v40 = vshll.u32 %v435_v51, 16  ;;  %v1342_v15 = vshrl.u32 %v435_v51, 16  ;;  %v15132_v30 = vld [vmem:[%s15414_s30 + $0x48] sm:$0xf] }
  0xb2   : > { %v3997_v35 = vsel %vm15832_vm7, %v11028_v22, %v3996_v46  ;;  %v3998_v25 = vrot.slane %v3996_v46, 4  ;;  %v1348_v48 = vshll.u32 %v436_v20, 16  ;;  %v1334_v54 = vrot.slane %v1332_v36, 4  ;;  %v438_v13 = vld [vmem:[%s15414_s30 + $0x180] sm:$0xf] }
  0xb3   : > { %v1321_v47 = vsel %vm15428_vm4, %v1316_v14, %v1320_v49  ;;  %v1326_v52 = vrot.slane %v1325_v12, 4  ;;  %v1340_v57 = vrot.slane %v1338_v40, 5  ;;  %v1344_v17 = vrot.slane %v1342_v15, 4  ;;  %v15133_v36 = vld [vmem:[%s15414_s30 + $0x4c] sm:$0x1] }
  0xb4   : > { %v4000_v41 = vsel %vm15832_vm7, %v3998_v25, %v3999_v0  ;;  %v1350_v1 = vrot.slane %v1348_v48, 5  ;;  %v4001_v22 = vrot.slane %v3999_v0, 4  ;;  %13477 = vmatmul.mubr.msk.bf16.gmra.mrb[4].mxu0 %vm2118_vm3, %v15927_v7  ;;  %v1335_v49 = vor.u32 %v1334_v54, %v1330_v18  ;;  %v439_v25 = vld [vmem:[%s15414_s30 + $0x184] sm:$0xf]  ;;  %v15193_v7 = vld [vmem:[%s15414_s30 + $0x13c] sm:$0x1] }
  0xb5   : > { %v1331_v51 = vsel %vm15428_vm4, %v1326_v52, %v1330_v18  ;;  %v15946_v20 = vcombine.low %v3997_v35, %v4000_v41  ;;  %v4002_v46 = vrot.slane %v15132_v30, 5  ;;  %v1345_v12 = vor.u32 %v1344_v17, %v1340_v57  ;;  %v16616_v4 = vld [vmem:[%s15414_s30 + $0x27c] sm:$0x1] }
  0xb6   : > { %v15950_v14 = vcombine.low %v1321_v47, %v1331_v51  ;;  %v4005_v40 = vrot.slane %v15133_v36, 5  ;;  %v1353_v15 = vshrl.u32 %v437_v50, 16  ;;  %v1336_v0 = vrot.slane %v1335_v49, 4  ;;  %v440_v36 = vld [vmem:[%s15414_s30 + $0x188] sm:$0xf] }
  0xb7   : > { %19137 = vst [vmem:[#allocation41_spill] sm:$0xff] %v15946_v20  ;;  %13480 = vmatprep.mubr.msk.bf16.mxu0 %vm2118_vm3, %v15946_v20  ;;  %v4003_v48 = vsel %vm15832_vm7, %v4001_v22, %v4002_v46  ;;  %v4004_v35 = vrot.slane %v4002_v46, 4  ;;  %v1356_v18 = vshll.u32 %v437_v50, 16  ;;  %v1346_v47 = vrot.slane %v1345_v12, 4 }
  0xb8   : > { %19138 = vst [vmem:[#allocation42_spill] sm:$0xff] %v15950_v14  ;;  %12894 = vmatprep.mubr.msk.bf16.mxu1 %vm2118_vm3, %v15950_v14  ;;  %v1355_v52 = vrot.slane %v1353_v15, 4  ;;  %v1362_v54 = vshll.u32 %v438_v13, 16  ;;  %v1366_v41 = vshrl.u32 %v438_v13, 16  ;;  %v1341_v17 = vsel %vm15428_vm4, %v1336_v0, %v1340_v57  ;;  %v441_v15 = vld [vmem:[%s15414_s30 + $0x18c] sm:$0x1] }
  0xb9   : > { %v4006_v51 = vsel %vm15832_vm7, %v4004_v35, %v4005_v40  ;;  %v1358_v22 = vrot.slane %v1356_v18, 5  ;;  %v1372_v49 = vshll.u32 %v439_v25, 16  ;;  %v1351_v50 = vsel %vm15428_vm4, %v1346_v47, %v1350_v1  ;;  %v15134_v0 = vld [vmem:[%s15414_s30 + $0x50] sm:$0xf]  ;;  %v15135_v40 = vld [vmem:[%s15414_s30 + $0x54] sm:$0xf] }
  0xba   : > { %v15966_v30 = vcombine.low %v4003_v48, %v4006_v51  ;;  %v1364_v46 = vrot.slane %v1362_v54, 5  ;;  %v1368_v12 = vrot.slane %v1366_v41, 4  ;;  %v15970_v13 = vcombine.low %v1341_v17, %v1351_v50  ;;  %v15136_v18 = vld [vmem:[%s15414_s30 + $0x58] sm:$0xf] }
  0xbb   : > { %v1359_v3 = vor.u32 %v1358_v22, %v1355_v52  ;;  %v1374_v57 = vrot.slane %v1372_v49, 5  ;;  %v11029_v14 = vrot.slane %v15134_v0, 9  ;;  %v4009_v35 = vrot.slane %v15135_v40, 5  ;;  %v15137_v40 = vld [vmem:[%s15414_s30 + $0x5c] sm:$0xf] }
  0xbc   : > { %19139 = vst [vmem:[#allocation43_spill] sm:$0xff] %v15966_v30  ;;  %19140 = vst [vmem:[#allocation44_spill] sm:$0xff] %v15970_v13  ;;  %v1369_v58 = vor.u32 %v1368_v12, %v1364_v46  ;;  %v4012_v28 = vrot.slane %v15136_v18, 5  ;;  %v1376_v44 = vshrl.u32 %v439_v25, 16  ;;  %12895 = vmatmul.mubr.msk.bf16.gmra.mrb[72].mxu1 %vm2118_vm3, %v15970_v13  ;;  %13481 = vmatmul.mubr.msk.bf16.gmra.mrb[8].mxu0 %vm2118_vm3, %v15966_v30  ;;  %v1382_v48 = vshll.u32 %v440_v36, 16 }
  0xbd   : > { %v1360_v1 = vrot.slane %v1359_v3, 4  ;;  %v1386_v47 = vshrl.u32 %v440_v36, 16  ;;  %v1392_v52 = vshll.u32 %v441_v15, 16  ;;  %v4010_v41 = vsel %vm15832_vm7, %v11029_v14, %v4009_v35  ;;  %v442_v3 = vld [vmem:[%s15414_s30 + $0x190] sm:$0xf] }
  0xbe   : > { %v1370_v54 = vrot.slane %v1369_v58, 4  ;;  %v4011_v17 = vrot.slane %v4009_v35, 4  ;;  %v1378_v51 = vrot.slane %v1376_v44, 4  ;;  %v1384_v22 = vrot.slane %v1382_v48, 5  ;;  %v443_v15 = vld [vmem:[%s15414_s30 + $0x194] sm:$0xf] }
  0xbf   : > { %v1365_v25 = vsel %vm15428_vm4, %v1360_v1, %v1364_v46  ;;  %v1388_v49 = vrot.slane %v1386_v47, 4  ;;  %v1394_v50 = vrot.slane %v1392_v52, 5  ;;  %v4014_v14 = vrot.slane %v4012_v28, 4  ;;  %v15138_v1 = vld [vmem:[%s15414_s30 + $0x60] sm:$0x1] }
  0xc0   : > { %v1375_v12 = vsel %vm15428_vm4, %v1370_v54, %v1374_v57  ;;  %v4013_v58 = vsel %vm15832_vm7, %v4011_v17, %v4012_v28  ;;  %v1379_v36 = vor.u32 %v1378_v51, %v1374_v57  ;;  %v4015_v35 = vrot.slane %v15137_v40, 5  ;;  %v444_v47 = vld [vmem:[%s15414_s30 + $0x198] sm:$0xf] }
  0xc1   : > { %v15989_v0 = vcombine.low %v1365_v25, %v1375_v12  ;;  %v15991_v44 = vcombine.low %v4010_v41, %v4013_v58  ;;  %v1389_v46 = vor.u32 %v1388_v49, %v1384_v22  ;;  %v4018_v48 = vrot.slane %v15138_v1, 5 }
  0xc2   : > { %v1380_v18 = vrot.slane %v1379_v36, 4  ;;  %v1397_v52 = vshrl.u32 %v442_v3, 16  ;;  %v1400_v54 = vshll.u32 %v442_v3, 16  ;;  %v4016_v57 = vsel %vm15832_vm7, %v4014_v14, %v4015_v35 }
  0xc3   : > { %19141 = vst [vmem:[#allocation45_spill] sm:$0xff] %v15989_v0  ;;  %19142 = vst [vmem:[#allocation46_spill] sm:$0xff] %v15991_v44  ;;  %12898 = vmatprep.mubr.msk.bf16.mxu1 %vm2118_vm3, %v15989_v0  ;;  %13484 = vmatprep.mubr.msk.bf16.mxu0 %vm2118_vm3, %v15991_v44  ;;  %v1390_v28 = vrot.slane %v1389_v46, 4  ;;  %v4017_v41 = vrot.slane %v4015_v35, 4  ;;  %v1406_v17 = vshll.u32 %v443_v15, 16  ;;  %v1410_v3 = vshrl.u32 %v443_v15, 16 }
  0xc4   : > { %v1385_v51 = vsel %vm15428_vm4, %v1380_v18, %v1384_v22  ;;  %v1399_v25 = vrot.slane %v1397_v52, 4  ;;  %v1402_v49 = vrot.slane %v1400_v54, 5  ;;  %v1416_v14 = vshll.u32 %v444_v47, 16  ;;  %v445_v46 = vld [vmem:[%s15414_s30 + $0x19c] sm:$0xf] }
  0xc5   : > { %v1395_v12 = vsel %vm15428_vm4, %v1390_v28, %v1394_v50  ;;  %v4019_v58 = vsel %vm15832_vm7, %v4017_v41, %v4018_v48  ;;  %v1408_v36 = vrot.slane %v1406_v17, 5  ;;  %v1412_v22 = vrot.slane %v1410_v3, 4  ;;  %v446_v18 = vld [vmem:[%s15414_s30 + $0x1a0] sm:$0x1]  ;;  %v15139_v54 = vld [vmem:[%s15414_s30 + $0x64] sm:$0xf] }
  0xc6   : > { %v16009_v40 = vcombine.low %v1385_v51, %v1395_v12  ;;  %v16011_v35 = vcombine.low %v4016_v57, %v4019_v58  ;;  %v1403_v1 = vor.u32 %v1402_v49, %v1399_v25  ;;  %v1418_v52 = vrot.slane %v1416_v14, 5  ;;  %v15140_v0 = vld [vmem:[%s15414_s30 + $0x68] sm:$0xf]  ;;  %v447_v58 = vld [vmem:[%s15414_s30 + $0x1a4] sm:$0xf] }
  0xc7   : > { %v11030_v15 = vrot.slane %v15139_v54, 9  ;;  %v4022_v13 = vrot.slane %v15140_v0, 5  ;;  %v4025_v50 = vrot.slane %v15141_v42, 5  ;;  %v1413_v28 = vor.u32 %v1412_v22, %v1408_v36  ;;  %v15142_v54 = vld [vmem:[%s15414_s30 + $0x70] sm:$0xf] }
  0xc8   : > { %19143 = vst [vmem:[#allocation47_spill] sm:$0xff] %v16009_v40  ;;  %19144 = vst [vmem:[#allocation48_spill] sm:$0xff] %v16011_v35  ;;  %12899 = vmatmul.mubr.msk.bf16.gmra.mrb[76].mxu1 %vm2118_vm3, %v16009_v40  ;;  %13485 = vmatmul.mubr.msk.bf16.gmra.mrb[12].mxu0 %vm2118_vm3, %v16011_v35  ;;  %v1404_v48 = vrot.slane %v1403_v1, 4  ;;  %v1420_v57 = vshrl.u32 %v444_v47, 16  ;;  %v1426_v41 = vshll.u32 %v445_v46, 16  ;;  %v1430_v25 = vshrl.u32 %v445_v46, 16 }
  0xc9   : > { %v4023_v17 = vsel %vm15832_vm7, %v11030_v15, %v4022_v13  ;;  %v4024_v51 = vrot.slane %v4022_v13, 4  ;;  %v1436_v0 = vshll.u32 %v446_v18, 16  ;;  %v1414_v49 = vrot.slane %v1413_v28, 4  ;;  %v448_v15 = vld [vmem:[%s15414_s30 + $0x1a8] sm:$0xf] }
  0xca   : > { %v1409_v42 = vsel %vm15428_vm4, %v1404_v48, %v1408_v36  ;;  %v1422_v3 = vrot.slane %v1420_v57, 4  ;;  %v1428_v12 = vrot.slane %v1426_v41, 5  ;;  %v1432_v14 = vrot.slane %v1430_v25, 4  ;;  %v15143_v57 = vld [vmem:[%s15414_s30 + $0x74] sm:$0x1] }
  0xcb   : > { %v4026_v47 = vsel %vm15832_vm7, %v4024_v51, %v4025_v50  ;;  %v1438_v1 = vrot.slane %v1436_v0, 5  ;;  %v4027_v22 = vrot.slane %v4025_v50, 4  ;;  %v1419_v13 = vsel %vm15428_vm4, %v1414_v49, %v1418_v52  ;;  %v449_v40 = vld [vmem:[%s15414_s30 + $0x1ac] sm:$0xf] }
  0xcc   : > { %v16030_v46 = vcombine.low %v4023_v17, %v4026_v47  ;;  %v1423_v18 = vor.u32 %v1422_v3, %v1418_v52  ;;  %v4028_v36 = vrot.slane %v15142_v54, 5  ;;  %v16034_v48 = vcombine.low %v1409_v42, %v1419_v13  ;;  %v450_v54 = vld [vmem:[%s15414_s30 + $0x1b0] sm:$0xf] }
  0xcd   : > { %v1433_v28 = vor.u32 %v1432_v14, %v1428_v12  ;;  %v4031_v41 = vrot.slane %v15143_v57, 5  ;;  %v1441_v33 = vshrl.u32 %v447_v58, 16  ;;  %v1444_v52 = vshll.u32 %v447_v58, 16  ;;  %v15144_v57 = vld [vmem:[%s15414_s30 + $0x78] sm:$0xf] }
  0xce   : > { %19145 = vst [vmem:[#allocation49_spill] sm:$0xff] %v16030_v46  ;;  %19146 = vst [vmem:[#allocation50_spill] sm:$0xff] %v16034_v48  ;;  %13488 = vmatprep.mubr.msk.bf16.mxu0 %vm2118_vm3, %v16030_v46  ;;  %v1424_v50 = vrot.slane %v1423_v18, 4  ;;  %v4029_v51 = vsel %vm15832_vm7, %v4027_v22, %v4028_v36  ;;  %v4030_v17 = vrot.slane %v4028_v36, 4  ;;  %12902 = vmatprep.mubr.msk.bf16.mxu1 %vm2118_vm3, %v16034_v48  ;;  %v1450_v42 = vshll.u32 %v448_v15, 16 }
  0xcf   : > { %v1434_v25 = vrot.slane %v1433_v28, 4  ;;  %v1443_v0 = vrot.slane %v1441_v33, 4  ;;  %v1454_v49 = vshrl.u32 %v448_v15, 16  ;;  %v1446_v14 = vrot.slane %v1444_v52, 5  ;;  %v451_v36 = vld [vmem:[%s15414_s30 + $0x1b4] sm:$0x1] }
  0xd0   : > { %v1429_v3 = vsel %vm15428_vm4, %v1424_v50, %v1428_v12  ;;  %v4032_v47 = vsel %vm15832_vm7, %v4030_v17, %v4031_v41  ;;  %v1460_v22 = vshll.u32 %v449_v40, 16  ;;  %v1452_v18 = vrot.slane %v1450_v42, 5  ;;  %v15145_v17 = vld [vmem:[%s15414_s30 + $0x7c] sm:$0xf]  ;;  %v15146_v48 = vld [vmem:[%s15414_s30 + $0x80] sm:$0xf] }
  0xd1   : > { %v1439_v58 = vsel %vm15428_vm4, %v1434_v25, %v1438_v1  ;;  %v16050_v13 = vcombine.low %v4029_v51, %v4032_v47  ;;  %v1456_v33 = vrot.slane %v1454_v49, 4  ;;  %v1447_v28 = vor.u32 %v1446_v14, %v1443_v0  ;;  %v11057_v25 = vld [vmem:[%s18776_s2 + $0x4] sm:$0x3] }
  0xd2   : > { %v16054_v15 = vcombine.low %v1429_v3, %v1439_v58  ;;  %v1462_v12 = vrot.slane %v1460_v22, 5  ;;  %v11031_v50 = vrot.slane %v15144_v57, 9  ;;  %v4035_v52 = vrot.slane %v15145_v17, 5  ;;  %15018 = vmatprep.subr.msk.bf16.mxu1 %vm2311_vm0, %v11057_v25  ;;  %v453_v17 = vld [vmem:[%s15414_s30 + $0x1bc] sm:$0xf] }
  0xd3   : > { %19147 = vst [vmem:[#allocation51_spill] sm:$0xff] %v16050_v13  ;;  %13489 = vmatmul.mubr.msk.bf16.gmra.mrb[16].mxu0 %vm2118_vm3, %v16050_v13  ;;  %v1457_v41 = vor.u32 %v1456_v33, %v1452_v18  ;;  %v4038_v1 = vrot.slane %v15146_v48, 5  ;;  %v1464_v51 = vshrl.u32 %v449_v40, 16  ;;  %v1448_v0 = vrot.slane %v1447_v28, 4  ;;  %v15147_v25 = vld [vmem:[%s15414_s30 + $0x84] sm:$0xf] }
  0xd4   : > { %19148 = vst [vmem:[#allocation52_spill] sm:$0xff] %v16054_v15  ;;  %12903 = vmatmul.mubr.msk.bf16.gmra.mrb[80].mxu1 %vm2118_vm3, %v16054_v15  ;;  %v1470_v42 = vshll.u32 %v450_v54, 16  ;;  %v1474_v49 = vshrl.u32 %v450_v54, 16  ;;  %v1480_v3 = vshll.u32 %v451_v36, 16  ;;  %v4036_v48 = vsel %vm15832_vm7, %v11031_v50, %v4035_v52  ;;  %v452_v54 = vld [vmem:[%s15414_s30 + $0x1b8] sm:$0xf] }
  0xd5   : > { %v1458_v47 = vrot.slane %v1457_v41, 4  ;;  %v4037_v40 = vrot.slane %v4035_v52, 4  ;;  %v1466_v14 = vrot.slane %v1464_v51, 4  ;;  %v1453_v22 = vsel %vm15428_vm4, %v1448_v0, %v1452_v18  ;;  %v454_v15 = vld [vmem:[%s15414_s30 + $0x1c0] sm:$0xf] }
  0xd6   : > { %v1472_v58 = vrot.slane %v1470_v42, 5  ;;  %v1476_v33 = vrot.slane %v1474_v49, 4  ;;  %v1482_v28 = vrot.slane %v1480_v3, 5  ;;  %v4040_v50 = vrot.slane %v4038_v1, 4  ;;  %v15148_v49 = vld [vmem:[%s15414_s30 + $0x88] sm:$0x1] }
  0xd7   : > { %v1463_v36 = vsel %vm15428_vm4, %v1458_v47, %v1462_v12  ;;  %v4039_v57 = vsel %vm15832_vm7, %v4037_v40, %v4038_v1  ;;  %v1467_v41 = vor.u32 %v1466_v14, %v1462_v12  ;;  %v4041_v0 = vrot.slane %v15147_v25, 5  ;;  %v16572_v13 = vld [vmem:[%s15414_s30 + $0x26c] sm:$0xf] }
  0xd8   : > { %v16077_v52 = vcombine.low %v1453_v22, %v1463_v36  ;;  %v16079_v51 = vcombine.low %v4036_v48, %v4039_v57  ;;  %v1477_v18 = vor.u32 %v1476_v33, %v1472_v58  ;;  %v4044_v3 = vrot.slane %v15148_v49, 5 }
  0xd9   : > { %v1468_v42 = vrot.slane %v1467_v41, 4  ;;  %v1485_v11 = vshrl.u32 %v452_v54, 16  ;;  %v1488_v47 = vshll.u32 %v452_v54, 16  ;;  %v4042_v1 = vsel %vm15832_vm7, %v4040_v50, %v4041_v0 }
  0xda   : > { %19149 = vst [vmem:[#allocation53_spill] sm:$0xff] %v16077_v52  ;;  %19150 = vst [vmem:[#allocation54_spill] sm:$0xff] %v16079_v51  ;;  %12906 = vmatprep.mubr.msk.bf16.mxu1 %vm2118_vm3, %v16077_v52  ;;  %13492 = vmatprep.mubr.msk.bf16.mxu0 %vm2118_vm3, %v16079_v51  ;;  %v1478_v12 = vrot.slane %v1477_v18, 4  ;;  %v4043_v48 = vrot.slane %v4041_v0, 4  ;;  %v1494_v40 = vshll.u32 %v453_v17, 16  ;;  %v1498_v54 = vshrl.u32 %v453_v17, 16 }
  0xdb   : > { %v1473_v14 = vsel %vm15428_vm4, %v1468_v42, %v1472_v58  ;;  %v1487_v22 = vrot.slane %v1485_v11, 4  ;;  %v1490_v33 = vrot.slane %v1488_v47, 5  ;;  %v1504_v50 = vshll.u32 %v454_v15, 16  ;;  %v455_v18 = vld [vmem:[%s15414_s30 + $0x1c4] sm:$0xf] }
  0xdc   : > { %v1483_v36 = vsel %vm15428_vm4, %v1478_v12, %v1482_v28  ;;  %v4045_v57 = vsel %vm15832_vm7, %v4043_v48, %v4044_v3  ;;  %v1496_v41 = vrot.slane %v1494_v40, 5  ;;  %v1500_v58 = vrot.slane %v1498_v54, 4  ;;  %v456_v11 = vld [vmem:[%s15414_s30 + $0x1c8] sm:$0x1]  ;;  %v15149_v47 = vld [vmem:[%s15414_s30 + $0x8c] sm:$0xf] }
  0xdd   : > { %v16097_v25 = vcombine.low %v1473_v14, %v1483_v36  ;;  %v16099_v0 = vcombine.low %v4042_v1, %v4045_v57  ;;  %v1491_v49 = vor.u32 %v1490_v33, %v1487_v22  ;;  %v1506_v42 = vrot.slane %v1504_v50, 5  ;;  %v15150_v52 = vld [vmem:[%s15414_s30 + $0x90] sm:$0xf]  ;;  %v457_v57 = vld [vmem:[%s15414_s30 + $0x1cc] sm:$0xf] }
  0xde   : > { %v11032_v17 = vrot.slane %v15149_v47, 9  ;;  %v4048_v37 = vrot.slane %v15150_v52, 5  ;;  %v4051_v28 = vrot.slane %v15151_v55, 5  ;;  %v1501_v12 = vor.u32 %v1500_v58, %v1496_v41  ;;  %v15152_v47 = vld [vmem:[%s15414_s30 + $0x98] sm:$0xf] }
  0xdf   : > { %19151 = vst [vmem:[#allocation55_spill] sm:$0xff] %v16097_v25  ;;  %19152 = vst [vmem:[#allocation56_spill] sm:$0xff] %v16099_v0  ;;  %12907 = vmatmul.mubr.msk.bf16.gmra.mrb[84].mxu1 %vm2118_vm3, %v16097_v25  ;;  %13493 = vmatmul.mubr.msk.bf16.gmra.mrb[20].mxu0 %vm2118_vm3, %v16099_v0  ;;  %v1492_v3 = vrot.slane %v1491_v49, 4  ;;  %v1508_v1 = vshrl.u32 %v454_v15, 16  ;;  %v1514_v48 = vshll.u32 %v455_v18, 16  ;;  %v1518_v22 = vshrl.u32 %v455_v18, 16 }
  0xe0   : > { %v4049_v40 = vsel %vm15832_vm7, %v11032_v17, %v4048_v37  ;;  %v4050_v14 = vrot.slane %v4048_v37, 4  ;;  %v1524_v52 = vshll.u32 %v456_v11, 16  ;;  %v1502_v33 = vrot.slane %v1501_v12, 4  ;;  %v458_v17 = vld [vmem:[%s15414_s30 + $0x1d0] sm:$0xf] }
  0xe1   : > { %v1497_v55 = vsel %vm15428_vm4, %v1492_v3, %v1496_v41  ;;  %v1510_v54 = vrot.slane %v1508_v1, 4  ;;  %v1516_v36 = vrot.slane %v1514_v48, 5  ;;  %v1520_v50 = vrot.slane %v1518_v22, 4  ;;  %v15153_v1 = vld [vmem:[%s15414_s30 + $0x9c] sm:$0x1] }
  0xe2   : > { %v4052_v15 = vsel %vm15832_vm7, %v4050_v14, %v4051_v28  ;;  %v1526_v49 = vrot.slane %v1524_v52, 5  ;;  %v4053_v58 = vrot.slane %v4051_v28, 4  ;;  %v1507_v37 = vsel %vm15428_vm4, %v1502_v33, %v1506_v42  ;;  %v459_v25 = vld [vmem:[%s15414_s30 + $0x1d4] sm:$0xf]  ;;  %v16548_v51 = vld [vmem:[%s15414_s30 + $0x12c] sm:$0xf] }
  0xe3   : > { %v16118_v18 = vcombine.low %v4049_v40, %v4052_v15  ;;  %v1511_v11 = vor.u32 %v1510_v54, %v1506_v42  ;;  %v4054_v41 = vrot.slane %v15152_v47, 5  ;;  %v16122_v3 = vcombine.low %v1497_v55, %v1507_v37  ;;  %v460_v47 = vld [vmem:[%s15414_s30 + $0x1d8] sm:$0xf] }
  0xe4   : > { %v1521_v12 = vor.u32 %v1520_v50, %v1516_v36  ;;  %v4057_v48 = vrot.slane %v15153_v1, 5  ;;  %v1529_v26 = vshrl.u32 %v457_v57, 16  ;;  %v1532_v42 = vshll.u32 %v457_v57, 16  ;;  %v15154_v1 = vld [vmem:[%s15414_s30 + $0xa0] sm:$0xf] }
  0xe5   : > { %19153 = vst [vmem:[#allocation57_spill] sm:$0xff] %v16118_v18  ;;  %19154 = vst [vmem:[#allocation58_spill] sm:$0xff] %v16122_v3  ;;  %13496 = vmatprep.mubr.msk.bf16.mxu0 %vm2118_vm3, %v16118_v18  ;;  %v1512_v28 = vrot.slane %v1511_v11, 4  ;;  %v4055_v14 = vsel %vm15832_vm7, %v4053_v58, %v4054_v41  ;;  %v4056_v40 = vrot.slane %v4054_v41, 4  ;;  %12910 = vmatprep.mubr.msk.bf16.mxu1 %vm2118_vm3, %v16122_v3  ;;  %v1538_v55 = vshll.u32 %v458_v17, 16 }
  0xe6   : > { %v1522_v22 = vrot.slane %v1521_v12, 4  ;;  %v1531_v52 = vrot.slane %v1529_v26, 4  ;;  %v1542_v33 = vshrl.u32 %v458_v17, 16  ;;  %v1534_v50 = vrot.slane %v1532_v42, 5  ;;  %v461_v41 = vld [vmem:[%s15414_s30 + $0x1dc] sm:$0x1] }
  0xe7   : > { %v1517_v54 = vsel %vm15428_vm4, %v1512_v28, %v1516_v36  ;;  %v4058_v15 = vsel %vm15832_vm7, %v4056_v40, %v4057_v48  ;;  %v1548_v58 = vshll.u32 %v459_v25, 16  ;;  %v1540_v11 = vrot.slane %v1538_v55, 5  ;;  %v15155_v40 = vld [vmem:[%s15414_s30 + $0xa4] sm:$0xf]  ;;  %v15156_v3 = vld [vmem:[%s15414_s30 + $0xa8] sm:$0xf] }
  0xe8   : > { %v1527_v57 = vsel %vm15428_vm4, %v1522_v22, %v1526_v49  ;;  %v16138_v37 = vcombine.low %v4055_v14, %v4058_v15  ;;  %v1544_v26 = vrot.slane %v1542_v33, 4  ;;  %v1535_v12 = vor.u32 %v1534_v50, %v1531_v52 }
  0xe9   : > { %v16142_v17 = vcombine.low %v1517_v54, %v1527_v57  ;;  %v1550_v36 = vrot.slane %v1548_v58, 5  ;;  %v11033_v28 = vrot.slane %v15154_v1, 9  ;;  %v4061_v42 = vrot.slane %v15155_v40, 5 }
  0xea   : > { %19155 = vst [vmem:[#allocation59_spill] sm:$0xff] %v16138_v37  ;;  %13497 = vmatmul.mubr.msk.bf16.gmra.mrb[24].mxu0 %vm2118_vm3, %v16138_v37  ;;  %v1545_v48 = vor.u32 %v1544_v26, %v1540_v11  ;;  %v4064_v49 = vrot.slane %v15156_v3, 5  ;;  %v1552_v14 = vshrl.u32 %v459_v25, 16  ;;  %v1536_v22 = vrot.slane %v1535_v12, 4  ;;  %v462_v12 = vld [vmem:[%s15414_s30 + $0x1e0] sm:$0xf] }
  0xeb   : > { %19156 = vst [vmem:[#allocation60_spill] sm:$0xff] %v16142_v17  ;;  %12911 = vmatmul.mubr.msk.bf16.gmra.mrb[88].mxu1 %vm2118_vm3, %v16142_v17  ;;  %v1558_v55 = vshll.u32 %v460_v47, 16  ;;  %v1562_v52 = vshrl.u32 %v460_v47, 16  ;;  %v1568_v33 = vshll.u32 %v461_v41, 16  ;;  %v4062_v15 = vsel %vm15832_vm7, %v11033_v28, %v4061_v42  ;;  %v464_v17 = vld [vmem:[%s15414_s30 + $0x1e8] sm:$0xf] }
  0xec   : > { %v1546_v54 = vrot.slane %v1545_v48, 4  ;;  %v4063_v50 = vrot.slane %v4061_v42, 4  ;;  %v1554_v58 = vrot.slane %v1552_v14, 4  ;;  %v1541_v57 = vsel %vm15428_vm4, %v1536_v22, %v1540_v11  ;;  %v463_v48 = vld [vmem:[%s15414_s30 + $0x1e4] sm:$0xf] }
  0xed   : > { %v1560_v25 = vrot.slane %v1558_v55, 5  ;;  %v1564_v3 = vrot.slane %v1562_v52, 4  ;;  %v1570_v26 = vrot.slane %v1568_v33, 5  ;;  %v4066_v28 = vrot.slane %v4064_v49, 4  ;;  %v15157_v14 = vld [vmem:[%s15414_s30 + $0xac] sm:$0xf] }
  0xee   : > { %v1551_v47 = vsel %vm15428_vm4, %v1546_v54, %v1550_v36  ;;  %v4065_v41 = vsel %vm15832_vm7, %v4063_v50, %v4064_v49  ;;  %v1555_v1 = vor.u32 %v1554_v58, %v1550_v36  ;;  %v4067_v22 = vrot.slane %v15157_v14, 5  ;;  %v15158_v52 = vld [vmem:[%s15414_s30 + $0xb0] sm:$0x1]  ;;  %v15188_v37 = vld [vmem:[%s15414_s30 + $0x128] sm:$0x1] }
  0xef   : > { %v16161_v40 = vcombine.low %v1541_v57, %v1551_v47  ;;  %v16163_v42 = vcombine.low %v4062_v15, %v4065_v41  ;;  %v1565_v11 = vor.u32 %v1564_v3, %v1560_v25  ;;  %v4070_v33 = vrot.slane %v15158_v52, 5 }
  0xf0   : > { %v1556_v55 = vrot.slane %v1555_v1, 4  ;;  %v1573_v61 = vshrl.u32 %v462_v12, 16  ;;  %v1576_v54 = vshll.u32 %v462_v12, 16  ;;  %v4068_v49 = vsel %vm15832_vm7, %v4066_v28, %v4067_v22 }
  0xf1   : > { %19157 = vst [vmem:[#allocation61_spill] sm:$0xff] %v16161_v40  ;;  %19158 = vst [vmem:[#allocation62_spill] sm:$0xff] %v16163_v42  ;;  %12914 = vmatprep.mubr.msk.bf16.mxu1 %vm2118_vm3, %v16161_v40  ;;  %13500 = vmatprep.mubr.msk.bf16.mxu0 %vm2118_vm3, %v16163_v42  ;;  %v1566_v36 = vrot.slane %v1565_v11, 4  ;;  %v4069_v15 = vrot.slane %v4067_v22, 4  ;;  %v1582_v50 = vshll.u32 %v463_v48, 16  ;;  %v1586_v12 = vshrl.u32 %v463_v48, 16 }
  0xf2   : > { %v1561_v58 = vsel %vm15428_vm4, %v1556_v55, %v1560_v25  ;;  %v1575_v57 = vrot.slane %v1573_v61, 4  ;;  %v1578_v3 = vrot.slane %v1576_v54, 5  ;;  %v1592_v28 = vshll.u32 %v464_v17, 16  ;;  %v465_v11 = vld [vmem:[%s15414_s30 + $0x1ec] sm:$0xf] }
  0xf3   : > { %v1571_v47 = vsel %vm15428_vm4, %v1566_v36, %v1570_v26  ;;  %v4071_v41 = vsel %vm15832_vm7, %v4069_v15, %v4070_v33  ;;  %v1584_v1 = vrot.slane %v1582_v50, 5  ;;  %v1588_v25 = vrot.slane %v1586_v12, 4  ;;  %v466_v61 = vld [vmem:[%s15414_s30 + $0x1f0] sm:$0x1]  ;;  %v15159_v54 = vld [vmem:[%s15414_s30 + $0xb4] sm:$0xf] }
  0xf4   : > { %v16181_v14 = vcombine.low %v1561_v58, %v1571_v47  ;;  %v16183_v22 = vcombine.low %v4068_v49, %v4071_v41  ;;  %v1579_v52 = vor.u32 %v1578_v3, %v1575_v57  ;;  %v1594_v55 = vrot.slane %v1592_v28, 5  ;;  %v15160_v40 = vld [vmem:[%s15414_s30 + $0xb8] sm:$0xf]  ;;  %v467_v41 = vld [vmem:[%s15414_s30 + $0x1f4] sm:$0xf] }
  0xf5   : > { %v11034_v48 = vrot.slane %v15159_v54, 9  ;;  %v4074_v23 = vrot.slane %v15160_v40, 5  ;;  %v4077_v26 = vrot.slane %v15161_v60, 5  ;;  %v1589_v36 = vor.u32 %v1588_v25, %v1584_v1  ;;  %v15162_v54 = vld [vmem:[%s15414_s30 + $0xc0] sm:$0xf] }
  0xf6   : > { %19159 = vst [vmem:[#allocation63_spill] sm:$0xff] %v16181_v14  ;;  %19160 = vst [vmem:[#allocation64_spill] sm:$0xff] %v16183_v22  ;;  %12915 = vmatmul.mubr.msk.bf16.gmra.mrb[92].mxu1 %vm2118_vm3, %v16181_v14  ;;  %13501 = vmatmul.mubr.msk.bf16.gmra.mrb[28].mxu0 %vm2118_vm3, %v16183_v22  ;;  %v1580_v33 = vrot.slane %v1579_v52, 4  ;;  %v1596_v49 = vshrl.u32 %v464_v17, 16  ;;  %v1602_v15 = vshll.u32 %v465_v11, 16  ;;  %v1606_v57 = vshrl.u32 %v465_v11, 16 }
  0xf7   : > { %v4075_v50 = vsel %vm15832_vm7, %v11034_v48, %v4074_v23  ;;  %v4076_v58 = vrot.slane %v4074_v23, 4  ;;  %v1612_v40 = vshll.u32 %v466_v61, 16  ;;  %v1590_v3 = vrot.slane %v1589_v36, 4  ;;  %v468_v48 = vld [vmem:[%s15414_s30 + $0x1f8] sm:$0xf] }
  0xf8   : > { %v1585_v60 = vsel %vm15428_vm4, %v1580_v33, %v1584_v1  ;;  %v1598_v12 = vrot.slane %v1596_v49, 4  ;;  %v1604_v47 = vrot.slane %v1602_v15, 5  ;;  %v1608_v28 = vrot.slane %v1606_v57, 4  ;;  %v15163_v49 = vld [vmem:[%s15414_s30 + $0xc4] sm:$0x1] }
  0xf9   : > { %v4078_v17 = vsel %vm15832_vm7, %v4076_v58, %v4077_v26  ;;  %v1614_v52 = vrot.slane %v1612_v40, 5  ;;  %v4079_v25 = vrot.slane %v4077_v26, 4  ;;  %v1595_v23 = vsel %vm15428_vm4, %v1590_v3, %v1594_v55  ;;  %v469_v14 = vld [vmem:[%s15414_s30 + $0x1fc] sm:$0xf] }
  0xfa   : > { %v16202_v11 = vcombine.low %v4075_v50, %v4078_v17  ;;  %v1599_v61 = vor.u32 %v1598_v12, %v1594_v55  ;;  %v4080_v1 = vrot.slane %v15162_v54, 5  ;;  %v16206_v33 = vcombine.low %v1585_v60, %v1595_v23  ;;  %v470_v54 = vld [vmem:[%s15414_s30 + $0x200] sm:$0xf] }
  0xfb   : > { %v1609_v36 = vor.u32 %v1608_v28, %v1604_v47  ;;  %v4083_v15 = vrot.slane %v15163_v49, 5  ;;  %v1617_v31 = vshrl.u32 %v467_v41, 16  ;;  %v1620_v55 = vshll.u32 %v467_v41, 16  ;;  %v15164_v49 = vld [vmem:[%s15414_s30 + $0xc8] sm:$0xf] }
  0xfc   : > { %19161 = vst [vmem:[#allocation65_spill] sm:$0xff] %v16202_v11  ;;  %19162 = vst [vmem:[#allocation66_spill] sm:$0xff] %v16206_v33  ;;  %13504 = vmatprep.mubr.msk.bf16.mxu0 %vm2118_vm3, %v16202_v11  ;;  %v1600_v26 = vrot.slane %v1599_v61, 4  ;;  %v4081_v58 = vsel %vm15832_vm7, %v4079_v25, %v4080_v1  ;;  %v4082_v50 = vrot.slane %v4080_v1, 4  ;;  %12918 = vmatprep.mubr.msk.bf16.mxu1 %vm2118_vm3, %v16206_v33  ;;  %v1626_v60 = vshll.u32 %v468_v48, 16 }
  0xfd   : > { %v1610_v57 = vrot.slane %v1609_v36, 4  ;;  %v1619_v40 = vrot.slane %v1617_v31, 4  ;;  %v1630_v3 = vshrl.u32 %v468_v48, 16  ;;  %v1622_v28 = vrot.slane %v1620_v55, 5  ;;  %v471_v1 = vld [vmem:[%s15414_s30 + $0x204] sm:$0x1] }
  0xfe   : > { %v1605_v12 = vsel %vm15428_vm4, %v1600_v26, %v1604_v47  ;;  %v4084_v17 = vsel %vm15832_vm7, %v4082_v50, %v4083_v15  ;;  %v1636_v25 = vshll.u32 %v469_v14, 16  ;;  %v1628_v61 = vrot.slane %v1626_v60, 5  ;;  %v15165_v50 = vld [vmem:[%s15414_s30 + $0xcc] sm:$0xf]  ;;  %v15166_v33 = vld [vmem:[%s15414_s30 + $0xd0] sm:$0xf] }
  0xff   : > { %v1615_v41 = vsel %vm15428_vm4, %v1610_v57, %v1614_v52  ;;  %v16222_v23 = vcombine.low %v4081_v58, %v4084_v17  ;;  %v1632_v31 = vrot.slane %v1630_v3, 4  ;;  %v1623_v36 = vor.u32 %v1622_v28, %v1619_v40  ;;  %v16499_v11 = vld [vmem:[%s15414_s30 + $0x258] sm:$0xf] }
 0x100   : > { %v16226_v48 = vcombine.low %v1605_v12, %v1615_v41  ;;  %v1638_v47 = vrot.slane %v1636_v25, 5  ;;  %v11035_v26 = vrot.slane %v15164_v49, 9  ;;  %v4087_v55 = vrot.slane %v15165_v50, 5 }
 0x101   : > { %19163 = vst [vmem:[#allocation67_spill] sm:$0xff] %v16222_v23  ;;  %13505 = vmatmul.mubr.msk.bf16.gmra.mrb[32].mxu0 %vm2118_vm3, %v16222_v23  ;;  %v1633_v15 = vor.u32 %v1632_v31, %v1628_v61  ;;  %v4090_v52 = vrot.slane %v15166_v33, 5  ;;  %v1640_v58 = vshrl.u32 %v469_v14, 16  ;;  %v1624_v57 = vrot.slane %v1623_v36, 4  ;;  %v472_v36 = vld [vmem:[%s15414_s30 + $0x208] sm:$0xf] }
 0x102   : > { %19164 = vst [vmem:[#allocation68_spill] sm:$0xff] %v16226_v48  ;;  %12919 = vmatmul.mubr.msk.bf16.gmra.mrb[96].mxu1 %vm2118_vm3, %v16226_v48  ;;  %v1646_v60 = vshll.u32 %v470_v54, 16  ;;  %v1650_v40 = vshrl.u32 %v470_v54, 16  ;;  %v1656_v3 = vshll.u32 %v471_v1, 16  ;;  %v4088_v17 = vsel %vm15832_vm7, %v11035_v26, %v4087_v55  ;;  %v474_v48 = vld [vmem:[%s15414_s30 + $0x210] sm:$0xf] }
 0x103   : > { %v1634_v12 = vrot.slane %v1633_v15, 4  ;;  %v4089_v28 = vrot.slane %v4087_v55, 4  ;;  %v1642_v25 = vrot.slane %v1640_v58, 4  ;;  %v1629_v41 = vsel %vm15428_vm4, %v1624_v57, %v1628_v61  ;;  %v473_v15 = vld [vmem:[%s15414_s30 + $0x20c] sm:$0xf] }
 0x104   : > { %v1648_v14 = vrot.slane %v1646_v60, 5  ;;  %v1652_v33 = vrot.slane %v1650_v40, 4  ;;  %v1658_v31 = vrot.slane %v1656_v3, 5  ;;  %v4092_v26 = vrot.slane %v4090_v52, 4  ;;  %v15167_v58 = vld [vmem:[%s15414_s30 + $0xd4] sm:$0xf] }
 0x105   : > { %v1639_v54 = vsel %vm15428_vm4, %v1634_v12, %v1638_v47  ;;  %v4091_v1 = vsel %vm15832_vm7, %v4089_v28, %v4090_v52  ;;  %v1643_v49 = vor.u32 %v1642_v25, %v1638_v47  ;;  %v4093_v57 = vrot.slane %v15167_v58, 5  ;;  %v15168_v40 = vld [vmem:[%s15414_s30 + $0xd8] sm:$0x1] }
 0x106   : > { %v16245_v50 = vcombine.low %v1629_v41, %v1639_v54  ;;  %v16247_v55 = vcombine.low %v4088_v17, %v4091_v1  ;;  %v1653_v61 = vor.u32 %v1652_v33, %v1648_v14  ;;  %v4096_v3 = vrot.slane %v15168_v40, 5 }
 0x107   : > { %v1644_v60 = vrot.slane %v1643_v49, 4  ;;  %v1661_v63 = vshrl.u32 %v472_v36, 16  ;;  %v1664_v12 = vshll.u32 %v472_v36, 16  ;;  %v4094_v52 = vsel %vm15832_vm7, %v4092_v26, %v4093_v57 }
 0x108   : > { %19165 = vst [vmem:[#allocation69_spill] sm:$0xff] %v16245_v50  ;;  %19166 = vst [vmem:[#allocation70_spill] sm:$0xff] %v16247_v55  ;;  %12922 = vmatprep.mubr.msk.bf16.mxu1 %vm2118_vm3, %v16245_v50  ;;  %13508 = vmatprep.mubr.msk.bf16.mxu0 %vm2118_vm3, %v16247_v55  ;;  %v1654_v47 = vrot.slane %v1653_v61, 4  ;;  %v4095_v17 = vrot.slane %v4093_v57, 4  ;;  %v1670_v28 = vshll.u32 %v473_v15, 16  ;;  %v1674_v36 = vshrl.u32 %v473_v15, 16 }
 0x109   : > { %v1649_v25 = vsel %vm15428_vm4, %v1644_v60, %v1648_v14  ;;  %v1663_v41 = vrot.slane %v1661_v63, 4  ;;  %v1666_v33 = vrot.slane %v1664_v12, 5  ;;  %v1680_v26 = vshll.u32 %v474_v48, 16  ;;  %v16265_v61 = vld [vmem:[%s15414_s30 + $0x214] sm:$0xf]  ;;  %v19395_v6 = vld [vmem:[#allocation67_spill] sm:$0xff] }
 0x10a   : > { %v1659_v54 = vsel %vm15428_vm4, %v1654_v47, %v1658_v31  ;;  %v4097_v1 = vsel %vm15832_vm7, %v4095_v17, %v4096_v3  ;;  %v1672_v49 = vrot.slane %v1670_v28, 5  ;;  %v1676_v63 = vrot.slane %v1674_v36, 4  ;;  %v476_v60 = vld [vmem:[%s15414_s30 + $0x218] sm:$0x1]  ;;  %v15169_v15 = vld [vmem:[%s15414_s30 + $0xdc] sm:$0xf] }
 0x10b   : > { %v16267_v58 = vcombine.low %v1649_v25, %v1659_v54  ;;  %v16269_v57 = vcombine.low %v4094_v52, %v4097_v1  ;;  %v1667_v14 = vor.u32 %v1666_v33, %v1663_v41  ;;  %v1682_v40 = vrot.slane %v1680_v26, 5  ;;  %v15170_v50 = vld [vmem:[%s15414_s30 + $0xe0] sm:$0xf]  ;;  %v15171_v31 = vld [vmem:[%s15414_s30 + $0xe4] sm:$0xf] }
 0x10c   : > { %v11036_v12 = vrot.slane %v15169_v15, 9  ;;  %v4100_v21 = vrot.slane %v15170_v50, 5  ;;  %v4103_v47 = vrot.slane %v15171_v31, 5  ;;  %v1677_v52 = vor.u32 %v1676_v63, %v1672_v49 }
 0x10d   : > { %19167 = vst [vmem:[#allocation71_spill] sm:$0xff] %v16267_v58  ;;  %19168 = vst [vmem:[#allocation72_spill] sm:$0xff] %v16269_v57  ;;  %12923 = vmatmul.mubr.msk.bf16.gmra.mrb[100].mxu1 %vm2118_vm3, %v16267_v58  ;;  %13509 = vmatmul.mubr.msk.bf16.gmra.mrb[36].mxu0 %vm2118_vm3, %v16269_v57  ;;  %v1668_v3 = vrot.slane %v1667_v14, 4  ;;  %v1684_v17 = vshrl.u32 %v474_v48, 16  ;;  %v1690_v28 = vshll.u32 %v16265_v61, 16  ;;  %v1694_v50 = vshrl.u32 %v16265_v61, 16 }
 0x10e   : > { %v4101_v25 = vsel %vm15832_vm7, %v11036_v12, %v4100_v21  ;;  %v4102_v41 = vrot.slane %v4100_v21, 4  ;;  %v1700_v33 = vshll.u32 %v476_v60, 16  ;;  %v1678_v54 = vrot.slane %v1677_v52, 4  ;;  %v16286_v48 = vld [vmem:[%s15414_s30 + $0x21c] sm:$0xf] }
 0x10f   : > { %v1673_v36 = vsel %vm15428_vm4, %v1668_v3, %v1672_v49  ;;  %v1686_v1 = vrot.slane %v1684_v17, 4  ;;  %v1692_v26 = vrot.slane %v1690_v28, 5  ;;  %v1696_v63 = vrot.slane %v1694_v50, 4  ;;  %v15172_v49 = vld [vmem:[%s15414_s30 + $0xe8] sm:$0xf] }
 0x110   : > { %v4104_v14 = vsel %vm15832_vm7, %v4102_v41, %v4103_v47  ;;  %v1702_v15 = vrot.slane %v1700_v33, 5  ;;  %v4105_v21 = vrot.slane %v4103_v47, 4  ;;  %v1683_v12 = vsel %vm15428_vm4, %v1678_v54, %v1682_v40  ;;  %v16296_v52 = vld [vmem:[%s15414_s30 + $0x220] sm:$0xf]  ;;  %v15173_v58 = vld [vmem:[%s15414_s30 + $0xec] sm:$0x1] }
 0x111   : > { %v16292_v60 = vcombine.low %v4101_v25, %v4104_v14  ;;  %v1687_v31 = vor.u32 %v1686_v1, %v1682_v40  ;;  %v4106_v3 = vrot.slane %v15172_v49, 5  ;;  %v16298_v17 = vcombine.low %v1673_v36, %v1683_v12 }
 0x112   : > { %v1697_v28 = vor.u32 %v1696_v63, %v1692_v26  ;;  %v4109_v16 = vrot.slane %v15173_v58, 5  ;;  %v1705_v41 = vshrl.u32 %v16286_v48, 16  ;;  %v1708_v50 = vshll.u32 %v16286_v48, 16 }
 0x113   : > { %19169 = vst [vmem:[#allocation73_spill] sm:$0xff] %v16292_v60  ;;  %19170 = vst [vmem:[#allocation74_spill] sm:$0xff] %v16298_v17  ;;  %13512 = vmatprep.mubr.msk.bf16.mxu0 %vm2118_vm3, %v16292_v60  ;;  %v1688_v47 = vrot.slane %v1687_v31, 4  ;;  %v4107_v40 = vsel %vm15832_vm7, %v4105_v21, %v4106_v3  ;;  %v4108_v25 = vrot.slane %v4106_v3, 4  ;;  %12926 = vmatprep.mubr.msk.bf16.mxu1 %vm2118_vm3, %v16298_v17  ;;  %v1714_v36 = vshll.u32 %v16296_v52, 16 }
 0x114   : > { %v1698_v58 = vrot.slane %v1697_v28, 4  ;;  %v1707_v33 = vrot.slane %v1705_v41, 4  ;;  %v1718_v54 = vshrl.u32 %v16296_v52, 16  ;;  %v1710_v63 = vrot.slane %v1708_v50, 5  ;;  %v16324_v28 = vld [vmem:[%s15414_s30 + $0x228] sm:$0xf] }
 0x115   : > { %v1693_v1 = vsel %vm15428_vm4, %v1688_v47, %v1692_v26  ;;  %v4110_v14 = vsel %vm15832_vm7, %v4108_v25, %v4109_v16  ;;  %v1724_v21 = vshll.u32 %v16302_v27, 16  ;;  %v1716_v49 = vrot.slane %v1714_v36, 5  ;;  %v16327_v41 = vld [vmem:[%s15414_s30 + $0x22c] sm:$0x1]  ;;  %v16332_v25 = vld [vmem:[%s15414_s30 + $0xf0] sm:$0xf] }
 0x116   : > { %v1703_v12 = vsel %vm15428_vm4, %v1698_v58, %v1702_v15  ;;  %v16321_v31 = vcombine.low %v4107_v40, %v4110_v14  ;;  %v1720_v3 = vrot.slane %v1718_v54, 4  ;;  %v1711_v47 = vor.u32 %v1710_v63, %v1707_v33  ;;  %v16338_v40 = vld [vmem:[%s15414_s30 + $0xf4] sm:$0xf]  ;;  %v15176_v36 = vld [vmem:[%s15414_s30 + $0xf8] sm:$0xf] }
 0x117   : > { %v16329_v26 = vcombine.low %v1693_v1, %v1703_v12  ;;  %v1726_v16 = vrot.slane %v1724_v21, 5  ;;  %v11037_v50 = vrot.slane %v16332_v25, 9  ;;  %v4113_v58 = vrot.slane %v16338_v40, 5  ;;  %v16470_v60 = vld [vmem:[%s15414_s30 + $0x254] sm:$0x1] }
 0x118   : > { %19171 = vst [vmem:[#allocation75_spill] sm:$0xff] %v16321_v31  ;;  %13513 = vmatmul.mubr.msk.bf16.gmra.mrb[40].mxu0 %vm2118_vm3, %v16321_v31  ;;  %v1721_v15 = vor.u32 %v1720_v3, %v1716_v49  ;;  %v4116_v54 = vrot.slane %v15176_v36, 5  ;;  %v1728_v1 = vshrl.u32 %v16302_v27, 16  ;;  %v1712_v33 = vrot.slane %v1711_v47, 4  ;;  %v15183_v31 = vld [vmem:[%s15414_s30 + $0x114] sm:$0x1] }
 0x119   : > { %19172 = vst [vmem:[#allocation76_spill] sm:$0xff] %v16329_v26  ;;  %12927 = vmatmul.mubr.msk.bf16.gmra.mrb[104].mxu1 %vm2118_vm3, %v16329_v26  ;;  %v1734_v14 = vshll.u32 %v16324_v28, 16  ;;  %v1738_v63 = vshrl.u32 %v16324_v28, 16  ;;  %v1744_v21 = vshll.u32 %v16327_v41, 16  ;;  %v4114_v3 = vsel %vm15832_vm7, %v11037_v50, %v4113_v58 }
 0x11a   : > { %v1722_v12 = vrot.slane %v1721_v15, 4  ;;  %v4115_v17 = vrot.slane %v4113_v58, 4  ;;  %v1730_v36 = vrot.slane %v1728_v1, 4  ;;  %v1717_v8 = vsel %vm15428_vm4, %v1712_v33, %v1716_v49  ;;  %v16360_v58 = vld [vmem:[%s15414_s30 + $0x234] sm:$0xf] }
 0x11b   : > { %v1736_v26 = vrot.slane %v1734_v14, 5  ;;  %v1740_v47 = vrot.slane %v1738_v63, 4  ;;  %v1746_v45 = vrot.slane %v1744_v21, 5  ;;  %v4118_v39 = vrot.slane %v4116_v54, 4  ;;  %v16367_v14 = vld [vmem:[%s15414_s30 + $0xfc] sm:$0xf] }
 0x11c   : > { %v1727_v56 = vsel %vm15428_vm4, %v1722_v12, %v1726_v16  ;;  %v4117_v15 = vsel %vm15832_vm7, %v4115_v17, %v4116_v54  ;;  %v1731_v50 = vor.u32 %v1730_v36, %v1726_v16  ;;  %v4119_v63 = vrot.slane %v16367_v14, 5  ;;  %v16372_v12 = vld [vmem:[%s15414_s30 + $0x238] sm:$0xf] }
 0x11d   : > { %v16362_v1 = vcombine.low %v1717_v8, %v1727_v56  ;;  %v16364_v49 = vcombine.low %v4114_v3, %v4117_v15  ;;  %v1741_v33 = vor.u32 %v1740_v47, %v1736_v26  ;;  %v4122_v53 = vrot.slane %v15178_v10, 5 }
 0x11e   : > { %v1732_v21 = vrot.slane %v1731_v50, 4  ;;  %v1749_v17 = vshrl.u32 %v16353_v19, 16  ;;  %v1752_v16 = vshll.u32 %v16353_v19, 16  ;;  %v4120_v8 = vsel %vm15832_vm7, %v4118_v39, %v4119_v63 }
 0x11f   : > { %19173 = vst [vmem:[#allocation77_spill] sm:$0xff] %v16362_v1  ;;  %19174 = vst [vmem:[#allocation78_spill] sm:$0xff] %v16364_v49  ;;  %12930 = vmatprep.mubr.msk.bf16.mxu1 %vm2118_vm3, %v16362_v1  ;;  %13516 = vmatprep.mubr.msk.bf16.mxu0 %vm2118_vm3, %v16364_v49  ;;  %v1742_v56 = vrot.slane %v1741_v33, 4  ;;  %v4121_v54 = vrot.slane %v4119_v63, 4  ;;  %v1758_v10 = vshll.u32 %v16360_v58, 16  ;;  %v1762_v15 = vshrl.u32 %v16360_v58, 16 }
 0x120   : > { %v1737_v3 = vsel %vm15428_vm4, %v1732_v21, %v1736_v26  ;;  %v1751_v36 = vrot.slane %v1749_v17, 4  ;;  %v1754_v47 = vrot.slane %v1752_v16, 5  ;;  %v1768_v63 = vshll.u32 %v16372_v12, 16  ;;  %v16392_v1 = vld [vmem:[%s15414_s30 + $0x23c] sm:$0xf] }
 0x121   : > { %v1747_v50 = vsel %vm15428_vm4, %v1742_v56, %v1746_v45  ;;  %v4123_v39 = vsel %vm15832_vm7, %v4121_v54, %v4122_v53  ;;  %v1760_v33 = vrot.slane %v1758_v10, 5  ;;  %v1764_v17 = vrot.slane %v1762_v15, 4  ;;  %v16399_v16 = vld [vmem:[%s15414_s30 + $0x240] sm:$0x1]  ;;  %v16406_v56 = vld [vmem:[%s15414_s30 + $0x108] sm:$0xf] }
 0x122   : > { %v16394_v29 = vcombine.low %v1737_v3, %v1747_v50  ;;  %v16396_v26 = vcombine.low %v4120_v8, %v4123_v39  ;;  %v1755_v21 = vor.u32 %v1754_v47, %v1751_v36  ;;  %v1770_v9 = vrot.slane %v1768_v63, 5  ;;  %v16410_v54 = vld [vmem:[%s15414_s30 + $0x10c] sm:$0xf] }
 0x123   : > { %v11038_v45 = vrot.slane %v16402_v38, 9  ;;  %v4126_v53 = vrot.slane %v16406_v56, 5  ;;  %v4129_v10 = vrot.slane %v16410_v54, 5  ;;  %v1765_v3 = vor.u32 %v1764_v17, %v1760_v33 }
 0x124   : > { %19175 = vst [vmem:[#allocation79_spill] sm:$0xff] %v16394_v29  ;;  %19176 = vst [vmem:[#allocation80_spill] sm:$0xff] %v16396_v26  ;;  %12931 = vmatmul.mubr.msk.bf16.gmra.mrb[108].mxu1 %vm2118_vm3, %v16394_v29  ;;  %13517 = vmatmul.mubr.msk.bf16.gmra.mrb[44].mxu0 %vm2118_vm3, %v16396_v26  ;;  %v1756_v8 = vrot.slane %v1755_v21, 4  ;;  %v1772_v36 = vshrl.u32 %v16372_v12, 16  ;;  %v1778_v47 = vshll.u32 %v16392_v1, 16  ;;  %v1782_v39 = vshrl.u32 %v16392_v1, 16 }
 0x125   : > { %v4127_v15 = vsel %vm15832_vm7, %v11038_v45, %v4126_v53  ;;  %v4128_v50 = vrot.slane %v4126_v53, 4  ;;  %v1788_v63 = vshll.u32 %v16399_v16, 16  ;;  %v1766_v34 = vrot.slane %v1765_v3, 4  ;;  %v16439_v3 = vld [vmem:[%s15414_s30 + $0x248] sm:$0xf] }
 0x126   : > { %v1761_v29 = vsel %vm15428_vm4, %v1756_v8, %v1760_v33  ;;  %v1774_v21 = vrot.slane %v1772_v36, 4  ;;  %v1780_v17 = vrot.slane %v1778_v47, 5  ;;  %v1784_v43 = vrot.slane %v1782_v39, 4  ;;  %v16435_v33 = vld [vmem:[%s15414_s30 + $0x110] sm:$0xf] }
 0x127   : > { %v4130_v45 = vsel %vm15832_vm7, %v4128_v50, %v4129_v10  ;;  %v1790_v53 = vrot.slane %v1788_v63, 5  ;;  %v4131_v24 = vrot.slane %v4129_v10, 4  ;;  %v1771_v2 = vsel %vm15428_vm4, %v1766_v34, %v1770_v9  ;;  %v16445_v39 = vld [vmem:[%s15414_s30 + $0x24c] sm:$0xf] }
 0x128   : > { %v16432_v26 = vcombine.low %v4127_v15, %v4130_v45  ;;  %v1775_v49 = vor.u32 %v1774_v21, %v1770_v9  ;;  %v4132_v8 = vrot.slane %v16435_v33, 5  ;;  %v16441_v36 = vcombine.low %v1761_v29, %v1771_v2 }
 0x129   : > { %v1785_v47 = vor.u32 %v1784_v43, %v1780_v17  ;;  %v4135_v50 = vrot.slane %v15183_v31, 5  ;;  %v1793_v10 = vshrl.u32 %v16426_v59, 16  ;;  %v1796_v2 = vshll.u32 %v16426_v59, 16 }
 0x12a   : > { %19177 = vst [vmem:[#allocation81_spill] sm:$0xff] %v16432_v26  ;;  %19178 = vst [vmem:[#allocation82_spill] sm:$0xff] %v16441_v36  ;;  %13520 = vmatprep.mubr.msk.bf16.mxu0 %vm2118_vm3, %v16432_v26  ;;  %v1776_v34 = vrot.slane %v1775_v49, 4  ;;  %v4133_v9 = vsel %vm15832_vm7, %v4131_v24, %v4132_v8  ;;  %v4134_v15 = vrot.slane %v4132_v8, 4  ;;  %12934 = vmatprep.mubr.msk.bf16.mxu1 %vm2118_vm3, %v16441_v36  ;;  %v1802_v31 = vshll.u32 %v16439_v3, 16 }
 0x12b   : > { %v1786_v43 = vrot.slane %v1785_v47, 4  ;;  %v1795_v29 = vrot.slane %v1793_v10, 4  ;;  %v1806_v63 = vshrl.u32 %v16439_v3, 16  ;;  %v1798_v21 = vrot.slane %v1796_v2, 5  ;;  %v16467_v26 = vld [vmem:[%s15414_s30 + $0x250] sm:$0xf] }
 0x12c   : > { %v1781_v49 = vsel %vm15428_vm4, %v1776_v34, %v1780_v17  ;;  %v4136_v24 = vsel %vm15832_vm7, %v4134_v15, %v4135_v50  ;;  %v1812_v45 = vshll.u32 %v16445_v39, 16  ;;  %v1804_v10 = vrot.slane %v1802_v31, 5  ;;  %v16475_v15 = vld [vmem:[%s15414_s30 + $0x118] sm:$0xf]  ;;  %v16485_v31 = vld [vmem:[%s15414_s30 + $0x120] sm:$0xf] }
 0x12d   : > { %v1791_v8 = vsel %vm15428_vm4, %v1786_v43, %v1790_v53  ;;  %v16464_v47 = vcombine.low %v4133_v9, %v4136_v24  ;;  %v1808_v36 = vrot.slane %v1806_v63, 4  ;;  %v1799_v34 = vor.u32 %v1798_v21, %v1795_v29  ;;  %v16481_v9 = vld [vmem:[%s15414_s30 + $0x11c] sm:$0xf] }
 0x12e   : > { %v16472_v17 = vcombine.low %v1781_v49, %v1791_v8  ;;  %v1814_v50 = vrot.slane %v1812_v45, 5  ;;  %v11039_v2 = vrot.slane %v16475_v15, 9  ;;  %v4139_v43 = vrot.slane %v16481_v9, 5 }
 0x12f   : > { %19179 = vst [vmem:[#allocation83_spill] sm:$0xff] %v16464_v47  ;;  %13521 = vmatmul.mubr.msk.bf16.gmra.mrb[48].mxu0 %vm2118_vm3, %v16464_v47  ;;  %v1809_v53 = vor.u32 %v1808_v36, %v1804_v10  ;;  %v4142_v63 = vrot.slane %v16485_v31, 5  ;;  %v1816_v29 = vshrl.u32 %v16445_v39, 16  ;;  %v1800_v49 = vrot.slane %v1799_v34, 4 }
 0x130   : > { %19180 = vst [vmem:[#allocation84_spill] sm:$0xff] %v16472_v17  ;;  %12935 = vmatmul.mubr.msk.bf16.gmra.mrb[112].mxu1 %vm2118_vm3, %v16472_v17  ;;  %v1822_v24 = vshll.u32 %v16467_v26, 16  ;;  %v1826_v36 = vshrl.u32 %v16467_v26, 16  ;;  %v1832_v21 = vshll.u32 %v16470_v60, 16  ;;  %v4140_v8 = vsel %vm15832_vm7, %v11039_v2, %v4139_v43 }
 0x131   : > { %v1810_v45 = vrot.slane %v1809_v53, 4  ;;  %v4141_v47 = vrot.slane %v4139_v43, 4  ;;  %v1818_v57 = vrot.slane %v1816_v29, 4  ;;  %v1805_v55 = vsel %vm15428_vm4, %v1800_v49, %v1804_v10  ;;  %v16506_v43 = vld [vmem:[%s15414_s30 + $0x25c] sm:$0xf] }
 0x132   : > { %v1824_v17 = vrot.slane %v1822_v24, 5  ;;  %v1828_v34 = vrot.slane %v1826_v36, 4  ;;  %v1834_v23 = vrot.slane %v1832_v21, 5  ;;  %v4144_v42 = vrot.slane %v4142_v63, 4  ;;  %v16513_v24 = vld [vmem:[%s15414_s30 + $0x124] sm:$0xf] }
 0x133   : > { %v1815_v22 = vsel %vm15428_vm4, %v1810_v45, %v1814_v50  ;;  %v4143_v53 = vsel %vm15832_vm7, %v4141_v47, %v4142_v63  ;;  %v1819_v2 = vor.u32 %v1818_v57, %v1814_v50  ;;  %v4145_v36 = vrot.slane %v16513_v24, 5  ;;  %v16518_v45 = vld [vmem:[%s15414_s30 + $0x260] sm:$0xf] }
 0x134   : > { %v16508_v29 = vcombine.low %v1805_v55, %v1815_v22  ;;  %v16510_v10 = vcombine.low %v4140_v8, %v4143_v53  ;;  %v1829_v49 = vor.u32 %v1828_v34, %v1824_v17  ;;  %v4148_v18 = vrot.slane %v15188_v37, 5 }
 0x135   : > { %v1820_v21 = vrot.slane %v1819_v2, 4  ;;  %v1837_v47 = vshrl.u32 %v16499_v11, 16  ;;  %v1840_v57 = vshll.u32 %v16499_v11, 16  ;;  %v4146_v55 = vsel %vm15832_vm7, %v4144_v42, %v4145_v36 }
 0x136   : > { %19181 = vst [vmem:[#allocation85_spill] sm:$0xff] %v16508_v29  ;;  %19182 = vst [vmem:[#allocation86_spill] sm:$0xff] %v16510_v10  ;;  %12938 = vmatprep.mubr.msk.bf16.mxu1 %vm2118_vm3, %v16508_v29  ;;  %13524 = vmatprep.mubr.msk.bf16.mxu0 %vm2118_vm3, %v16510_v10  ;;  %v1830_v22 = vrot.slane %v1829_v49, 4  ;;  %v4147_v50 = vrot.slane %v4145_v36, 4  ;;  %v1846_v37 = vshll.u32 %v16506_v43, 16  ;;  %v1850_v53 = vshrl.u32 %v16506_v43, 16 }
 0x137   : > { %v1825_v63 = vsel %vm15428_vm4, %v1820_v21, %v1824_v17  ;;  %v1839_v8 = vrot.slane %v1837_v47, 4  ;;  %v1842_v34 = vrot.slane %v1840_v57, 5  ;;  %v1856_v36 = vshll.u32 %v16518_v45, 16  ;;  %v16538_v29 = vld [vmem:[%s15414_s30 + $0x264] sm:$0xf] }
 0x138   : > { %v1835_v2 = vsel %vm15428_vm4, %v1830_v22, %v1834_v23  ;;  %v4149_v42 = vsel %vm15832_vm7, %v4147_v50, %v4148_v18  ;;  %v1848_v49 = vrot.slane %v1846_v37, 5  ;;  %v1852_v47 = vrot.slane %v1850_v53, 4  ;;  %v16545_v57 = vld [vmem:[%s15414_s30 + $0x268] sm:$0x1]  ;;  %v16552_v22 = vld [vmem:[%s15414_s30 + $0x130] sm:$0xf] }
 0x139   : > { %v16540_v10 = vcombine.low %v1825_v63, %v1835_v2  ;;  %v16542_v17 = vcombine.low %v4146_v55, %v4149_v42  ;;  %v1843_v21 = vor.u32 %v1842_v34, %v1839_v8  ;;  %v1858_v0 = vrot.slane %v1856_v36, 5  ;;  %v16556_v50 = vld [vmem:[%s15414_s30 + $0x134] sm:$0xf] }
 0x13a   : > { %v11040_v23 = vrot.slane %v16548_v51, 9  ;;  %v4152_v18 = vrot.slane %v16552_v22, 5  ;;  %19185 = vst [vmem:[#allocation89_spill] sm:$0xff] %v16556_v50  ;;  %v4155_v37 = vrot.slane %v16556_v50, 5  ;;  %v1853_v63 = vor.u32 %v1852_v47, %v1848_v49 }
 0x13b   : > { %19183 = vst [vmem:[#allocation87_spill] sm:$0xff] %v16540_v10  ;;  %19184 = vst [vmem:[#allocation88_spill] sm:$0xff] %v16542_v17  ;;  %12939 = vmatmul.mubr.msk.bf16.gmra.mrb[116].mxu1 %vm2118_vm3, %v16540_v10  ;;  %13525 = vmatmul.mubr.msk.bf16.gmra.mrb[52].mxu0 %vm2118_vm3, %v16542_v17  ;;  %v1844_v55 = vrot.slane %v1843_v21, 4  ;;  %v1860_v8 = vshrl.u32 %v16518_v45, 16  ;;  %v1866_v34 = vshll.u32 %v16538_v29, 16  ;;  %v1870_v42 = vshrl.u32 %v16538_v29, 16 }
 0x13c   : > { %v4153_v53 = vsel %vm15832_vm7, %v11040_v23, %v4152_v18  ;;  %v4154_v2 = vrot.slane %v4152_v18, 4  ;;  %v1876_v36 = vshll.u32 %v16545_v57, 16  ;;  %v1854_v17 = vrot.slane %v1853_v63, 4  ;;  %v16585_v63 = vld [vmem:[%s15414_s30 + $0x270] sm:$0xf] }
 0x13d   : > { %v1849_v10 = vsel %vm15428_vm4, %v1844_v55, %v1848_v49  ;;  %v1862_v21 = vrot.slane %v1860_v8, 4  ;;  %v1868_v47 = vrot.slane %v1866_v34, 5  ;;  %v1872_v46 = vrot.slane %v1870_v42, 4  ;;  %v16581_v49 = vld [vmem:[%s15414_s30 + $0x138] sm:$0xf] }
 0x13e   : > { %v4156_v23 = vsel %vm15832_vm7, %v4154_v2, %v4155_v37  ;;  %v1878_v18 = vrot.slane %v1876_v36, 5  ;;  %v4157_v35 = vrot.slane %v4155_v37, 4  ;;  %v1859_v44 = vsel %vm15428_vm4, %v1854_v17, %v1858_v0  ;;  %v16591_v42 = vld [vmem:[%s15414_s30 + $0x274] sm:$0xf] }
 0x13f   : > { %v16578_v30 = vcombine.low %v4153_v53, %v4156_v23  ;;  %v1863_v20 = vor.u32 %v1862_v21, %v1858_v0  ;;  %v4158_v55 = vrot.slane %v16581_v49, 5  ;;  %v16587_v8 = vcombine.low %v1849_v10, %v1859_v44 }
 0x140   : > { %v1873_v34 = vor.u32 %v1872_v46, %v1868_v47  ;;  %v4161_v2 = vrot.slane %v15193_v7, 5  ;;  %v1881_v37 = vshrl.u32 %v16572_v13, 16  ;;  %v1884_v44 = vshll.u32 %v16572_v13, 16 }
 0x141   : > { %19186 = vst [vmem:[#allocation90_spill] sm:$0xff] %v16578_v30  ;;  %19187 = vst [vmem:[#allocation91_spill] sm:$0xff] %v16587_v8  ;;  %13528 = vmatprep.mubr.msk.bf16.mxu0 %vm2118_vm3, %v16578_v30  ;;  %v1864_v17 = vrot.slane %v1863_v20, 4  ;;  %v4159_v0 = vsel %vm15832_vm7, %v4157_v35, %v4158_v55  ;;  %v4160_v53 = vrot.slane %v4158_v55, 4  ;;  %12942 = vmatprep.mubr.msk.bf16.mxu1 %vm2118_vm3, %v16587_v8  ;;  %v1890_v10 = vshll.u32 %v16585_v63, 16 }
 0x142   : > { %v1874_v7 = vrot.slane %v1873_v34, 4  ;;  %v1883_v46 = vrot.slane %v1881_v37, 4  ;;  %v1894_v36 = vshrl.u32 %v16585_v63, 16  ;;  %v1886_v21 = vrot.slane %v1884_v44, 5  ;;  %v16613_v30 = vld [vmem:[%s15414_s30 + $0x278] sm:$0xf] }
 0x143   : > { %v1869_v20 = vsel %vm15428_vm4, %v1864_v17, %v1868_v47  ;;  %v4162_v35 = vsel %vm15832_vm7, %v4160_v53, %v4161_v2  ;;  %v1900_v23 = vshll.u32 %v16591_v42, 16  ;;  %v1892_v37 = vrot.slane %v1890_v10, 5  ;;  %v16621_v53 = vld [vmem:[%s15414_s30 + $0x140] sm:$0xf]  ;;  %v16631_v10 = vld [vmem:[%s15414_s30 + $0x148] sm:$0xf] }
 0x144   : > { %v1879_v55 = vsel %vm15428_vm4, %v1874_v7, %v1878_v18  ;;  %v16610_v34 = vcombine.low %v4159_v0, %v4162_v35  ;;  %v1896_v8 = vrot.slane %v1894_v36, 4  ;;  %v1887_v17 = vor.u32 %v1886_v21, %v1883_v46  ;;  %19190 = vst [vmem:[#allocation94_spill] sm:$0xff] %v16621_v53  ;;  %v16627_v0 = vld [vmem:[%s15414_s30 + $0x144] sm:$0xf]  ;;  %19192 = vst [vmem:[#allocation96_spill] sm:$0xff] %v16631_v10 }
 0x145   : > { %v16618_v47 = vcombine.low %v1869_v20, %v1879_v55  ;;  %v1902_v2 = vrot.slane %v1900_v23, 5  ;;  %v11041_v44 = vrot.slane %v16621_v53, 9  ;;  %19191 = vst [vmem:[#allocation95_spill] sm:$0xff] %v16627_v0  ;;  %v4165_v7 = vrot.slane %v16627_v0, 5 }
 0x146   : > { %19188 = vst [vmem:[#allocation92_spill] sm:$0xff] %v16610_v34  ;;  %13529 = vmatmul.mubr.msk.bf16.gmra.mrb[56].mxu0 %vm2118_vm3, %v16610_v34  ;;  %v1897_v18 = vor.u32 %v1896_v8, %v1892_v37  ;;  %v4168_v36 = vrot.slane %v16631_v10, 5  ;;  %v1904_v20 = vshrl.u32 %v16591_v42, 16  ;;  %v1888_v46 = vrot.slane %v1887_v17, 4 }
 0x147   : > { %19189 = vst [vmem:[#allocation93_spill] sm:$0xff] %v16618_v47  ;;  %12943 = vmatmul.mubr.msk.bf16.gmra.mrb[120].mxu1 %vm2118_vm3, %v16618_v47  ;;  %v1910_v35 = vshll.u32 %v16613_v30, 16  ;;  %v1914_v21 = vshrl.u32 %v16613_v30, 16  ;;  %v1920_v8 = vshll.u32 %v16616_v4, 16  ;;  %v4166_v55 = vsel %vm15832_vm7, %v11041_v44, %v4165_v7 }
 0x148   : > { %v1898_v23 = vrot.slane %v1897_v18, 4  ;;  %v4167_v34 = vrot.slane %v4165_v7, 4  ;;  %v1906_v5 = vrot.slane %v1904_v20, 4  ;;  %v1893_v62 = vsel %vm15428_vm4, %v1888_v46, %v1892_v37  ;;  %v16653_v37 = vld [vmem:[%s15414_s30 + $0x14c] sm:$0xf] }
 0x149   : > { %v1912_v47 = vrot.slane %v1910_v35, 5  ;;  %v1916_v17 = vrot.slane %v1914_v21, 4  ;;  %v1922_v10 = vrot.slane %v1920_v8, 5  ;;  %v4170_v50 = vrot.slane %v4168_v36, 4  ;;  %v15198_v21 = vld [vmem:[%s15414_s30 + $0x150] sm:$0x1] }
 0x14a   : > { %v1903_v53 = vsel %vm15428_vm4, %v1898_v23, %v1902_v2  ;;  %v4169_v0 = vsel %vm15832_vm7, %v4167_v34, %v4168_v36  ;;  %v1907_v18 = vor.u32 %v1906_v5, %v1902_v2  ;;  %v4171_v46 = vrot.slane %v16653_v37, 5  ;;  %v16658_v34 = vld [vmem:[%s15414_s30 + $0x154] sm:$0xf] }
 0x14b   : > { %v16648_v44 = vcombine.low %v1893_v62, %v1903_v53  ;;  %v16650_v7 = vcombine.low %v4166_v55, %v4169_v0  ;;  %v1917_v20 = vor.u32 %v1916_v17, %v1912_v47  ;;  %v4174_v8 = vrot.slane %v15198_v21, 5  ;;  %19195 = vst [vmem:[#allocation99_spill] sm:$0xff] %v16658_v34  ;;  %v16668_v0 = vld [vmem:[%s15414_s30 + $0x158] sm:$0xf]  ;;  %v16674_v55 = vld [vmem:[%s15414_s30] sm:$0xf] }
 0x14c   : > { %v1908_v35 = vrot.slane %v1907_v18, 4  ;;  %v11042_v5 = vrot.slane %v16658_v34, 9  ;;  %v4172_v2 = vsel %vm15832_vm7, %v4170_v50, %v4171_v46  ;;  %v4173_v53 = vrot.slane %v4171_v46, 4  ;;  %19196 = vst [vmem:[#allocation100_spill] sm:$0xff] %v16668_v0  ;;  %19197 = vst [vmem:[#allocation101_spill] sm:$0xff] %v16674_v55 }
 0x14d   : > { %19193 = vst [vmem:[#allocation97_spill] sm:$0xff] %v16648_v44  ;;  %19194 = vst [vmem:[#allocation98_spill] sm:$0xff] %v16650_v7  ;;  %12946 = vmatprep.mubr.msk.bf16.mxu1 %vm2118_vm3, %v16648_v44  ;;  %13532 = vmatprep.mubr.msk.bf16.mxu0 %vm2118_vm3, %v16650_v7  ;;  %v1918_v62 = vrot.slane %v1917_v20, 4  ;;  %v4178_v36 = vrot.slane %v16668_v0, 5  ;;  %v16677_v17 = vld [vmem:[%s15414_s30 + $0x4] sm:$0xf] }
 0x14e   : > { %v1913_v23 = vsel %vm15428_vm4, %v1908_v35, %v1912_v47  ;;  %19198 = vst [vmem:[#allocation102_spill] sm:$0xff] %v16677_v17  ;;  %v10897_v18 = vcombine.low %v16674_v55, %v16677_v17  ;;  %v16682_v20 = vld [vmem:[%s15414_s30 + $0x15c] sm:$0xf]  ;;  %v16686_v46 = vld [vmem:[%s15414_s30 + $0x160] sm:$0xf]  ;;  %v4175_v35 = vsel %vm15832_vm7, %v4173_v53, %v4174_v8 }
 0x14f   : > { %19199 = vst [vmem:[#allocation103_spill] sm:$0xff] %v16682_v20  ;;  %v4181_v50 = vrot.slane %v16682_v20, 5  ;;  %19200 = vst [vmem:[#allocation104_spill] sm:$0xff] %v16686_v46  ;;  %v4184_v21 = vrot.slane %v16686_v46, 5  ;;  %v1923_v47 = vsel %vm15428_vm4, %v1918_v62, %v1922_v10  ;;  %v4179_v44 = vsel %vm15832_vm7, %v11042_v5, %v4178_v36  ;;  %v15205_v10 = vld [vmem:[%s15414_s30 + $0x164] sm:$0x1] }
 0x150   : > { %v4180_v7 = vrot.slane %v4178_v36, 4  ;;  %v16695_v55 = vcombine.low %v1913_v23, %v1923_v47  ;;  %v16697_v17 = vcombine.low %v4172_v2, %v4175_v35  ;;  %v4187_v62 = vrot.slane %v15205_v10, 5  ;;  %v16703_v46 = vld [vmem:[%s15414_s30 + $0x168] sm:$0xf]  ;;  %v16713_v2 = vld [vmem:[%s15414_s30 + $0x16c] sm:$0xf] }
 0x151   : > { %v4183_v20 = vrot.slane %v4181_v50, 4  ;;  %v4186_v34 = vrot.slane %v4184_v21, 4  ;;  %19203 = vst [vmem:[#allocation107_spill] sm:$0xff] %v16703_v46  ;;  %v11043_v8 = vrot.slane %v16703_v46, 9  ;;  %19205 = vst [vmem:[#allocation109_spill] sm:$0xff] %v16713_v2 }
 0x152   : > { %19201 = vst [vmem:[#allocation105_spill] sm:$0xff] %v16695_v55  ;;  %19202 = vst [vmem:[#allocation106_spill] sm:$0xff] %v16697_v17  ;;  %v4182_v32 = vsel %vm15832_vm7, %v4180_v7, %v4181_v50  ;;  %12947 = vmatmul.mubr.msk.bf16.gmra.mrb[124].mxu1 %vm2118_vm3, %v16695_v55  ;;  %13533 = vmatmul.mubr.msk.bf16.gmra.mrb[60].mxu0 %vm2118_vm3, %v16697_v17  ;;  %v4191_v7 = vrot.slane %v16713_v2, 5  ;;  %v16717_v53 = vld [vmem:[%s15414_s30 + $0x170] sm:$0xf] }
 0x153   : > { %v16710_v5 = vcombine.low %v4179_v44, %v4182_v32  ;;  %19206 = vst [vmem:[#allocation110_spill] sm:$0xff] %v16717_v53  ;;  %v4194_v36 = vrot.slane %v16717_v53, 5  ;;  %12952 = vmatprep.mubr.msk.bf16.mxu1 %vm2118_vm3, %v10897_v18  ;;  %v4185_v23 = vsel %vm15832_vm7, %v4183_v20, %v4184_v21  ;;  %v4188_v50 = vsel %vm15832_vm7, %v4186_v34, %v4187_v62  ;;  %v16726_v32 = vld [vmem:[%s15414_s30 + $0x174] sm:$0xf]  ;;  %v16732_v47 = vld [vmem:[%s18776_s2 + $0xe] sm:$0x3] }
 0x154   : > { %19207 = vst [vmem:[#allocation111_spill] sm:$0xff] %v16726_v32  ;;  %v4197_v44 = vrot.slane %v16726_v32, 5  ;;  %19208 = vst [vmem:[#allocation112_spill] sm:$0xff] %v16732_v47  ;;  %v4193_v18 = vrot.slane %v4191_v7, 4  ;;  %15024 = vmatprep.subr.msk.bf16.mxu0 %vm2311_vm0, %v16732_v47  ;;  %v4192_v34 = vsel %vm15832_vm7, %v11043_v8, %v4191_v7  ;;  %v16741_v20 = vld [vmem:[%s15414_s30 + $0x180] sm:$0xf]  ;;  %v16756_v8 = vcombine.low %v4185_v23, %v4188_v50 }
 0x155   : > { %19204 = vst [vmem:[#allocation108_spill] sm:$0xff] %v16710_v5  ;;  %13536 = vmatprep.mubr.msk.bf16.mxu0 %vm2118_vm3, %v16710_v5  ;;  %19209 = vst [vmem:[#allocation113_spill] sm:$0xff] %v16741_v20  ;;  %v4204_v21 = vrot.slane %v16741_v20, 5  ;;  %v16745_v35 = vld [vmem:[%s15414_s30 + $0x8] sm:$0xf]  ;;  %v4196_v32 = vrot.slane %v4194_v36, 4 }
 0x156   : > { %19210 = vst [vmem:[#allocation114_spill] sm:$0xff] %v16745_v35  ;;  %v16748_v10 = vld [vmem:[%s15414_s30 + $0xc] sm:$0xf]  ;;  %v15213_v55 = vld [vmem:[%s18776_s2 + $0x4] sm:$0x3]  ;;  %19212 = vst [vmem:[#allocation116_spill] sm:$0xff] %v16756_v8  ;;  %v4195_v7 = vsel %vm15832_vm7, %v4193_v18, %v4194_v36 }
 0x157   : > { %19211 = vst [vmem:[#allocation115_spill] sm:$0xff] %v16748_v10  ;;  %v10898_v62 = vcombine.low %v16745_v35, %v16748_v10  ;;  %v4758_v5 = vsel %vm2311_vm0, %v15213_v55, 0  ;;  %v15214_v17 = vld [vmem:[%s15414_s30 + $0x14] sm:$0xf]  ;;  %v15215_v20 = vld [vmem:[%s15414_s30 + $0x18] sm:$0xf]  ;;  %v16765_v2 = vcombine.low %v4192_v34, %v4195_v7  ;;  %v4198_v36 = vsel %vm15832_vm7, %v4196_v32, %v4197_v44 }
 0x158   : > { %v16762_v53 = vcombine.low %v15214_v17, %v15215_v20  ;;  %v4199_v46 = vrot.slane %v4197_v44, 4  ;;  %v15216_v10 = vld [vmem:[%s15414_s30 + $0x178] sm:$0x1]  ;;  %v16768_v47 = vld [vmem:[%s15414_s30 + $0x17c] sm:$0xf]  ;;  %v4206_v23 = vrot.slane %v4204_v21, 4 }
 0x159   : > { %v4200_v35 = vrot.slane %v15216_v10, 5  ;;  %19214 = vst [vmem:[#allocation118_spill] sm:$0xff] %v16765_v2  ;;  %19215 = vst [vmem:[#allocation119_spill] sm:$0xff] %v16768_v47  ;;  %v11044_v55 = vrot.slane %v16768_v47, 9  ;;  %v16772_v50 = vld [vmem:[%s15414_s30 + $0x184] sm:$0xf] }
 0x15a   : > { %19213 = vst [vmem:[#allocation117_spill] sm:$0xff] %v16762_v53  ;;  %19216 = vst [vmem:[#allocation120_spill] sm:$0xff] %v16772_v50  ;;  %v4207_v17 = vrot.slane %v16772_v50, 5  ;;  %12953 = vmatmul.mubr.msk.bf16.vlgmr.msra.gmra.mrb[0].mxu1 %vm2118_vm3, %v10898_v62  ;;  %13537 = vmatmul.mubr.msk.bf16.gmra.mrb[64].mxu0 %vm2118_vm3, %v16756_v8  ;;  %v16785_v34 = vld [vmem:[%s15414_s30 + $0x188] sm:$0xf] }
 0x15b   : > { %13081 = vmatpush3.bf16.msra.mxu1 %v4758_v5  ;;  %12956 = vmatprep.mubr.msk.bf16.mxu1 %vm2118_vm3, %v16762_v53  ;;  %v4201_v18 = vsel %vm15832_vm7, %v4199_v46, %v4200_v35  ;;  %19217 = vst [vmem:[#allocation121_spill] sm:$0xff] %v16785_v34  ;;  %v4210_v20 = vrot.slane %v16785_v34, 5  ;;  %v4205_v5 = vsel %vm15832_vm7, %v11044_v55, %v4204_v21  ;;  %v16795_v62 = vld [vmem:[%s15414_s30 + $0x194] sm:$0xf]  ;;  %v15221_v46 = vld [vmem:[%s15414_s30 + $0x1c] sm:$0xf] }
 0x15c   : > { %13540 = vmatprep.mubr.msk.bf16.mxu0 %vm2118_vm3, %v16765_v2  ;;  %v4208_v10 = vsel %vm15832_vm7, %v4206_v23, %v4207_v17  ;;  %19218 = vst [vmem:[#allocation122_spill] sm:$0xff] %v16795_v62  ;;  %v4217_v32 = vrot.slane %v16795_v62, 5  ;;  %v15222_v44 = vld [vmem:[%s15414_s30 + $0x20] sm:$0xf]  ;;  %v16802_v7 = vcombine.low %v4198_v36, %v4201_v18  ;;  %v15223_v53 = vld [vmem:[%s15414_s30 + $0x28] sm:$0xf] }
 0x15d   : > { %v16800_v35 = vcombine.low %v15221_v46, %v15222_v44  ;;  %v15224_v2 = vld [vmem:[%s15414_s30 + $0x2c] sm:$0xf]  ;;  %v16808_v21 = vcombine.low %v4205_v5, %v4208_v10  ;;  %v4209_v55 = vrot.slane %v4207_v17, 4  ;;  %v4212_v23 = vrot.slane %v4210_v20, 4  ;;  %v16812_v62 = vld [vmem:[%s15414_s30 + $0x190] sm:$0xf] }
 0x15e   : > { %19220 = vst [vmem:[#allocation124_spill] sm:$0xff] %v16802_v7  ;;  %v16806_v8 = vcombine.low %v15223_v53, %v15224_v2  ;;  %v15225_v50 = vld [vmem:[%s15414_s30 + $0x18c] sm:$0x1]  ;;  %19223 = vst [vmem:[#allocation127_spill] sm:$0xff] %v16812_v62  ;;  %v11045_v47 = vrot.slane %v16812_v62, 9  ;;  %v4219_v46 = vrot.slane %v4217_v32, 4 }
 0x15f   : > { %19219 = vst [vmem:[#allocation123_spill] sm:$0xff] %v16800_v35  ;;  %19222 = vst [vmem:[#allocation126_spill] sm:$0xff] %v16808_v21  ;;  %v4213_v34 = vrot.slane %v15225_v50, 5  ;;  %v16816_v36 = vld [vmem:[%s15414_s30 + $0x198] sm:$0xf]  ;;  %v4211_v53 = vsel %vm15832_vm7, %v4209_v55, %v4210_v20 }
 0x160   : > { %19221 = vst [vmem:[#allocation125_spill] sm:$0xff] %v16806_v8  ;;  %19224 = vst [vmem:[#allocation128_spill] sm:$0xff] %v16816_v36  ;;  %v4220_v2 = vrot.slane %v16816_v36, 5  ;;  %v16832_v17 = vld [vmem:[%s15414_s30 + $0x19c] sm:$0xf]  ;;  %v4218_v5 = vsel %vm15832_vm7, %v11045_v47, %v4217_v32 }
 0x161   : > { %v4214_v50 = vsel %vm15832_vm7, %v4212_v23, %v4213_v34  ;;  %19225 = vst [vmem:[#allocation129_spill] sm:$0xff] %v16832_v17  ;;  %v4223_v18 = vrot.slane %v16832_v17, 5  ;;  %v16840_v44 = vld [vmem:[%s15414_s30 + $0x1a8] sm:$0xf]  ;;  %v15230_v20 = vld [vmem:[%s15414_s30 + $0x30] sm:$0xf] }
 0x162   : > { %12957 = vmatmul.mubr.msk.bf16.gmra.mrb[4].mxu1 %vm2118_vm3, %v16800_v35  ;;  %13541 = vmatmul.mubr.msk.bf16.gmra.mrb[68].mxu0 %vm2118_vm3, %v16802_v7  ;;  %v4221_v10 = vsel %vm15832_vm7, %v4219_v46, %v4220_v2  ;;  %19226 = vst [vmem:[#allocation130_spill] sm:$0xff] %v16840_v44  ;;  %v4230_v35 = vrot.slane %v16840_v44, 5  ;;  %v15231_v55 = vld [vmem:[%s15414_s30 + $0x34] sm:$0xf]  ;;  %v16847_v23 = vcombine.low %v4211_v53, %v4214_v50  ;;  %v15233_v7 = vld [vmem:[%s15414_s30 + $0x40] sm:$0xf] }
 0x163   : > { %12960 = vmatprep.mubr.msk.bf16.mxu1 %vm2118_vm3, %v16806_v8  ;;  %13544 = vmatprep.mubr.msk.bf16.mxu0 %vm2118_vm3, %v16808_v21  ;;  %v16845_v34 = vcombine.low %v15230_v20, %v15231_v55  ;;  %v15232_v21 = vld [vmem:[%s15414_s30 + $0x3c] sm:$0xf]  ;;  %v16853_v47 = vcombine.low %v4218_v5, %v4221_v10  ;;  %v4222_v32 = vrot.slane %v4220_v2, 4  ;;  %v4225_v46 = vrot.slane %v4223_v18, 4  ;;  %v15234_v17 = vld [vmem:[%s15414_s30 + $0x1a0] sm:$0x1] }
 0x164   : > { %19228 = vst [vmem:[#allocation132_spill] sm:$0xff] %v16847_v23  ;;  %v16851_v36 = vcombine.low %v15232_v21, %v15233_v7  ;;  %v4226_v62 = vrot.slane %v15234_v17, 5  ;;  %v16857_v44 = vld [vmem:[%s15414_s30 + $0x1a4] sm:$0xf]  ;;  %v4232_v20 = vrot.slane %v4230_v35, 4 }
 0x165   : > { %19227 = vst [vmem:[#allocation131_spill] sm:$0xff] %v16845_v34  ;;  %19230 = vst [vmem:[#allocation134_spill] sm:$0xff] %v16853_v47  ;;  %v11046_v0 = vrot.slane %v16857_v44, 9  ;;  %v16861_v53 = vld [vmem:[%s15414_s30 + $0x1ac] sm:$0xf]  ;;  %v4224_v21 = vsel %vm15832_vm7, %v4222_v32, %v4223_v18 }
 0x166   : > { %19229 = vst [vmem:[#allocation133_spill] sm:$0xff] %v16851_v36  ;;  %19231 = vst [vmem:[#allocation135_spill] sm:$0xff] %v16857_v44  ;;  %v4233_v7 = vrot.slane %v16861_v53, 5  ;;  %v4227_v2 = vsel %vm15832_vm7, %v4225_v46, %v4226_v62  ;;  %v16877_v50 = vld [vmem:[%s15414_s30 + $0x1b0] sm:$0xf] }
 0x167   : > { %19232 = vst [vmem:[#allocation136_spill] sm:$0xff] %v16861_v53  ;;  %19233 = vst [vmem:[#allocation137_spill] sm:$0xff] %v16877_v50  ;;  %v4236_v17 = vrot.slane %v16877_v50, 5  ;;  %v4231_v5 = vsel %vm15832_vm7, %v11046_v0, %v4230_v35  ;;  %v16885_v55 = vld [vmem:[%s15414_s30 + $0x1bc] sm:$0xf]  ;;  %v16892_v46 = vcombine.low %v4224_v21, %v4227_v2 }
 0x168   : > { %v4234_v10 = vsel %vm15832_vm7, %v4232_v20, %v4233_v7  ;;  %19234 = vst [vmem:[#allocation138_spill] sm:$0xff] %v16885_v55  ;;  %v15239_v18 = vld [vmem:[%s15414_s30 + $0x44] sm:$0xf]  ;;  %v15240_v32 = vld [vmem:[%s15414_s30 + $0x48] sm:$0xf]  ;;  %v4235_v35 = vrot.slane %v4233_v7, 4 }
 0x169   : > { %v16890_v62 = vcombine.low %v15239_v18, %v15240_v32  ;;  %19236 = vst [vmem:[#allocation140_spill] sm:$0xff] %v16892_v46  ;;  %v15242_v53 = vld [vmem:[%s15414_s30 + $0x54] sm:$0xf]  ;;  %v16898_v0 = vcombine.low %v4231_v5, %v4234_v10  ;;  %v4238_v20 = vrot.slane %v4236_v17, 4  ;;  %v16906_v21 = vld [vmem:[%s15414_s30 + $0x1c0] sm:$0xf] }
 0x16a   : > { %12961 = vmatmul.mubr.msk.bf16.gmra.mrb[8].mxu1 %vm2118_vm3, %v16845_v34  ;;  %13545 = vmatmul.mubr.msk.bf16.gmra.mrb[72].mxu0 %vm2118_vm3, %v16847_v23  ;;  %v15241_v23 = vld [vmem:[%s15414_s30 + $0x50] sm:$0xf]  ;;  %v15243_v44 = vld [vmem:[%s15414_s30 + $0x1b4] sm:$0x1]  ;;  %19240 = vst [vmem:[#allocation144_spill] sm:$0xff] %v16906_v21 }
 0x16b   : > { %12964 = vmatprep.mubr.msk.bf16.mxu1 %vm2118_vm3, %v16851_v36  ;;  %13548 = vmatprep.mubr.msk.bf16.mxu0 %vm2118_vm3, %v16853_v47  ;;  %v4243_v47 = vrot.slane %v16885_v55, 5  ;;  %19235 = vst [vmem:[#allocation139_spill] sm:$0xff] %v16890_v62  ;;  %v16896_v50 = vcombine.low %v15241_v23, %v15242_v53  ;;  %19238 = vst [vmem:[#allocation142_spill] sm:$0xff] %v16898_v0  ;;  %v4239_v36 = vrot.slane %v15243_v44, 5  ;;  %v16902_v55 = vld [vmem:[%s15414_s30 + $0x1b8] sm:$0xf] }
 0x16c   : > { %19239 = vst [vmem:[#allocation143_spill] sm:$0xff] %v16902_v55  ;;  %v11047_v34 = vrot.slane %v16902_v55, 9  ;;  %v4246_v23 = vrot.slane %v16906_v21, 5  ;;  %v4237_v44 = vsel %vm15832_vm7, %v4235_v35, %v4236_v17  ;;  %v16922_v7 = vld [vmem:[%s15414_s30 + $0x1c4] sm:$0xf] }
 0x16d   : > { %19237 = vst [vmem:[#allocation141_spill] sm:$0xff] %v16896_v50  ;;  %v4245_v18 = vrot.slane %v4243_v47, 4  ;;  %v4240_v53 = vsel %vm15832_vm7, %v4238_v20, %v4239_v36  ;;  %19241 = vst [vmem:[#allocation145_spill] sm:$0xff] %v16922_v7  ;;  %v4249_v2 = vrot.slane %v16922_v7, 5  ;;  %v16930_v32 = vld [vmem:[%s15414_s30 + $0x1d0] sm:$0xf] }
 0x16e   : > { %v4244_v5 = vsel %vm15832_vm7, %v11047_v34, %v4243_v47  ;;  %19242 = vst [vmem:[#allocation146_spill] sm:$0xff] %v16930_v32  ;;  %v15248_v17 = vld [vmem:[%s15414_s30 + $0x58] sm:$0xf]  ;;  %v15249_v35 = vld [vmem:[%s15414_s30 + $0x5c] sm:$0xf]  ;;  %v16937_v20 = vcombine.low %v4237_v44, %v4240_v53  ;;  %v4248_v47 = vrot.slane %v4246_v23, 4 }
 0x16f   : > { %v4247_v10 = vsel %vm15832_vm7, %v4245_v18, %v4246_v23  ;;  %v16935_v36 = vcombine.low %v15248_v17, %v15249_v35  ;;  %v15251_v21 = vld [vmem:[%s15414_s30 + $0x68] sm:$0xf]  ;;  %v4251_v18 = vrot.slane %v4249_v2, 4  ;;  %v16951_v44 = vld [vmem:[%s15414_s30 + $0x1d4] sm:$0xf] }
 0x170   : > { %19244 = vst [vmem:[#allocation148_spill] sm:$0xff] %v16937_v20  ;;  %v16943_v34 = vcombine.low %v4244_v5, %v4247_v10  ;;  %v15252_v55 = vld [vmem:[%s15414_s30 + $0x1c8] sm:$0x1]  ;;  %19248 = vst [vmem:[#allocation152_spill] sm:$0xff] %v16951_v44  ;;  %v16967_v23 = vld [vmem:[%s15414_s30 + $0x1d8] sm:$0xf] }
 0x171   : > { %19243 = vst [vmem:[#allocation147_spill] sm:$0xff] %v16935_v36  ;;  %19249 = vst [vmem:[#allocation153_spill] sm:$0xff] %v16967_v23  ;;  %v4262_v53 = vrot.slane %v16967_v23, 5  ;;  %v16975_v35 = vld [vmem:[%s15414_s30 + $0x1e4] sm:$0xf] }
 0x172   : > { %12965 = vmatmul.mubr.msk.bf16.gmra.mrb[12].mxu1 %vm2118_vm3, %v16890_v62  ;;  %13549 = vmatmul.mubr.msk.bf16.gmra.mrb[76].mxu0 %vm2118_vm3, %v16892_v46  ;;  %v15250_v46 = vld [vmem:[%s15414_s30 + $0x64] sm:$0xf]  ;;  %19246 = vst [vmem:[#allocation150_spill] sm:$0xff] %v16943_v34  ;;  %19250 = vst [vmem:[#allocation154_spill] sm:$0xff] %v16975_v35 }
 0x173   : > { %12968 = vmatprep.mubr.msk.bf16.mxu1 %vm2118_vm3, %v16896_v50  ;;  %13552 = vmatprep.mubr.msk.bf16.mxu0 %vm2118_vm3, %v16898_v0  ;;  %v4256_v0 = vrot.slane %v16930_v32, 5  ;;  %v16941_v7 = vcombine.low %v15250_v46, %v15251_v21  ;;  %v4252_v50 = vrot.slane %v15252_v55, 5  ;;  %v16947_v32 = vld [vmem:[%s15414_s30 + $0x1cc] sm:$0xf]  ;;  %v4259_v46 = vrot.slane %v16951_v44, 5 }
 0x174   : > { %19247 = vst [vmem:[#allocation151_spill] sm:$0xff] %v16947_v32  ;;  %v11048_v62 = vrot.slane %v16947_v32, 9  ;;  %v4250_v55 = vsel %vm15832_vm7, %v4248_v47, %v4249_v2  ;;  %v15257_v2 = vld [vmem:[%s15414_s30 + $0x6c] sm:$0xf]  ;;  %v15258_v47 = vld [vmem:[%s15414_s30 + $0x70] sm:$0xf] }
 0x175   : > { %19245 = vst [vmem:[#allocation149_spill] sm:$0xff] %v16941_v7  ;;  %v4258_v17 = vrot.slane %v4256_v0, 4  ;;  %v4253_v21 = vsel %vm15832_vm7, %v4251_v18, %v4252_v50  ;;  %v16980_v50 = vcombine.low %v15257_v2, %v15258_v47  ;;  %v15260_v44 = vld [vmem:[%s15414_s30 + $0x7c] sm:$0xf]  ;;  %v17020_v47 = vld [vmem:[%s15414_s30 + $0x1f8] sm:$0xf] }
 0x176   : > { %v4257_v5 = vsel %vm15832_vm7, %v11048_v62, %v4256_v0  ;;  %v16982_v18 = vcombine.low %v4250_v55, %v4253_v21  ;;  %v4261_v0 = vrot.slane %v4259_v46, 4  ;;  %v15261_v32 = vld [vmem:[%s15414_s30 + $0x1dc] sm:$0x1]  ;;  %v16996_v55 = vld [vmem:[%s15414_s30 + $0x1e8] sm:$0xf]  ;;  %19258 = vst [vmem:[#allocation162_spill] sm:$0xff] %v17020_v47 }
 0x177   : > { %v4260_v10 = vsel %vm15832_vm7, %v4258_v17, %v4259_v46  ;;  %19251 = vst [vmem:[#allocation155_spill] sm:$0xff] %v16980_v50  ;;  %v4264_v17 = vrot.slane %v4262_v53, 4  ;;  %19256 = vst [vmem:[#allocation160_spill] sm:$0xff] %v16996_v55  ;;  %v17012_v46 = vld [vmem:[%s15414_s30 + $0x1ec] sm:$0xf] }
 0x178   : > { %19252 = vst [vmem:[#allocation156_spill] sm:$0xff] %v16982_v18  ;;  %v16988_v62 = vcombine.low %v4257_v5, %v4260_v10  ;;  %19257 = vst [vmem:[#allocation161_spill] sm:$0xff] %v17012_v46  ;;  %v4275_v21 = vrot.slane %v17012_v46, 5 }
 0x17a   : > { %12969 = vmatmul.mubr.msk.bf16.gmra.mrb[16].mxu1 %vm2118_vm3, %v16935_v36  ;;  %13553 = vmatmul.mubr.msk.bf16.gmra.mrb[80].mxu0 %vm2118_vm3, %v16937_v20  ;;  %v15259_v20 = vld [vmem:[%s15414_s30 + $0x78] sm:$0xf]  ;;  %19254 = vst [vmem:[#allocation158_spill] sm:$0xff] %v16988_v62 }
 0x17b   : > { %12972 = vmatprep.mubr.msk.bf16.mxu1 %vm2118_vm3, %v16941_v7  ;;  %13556 = vmatprep.mubr.msk.bf16.mxu0 %vm2118_vm3, %v16943_v34  ;;  %v4269_v34 = vrot.slane %v16975_v35, 5  ;;  %v16986_v23 = vcombine.low %v15259_v20, %v15260_v44  ;;  %v4265_v7 = vrot.slane %v15261_v32, 5  ;;  %v16992_v35 = vld [vmem:[%s15414_s30 + $0x1e0] sm:$0xf]  ;;  %v4272_v20 = vrot.slane %v16996_v55, 5 }
 0x17c   : > { %19255 = vst [vmem:[#allocation159_spill] sm:$0xff] %v16992_v35  ;;  %v11049_v36 = vrot.slane %v16992_v35, 9  ;;  %v4263_v32 = vsel %vm15832_vm7, %v4261_v0, %v4262_v53  ;;  %v15266_v53 = vld [vmem:[%s15414_s30 + $0x80] sm:$0xf]  ;;  %v15267_v0 = vld [vmem:[%s15414_s30 + $0x84] sm:$0xf] }
 0x17d   : > { %19253 = vst [vmem:[#allocation157_spill] sm:$0xff] %v16986_v23  ;;  %v4271_v2 = vrot.slane %v4269_v34, 4  ;;  %v4266_v44 = vsel %vm15832_vm7, %v4264_v17, %v4265_v7  ;;  %v17025_v7 = vcombine.low %v15266_v53, %v15267_v0  ;;  %v15269_v55 = vld [vmem:[%s15414_s30 + $0x90] sm:$0xf]  ;;  %v17065_v0 = vld [vmem:[%s15414_s30 + $0x20c] sm:$0xf] }
 0x17e   : > { %v4270_v5 = vsel %vm15832_vm7, %v11049_v36, %v4269_v34  ;;  %v17027_v17 = vcombine.low %v4263_v32, %v4266_v44  ;;  %v4274_v34 = vrot.slane %v4272_v20, 4  ;;  %v15270_v35 = vld [vmem:[%s15414_s30 + $0x1f0] sm:$0x1]  ;;  %v17041_v32 = vld [vmem:[%s15414_s30 + $0x1fc] sm:$0xf]  ;;  %19266 = vst [vmem:[#allocation170_spill] sm:$0xff] %v17065_v0 }
 0x17f   : > { %v4273_v10 = vsel %vm15832_vm7, %v4271_v2, %v4272_v20  ;;  %19259 = vst [vmem:[#allocation163_spill] sm:$0xff] %v17025_v7  ;;  %v4277_v2 = vrot.slane %v4275_v21, 4  ;;  %19264 = vst [vmem:[#allocation168_spill] sm:$0xff] %v17041_v32  ;;  %v17057_v20 = vld [vmem:[%s15414_s30 + $0x200] sm:$0xf] }
 0x180   : > { %19260 = vst [vmem:[#allocation164_spill] sm:$0xff] %v17027_v17  ;;  %v17033_v36 = vcombine.low %v4270_v5, %v4273_v10  ;;  %19265 = vst [vmem:[#allocation169_spill] sm:$0xff] %v17057_v20  ;;  %v4288_v44 = vrot.slane %v17057_v20, 5 }
 0x182   : > { %12973 = vmatmul.mubr.msk.bf16.gmra.mrb[20].mxu1 %vm2118_vm3, %v16980_v50  ;;  %13557 = vmatmul.mubr.msk.bf16.gmra.mrb[84].mxu0 %vm2118_vm3, %v16982_v18  ;;  %v15268_v18 = vld [vmem:[%s15414_s30 + $0x8c] sm:$0xf]  ;;  %19262 = vst [vmem:[#allocation166_spill] sm:$0xff] %v17033_v36 }
 0x183   : > { %12976 = vmatprep.mubr.msk.bf16.mxu1 %vm2118_vm3, %v16986_v23  ;;  %13560 = vmatprep.mubr.msk.bf16.mxu0 %vm2118_vm3, %v16988_v62  ;;  %v4282_v62 = vrot.slane %v17020_v47, 5  ;;  %v17031_v46 = vcombine.low %v15268_v18, %v15269_v55  ;;  %v4278_v23 = vrot.slane %v15270_v35, 5  ;;  %v17037_v47 = vld [vmem:[%s15414_s30 + $0x1f4] sm:$0xf]  ;;  %v4285_v18 = vrot.slane %v17041_v32, 5 }
 0x184   : > { %19263 = vst [vmem:[#allocation167_spill] sm:$0xff] %v17037_v47  ;;  %v11050_v50 = vrot.slane %v17037_v47, 9  ;;  %v4276_v35 = vsel %vm15832_vm7, %v4274_v34, %v4275_v21  ;;  %v15275_v21 = vld [vmem:[%s15414_s30 + $0x94] sm:$0xf]  ;;  %v15276_v34 = vld [vmem:[%s15414_s30 + $0x98] sm:$0xf] }
 0x185   : > { %19261 = vst [vmem:[#allocation165_spill] sm:$0xff] %v17031_v46  ;;  %v4284_v53 = vrot.slane %v4282_v62, 4  ;;  %v4279_v55 = vsel %vm15832_vm7, %v4277_v2, %v4278_v23  ;;  %v17070_v23 = vcombine.low %v15275_v21, %v15276_v34  ;;  %v15278_v32 = vld [vmem:[%s15414_s30 + $0xa4] sm:$0xf]  ;;  %v4290_v47 = vrot.slane %v4288_v44, 4 }
 0x186   : > { %v4283_v5 = vsel %vm15832_vm7, %v11050_v50, %v4282_v62  ;;  %v17072_v2 = vcombine.low %v4276_v35, %v4279_v55  ;;  %v4287_v62 = vrot.slane %v4285_v18, 4  ;;  %v17086_v34 = vld [vmem:[%s15414_s30 + $0x210] sm:$0xf] }
 0x187   : > { %v4286_v10 = vsel %vm15832_vm7, %v4284_v53, %v4285_v18  ;;  %19267 = vst [vmem:[#allocation171_spill] sm:$0xff] %v17070_v23  ;;  %v15279_v53 = vld [vmem:[%s15414_s30 + $0x204] sm:$0x1]  ;;  %19272 = vst [vmem:[#allocation176_spill] sm:$0xff] %v17086_v34  ;;  %v4298_v35 = vrot.slane %v17086_v34, 5  ;;  %v4301_v18 = vrot.slane %v16265_v61, 5 }
 0x188   : > { %19268 = vst [vmem:[#allocation172_spill] sm:$0xff] %v17072_v2  ;;  %v17078_v50 = vcombine.low %v4283_v5, %v4286_v10  ;;  %v4308_v10 = vrot.slane %v16296_v52, 5  ;;  %v11052_v52 = vrot.slane %v16286_v48, 9 }
 0x189   : > { %v4300_v61 = vrot.slane %v4298_v35, 4 }
 0x18a   : > { %12977 = vmatmul.mubr.msk.bf16.gmra.mrb[24].mxu1 %vm2118_vm3, %v17025_v7  ;;  %13561 = vmatmul.mubr.msk.bf16.gmra.mrb[88].mxu0 %vm2118_vm3, %v17027_v17  ;;  %v15277_v17 = vld [vmem:[%s15414_s30 + $0xa0] sm:$0xf]  ;;  %19270 = vst [vmem:[#allocation174_spill] sm:$0xff] %v17078_v50  ;;  %v17082_v7 = vld [vmem:[%s15414_s30 + $0x208] sm:$0xf] }
 0x18b   : > { %12980 = vmatprep.mubr.msk.bf16.mxu1 %vm2118_vm3, %v17031_v46  ;;  %13564 = vmatprep.mubr.msk.bf16.mxu0 %vm2118_vm3, %v17033_v36  ;;  %v4295_v36 = vrot.slane %v17065_v0, 5  ;;  %v17076_v20 = vcombine.low %v15277_v17, %v15278_v32  ;;  %v4291_v46 = vrot.slane %v15279_v53, 5  ;;  %19271 = vst [vmem:[#allocation175_spill] sm:$0xff] %v17082_v7  ;;  %v11051_v0 = vrot.slane %v17082_v7, 9  ;;  %v15282_v53 = vld [vmem:[%s15414_s30 + $0xa8] sm:$0xf] }
 0x18c   : > { %v4289_v17 = vsel %vm15832_vm7, %v4287_v62, %v4288_v44  ;;  %v15284_v44 = vld [vmem:[%s15414_s30 + $0xb4] sm:$0xf]  ;;  %v15285_v62 = vld [vmem:[%s15414_s30 + $0xb8] sm:$0xf]  ;;  %v4302_v48 = vsel %vm15832_vm7, %v4300_v61, %v4301_v18  ;;  %v15290_v61 = vld [vmem:[%s15414_s30 + $0xcc] sm:$0xf] }
 0x18d   : > { %19269 = vst [vmem:[#allocation173_spill] sm:$0xff] %v17076_v20  ;;  %v4297_v21 = vrot.slane %v4295_v36, 4  ;;  %v4292_v32 = vsel %vm15832_vm7, %v4290_v47, %v4291_v46  ;;  %v4296_v55 = vsel %vm15832_vm7, %v11051_v0, %v4295_v36  ;;  %v17115_v7 = vcombine.low %v15284_v44, %v15285_v62  ;;  %v15286_v36 = vld [vmem:[%s15414_s30 + $0x218] sm:$0x1] }
 0x18e   : > { %v17111_v34 = vcombine.low %v4289_v17, %v4292_v32  ;;  %v4303_v47 = vrot.slane %v4301_v18, 4  ;;  %v4304_v0 = vrot.slane %v15286_v36, 5  ;;  %v4309_v17 = vsel %vm15832_vm7, %v11052_v52, %v4308_v10  ;;  %v15289_v18 = vld [vmem:[%s15414_s30 + $0xc8] sm:$0xf] }
 0x18f   : > { %v4299_v5 = vsel %vm15832_vm7, %v4297_v21, %v4298_v35  ;;  %19275 = vst [vmem:[#allocation179_spill] sm:$0xff] %v17115_v7  ;;  %v4310_v21 = vrot.slane %v4308_v10, 4  ;;  %v17148_v36 = vcombine.low %v15289_v18, %v15290_v61  ;;  %v15294_v18 = vld [vmem:[%s15414_s30 + $0xe0] sm:$0xf] }
 0x190   : > { %19274 = vst [vmem:[#allocation178_spill] sm:$0xff] %v17111_v34  ;;  %v17117_v46 = vcombine.low %v4296_v55, %v4299_v5  ;;  %v4305_v35 = vsel %vm15832_vm7, %v4303_v47, %v4304_v0  ;;  %v4321_v55 = vrot.slane %v16360_v58, 5  ;;  %v15287_v5 = vld [vmem:[%s15414_s30 + $0xbc] sm:$0xf]  ;;  %v4317_v0 = vrot.slane %v16327_v41, 5 }
 0x191   : > { %v17144_v62 = vcombine.low %v4302_v48, %v4305_v35  ;;  %19279 = vst [vmem:[#allocation183_spill] sm:$0xff] %v17148_v36  ;;  %v11053_v58 = vrot.slane %v16353_v19, 9  ;;  %v4334_v35 = vrot.slane %v16439_v3, 5  ;;  %v11054_v3 = vrot.slane %v16426_v59, 9 }
 0x192   : > { %12981 = vmatmul.mubr.msk.bf16.gmra.mrb[28].mxu1 %vm2118_vm3, %v17070_v23  ;;  %13565 = vmatmul.mubr.msk.bf16.gmra.mrb[92].mxu0 %vm2118_vm3, %v17072_v2  ;;  %v15283_v2 = vld [vmem:[%s15414_s30 + $0xac] sm:$0xf]  ;;  %19276 = vst [vmem:[#allocation180_spill] sm:$0xff] %v17117_v46  ;;  %v4323_v52 = vrot.slane %v4321_v55, 4 }
 0x193   : > { %12984 = vmatprep.mubr.msk.bf16.mxu1 %vm2118_vm3, %v17076_v20  ;;  %13568 = vmatprep.mubr.msk.bf16.mxu0 %vm2118_vm3, %v17078_v50  ;;  %v17109_v50 = vcombine.low %v15282_v53, %v15283_v2  ;;  %v4311_v2 = vrot.slane %v16302_v27, 5  ;;  %v4314_v27 = vrot.slane %v16324_v28, 5  ;;  %v15288_v53 = vld [vmem:[%s15414_s30 + $0xc0] sm:$0xf]  ;;  %19278 = vst [vmem:[#allocation182_spill] sm:$0xff] %v17144_v62 }
 0x194   : > { %v17142_v44 = vcombine.low %v15287_v5, %v15288_v53 }
 0x195   : > { %19273 = vst [vmem:[#allocation177_spill] sm:$0xff] %v17109_v50  ;;  %v4312_v32 = vsel %vm15832_vm7, %v4310_v21, %v4311_v2  ;;  %v4313_v28 = vrot.slane %v4311_v2, 4  ;;  %v4316_v10 = vrot.slane %v4314_v27, 4  ;;  %v4324_v21 = vrot.slane %v16372_v12, 5 }
 0x196   : > { %19277 = vst [vmem:[#allocation181_spill] sm:$0xff] %v17142_v44  ;;  %v17150_v47 = vcombine.low %v4309_v17, %v4312_v32  ;;  %v4327_v12 = vrot.slane %v16392_v1, 5  ;;  %v4322_v2 = vsel %vm15832_vm7, %v11053_v58, %v4321_v55  ;;  %v15291_v17 = vld [vmem:[%s15414_s30 + $0xd0] sm:$0xf]  ;;  %v15292_v32 = vld [vmem:[%s15414_s30 + $0xd4] sm:$0xf] }
 0x197   : > { %v4315_v19 = vsel %vm15832_vm7, %v4313_v28, %v4314_v27  ;;  %v4318_v41 = vsel %vm15832_vm7, %v4316_v10, %v4317_v0  ;;  %v4325_v48 = vsel %vm15832_vm7, %v4323_v52, %v4324_v21  ;;  %v17175_v5 = vcombine.low %v15291_v17, %v15292_v32  ;;  %v15293_v27 = vld [vmem:[%s15414_s30 + $0xdc] sm:$0xf] }
 0x198   : > { %19280 = vst [vmem:[#allocation184_spill] sm:$0xff] %v17150_v47  ;;  %v17177_v53 = vcombine.low %v4315_v19, %v4318_v41  ;;  %v17181_v61 = vcombine.low %v15293_v27, %v15294_v18  ;;  %v17183_v28 = vcombine.low %v4322_v2, %v4325_v48  ;;  %v4326_v1 = vrot.slane %v4324_v21, 4  ;;  %v15295_v41 = vld [vmem:[%s15414_s30 + $0xe4] sm:$0xf]  ;;  %v15296_v2 = vld [vmem:[%s15414_s30 + $0xe8] sm:$0xf] }
 0x199   : > { %19281 = vst [vmem:[#allocation185_spill] sm:$0xff] %v17175_v5  ;;  %v4329_v55 = vrot.slane %v4327_v12, 4  ;;  %v4330_v10 = vrot.slane %v16399_v16, 5  ;;  %v4336_v0 = vrot.slane %v4334_v35, 4  ;;  %v4337_v58 = vrot.slane %v16445_v39, 5 }
 0x19a   : > { %12985 = vmatmul.mubr.msk.bf16.gmra.mrb[32].mxu1 %vm2118_vm3, %v17109_v50  ;;  %13569 = vmatmul.mubr.msk.bf16.gmra.mrb[96].mxu0 %vm2118_vm3, %v17111_v34  ;;  %19282 = vst [vmem:[#allocation186_spill] sm:$0xff] %v17177_v53  ;;  %19283 = vst [vmem:[#allocation187_spill] sm:$0xff] %v17181_v61  ;;  %v4328_v16 = vsel %vm15832_vm7, %v4326_v1, %v4327_v12  ;;  %v4340_v39 = vrot.slane %v16467_v26, 5  ;;  %v4335_v52 = vsel %vm15832_vm7, %v11054_v3, %v4334_v35 }
 0x19b   : > { %12988 = vmatprep.mubr.msk.bf16.mxu1 %vm2118_vm3, %v17115_v7  ;;  %13572 = vmatprep.mubr.msk.bf16.mxu0 %vm2118_vm3, %v17117_v46  ;;  %19284 = vst [vmem:[#allocation188_spill] sm:$0xff] %v17183_v28  ;;  %v4331_v59 = vsel %vm15832_vm7, %v4329_v55, %v4330_v10  ;;  %v4338_v21 = vsel %vm15832_vm7, %v4336_v0, %v4337_v58  ;;  %v4347_v19 = vrot.slane %v16506_v43, 5  ;;  %v4339_v32 = vrot.slane %v4337_v58, 4  ;;  %v15297_v10 = vld [vmem:[%s15414_s30 + $0xf8] sm:$0xf] }
 0x19c   : > { %v17208_v48 = vcombine.low %v15295_v41, %v15296_v2  ;;  %v17210_v17 = vcombine.low %v4328_v16, %v4331_v59  ;;  %v17214_v12 = vcombine.low %v16332_v25, %v16338_v40  ;;  %v17216_v26 = vcombine.low %v4335_v52, %v4338_v21 }
 0x19d   : > { %v4342_v35 = vrot.slane %v4340_v39, 4  ;;  %v4343_v27 = vrot.slane %v16470_v60, 5  ;;  %v11055_v43 = vrot.slane %v16499_v11, 9  ;;  %v4349_v18 = vrot.slane %v4347_v19, 4 }
 0x19e   : > { %19285 = vst [vmem:[#allocation189_spill] sm:$0xff] %v17208_v48  ;;  %19286 = vst [vmem:[#allocation190_spill] sm:$0xff] %v17210_v17  ;;  %v4350_v1 = vrot.slane %v16518_v45, 5  ;;  %v4341_v60 = vsel %vm15832_vm7, %v4339_v32, %v4340_v39  ;;  %v4353_v25 = vrot.slane %v16538_v29, 5  ;;  %v4360_v55 = vrot.slane %v16585_v63, 5 }
 0x19f   : > { %19287 = vst [vmem:[#allocation191_spill] sm:$0xff] %v17214_v12  ;;  %19288 = vst [vmem:[#allocation192_spill] sm:$0xff] %v17216_v26  ;;  %v4344_v11 = vsel %vm15832_vm7, %v4342_v35, %v4343_v27  ;;  %v4348_v40 = vsel %vm15832_vm7, %v11055_v43, %v4347_v19  ;;  %v17243_v3 = vcombine.low %v15297_v10, %v16367_v14  ;;  %v4356_v14 = vrot.slane %v16545_v57, 5  ;;  %v17283_v35 = vld [vmem:[%s17254_s20] sm:$0xf] }
 0x1a0   : > { %v4351_v45 = vsel %vm15832_vm7, %v4349_v18, %v4350_v1  ;;  %v17245_v0 = vcombine.low %v4341_v60, %v4344_v11  ;;  %v17249_v58 = vcombine.low %v16402_v38, %v16406_v56  ;;  %v4352_v16 = vrot.slane %v4350_v1, 4  ;;  %v17262_v56 = vld [vmem:[%s17254_s20 + $0x4] sm:$0xf]  ;;  %v17286_v27 = vld [vmem:[%s17254_s20 + $0x8] sm:$0xf] }
 0x1a1   : > { %19289 = vst [vmem:[#allocation193_spill] sm:$0xff] %v17243_v3  ;;  %v17256_v29 = vcombine.low %v4348_v40, %v4351_v45  ;;  %v4355_v59 = vrot.slane %v4353_v25, 4  ;;  %v11056_v39 = vrot.slane %v16572_v13, 9  ;;  %v4362_v52 = vrot.slane %v4360_v55, 4 }
 0x1a2   : > { %12989 = vmatmul.mubr.msk.bf16.gmra.mrb[36].mxu1 %vm2118_vm3, %v17142_v44  ;;  %13573 = vmatmul.mubr.msk.bf16.gmra.mrb[100].mxu0 %vm2118_vm3, %v17144_v62  ;;  %19290 = vst [vmem:[#allocation194_spill] sm:$0xff] %v17245_v0  ;;  %19291 = vst [vmem:[#allocation195_spill] sm:$0xff] %v17249_v58  ;;  %v4363_v38 = vrot.slane %v16591_v42, 5  ;;  %v4354_v57 = vsel %vm15832_vm7, %v4352_v16, %v4353_v25  ;;  %v4366_v19 = vrot.slane %v16613_v30, 5  ;;  %v6864_v32 = vrot.slane %v17262_v56, 5 }
 0x1a3   : > { %12992 = vmatprep.mubr.msk.bf16.mxu1 %vm2118_vm3, %v17148_v36  ;;  %13576 = vmatprep.mubr.msk.bf16.mxu0 %vm2118_vm3, %v17150_v47  ;;  %19292 = vst [vmem:[#allocation196_spill] sm:$0xff] %v17256_v29  ;;  %v4357_v21 = vsel %vm15832_vm7, %v4355_v59, %v4356_v14  ;;  %v4361_v41 = vsel %vm15832_vm7, %v11056_v39, %v4360_v55  ;;  %v4369_v40 = vrot.slane %v16616_v4, 5  ;;  %v11320_v45 = vrot.slane %v17283_v35, 9  ;;  %v17324_v59 = vld [vmem:[%s17254_s20 + $0x10] sm:$0x1] }
 0x1a4   : > { %v4364_v2 = vsel %vm15832_vm7, %v4362_v52, %v4363_v38  ;;  %v17290_v43 = vcombine.low %v16410_v54, %v16435_v33  ;;  %v17292_v18 = vcombine.low %v4354_v57, %v4357_v21  ;;  %v17296_v1 = vcombine.low %v16475_v15, %v16481_v9  ;;  %v17304_v54 = vld [vmem:[%s17254_s20 + $0xc] sm:$0xf]  ;;  %19297 = vst [vmem:[#allocation201_spill] sm:$0xff] %v17324_v59 }
 0x1a5   : > { %v17298_v60 = vcombine.low %v4361_v41, %v4364_v2  ;;  %v4365_v11 = vrot.slane %v4363_v38, 4  ;;  %v4368_v25 = vrot.slane %v4366_v19, 4  ;;  %v6866_v55 = vrot.slane %v6864_v32, 4  ;;  %v19305_v2 = vld [vmem:[#allocation95_spill] sm:$0xff] }
 0x1a6   : > { %19293 = vst [vmem:[#allocation197_spill] sm:$0xff] %v17290_v43  ;;  %19294 = vst [vmem:[#allocation198_spill] sm:$0xff] %v17292_v18  ;;  %v6867_v10 = vrot.slane %v17286_v27, 5  ;;  %v6870_v15 = vrot.slane %v17304_v54, 5  ;;  %v6865_v9 = vsel %vm15832_vm7, %v11320_v45, %v6864_v32  ;;  %v17328_v14 = vcombine.low %v16485_v31, %v16513_v24  ;;  %v19302_v24 = vld [vmem:[#allocation89_spill] sm:$0xff]  ;;  %v19306_v32 = vld [vmem:[#allocation94_spill] sm:$0xff] }
 0x1a7   : > { %19295 = vst [vmem:[#allocation199_spill] sm:$0xff] %v17296_v1  ;;  %19296 = vst [vmem:[#allocation200_spill] sm:$0xff] %v17298_v60  ;;  %v4367_v4 = vsel %vm15832_vm7, %v4365_v11, %v4366_v19  ;;  %v4370_v33 = vsel %vm15832_vm7, %v4368_v25, %v4369_v40  ;;  %v17334_v52 = vcombine.low %v16548_v51, %v16552_v22  ;;  %v6873_v19 = vrot.slane %v17324_v59, 5  ;;  %v19308_v25 = vld [vmem:[#allocation96_spill] sm:$0xff] }
 0x1a8   : > { %v6868_v16 = vsel %vm15832_vm7, %v6866_v55, %v6867_v10  ;;  %19298 = vst [vmem:[#allocation202_spill] sm:$0xff] %v17328_v14  ;;  %v17330_v39 = vcombine.low %v4367_v4, %v4370_v33  ;;  %v6869_v57 = vrot.slane %v6867_v10, 4  ;;  %v6872_v21 = vrot.slane %v6870_v15, 4  ;;  %v19310_v45 = vld [vmem:[#allocation100_spill] sm:$0xff]  ;;  %v19311_v55 = vld [vmem:[#allocation99_spill] sm:$0xff] }
 0x1a9   : > { %19300 = vst [vmem:[#allocation204_spill] sm:$0xff] %v17334_v52  ;;  %v17336_v38 = vcombine.low %v6865_v9, %v6868_v16  ;;  %v17353_v22 = vcombine.low %v19302_v24, %v16581_v49  ;;  %v17359_v11 = vcombine.low %v19306_v32, %v19305_v2  ;;  %v17372_v49 = vld [vmem:[%s18776_s2 + $0x6] sm:$0x3]  ;;  %v17378_v40 = vcombine.low %v19308_v25, %v16653_v37  ;;  %v19312_v4 = vld [vmem:[#allocation112_spill] sm:$0xff]  ;;  %v19314_v9 = vld [vmem:[#allocation133_spill] sm:$0xff] }
 0x1aa   : > { %12993 = vmatmul.mubr.msk.bf16.gmra.mrb[40].mxu1 %vm2118_vm3, %v17175_v5  ;;  %13577 = vmatmul.mubr.msk.bf16.gmra.mrb[104].mxu0 %vm2118_vm3, %v17177_v53  ;;  %19299 = vst [vmem:[#allocation203_spill] sm:$0xff] %v17330_v39  ;;  %v6871_v51 = vsel %vm15832_vm7, %v6869_v57, %v6870_v15  ;;  %v6874_v31 = vsel %vm15832_vm7, %v6872_v21, %v6873_v19  ;;  %v8318_v33 = vsel %vm2311_vm0, %v19312_v4, 0  ;;  %v19313_v15 = vld [vmem:[#allocation131_spill] sm:$0xff]  ;;  %v19315_v37 = vld [vmem:[#allocation104_spill] sm:$0xff]  ;;  %v19317_v21 = vld [vmem:[#allocation109_spill] sm:$0xff] }
 0x1ab   : > { %12996 = vmatprep.mubr.msk.bf16.mxu1 %vm2118_vm3, %v17181_v61  ;;  %13580 = vmatprep.mubr.msk.bf16.mxu0 %vm2118_vm3, %v17183_v28  ;;  %19301 = vst [vmem:[#allocation205_spill] sm:$0xff] %v17336_v38  ;;  %19303 = vst [vmem:[#allocation89_spill] sm:$0xff] %v17353_v22  ;;  %v17355_v41 = vcombine.low %v6871_v51, %v6874_v31  ;;  %v17382_v10 = vcombine.low %v19311_v55, %v19310_v45  ;;  %v19316_v16 = vld [vmem:[#allocation103_spill] sm:$0xff]  ;;  %v19320_v24 = vld [vmem:[#allocation141_spill] sm:$0xff] }
 0x1ac   : > { %19307 = vst [vmem:[#allocation95_spill] sm:$0xff] %v17359_v11  ;;  %15019 = vmatprep.subr.msk.bf16.mxu1 %vm2311_vm0, %v17372_v49  ;;  %19309 = vst [vmem:[#allocation94_spill] sm:$0xff] %v17378_v40  ;;  %v17396_v57 = vcombine.low %v19316_v16, %v19315_v37  ;;  %v19318_v19 = vld [vmem:[#allocation107_spill] sm:$0xff]  ;;  %v19322_v32 = vld [vmem:[#allocation110_spill] sm:$0xff] }
 0x1ad   : > { %19304 = vst [vmem:[#allocation206_spill] sm:$0xff] %v17355_v41  ;;  %v17400_v51 = vcombine.low %v19318_v19, %v19317_v21  ;;  %v19319_v31 = vld [vmem:[#allocation139_spill] sm:$0xff]  ;;  %v19323_v45 = vld [vmem:[#allocation113_spill] sm:$0xff]  ;;  %v19328_v21 = vld [vmem:[#allocation120_spill] sm:$0xff] }
 0x1ae   : > { %v19321_v2 = vld [vmem:[#allocation111_spill] sm:$0xff]  ;;  %v19326_v37 = vld [vmem:[#allocation149_spill] sm:$0xff]  ;;  %v19334_v59 = vld [vmem:[#allocation128_spill] sm:$0xff] }
 0x1af   : > { %v17412_v25 = vcombine.low %v19322_v32, %v19321_v2  ;;  %v19324_v55 = vld [vmem:[#allocation119_spill] sm:$0xff]  ;;  %v19327_v16 = vld [vmem:[#allocation121_spill] sm:$0xff]  ;;  %v19329_v2 = vld [vmem:[#allocation122_spill] sm:$0xff] }
 0x1b0   : > { %v17416_v4 = vcombine.low %v19324_v55, %v19323_v45  ;;  %v17428_v19 = vcombine.low %v19328_v21, %v19327_v16  ;;  %v19330_v32 = vld [vmem:[#allocation127_spill] sm:$0xff]  ;;  %v19335_v21 = vld [vmem:[#allocation130_spill] sm:$0xff] }
 0x1b1   : > { %v17432_v45 = vcombine.low %v19330_v32, %v19329_v2  ;;  %v19331_v55 = vld [vmem:[#allocation155_spill] sm:$0xff] }
 0x1b2   : > { %12997 = vmatmul.mubr.msk.bf16.gmra.mrb[44].mxu1 %vm2118_vm3, %v17208_v48  ;;  %13581 = vmatmul.mubr.msk.bf16.gmra.mrb[108].mxu0 %vm2118_vm3, %v17210_v17  ;;  %v19337_v32 = vld [vmem:[#allocation163_spill] sm:$0xff] }
 0x1b3   : > { %13000 = vmatprep.mubr.msk.bf16.mxu1 %vm2118_vm3, %v17214_v12  ;;  %13584 = vmatprep.mubr.msk.bf16.mxu0 %vm2118_vm3, %v17216_v26 }
 0x1ba   : > { %13001 = vmatmul.mubr.msk.bf16.gmra.mrb[48].mxu1 %vm2118_vm3, %v17243_v3  ;;  %13585 = vmatmul.mubr.msk.bf16.gmra.mrb[112].mxu0 %vm2118_vm3, %v17245_v0 }
 0x1bb   : > { %13004 = vmatprep.mubr.msk.bf16.mxu1 %vm2118_vm3, %v17249_v58  ;;  %13588 = vmatprep.mubr.msk.bf16.mxu0 %vm2118_vm3, %v17256_v29 }
 0x1c2   : > { %13005 = vmatmul.mubr.msk.bf16.gmra.mrb[52].mxu1 %vm2118_vm3, %v17290_v43  ;;  %13589 = vmatmul.mubr.msk.bf16.gmra.mrb[116].mxu0 %vm2118_vm3, %v17292_v18 }
 0x1c3   : > { %13008 = vmatprep.mubr.msk.bf16.mxu1 %vm2118_vm3, %v17296_v1  ;;  %13592 = vmatprep.mubr.msk.bf16.mxu0 %vm2118_vm3, %v17298_v60 }
 0x1ca   : > { %13009 = vmatmul.mubr.msk.bf16.gmra.mrb[56].mxu1 %vm2118_vm3, %v17328_v14  ;;  %13593 = vmatmul.mubr.msk.bf16.gmra.mrb[120].mxu0 %vm2118_vm3, %v17330_v39 }
 0x1cb   : > { %13012 = vmatprep.mubr.msk.bf16.mxu1 %vm2118_vm3, %v17334_v52  ;;  %13596 = vmatprep.mubr.msk.bf16.mxu0 %vm2118_vm3, %v17336_v38  ;;  %v19333_v38 = vld [vmem:[#allocation129_spill] sm:$0xff] }
 0x1cc   : > { %v17444_v16 = vcombine.low %v19334_v59, %v19333_v38  ;;  %v19341_v38 = vld [vmem:[#allocation138_spill] sm:$0xff] }
 0x1d2   : > { %13013 = vmatmul.mubr.msk.bf16.gmra.mrb[60].mxu1 %vm2118_vm3, %v17353_v22  ;;  %13597 = vmatmul.mubr.msk.bf16.gmra.mrb[124].mxu0 %vm2118_vm3, %v17355_v41  ;;  %v19332_v41 = vld [vmem:[#allocation157_spill] sm:$0xff] }
 0x1d3   : > { %13016 = vmatprep.mubr.msk.bf16.mxu1 %vm2118_vm3, %v17359_v11  ;;  %13602 = vmatprep.mubr.msk.bf16.mxu0 %vm2118_vm3, %v16806_v8 }
 0x1da   : > { %13017 = vmatmul.mubr.msk.bf16.gmra.mrb[64].mxu1 %vm2118_vm3, %v17378_v40  ;;  %13603 = vmatmul.mubr.msk.bf16.vlgmr.msra.gmra.mrb[0].mxu0 %vm2118_vm3, %v19313_v15 }
 0x1db   : > { %13731 = vmatpush3.bf16.msra.mxu0 %v8318_v33  ;;  %13020 = vmatprep.mubr.msk.bf16.mxu1 %vm2118_vm3, %v17382_v10  ;;  %v19325_v33 = vld [vmem:[#allocation147_spill] sm:$0xff] }
 0x1dc   : > { %13606 = vmatprep.mubr.msk.bf16.mxu0 %vm2118_vm3, %v19314_v9  ;;  %v19375_v9 = vld [vmem:[#allocation114_spill] sm:$0xff] }
 0x1dd   : > { %v3960_v15 = vrot.slane %v19375_v9, 5 }
 0x1e2   : > { %13021 = vmatmul.mubr.msk.bf16.gmra.mrb[68].mxu1 %vm2118_vm3, %v17396_v57  ;;  %13607 = vmatmul.mubr.msk.bf16.gmra.mrb[4].mxu0 %vm2118_vm3, %v19319_v31 }
 0x1e3   : > { %13024 = vmatprep.mubr.msk.bf16.mxu1 %vm2118_vm3, %v17400_v51  ;;  %13610 = vmatprep.mubr.msk.bf16.mxu0 %vm2118_vm3, %v19320_v24  ;;  %v19342_v24 = vld [vmem:[#allocation143_spill] sm:$0xff] }
 0x1ea   : > { %13025 = vmatmul.mubr.msk.bf16.gmra.mrb[72].mxu1 %vm2118_vm3, %v17412_v25  ;;  %13611 = vmatmul.mubr.msk.bf16.gmra.mrb[8].mxu0 %vm2118_vm3, %v19325_v33  ;;  %v19340_v33 = vld [vmem:[#allocation136_spill] sm:$0xff] }
 0x1eb   : > { %13028 = vmatprep.mubr.msk.bf16.mxu1 %vm2118_vm3, %v17416_v4  ;;  %13614 = vmatprep.mubr.msk.bf16.mxu0 %vm2118_vm3, %v19326_v37  ;;  %v19336_v37 = vld [vmem:[#allocation135_spill] sm:$0xff] }
 0x1ec   : > { %v17448_v2 = vcombine.low %v19336_v37, %v19335_v21  ;;  %v17464_v37 = vcombine.low %v19342_v24, %v19341_v38  ;;  %v19343_v21 = vld [vmem:[#allocation145_spill] sm:$0xff] }
 0x1ed   : > { %v19347_v38 = vld [vmem:[#allocation153_spill] sm:$0xff] }
 0x1f2   : > { %13029 = vmatmul.mubr.msk.bf16.gmra.mrb[76].mxu1 %vm2118_vm3, %v17428_v19  ;;  %13615 = vmatmul.mubr.msk.bf16.gmra.mrb[12].mxu0 %vm2118_vm3, %v19331_v55  ;;  %v19338_v55 = vld [vmem:[#allocation165_spill] sm:$0xff] }
 0x1f3   : > { %13032 = vmatprep.mubr.msk.bf16.mxu1 %vm2118_vm3, %v17432_v45  ;;  %13618 = vmatprep.mubr.msk.bf16.mxu0 %vm2118_vm3, %v19332_v41  ;;  %v19339_v41 = vld [vmem:[#allocation137_spill] sm:$0xff] }
 0x1f4   : > { %v17460_v59 = vcombine.low %v19340_v33, %v19339_v41  ;;  %v19345_v33 = vld [vmem:[#allocation146_spill] sm:$0xff] }
 0x1fa   : > { %13033 = vmatmul.mubr.msk.bf16.gmra.mrb[80].mxu1 %vm2118_vm3, %v17444_v16  ;;  %13619 = vmatmul.mubr.msk.bf16.gmra.mrb[16].mxu0 %vm2118_vm3, %v19337_v32  ;;  %v19346_v32 = vld [vmem:[#allocation151_spill] sm:$0xff] }
 0x1fb   : > { %13036 = vmatprep.mubr.msk.bf16.mxu1 %vm2118_vm3, %v17448_v2  ;;  %13622 = vmatprep.mubr.msk.bf16.mxu0 %vm2118_vm3, %v19338_v55  ;;  %v19344_v55 = vld [vmem:[#allocation144_spill] sm:$0xff]  ;;  %v17480_v24 = vcombine.low %v19346_v32, %v19345_v33 }
 0x1fc   : > { %v17476_v41 = vcombine.low %v19344_v55, %v19343_v21  ;;  %v19349_v21 = vld [vmem:[#allocation154_spill] sm:$0xff]  ;;  %v19352_v33 = vld [vmem:[#allocation160_spill] sm:$0xff] }
 0x202   : > { %13037 = vmatmul.mubr.msk.bf16.gmra.mrb[84].mxu1 %vm2118_vm3, %v17460_v59  ;;  %13623 = vmatmul.mubr.msk.bf16.gmra.mrb[20].mxu0 %vm2118_vm3, %v17070_v23  ;;  %v19350_v23 = vld [vmem:[#allocation159_spill] sm:$0xff] }
 0x203   : > { %13040 = vmatprep.mubr.msk.bf16.mxu1 %vm2118_vm3, %v17464_v37  ;;  %13626 = vmatprep.mubr.msk.bf16.mxu0 %vm2118_vm3, %v17076_v20  ;;  %v19348_v20 = vld [vmem:[#allocation152_spill] sm:$0xff]  ;;  %v17496_v32 = vcombine.low %v19350_v23, %v19349_v21  ;;  %v19353_v23 = vld [vmem:[#allocation162_spill] sm:$0xff]  ;;  %v19354_v21 = vld [vmem:[#allocation167_spill] sm:$0xff] }
 0x204   : > { %v17492_v55 = vcombine.low %v19348_v20, %v19347_v38  ;;  %v19351_v20 = vld [vmem:[#allocation161_spill] sm:$0xff] }
 0x205   : > { %v17508_v38 = vcombine.low %v19352_v33, %v19351_v20  ;;  %v19359_v33 = vld [vmem:[#allocation170_spill] sm:$0xff] }
 0x20a   : > { %13041 = vmatmul.mubr.msk.bf16.gmra.mrb[88].mxu1 %vm2118_vm3, %v17476_v41  ;;  %13627 = vmatmul.mubr.msk.bf16.gmra.mrb[24].mxu0 %vm2118_vm3, %v17109_v50 }
 0x20b   : > { %13044 = vmatprep.mubr.msk.bf16.mxu1 %vm2118_vm3, %v17480_v24  ;;  %13630 = vmatprep.mubr.msk.bf16.mxu0 %vm2118_vm3, %v17115_v7  ;;  %v17512_v7 = vcombine.low %v19354_v21, %v19353_v23  ;;  %v19360_v23 = vld [vmem:[#allocation175_spill] sm:$0xff] }
 0x20c   : > { %v17528_v21 = vcombine.low %v19360_v23, %v19359_v33  ;;  %v15299_v33 = vld [vmem:[%s15414_s30 + $0x21c] sm:$0xf]  ;;  %v15300_v23 = vld [vmem:[%s15414_s30 + $0x220] sm:$0xf] }
 0x20d   : > { %19355 = vst [vmem:[#allocation96_spill] sm:$0xff] %v17512_v7 }
 0x20e   : > { %19361 = vst [vmem:[#allocation99_spill] sm:$0xff] %v17528_v21 }
 0x212   : > { %13045 = vmatmul.mubr.msk.bf16.gmra.mrb[92].mxu1 %vm2118_vm3, %v17492_v55  ;;  %13631 = vmatmul.mubr.msk.bf16.gmra.mrb[28].mxu0 %vm2118_vm3, %v17142_v44  ;;  %v19357_v44 = vld [vmem:[#allocation168_spill] sm:$0xff] }
 0x213   : > { %13048 = vmatprep.mubr.msk.bf16.mxu1 %vm2118_vm3, %v17496_v32  ;;  %13634 = vmatprep.mubr.msk.bf16.mxu0 %vm2118_vm3, %v17148_v36  ;;  %v19356_v36 = vld [vmem:[#allocation169_spill] sm:$0xff] }
 0x214   : > { %v17524_v20 = vcombine.low %v19357_v44, %v19356_v36  ;;  %v15298_v44 = vld [vmem:[%s15414_s30 + $0x214] sm:$0xf] }
 0x215   : > { %v19362_v36 = vld [vmem:[#allocation176_spill] sm:$0xff] }
 0x216   : > { %19358 = vst [vmem:[#allocation100_spill] sm:$0xff] %v17524_v20 }
 0x21a   : > { %13049 = vmatmul.mubr.msk.bf16.gmra.mrb[96].mxu1 %vm2118_vm3, %v17508_v38  ;;  %13635 = vmatmul.mubr.msk.bf16.gmra.mrb[32].mxu0 %vm2118_vm3, %v17175_v5  ;;  %v17544_v5 = vcombine.low %v15299_v33, %v15300_v23  ;;  %v15303_v33 = vld [vmem:[%s15414_s30 + $0x230] sm:$0xf]  ;;  %v15304_v23 = vld [vmem:[%s15414_s30 + $0x234] sm:$0xf] }
 0x21b   : > { %13052 = vmatprep.mubr.msk.bf16.mxu1 %vm2118_vm3, %v17512_v7  ;;  %13638 = vmatprep.mubr.msk.bf16.mxu0 %vm2118_vm3, %v17181_v61  ;;  %v17540_v61 = vcombine.low %v19362_v36, %v15298_v44  ;;  %v15301_v44 = vld [vmem:[%s15414_s30 + $0x224] sm:$0xf]  ;;  %v15302_v36 = vld [vmem:[%s15414_s30 + $0x228] sm:$0xf] }
 0x21c   : > { %19364 = vst [vmem:[#allocation104_spill] sm:$0xff] %v17544_v5 }
 0x21d   : > { %19363 = vst [vmem:[#allocation112_spill] sm:$0xff] %v17540_v61 }
 0x222   : > { %13053 = vmatmul.mubr.msk.bf16.gmra.mrb[100].mxu1 %vm2118_vm3, %v17524_v20  ;;  %13639 = vmatmul.mubr.msk.bf16.gmra.mrb[36].mxu0 %vm2118_vm3, %v17208_v48  ;;  %v17560_v48 = vcombine.low %v15303_v33, %v15304_v23  ;;  %v15307_v33 = vld [vmem:[%s15414_s30 + $0x244] sm:$0xf]  ;;  %v15308_v23 = vld [vmem:[%s15414_s30 + $0x248] sm:$0xf] }
 0x223   : > { %13056 = vmatprep.mubr.msk.bf16.mxu1 %vm2118_vm3, %v17528_v21  ;;  %13642 = vmatprep.mubr.msk.bf16.mxu0 %vm2118_vm3, %v17214_v12  ;;  %v17556_v12 = vcombine.low %v15301_v44, %v15302_v36  ;;  %v15305_v44 = vld [vmem:[%s15414_s30 + $0x238] sm:$0xf]  ;;  %v15306_v36 = vld [vmem:[%s15414_s30 + $0x23c] sm:$0xf] }
 0x224   : > { %19366 = vst [vmem:[#allocation109_spill] sm:$0xff] %v17560_v48 }
 0x225   : > { %19365 = vst [vmem:[#allocation103_spill] sm:$0xff] %v17556_v12 }
 0x22a   : > { %13057 = vmatmul.mubr.msk.bf16.gmra.mrb[104].mxu1 %vm2118_vm3, %v17540_v61  ;;  %13643 = vmatmul.mubr.msk.bf16.gmra.mrb[40].mxu0 %vm2118_vm3, %v17243_v3  ;;  %v17576_v3 = vcombine.low %v15307_v33, %v15308_v23  ;;  %v15311_v33 = vld [vmem:[%s15414_s30 + $0x258] sm:$0xf]  ;;  %v15312_v23 = vld [vmem:[%s15414_s30 + $0x25c] sm:$0xf] }
 0x22b   : > { %13060 = vmatprep.mubr.msk.bf16.mxu1 %vm2118_vm3, %v17544_v5  ;;  %13646 = vmatprep.mubr.msk.bf16.mxu0 %vm2118_vm3, %v17249_v58  ;;  %v17572_v58 = vcombine.low %v15305_v44, %v15306_v36  ;;  %v15309_v44 = vld [vmem:[%s15414_s30 + $0x24c] sm:$0xf]  ;;  %v15310_v36 = vld [vmem:[%s15414_s30 + $0x250] sm:$0xf] }
 0x22c   : > { %19368 = vst [vmem:[#allocation111_spill] sm:$0xff] %v17576_v3 }
 0x22d   : > { %19367 = vst [vmem:[#allocation107_spill] sm:$0xff] %v17572_v58 }
 0x232   : > { %13061 = vmatmul.mubr.msk.bf16.gmra.mrb[108].mxu1 %vm2118_vm3, %v17556_v12  ;;  %13647 = vmatmul.mubr.msk.bf16.gmra.mrb[44].mxu0 %vm2118_vm3, %v17290_v43  ;;  %v17592_v43 = vcombine.low %v15311_v33, %v15312_v23  ;;  %v17609_v33 = vcombine.low %v16572_v13, %v16585_v63  ;;  %v19374_v23 = vld [vmem:[#allocation101_spill] sm:$0xff] }
 0x233   : > { %13064 = vmatprep.mubr.msk.bf16.mxu1 %vm2118_vm3, %v17560_v48  ;;  %13650 = vmatprep.mubr.msk.bf16.mxu0 %vm2118_vm3, %v17296_v1  ;;  %v17588_v1 = vcombine.low %v15309_v44, %v15310_v36  ;;  %v15313_v44 = vld [vmem:[%s15414_s30 + $0x260] sm:$0xf]  ;;  %v15314_v36 = vld [vmem:[%s15414_s30 + $0x264] sm:$0xf]  ;;  %v11025_v31 = vrot.slane %v19374_v23, 9 }
 0x234   : > { %19370 = vst [vmem:[#allocation113_spill] sm:$0xff] %v17592_v43  ;;  %v17605_v50 = vcombine.low %v15313_v44, %v15314_v36  ;;  %19373 = vst [vmem:[#allocation121_spill] sm:$0xff] %v17609_v33  ;;  %v17628_v44 = vcombine.low %v16591_v42, %v16613_v30  ;;  %v15315_v36 = vld [vmem:[%s15414_s30 + $0x10] sm:$0x1] }
 0x235   : > { %19369 = vst [vmem:[#allocation110_spill] sm:$0xff] %v17588_v1  ;;  %v3966_v23 = vrot.slane %v15315_v36, 5  ;;  %v19386_v36 = vld [vmem:[#allocation49_spill] sm:$0xff] }
 0x236   : > { %19372 = vst [vmem:[#allocation119_spill] sm:$0xff] %v17605_v50  ;;  %19377 = vst [vmem:[#allocation120_spill] sm:$0xff] %v17628_v44 }
 0x23a   : > { %13065 = vmatmul.mubr.msk.bf16.gmra.mrb[112].mxu1 %vm2118_vm3, %v17572_v58  ;;  %13651 = vmatmul.mubr.msk.bf16.gmra.mrb[48].mxu0 %vm2118_vm3, %v17328_v14 }
 0x23b   : > { %13068 = vmatprep.mubr.msk.bf16.mxu1 %vm2118_vm3, %v17576_v3  ;;  %13654 = vmatprep.mubr.msk.bf16.mxu0 %vm2118_vm3, %v17334_v52  ;;  %v19371_v52 = vld [vmem:[#allocation102_spill] sm:$0xff] }
 0x23c   : > { %v3957_v14 = vrot.slane %v19371_v52, 5  ;;  %v19376_v52 = vld [vmem:[#allocation115_spill] sm:$0xff] }
 0x23d   : > { %v3963_v13 = vrot.slane %v19376_v52, 5  ;;  %v19382_v52 = vld [vmem:[#allocation41_spill] sm:$0xff] }
 0x23e   : > { %v3958_v63 = vsel %vm15832_vm7, %v11025_v31, %v3957_v14  ;;  %v19381_v31 = vld [vmem:[#allocation40_spill] sm:$0xff] }
 0x23f   : > { %v3965_v8 = vrot.slane %v3963_v13, 4 }
 0x241   : > { %v3967_v42 = vsel %vm15832_vm7, %v3965_v8, %v3966_v23  ;;  %v15316_v8 = vld [vmem:[%s18776_s2 + $0x8] sm:$0x3] }
 0x242   : > { %13069 = vmatmul.mubr.msk.bf16.gmra.mrb[116].mxu1 %vm2118_vm3, %v17588_v1  ;;  %13655 = vmatmul.mubr.msk.bf16.gmra.mrb[52].mxu0 %vm2118_vm3, %v17353_v22  ;;  %v3959_v22 = vrot.slane %v3957_v14, 4  ;;  %v17645_v14 = vld [vmem:[%s18776_s2 + $0x10] sm:$0x3]  ;;  %v19387_v23 = vld [vmem:[#allocation51_spill] sm:$0xff] }
 0x243   : > { %13072 = vmatprep.mubr.msk.bf16.mxu1 %vm2118_vm3, %v17592_v43  ;;  %13658 = vmatprep.mubr.msk.bf16.mxu0 %vm2118_vm3, %v17359_v11 }
 0x244   : > { %v3961_v9 = vsel %vm15832_vm7, %v3959_v22, %v3960_v15  ;;  %15025 = vmatprep.subr.msk.bf16.mxu0 %vm2311_vm0, %v17645_v14 }
 0x245   : > { %v11058_v11 = vcombine.low %v3958_v63, %v3961_v9  ;;  %v19384_v63 = vld [vmem:[#allocation46_spill] sm:$0xff]  ;;  %v19385_v9 = vld [vmem:[#allocation48_spill] sm:$0xff] }
 0x24a   : > { %13073 = vmatmul.mubr.msk.bf16.gmra.mrb[120].mxu1 %vm2118_vm3, %v17605_v50  ;;  %13659 = vmatmul.mubr.msk.bf16.gmra.mrb[56].mxu0 %vm2118_vm3, %v17378_v40  ;;  %v3962_v40 = vrot.slane %v3960_v15, 4  ;;  %v19379_v15 = vld [vmem:[#allocation36_spill] sm:$0xff] }
 0x24b   : > { %13076 = vmatprep.mubr.msk.bf16.mxu1 %vm2118_vm3, %v17609_v33  ;;  %13662 = vmatprep.mubr.msk.bf16.mxu0 %vm2118_vm3, %v17382_v10 }
 0x24c   : > { %v3964_v30 = vsel %vm15832_vm7, %v3962_v40, %v3963_v13  ;;  %v19378_v40 = vld [vmem:[#allocation35_spill] sm:$0xff] }
 0x24d   : > { %v11059_v22 = vcombine.low %v3964_v30, %v3967_v42  ;;  %v19383_v13 = vld [vmem:[#allocation43_spill] sm:$0xff]  ;;  %v19388_v30 = vld [vmem:[#allocation54_spill] sm:$0xff]  ;;  %v19389_v42 = vld [vmem:[#allocation56_spill] sm:$0xff] }
 0x252   : > { %13077 = vmatmul.mubr.msk.bf16.gmra.mrb[124].mxu1 %vm2118_vm3, %v17628_v44  ;;  %13663 = vmatmul.mubr.msk.bf16.gmra.mrb[60].mxu0 %vm2118_vm3, %v17396_v57 }
 0x253   : > { %13082 = vmatprep.mubr.msk.bf16.mxu1 %vm2118_vm3, %v11058_v11  ;;  %13666 = vmatprep.mubr.msk.bf16.mxu0 %vm2118_vm3, %v17400_v51  ;;  %v5452_v11 = vsel %vm2311_vm0, %v17372_v49, 0  ;;  %v19380_v49 = vld [vmem:[#allocation37_spill] sm:$0xff] }
 0x25a   : > { %13083 = vmatmul.mubr.msk.bf16.vlgmr.msra.gmra.mrb[0].mxu1 %vm2118_vm3, %v11059_v22  ;;  %13667 = vmatmul.mubr.msk.bf16.gmra.mrb[64].mxu0 %vm2118_vm3, %v17412_v25  ;;  %v19390_v22 = vld [vmem:[#allocation57_spill] sm:$0xff] }
 0x25b   : > { %13211 = vmatpush3.bf16.msra.mxu1 %v5452_v11  ;;  %13086 = vmatprep.mubr.msk.bf16.mxu1 %vm2118_vm3, %v19378_v40  ;;  %v19391_v11 = vld [vmem:[#allocation59_spill] sm:$0xff]  ;;  %v19392_v40 = vld [vmem:[#allocation62_spill] sm:$0xff] }
 0x25c   : > { %13670 = vmatprep.mubr.msk.bf16.mxu0 %vm2118_vm3, %v17416_v4  ;;  %15021 = vmatprep.subr.msk.bf16.mxu1 %vm2311_vm0, %v15316_v8  ;;  %v19393_v8 = vld [vmem:[#allocation64_spill] sm:$0xff] }
 0x262   : > { %13087 = vmatmul.mubr.msk.bf16.gmra.mrb[4].mxu1 %vm2118_vm3, %v19379_v15  ;;  %13671 = vmatmul.mubr.msk.bf16.gmra.mrb[68].mxu0 %vm2118_vm3, %v17428_v19  ;;  %v19394_v15 = vld [vmem:[#allocation65_spill] sm:$0xff] }
 0x263   : > { %13090 = vmatprep.mubr.msk.bf16.mxu1 %vm2118_vm3, %v19380_v49  ;;  %13674 = vmatprep.mubr.msk.bf16.mxu0 %vm2118_vm3, %v17432_v45 }
 0x26a   : > { %13091 = vmatmul.mubr.msk.bf16.gmra.mrb[8].mxu1 %vm2118_vm3, %v19381_v31  ;;  %13675 = vmatmul.mubr.msk.bf16.gmra.mrb[72].mxu0 %vm2118_vm3, %v17444_v16 }
 0x26b   : > { %13094 = vmatprep.mubr.msk.bf16.mxu1 %vm2118_vm3, %v19382_v52  ;;  %13678 = vmatprep.mubr.msk.bf16.mxu0 %vm2118_vm3, %v17448_v2 }
 0x272   : > { %13095 = vmatmul.mubr.msk.bf16.gmra.mrb[12].mxu1 %vm2118_vm3, %v19383_v13  ;;  %13679 = vmatmul.mubr.msk.bf16.gmra.mrb[76].mxu0 %vm2118_vm3, %v17460_v59 }
 0x273   : > { %13098 = vmatprep.mubr.msk.bf16.mxu1 %vm2118_vm3, %v19384_v63  ;;  %13682 = vmatprep.mubr.msk.bf16.mxu0 %vm2118_vm3, %v17464_v37 }
 0x27a   : > { %13099 = vmatmul.mubr.msk.bf16.gmra.mrb[16].mxu1 %vm2118_vm3, %v19385_v9  ;;  %13683 = vmatmul.mubr.msk.bf16.gmra.mrb[80].mxu0 %vm2118_vm3, %v17476_v41 }
 0x27b   : > { %13102 = vmatprep.mubr.msk.bf16.mxu1 %vm2118_vm3, %v19386_v36  ;;  %13686 = vmatprep.mubr.msk.bf16.mxu0 %vm2118_vm3, %v17480_v24 }
 0x282   : > { %13103 = vmatmul.mubr.msk.bf16.gmra.mrb[20].mxu1 %vm2118_vm3, %v19387_v23  ;;  %13687 = vmatmul.mubr.msk.bf16.gmra.mrb[84].mxu0 %vm2118_vm3, %v17492_v55 }
 0x283   : > { %13106 = vmatprep.mubr.msk.bf16.mxu1 %vm2118_vm3, %v19388_v30  ;;  %13690 = vmatprep.mubr.msk.bf16.mxu0 %vm2118_vm3, %v17496_v32 }
 0x28a   : > { %13107 = vmatmul.mubr.msk.bf16.gmra.mrb[24].mxu1 %vm2118_vm3, %v19389_v42  ;;  %13691 = vmatmul.mubr.msk.bf16.gmra.mrb[88].mxu0 %vm2118_vm3, %v17508_v38 }
 0x28b   : > { %13110 = vmatprep.mubr.msk.bf16.mxu1 %vm2118_vm3, %v19390_v22  ;;  %13694 = vmatprep.mubr.msk.bf16.mxu0 %vm2118_vm3, %v17512_v7  ;;  %v18063_v7 = vld [vmem:[%s17254_s20 + $0x24] sm:$0x1] }
 0x292   : > { %13111 = vmatmul.mubr.msk.bf16.gmra.mrb[28].mxu1 %vm2118_vm3, %v19391_v11  ;;  %13695 = vmatmul.mubr.msk.bf16.gmra.mrb[92].mxu0 %vm2118_vm3, %v17524_v20  ;;  %v19396_v20 = vld [vmem:[#allocation70_spill] sm:$0xff] }
 0x293   : > { %13114 = vmatprep.mubr.msk.bf16.mxu1 %vm2118_vm3, %v19392_v40  ;;  %13698 = vmatprep.mubr.msk.bf16.mxu0 %vm2118_vm3, %v17528_v21  ;;  %v19397_v21 = vld [vmem:[#allocation72_spill] sm:$0xff] }
 0x29a   : > { %13115 = vmatmul.mubr.msk.bf16.gmra.mrb[32].mxu1 %vm2118_vm3, %v19393_v8  ;;  %13699 = vmatmul.mubr.msk.bf16.gmra.mrb[96].mxu0 %vm2118_vm3, %v17540_v61  ;;  %v19398_v61 = vld [vmem:[#allocation73_spill] sm:$0xff] }
 0x29b   : > { %13118 = vmatprep.mubr.msk.bf16.mxu1 %vm2118_vm3, %v19394_v15  ;;  %13702 = vmatprep.mubr.msk.bf16.mxu0 %vm2118_vm3, %v17544_v5  ;;  %v19402_v5 = vld [vmem:[#allocation81_spill] sm:$0xff] }
 0x2a2   : > { %13119 = vmatmul.mubr.msk.bf16.gmra.mrb[36].mxu1 %vm2118_vm3, %v19395_v6  ;;  %13703 = vmatmul.mubr.msk.bf16.gmra.mrb[100].mxu0 %vm2118_vm3, %v17556_v12  ;;  %v19399_v12 = vld [vmem:[#allocation75_spill] sm:$0xff] }
 0x2a3   : > { %13122 = vmatprep.mubr.msk.bf16.mxu1 %vm2118_vm3, %v19396_v20  ;;  %13706 = vmatprep.mubr.msk.bf16.mxu0 %vm2118_vm3, %v17560_v48  ;;  %v19400_v48 = vld [vmem:[#allocation78_spill] sm:$0xff] }
 0x2aa   : > { %13123 = vmatmul.mubr.msk.bf16.gmra.mrb[40].mxu1 %vm2118_vm3, %v19397_v21  ;;  %13707 = vmatmul.mubr.msk.bf16.gmra.mrb[104].mxu0 %vm2118_vm3, %v17572_v58  ;;  %v19401_v58 = vld [vmem:[#allocation80_spill] sm:$0xff] }
 0x2ab   : > { %13126 = vmatprep.mubr.msk.bf16.mxu1 %vm2118_vm3, %v19398_v61  ;;  %13710 = vmatprep.mubr.msk.bf16.mxu0 %vm2118_vm3, %v17576_v3  ;;  %v19404_v3 = vld [vmem:[#allocation83_spill] sm:$0xff]  ;;  %v19415_v61 = vld [vmem:[#allocation5_spill] sm:$0xff]  ;;  %v19416_v21 = vld [vmem:[#allocation108_spill] sm:$0xff] }
 0x2b2   : > { %13127 = vmatmul.mubr.msk.bf16.gmra.mrb[44].mxu1 %vm2118_vm3, %v19399_v12  ;;  %13711 = vmatmul.mubr.msk.bf16.gmra.mrb[108].mxu0 %vm2118_vm3, %v17588_v1  ;;  %v17760_v1 = vcombine.low %v17283_v35, %v17262_v56  ;;  %v19411_v12 = vld [vmem:[#allocation92_spill] sm:$0xff] }
 0x2b3   : > { %13130 = vmatprep.mubr.msk.bf16.mxu1 %vm2118_vm3, %v19400_v48  ;;  %13714 = vmatprep.mubr.msk.bf16.mxu0 %vm2118_vm3, %v17592_v43  ;;  %v19405_v43 = vld [vmem:[#allocation86_spill] sm:$0xff] }
 0x2b4   : > { %19403 = vst [vmem:[#allocation122_spill] sm:$0xff] %v17760_v1 }
 0x2ba   : > { %13131 = vmatmul.mubr.msk.bf16.gmra.mrb[48].mxu1 %vm2118_vm3, %v19401_v58  ;;  %13715 = vmatmul.mubr.msk.bf16.gmra.mrb[112].mxu0 %vm2118_vm3, %v17605_v50  ;;  %v17771_v50 = vld [vmem:[%s17254_s20 + $0x14] sm:$0xf] }
 0x2bb   : > { %13134 = vmatprep.mubr.msk.bf16.mxu1 %vm2118_vm3, %v19402_v5  ;;  %13718 = vmatprep.mubr.msk.bf16.mxu0 %vm2118_vm3, %v17609_v33  ;;  %19406 = vst [vmem:[#allocation127_spill] sm:$0xff] %v17771_v50  ;;  %v17774_v5 = vld [vmem:[%s17254_s20 + $0x18] sm:$0xf]  ;;  %v17778_v33 = vcombine.low %v17286_v27, %v17304_v54  ;;  %v19409_v58 = vld [vmem:[#allocation88_spill] sm:$0xff] }
 0x2bc   : > { %19407 = vst [vmem:[#allocation129_spill] sm:$0xff] %v17774_v5 }
 0x2bd   : > { %19408 = vst [vmem:[#allocation128_spill] sm:$0xff] %v17778_v33 }
 0x2c2   : > { %13135 = vmatmul.mubr.msk.bf16.gmra.mrb[52].mxu1 %vm2118_vm3, %v19404_v3  ;;  %13719 = vmatmul.mubr.msk.bf16.gmra.mrb[116].mxu0 %vm2118_vm3, %v17628_v44  ;;  %v11389_v3 = vcombine.low %v17771_v50, %v17774_v5  ;;  %v19410_v44 = vld [vmem:[#allocation90_spill] sm:$0xff] }
 0x2c3   : > { %13138 = vmatprep.mubr.msk.bf16.mxu1 %vm2118_vm3, %v19405_v43  ;;  %13722 = vmatprep.mubr.msk.bf16.mxu0 %vm2118_vm3, %v17760_v1  ;;  %v17790_v1 = vld [vmem:[%s17254_s20 + $0x1c] sm:$0xf]  ;;  %v17793_v43 = vld [vmem:[%s17254_s20 + $0x20] sm:$0xf] }
 0x2c4   : > { %v11390_v48 = vcombine.low %v17790_v1, %v17793_v43 }
 0x2ca   : > { %13139 = vmatmul.mubr.msk.bf16.gmra.mrb[56].mxu1 %vm2118_vm3, %v19409_v58  ;;  %13723 = vmatmul.mubr.msk.bf16.gmra.mrb[120].mxu0 %vm2118_vm3, %v17778_v33  ;;  %v19412_v58 = vld [vmem:[#allocation98_spill] sm:$0xff]  ;;  %v19413_v33 = vld [vmem:[#allocation4_spill] sm:$0xff] }
 0x2cb   : > { %13142 = vmatprep.mubr.msk.bf16.mxu1 %vm2118_vm3, %v19410_v44  ;;  %13726 = vmatprep.mubr.msk.bf16.mxu0 %vm2118_vm3, %v11389_v3  ;;  %v9022_v3 = vsel %vm2311_vm0, %v17645_v14, 0  ;;  %v19414_v44 = vld [vmem:[#allocation106_spill] sm:$0xff] }
 0x2cc   : > { %v19420_v14 = vld [vmem:[#allocation118_spill] sm:$0xff] }
 0x2d2   : > { %13143 = vmatmul.mubr.msk.bf16.gmra.mrb[60].mxu1 %vm2118_vm3, %v19411_v12  ;;  %13727 = vmatmul.mubr.msk.bf16.gmra.mrb[124].mxu0 %vm2118_vm3, %v11390_v48  ;;  %v19417_v48 = vld [vmem:[#allocation6_spill] sm:$0xff] }
 0x2d3   : > { %13146 = vmatprep.mubr.msk.bf16.mxu1 %vm2118_vm3, %v19412_v58  ;;  %13732 = vmatprep.mubr.msk.bf16.mxu0 %vm2118_vm3, %v19413_v33  ;;  %v19418_v58 = vld [vmem:[#allocation116_spill] sm:$0xff]  ;;  %v19419_v33 = vld [vmem:[#allocation7_spill] sm:$0xff] }
 0x2da   : > { %13147 = vmatmul.mubr.msk.bf16.gmra.mrb[64].mxu1 %vm2118_vm3, %v19414_v44  ;;  %13733 = vmatmul.mubr.msk.bf16.vlgmr.msra.gmra.mrb[0].mxu0 %vm2118_vm3, %v19415_v61  ;;  %v19421_v44 = vld [vmem:[#allocation8_spill] sm:$0xff] }
 0x2db   : > { %13861 = vmatpush3.bf16.msra.mxu0 %v9022_v3  ;;  %13150 = vmatprep.mubr.msk.bf16.mxu1 %vm2118_vm3, %v19416_v21  ;;  %v19422_v61 = vld [vmem:[#allocation124_spill] sm:$0xff]  ;;  %v19423_v3 = vld [vmem:[#allocation9_spill] sm:$0xff]  ;;  %v19424_v21 = vld [vmem:[#allocation126_spill] sm:$0xff] }
 0x2dc   : > { %13736 = vmatprep.mubr.msk.bf16.mxu0 %vm2118_vm3, %v19417_v48  ;;  %v19425_v48 = vld [vmem:[#allocation10_spill] sm:$0xff] }
 0x2e2   : > { %13151 = vmatmul.mubr.msk.bf16.gmra.mrb[68].mxu1 %vm2118_vm3, %v19418_v58  ;;  %13737 = vmatmul.mubr.msk.bf16.gmra.mrb[4].mxu0 %vm2118_vm3, %v19419_v33  ;;  %v19426_v58 = vld [vmem:[#allocation132_spill] sm:$0xff]  ;;  %v19427_v33 = vld [vmem:[#allocation11_spill] sm:$0xff] }
 0x2e3   : > { %13154 = vmatprep.mubr.msk.bf16.mxu1 %vm2118_vm3, %v19420_v14  ;;  %13740 = vmatprep.mubr.msk.bf16.mxu0 %vm2118_vm3, %v19421_v44  ;;  %v19428_v14 = vld [vmem:[#allocation134_spill] sm:$0xff]  ;;  %v19429_v44 = vld [vmem:[#allocation12_spill] sm:$0xff] }
 0x2ea   : > { %13155 = vmatmul.mubr.msk.bf16.gmra.mrb[72].mxu1 %vm2118_vm3, %v19422_v61  ;;  %13741 = vmatmul.mubr.msk.bf16.gmra.mrb[8].mxu0 %vm2118_vm3, %v19423_v3  ;;  %v19430_v61 = vld [vmem:[#allocation140_spill] sm:$0xff]  ;;  %v19431_v3 = vld [vmem:[#allocation13_spill] sm:$0xff] }
 0x2eb   : > { %13158 = vmatprep.mubr.msk.bf16.mxu1 %vm2118_vm3, %v19424_v21  ;;  %13744 = vmatprep.mubr.msk.bf16.mxu0 %vm2118_vm3, %v19425_v48  ;;  %v19432_v21 = vld [vmem:[#allocation142_spill] sm:$0xff] }
 0x2ec   : > { %v19433_v48 = vld [vmem:[#allocation14_spill] sm:$0xff] }
 0x2f2   : > { %13159 = vmatmul.mubr.msk.bf16.gmra.mrb[76].mxu1 %vm2118_vm3, %v19426_v58  ;;  %13745 = vmatmul.mubr.msk.bf16.gmra.mrb[12].mxu0 %vm2118_vm3, %v19427_v33  ;;  %v19434_v58 = vld [vmem:[#allocation148_spill] sm:$0xff]  ;;  %v19435_v33 = vld [vmem:[#allocation15_spill] sm:$0xff] }
 0x2f3   : > { %13162 = vmatprep.mubr.msk.bf16.mxu1 %vm2118_vm3, %v19428_v14  ;;  %13748 = vmatprep.mubr.msk.bf16.mxu0 %vm2118_vm3, %v19429_v44  ;;  %v19436_v14 = vld [vmem:[#allocation150_spill] sm:$0xff]  ;;  %v19437_v44 = vld [vmem:[#allocation16_spill] sm:$0xff] }
 0x2fa   : > { %13163 = vmatmul.mubr.msk.bf16.gmra.mrb[80].mxu1 %vm2118_vm3, %v19430_v61  ;;  %13749 = vmatmul.mubr.msk.bf16.gmra.mrb[16].mxu0 %vm2118_vm3, %v19431_v3  ;;  %v19438_v61 = vld [vmem:[#allocation156_spill] sm:$0xff]  ;;  %v19439_v3 = vld [vmem:[#allocation17_spill] sm:$0xff] }
 0x2fb   : > { %13166 = vmatprep.mubr.msk.bf16.mxu1 %vm2118_vm3, %v19432_v21  ;;  %13752 = vmatprep.mubr.msk.bf16.mxu0 %vm2118_vm3, %v19433_v48  ;;  %v19440_v21 = vld [vmem:[#allocation158_spill] sm:$0xff] }
 0x2fc   : > { %v19441_v48 = vld [vmem:[#allocation18_spill] sm:$0xff] }
 0x302   : > { %13167 = vmatmul.mubr.msk.bf16.gmra.mrb[84].mxu1 %vm2118_vm3, %v19434_v58  ;;  %13753 = vmatmul.mubr.msk.bf16.gmra.mrb[20].mxu0 %vm2118_vm3, %v19435_v33  ;;  %v19442_v58 = vld [vmem:[#allocation164_spill] sm:$0xff]  ;;  %v19443_v33 = vld [vmem:[#allocation19_spill] sm:$0xff] }
 0x303   : > { %13170 = vmatprep.mubr.msk.bf16.mxu1 %vm2118_vm3, %v19436_v14  ;;  %13756 = vmatprep.mubr.msk.bf16.mxu0 %vm2118_vm3, %v19437_v44  ;;  %v19444_v14 = vld [vmem:[#allocation166_spill] sm:$0xff]  ;;  %v19445_v44 = vld [vmem:[#allocation20_spill] sm:$0xff] }
 0x30a   : > { %13171 = vmatmul.mubr.msk.bf16.gmra.mrb[88].mxu1 %vm2118_vm3, %v19438_v61  ;;  %13757 = vmatmul.mubr.msk.bf16.gmra.mrb[24].mxu0 %vm2118_vm3, %v19439_v3  ;;  %v19446_v61 = vld [vmem:[#allocation172_spill] sm:$0xff]  ;;  %v19447_v3 = vld [vmem:[#allocation21_spill] sm:$0xff] }
 0x30b   : > { %13174 = vmatprep.mubr.msk.bf16.mxu1 %vm2118_vm3, %v19440_v21  ;;  %13760 = vmatprep.mubr.msk.bf16.mxu0 %vm2118_vm3, %v19441_v48  ;;  %v19448_v21 = vld [vmem:[#allocation174_spill] sm:$0xff] }
 0x30c   : > { %v19449_v48 = vld [vmem:[#allocation22_spill] sm:$0xff] }
 0x312   : > { %13175 = vmatmul.mubr.msk.bf16.gmra.mrb[92].mxu1 %vm2118_vm3, %v19442_v58  ;;  %13761 = vmatmul.mubr.msk.bf16.gmra.mrb[28].mxu0 %vm2118_vm3, %v19443_v33  ;;  %v19450_v33 = vld [vmem:[#allocation23_spill] sm:$0xff] }
 0x313   : > { %13178 = vmatprep.mubr.msk.bf16.mxu1 %vm2118_vm3, %v19444_v14  ;;  %13764 = vmatprep.mubr.msk.bf16.mxu0 %vm2118_vm3, %v19445_v44  ;;  %v19451_v44 = vld [vmem:[#allocation24_spill] sm:$0xff] }
 0x314   : > { %v19491_v14 = vld [vmem:[#allocation68_spill] sm:$0xff] }
 0x31a   : > { %13179 = vmatmul.mubr.msk.bf16.gmra.mrb[96].mxu1 %vm2118_vm3, %v19446_v61  ;;  %13765 = vmatmul.mubr.msk.bf16.gmra.mrb[32].mxu0 %vm2118_vm3, %v19447_v3  ;;  %v19452_v3 = vld [vmem:[#allocation25_spill] sm:$0xff]  ;;  %v19489_v61 = vld [vmem:[#allocation66_spill] sm:$0xff] }
 0x31b   : > { %13182 = vmatprep.mubr.msk.bf16.mxu1 %vm2118_vm3, %v19448_v21  ;;  %13768 = vmatprep.mubr.msk.bf16.mxu0 %vm2118_vm3, %v19449_v48  ;;  %v19453_v48 = vld [vmem:[#allocation26_spill] sm:$0xff]  ;;  %v19487_v21 = vld [vmem:[#allocation63_spill] sm:$0xff] }
 0x322   : > { %13183 = vmatmul.mubr.msk.bf16.gmra.mrb[100].mxu1 %vm2118_vm3, %v17111_v34  ;;  %13769 = vmatmul.mubr.msk.bf16.gmra.mrb[36].mxu0 %vm2118_vm3, %v19450_v33  ;;  %v19454_v33 = vld [vmem:[#allocation27_spill] sm:$0xff]  ;;  %v19485_v34 = vld [vmem:[#allocation61_spill] sm:$0xff] }
 0x323   : > { %13186 = vmatprep.mubr.msk.bf16.mxu1 %vm2118_vm3, %v17117_v46  ;;  %13772 = vmatprep.mubr.msk.bf16.mxu0 %vm2118_vm3, %v19451_v44  ;;  %v19455_v44 = vld [vmem:[#allocation28_spill] sm:$0xff] }
 0x324   : > { %v19483_v46 = vld [vmem:[#allocation60_spill] sm:$0xff] }
 0x32a   : > { %13187 = vmatmul.mubr.msk.bf16.gmra.mrb[104].mxu1 %vm2118_vm3, %v17144_v62  ;;  %13773 = vmatmul.mubr.msk.bf16.gmra.mrb[40].mxu0 %vm2118_vm3, %v19452_v3  ;;  %v19456_v3 = vld [vmem:[#allocation29_spill] sm:$0xff]  ;;  %v19481_v62 = vld [vmem:[#allocation58_spill] sm:$0xff] }
 0x32b   : > { %13190 = vmatprep.mubr.msk.bf16.mxu1 %vm2118_vm3, %v17150_v47  ;;  %13776 = vmatprep.mubr.msk.bf16.mxu0 %vm2118_vm3, %v19453_v48  ;;  %v19457_v48 = vld [vmem:[#allocation30_spill] sm:$0xff]  ;;  %v19479_v47 = vld [vmem:[#allocation55_spill] sm:$0xff] }
 0x332   : > { %13191 = vmatmul.mubr.msk.bf16.gmra.mrb[108].mxu1 %vm2118_vm3, %v17177_v53  ;;  %13777 = vmatmul.mubr.msk.bf16.gmra.mrb[44].mxu0 %vm2118_vm3, %v19454_v33  ;;  %v19458_v33 = vld [vmem:[#allocation31_spill] sm:$0xff]  ;;  %v19477_v53 = vld [vmem:[#allocation53_spill] sm:$0xff] }
 0x333   : > { %13194 = vmatprep.mubr.msk.bf16.mxu1 %vm2118_vm3, %v17183_v28  ;;  %13780 = vmatprep.mubr.msk.bf16.mxu0 %vm2118_vm3, %v19455_v44  ;;  %v19459_v44 = vld [vmem:[#allocation33_spill] sm:$0xff]  ;;  %v19474_v28 = vld [vmem:[#allocation139_spill] sm:$0xff] }
 0x33a   : > { %13195 = vmatmul.mubr.msk.bf16.gmra.mrb[112].mxu1 %vm2118_vm3, %v17210_v17  ;;  %13781 = vmatmul.mubr.msk.bf16.gmra.mrb[48].mxu0 %vm2118_vm3, %v19456_v3  ;;  %v19460_v3 = vld [vmem:[#allocation34_spill] sm:$0xff]  ;;  %v19472_v17 = vld [vmem:[#allocation133_spill] sm:$0xff] }
 0x33b   : > { %13198 = vmatprep.mubr.msk.bf16.mxu1 %vm2118_vm3, %v17216_v26  ;;  %13784 = vmatprep.mubr.msk.bf16.mxu0 %vm2118_vm3, %v19457_v48  ;;  %v19461_v48 = vld [vmem:[#allocation38_spill] sm:$0xff]  ;;  %v19470_v26 = vld [vmem:[#allocation131_spill] sm:$0xff] }
 0x342   : > { %13199 = vmatmul.mubr.msk.bf16.gmra.mrb[116].mxu1 %vm2118_vm3, %v17245_v0  ;;  %13785 = vmatmul.mubr.msk.bf16.gmra.mrb[52].mxu0 %vm2118_vm3, %v19458_v33  ;;  %v19462_v33 = vld [vmem:[#allocation39_spill] sm:$0xff]  ;;  %v19468_v0 = vld [vmem:[#allocation125_spill] sm:$0xff] }
 0x343   : > { %13202 = vmatprep.mubr.msk.bf16.mxu1 %vm2118_vm3, %v17256_v29  ;;  %13788 = vmatprep.mubr.msk.bf16.mxu0 %vm2118_vm3, %v19459_v44  ;;  %v19463_v29 = vld [vmem:[#allocation117_spill] sm:$0xff]  ;;  %v19464_v44 = vld [vmem:[#allocation42_spill] sm:$0xff] }
 0x34a   : > { %13203 = vmatmul.mubr.msk.bf16.gmra.mrb[120].mxu1 %vm2118_vm3, %v17292_v18  ;;  %13789 = vmatmul.mubr.msk.bf16.gmra.mrb[56].mxu0 %vm2118_vm3, %v19460_v3  ;;  %v19465_v18 = vld [vmem:[#allocation123_spill] sm:$0xff]  ;;  %v19466_v3 = vld [vmem:[#allocation44_spill] sm:$0xff] }
 0x34b   : > { %13206 = vmatprep.mubr.msk.bf16.mxu1 %vm2118_vm3, %v17298_v60  ;;  %13792 = vmatprep.mubr.msk.bf16.mxu0 %vm2118_vm3, %v19461_v48  ;;  %v19467_v60 = vld [vmem:[#allocation2_spill] sm:$0xff] }
 0x352   : > { %13207 = vmatmul.mubr.msk.bf16.gmra.mrb[124].mxu1 %vm2118_vm3, %v17330_v39  ;;  %13793 = vmatmul.mubr.msk.bf16.gmra.mrb[60].mxu0 %vm2118_vm3, %v19462_v33  ;;  %v19469_v39 = vld [vmem:[#allocation45_spill] sm:$0xff] }
 0x353   : > { %13212 = vmatprep.mubr.msk.bf16.mxu1 %vm2118_vm3, %v19463_v29  ;;  %13796 = vmatprep.mubr.msk.bf16.mxu0 %vm2118_vm3, %v19464_v44  ;;  %v19471_v29 = vld [vmem:[#allocation47_spill] sm:$0xff] }
 0x35a   : > { %13213 = vmatmul.mubr.msk.bf16.vlgmr.msra.gmra.mrb[0].mxu1 %vm2118_vm3, %v19465_v18  ;;  %13797 = vmatmul.mubr.msk.bf16.gmra.mrb[64].mxu0 %vm2118_vm3, %v19466_v3  ;;  %v19473_v18 = vld [vmem:[#allocation50_spill] sm:$0xff] }
 0x35b   : > { %13991 = vmatpush3.bf16.msra.mxu1 %v19467_v60  ;;  %13216 = vmatprep.mubr.msk.bf16.mxu1 %vm2118_vm3, %v19468_v0  ;;  %v19475_v60 = vld [vmem:[#allocation52_spill] sm:$0xff]  ;;  %v19476_v0 = vld [vmem:[#allocation141_spill] sm:$0xff] }
 0x35c   : > { %13800 = vmatprep.mubr.msk.bf16.mxu0 %vm2118_vm3, %v19469_v39 }
 0x362   : > { %13217 = vmatmul.mubr.msk.bf16.gmra.mrb[4].mxu1 %vm2118_vm3, %v19470_v26  ;;  %13801 = vmatmul.mubr.msk.bf16.gmra.mrb[68].mxu0 %vm2118_vm3, %v19471_v29  ;;  %v19478_v26 = vld [vmem:[#allocation147_spill] sm:$0xff] }
 0x363   : > { %13220 = vmatprep.mubr.msk.bf16.mxu1 %vm2118_vm3, %v19472_v17  ;;  %13804 = vmatprep.mubr.msk.bf16.mxu0 %vm2118_vm3, %v19473_v18  ;;  %v19480_v17 = vld [vmem:[#allocation149_spill] sm:$0xff] }
 0x36a   : > { %13221 = vmatmul.mubr.msk.bf16.gmra.mrb[8].mxu1 %vm2118_vm3, %v19474_v28  ;;  %13805 = vmatmul.mubr.msk.bf16.gmra.mrb[72].mxu0 %vm2118_vm3, %v19475_v60  ;;  %v19482_v28 = vld [vmem:[#allocation155_spill] sm:$0xff] }
 0x36b   : > { %13224 = vmatprep.mubr.msk.bf16.mxu1 %vm2118_vm3, %v19476_v0  ;;  %13808 = vmatprep.mubr.msk.bf16.mxu0 %vm2118_vm3, %v19477_v53  ;;  %v19484_v0 = vld [vmem:[#allocation157_spill] sm:$0xff]  ;;  %v6161_v53 = vshrl.u32 %v17304_v54, 16  ;;  %v19512_v60 = vld [vmem:[#allocation195_spill] sm:$0xff] }
 0x372   : > { %13225 = vmatmul.mubr.msk.bf16.gmra.mrb[12].mxu1 %vm2118_vm3, %v19478_v26  ;;  %13809 = vmatmul.mubr.msk.bf16.gmra.mrb[76].mxu0 %vm2118_vm3, %v19479_v47  ;;  %v19486_v26 = vld [vmem:[#allocation163_spill] sm:$0xff]  ;;  %v19510_v47 = vld [vmem:[#allocation193_spill] sm:$0xff] }
 0x373   : > { %13228 = vmatprep.mubr.msk.bf16.mxu1 %vm2118_vm3, %v19480_v17  ;;  %13812 = vmatprep.mubr.msk.bf16.mxu0 %vm2118_vm3, %v19481_v62  ;;  %v19488_v17 = vld [vmem:[#allocation165_spill] sm:$0xff] }
 0x37a   : > { %13229 = vmatmul.mubr.msk.bf16.gmra.mrb[16].mxu1 %vm2118_vm3, %v19482_v28  ;;  %13813 = vmatmul.mubr.msk.bf16.gmra.mrb[80].mxu0 %vm2118_vm3, %v19483_v46  ;;  %v19490_v28 = vld [vmem:[#allocation171_spill] sm:$0xff] }
 0x37b   : > { %13232 = vmatprep.mubr.msk.bf16.mxu1 %vm2118_vm3, %v19484_v0  ;;  %13816 = vmatprep.mubr.msk.bf16.mxu0 %vm2118_vm3, %v19485_v34  ;;  %v19492_v0 = vld [vmem:[#allocation173_spill] sm:$0xff] }
 0x37c   : > { %v19493_v34 = vld [vmem:[#allocation69_spill] sm:$0xff] }
 0x382   : > { %13233 = vmatmul.mubr.msk.bf16.gmra.mrb[20].mxu1 %vm2118_vm3, %v19486_v26  ;;  %13817 = vmatmul.mubr.msk.bf16.gmra.mrb[84].mxu0 %vm2118_vm3, %v19487_v21  ;;  %v19494_v26 = vld [vmem:[#allocation177_spill] sm:$0xff]  ;;  %v19495_v21 = vld [vmem:[#allocation71_spill] sm:$0xff] }
 0x383   : > { %13236 = vmatprep.mubr.msk.bf16.mxu1 %vm2118_vm3, %v19488_v17  ;;  %13820 = vmatprep.mubr.msk.bf16.mxu0 %vm2118_vm3, %v19489_v61  ;;  %v19496_v17 = vld [vmem:[#allocation179_spill] sm:$0xff]  ;;  %v19497_v61 = vld [vmem:[#allocation74_spill] sm:$0xff] }
 0x38a   : > { %13237 = vmatmul.mubr.msk.bf16.gmra.mrb[24].mxu1 %vm2118_vm3, %v19490_v28  ;;  %13821 = vmatmul.mubr.msk.bf16.gmra.mrb[88].mxu0 %vm2118_vm3, %v19491_v14  ;;  %v19498_v28 = vld [vmem:[#allocation181_spill] sm:$0xff]  ;;  %v19499_v14 = vld [vmem:[#allocation76_spill] sm:$0xff] }
 0x38b   : > { %13240 = vmatprep.mubr.msk.bf16.mxu1 %vm2118_vm3, %v19492_v0  ;;  %13824 = vmatprep.mubr.msk.bf16.mxu0 %vm2118_vm3, %v19493_v34  ;;  %v19500_v0 = vld [vmem:[#allocation183_spill] sm:$0xff]  ;;  %v19501_v34 = vld [vmem:[#allocation77_spill] sm:$0xff] }
 0x392   : > { %13241 = vmatmul.mubr.msk.bf16.gmra.mrb[28].mxu1 %vm2118_vm3, %v19494_v26  ;;  %13825 = vmatmul.mubr.msk.bf16.gmra.mrb[92].mxu0 %vm2118_vm3, %v19495_v21  ;;  %v19502_v26 = vld [vmem:[#allocation185_spill] sm:$0xff]  ;;  %v19503_v21 = vld [vmem:[#allocation79_spill] sm:$0xff] }
 0x393   : > { %13244 = vmatprep.mubr.msk.bf16.mxu1 %vm2118_vm3, %v19496_v17  ;;  %13828 = vmatprep.mubr.msk.bf16.mxu0 %vm2118_vm3, %v19497_v61  ;;  %v19504_v17 = vld [vmem:[#allocation187_spill] sm:$0xff]  ;;  %v19505_v61 = vld [vmem:[#allocation82_spill] sm:$0xff] }
 0x39a   : > { %13245 = vmatmul.mubr.msk.bf16.gmra.mrb[32].mxu1 %vm2118_vm3, %v19498_v28  ;;  %13829 = vmatmul.mubr.msk.bf16.gmra.mrb[96].mxu0 %vm2118_vm3, %v19499_v14  ;;  %v19506_v28 = vld [vmem:[#allocation189_spill] sm:$0xff]  ;;  %v19507_v14 = vld [vmem:[#allocation84_spill] sm:$0xff] }
 0x39b   : > { %13248 = vmatprep.mubr.msk.bf16.mxu1 %vm2118_vm3, %v19500_v0  ;;  %13832 = vmatprep.mubr.msk.bf16.mxu0 %vm2118_vm3, %v19501_v34  ;;  %v19508_v0 = vld [vmem:[#allocation191_spill] sm:$0xff]  ;;  %v19509_v34 = vld [vmem:[#allocation85_spill] sm:$0xff] }
 0x3a2   : > { %13249 = vmatmul.mubr.msk.bf16.gmra.mrb[36].mxu1 %vm2118_vm3, %v19502_v26  ;;  %13833 = vmatmul.mubr.msk.bf16.gmra.mrb[100].mxu0 %vm2118_vm3, %v19503_v21  ;;  %v6128_v26 = vshrl.u32 %v17283_v35, 16  ;;  %v6131_v21 = vshll.u32 %v17283_v35, 16  ;;  %v6157_v35 = vshll.u32 %v17304_v54, 16  ;;  %v6163_v54 = vrot.slane %v6161_v53, 4 }
 0x3a3   : > { %13252 = vmatprep.mubr.msk.bf16.mxu1 %vm2118_vm3, %v19504_v17  ;;  %13836 = vmatprep.mubr.msk.bf16.mxu0 %vm2118_vm3, %v19505_v61  ;;  %v6137_v17 = vshll.u32 %v17262_v56, 16  ;;  %v6141_v61 = vshrl.u32 %v17262_v56, 16  ;;  %v19513_v56 = vld [vmem:[#allocation91_spill] sm:$0xff] }
 0x3a4   : > { %v6130_v58 = vrot.slane %v6128_v26, 4  ;;  %v6133_v46 = vrot.slane %v6131_v21, 5  ;;  %v8263_v26 = vshll.u32 %v17771_v50, 16  ;;  %v6159_v29 = vrot.slane %v6157_v35, 5  ;;  %v19516_v35 = vld [vmem:[#allocation201_spill] sm:$0xff] }
 0x3a5   : > { %v6143_v62 = vrot.slane %v6141_v61, 4  ;;  %v6167_v53 = vshll.u32 %v19516_v35, 16 }
 0x3a6   : > { %v6134_v21 = vor.u32 %v6133_v46, %v6130_v58  ;;  %v8265_v44 = vrot.slane %v8263_v26, 5  ;;  %v8283_v46 = vshrl.u32 %v17790_v1, 16  ;;  %v19514_v58 = vld [vmem:[#allocation197_spill] sm:$0xff] }
 0x3a8   : > { %v6135_v39 = vrot.slane %v6134_v21, 4  ;;  %v19517_v21 = vld [vmem:[#allocation199_spill] sm:$0xff] }
 0x3aa   : > { %13253 = vmatmul.mubr.msk.bf16.gmra.mrb[40].mxu1 %vm2118_vm3, %v19506_v28  ;;  %13837 = vmatmul.mubr.msk.bf16.gmra.mrb[104].mxu0 %vm2118_vm3, %v19507_v14  ;;  %v6139_v28 = vrot.slane %v6137_v17, 5  ;;  %v19511_v14 = vld [vmem:[#allocation87_spill] sm:$0xff]  ;;  %v8273_v17 = vshrl.u32 %v17774_v5, 16 }
 0x3ab   : > { %13256 = vmatprep.mubr.msk.bf16.mxu1 %vm2118_vm3, %v19508_v0  ;;  %13840 = vmatprep.mubr.msk.bf16.mxu0 %vm2118_vm3, %v19509_v34  ;;  %v6147_v0 = vshll.u32 %v17286_v27, 16  ;;  %v6151_v34 = vshrl.u32 %v17286_v27, 16  ;;  %v8269_v27 = vshll.u32 %v17774_v5, 16  ;;  %v6169_v5 = vrot.slane %v6167_v53, 5 }
 0x3ac   : > { %v6144_v61 = vor.u32 %v6143_v62, %v6139_v28  ;;  %v8293_v62 = vshrl.u32 %v17793_v43, 16  ;;  %v6140_v26 = vsel %vm15428_vm4, %v6135_v39, %v6139_v28 }
 0x3ad   : > { %v6153_v18 = vrot.slane %v6151_v34, 4  ;;  %v8271_v33 = vrot.slane %v8269_v27, 5  ;;  %v6164_v34 = vor.u32 %v6163_v54, %v6159_v29  ;;  %v8279_v27 = vshll.u32 %v17790_v1, 16 }
 0x3ae   : > { %v6145_v3 = vrot.slane %v6144_v61, 4  ;;  %v19518_v61 = vld [vmem:[#allocation97_spill] sm:$0xff]  ;;  %v8295_v20 = vrot.slane %v8293_v62, 4 }
 0x3af   : > { %v8281_v48 = vrot.slane %v8279_v27, 5 }
 0x3b2   : > { %13257 = vmatmul.mubr.msk.bf16.gmra.mrb[44].mxu1 %vm2118_vm3, %v19510_v47  ;;  %13841 = vmatmul.mubr.msk.bf16.gmra.mrb[108].mxu0 %vm2118_vm3, %v19511_v14  ;;  %v8260_v47 = vshrl.u32 %v17771_v50, 16  ;;  %v6149_v14 = vrot.slane %v6147_v0, 5  ;;  %v19515_v50 = vld [vmem:[#allocation93_spill] sm:$0xff] }
 0x3b3   : > { %13260 = vmatprep.mubr.msk.bf16.mxu1 %vm2118_vm3, %v19512_v60  ;;  %13844 = vmatprep.mubr.msk.bf16.mxu0 %vm2118_vm3, %v19513_v56  ;;  %v8275_v56 = vrot.slane %v8273_v17, 4 }
 0x3b4   : > { %v8262_v60 = vrot.slane %v8260_v47, 4  ;;  %v6154_v0 = vor.u32 %v6153_v18, %v6149_v14  ;;  %v6150_v17 = vsel %vm15428_vm4, %v6145_v3, %v6149_v14  ;;  %v8289_v18 = vshll.u32 %v17793_v43, 16  ;;  %v19520_v14 = vld [vmem:[#allocation202_spill] sm:$0xff]  ;;  %v19521_v3 = vld [vmem:[#allocation105_spill] sm:$0xff] }
 0x3b5   : > { %v18060_v35 = vcombine.low %v6140_v26, %v6150_v17 }
 0x3b6   : > { %v8266_v54 = vor.u32 %v8265_v44, %v8262_v60  ;;  %v8291_v12 = vrot.slane %v8289_v18, 5  ;;  %v19523_v18 = vld [vmem:[#allocation89_spill] sm:$0xff] }
 0x3b8   : > { %v8267_v39 = vrot.slane %v8266_v54, 4  ;;  %v8296_v62 = vor.u32 %v8295_v20, %v8291_v12  ;;  %v19548_v54 = vld [vmem:[#allocation119_spill] sm:$0xff] }
 0x3ba   : > { %13261 = vmatmul.mubr.msk.bf16.gmra.mrb[48].mxu1 %vm2118_vm3, %v19514_v58  ;;  %13845 = vmatmul.mubr.msk.bf16.gmra.mrb[112].mxu0 %vm2118_vm3, %v19515_v50  ;;  %v8276_v58 = vor.u32 %v8275_v56, %v8271_v33  ;;  %v6155_v50 = vrot.slane %v6154_v0, 4  ;;  %v19522_v56 = vld [vmem:[#allocation204_spill] sm:$0xff]  ;;  %v8299_v0 = vshll.u32 %v18063_v7, 16  ;;  %v8297_v17 = vrot.slane %v8296_v62, 4  ;;  %v19554_v62 = vld [vmem:[#allocation122_spill] sm:$0xff] }
 0x3bb   : > { %13264 = vmatprep.mubr.msk.bf16.mxu1 %vm2118_vm3, %v19517_v21  ;;  %13848 = vmatprep.mubr.msk.bf16.mxu0 %vm2118_vm3, %v19518_v61  ;;  %v6165_v21 = vrot.slane %v6164_v34, 4  ;;  %v8285_v61 = vrot.slane %v8283_v46, 4  ;;  %v8272_v34 = vsel %vm15428_vm4, %v8267_v39, %v8271_v33  ;;  %v19551_v39 = vld [vmem:[#allocation98_spill] sm:$0xff] }
 0x3bc   : > { %v8277_v28 = vrot.slane %v8276_v58, 4  ;;  %v6160_v44 = vsel %vm15428_vm4, %v6155_v50, %v6159_v29  ;;  %v8301_v27 = vrot.slane %v8299_v0, 5  ;;  %v19549_v58 = vld [vmem:[#allocation92_spill] sm:$0xff] }
 0x3bd   : > { %v6170_v60 = vsel %vm15428_vm4, %v6165_v21, %v6169_v5  ;;  %v8286_v46 = vor.u32 %v8285_v61, %v8281_v48  ;;  %v19524_v5 = vld [vmem:[#allocation95_spill] sm:$0xff]  ;;  %v19525_v61 = vld [vmem:[#allocation94_spill] sm:$0xff]  ;;  %v19550_v21 = vld [vmem:[#allocation121_spill] sm:$0xff] }
 0x3be   : > { %v8282_v53 = vsel %vm15428_vm4, %v8277_v28, %v8281_v48  ;;  %v18082_v50 = vcombine.low %v6160_v44, %v6170_v60  ;;  %v8302_v48 = vsel %vm15428_vm4, %v8297_v17, %v8301_v27  ;;  %v19552_v60 = vld [vmem:[#allocation120_spill] sm:$0xff] }
 0x3bf   : > { %v11456_v29 = vcombine.low %v8272_v34, %v8282_v53  ;;  %v8287_v26 = vrot.slane %v8286_v46, 4  ;;  %v19553_v46 = vld [vmem:[#allocation106_spill] sm:$0xff]  ;;  %v19555_v0 = vld [vmem:[#allocation108_spill] sm:$0xff] }
 0x3c0   : > { %v19556_v17 = vld [vmem:[#allocation128_spill] sm:$0xff] }
 0x3c1   : > { %v8292_v20 = vsel %vm15428_vm4, %v8287_v26, %v8291_v12  ;;  %v19526_v12 = vld [vmem:[#allocation96_spill] sm:$0xff] }
 0x3c2   : > { %13265 = vmatmul.mubr.msk.bf16.gmra.mrb[52].mxu1 %vm2118_vm3, %v19520_v14  ;;  %13849 = vmatmul.mubr.msk.bf16.gmra.mrb[116].mxu0 %vm2118_vm3, %v19521_v3  ;;  %v11457_v33 = vcombine.low %v8292_v20, %v8302_v48  ;;  %v19557_v27 = vld [vmem:[#allocation116_spill] sm:$0xff] }
 0x3c3   : > { %13268 = vmatprep.mubr.msk.bf16.mxu1 %vm2118_vm3, %v19522_v56  ;;  %13852 = vmatprep.mubr.msk.bf16.mxu0 %vm2118_vm3, %v18060_v35 }
 0x3ca   : > { %13269 = vmatmul.mubr.msk.bf16.gmra.mrb[56].mxu1 %vm2118_vm3, %v19523_v18  ;;  %13853 = vmatmul.mubr.msk.bf16.gmra.mrb[120].mxu0 %vm2118_vm3, %v18082_v50  ;;  %v19558_v18 = vld [vmem:[#allocation38_spill] sm:$0xff] }
 0x3cb   : > { %13272 = vmatprep.mubr.msk.bf16.mxu1 %vm2118_vm3, %v19524_v5  ;;  %13856 = vmatprep.mubr.msk.bf16.mxu0 %vm2118_vm3, %v11456_v29  ;;  %v19559_v5 = vld [vmem:[#allocation118_spill] sm:$0xff] }
 0x3d2   : > { %13273 = vmatmul.mubr.msk.bf16.gmra.mrb[60].mxu1 %vm2118_vm3, %v19525_v61  ;;  %13857 = vmatmul.mubr.msk.bf16.gmra.mrb[124].mxu0 %vm2118_vm3, %v11457_v33 }
 0x3d3   : > { %13276 = vmatprep.mubr.msk.bf16.mxu1 %vm2118_vm3, %v17382_v10  ;;  %13862 = vmatprep.mubr.msk.bf16.mxu0 %vm2118_vm3, %v19380_v49  ;;  %v19527_v10 = vld [vmem:[#allocation70_spill] sm:$0xff]  ;;  %v19540_v49 = vld [vmem:[#allocation107_spill] sm:$0xff] }
 0x3da   : > { %13277 = vmatmul.mubr.msk.bf16.gmra.mrb[64].mxu1 %vm2118_vm3, %v17396_v57  ;;  %13863 = vmatmul.mubr.msk.bf16.vlgmr.msra.gmra.mrb[0].mxu0 %vm2118_vm3, %v19381_v31  ;;  %v19528_v57 = vld [vmem:[#allocation100_spill] sm:$0xff]  ;;  %v19541_v31 = vld [vmem:[#allocation83_spill] sm:$0xff] }
 0x3db   : > { %13280 = vmatprep.mubr.msk.bf16.mxu1 %vm2118_vm3, %v17400_v51  ;;  %13866 = vmatprep.mubr.msk.bf16.mxu0 %vm2118_vm3, %v19382_v52  ;;  %v19529_v51 = vld [vmem:[#allocation72_spill] sm:$0xff]  ;;  %v19542_v52 = vld [vmem:[#allocation111_spill] sm:$0xff] }
 0x3e2   : > { %13281 = vmatmul.mubr.msk.bf16.gmra.mrb[68].mxu1 %vm2118_vm3, %v17412_v25  ;;  %13867 = vmatmul.mubr.msk.bf16.gmra.mrb[4].mxu0 %vm2118_vm3, %v19383_v13  ;;  %v19530_v25 = vld [vmem:[#allocation99_spill] sm:$0xff]  ;;  %v19543_v13 = vld [vmem:[#allocation86_spill] sm:$0xff] }
 0x3e3   : > { %13284 = vmatprep.mubr.msk.bf16.mxu1 %vm2118_vm3, %v17416_v4  ;;  %13870 = vmatprep.mubr.msk.bf16.mxu0 %vm2118_vm3, %v19384_v63  ;;  %v19531_v4 = vld [vmem:[#allocation73_spill] sm:$0xff] }
 0x3ea   : > { %13285 = vmatmul.mubr.msk.bf16.gmra.mrb[72].mxu1 %vm2118_vm3, %v17428_v19  ;;  %13871 = vmatmul.mubr.msk.bf16.gmra.mrb[8].mxu0 %vm2118_vm3, %v19385_v9  ;;  %v19532_v19 = vld [vmem:[#allocation112_spill] sm:$0xff] }
 0x3eb   : > { %13288 = vmatprep.mubr.msk.bf16.mxu1 %vm2118_vm3, %v17432_v45  ;;  %13874 = vmatprep.mubr.msk.bf16.mxu0 %vm2118_vm3, %v19386_v36  ;;  %v19534_v45 = vld [vmem:[#allocation104_spill] sm:$0xff] }
 0x3f2   : > { %13289 = vmatmul.mubr.msk.bf16.gmra.mrb[76].mxu1 %vm2118_vm3, %v17444_v16  ;;  %13875 = vmatmul.mubr.msk.bf16.gmra.mrb[12].mxu0 %vm2118_vm3, %v19387_v23  ;;  %v19535_v16 = vld [vmem:[#allocation78_spill] sm:$0xff] }
 0x3f3   : > { %13292 = vmatprep.mubr.msk.bf16.mxu1 %vm2118_vm3, %v17448_v2  ;;  %13878 = vmatprep.mubr.msk.bf16.mxu0 %vm2118_vm3, %v19388_v30  ;;  %v19536_v2 = vld [vmem:[#allocation103_spill] sm:$0xff]  ;;  %v19544_v30 = vld [vmem:[#allocation110_spill] sm:$0xff] }
 0x3fa   : > { %13293 = vmatmul.mubr.msk.bf16.gmra.mrb[80].mxu1 %vm2118_vm3, %v17460_v59  ;;  %13879 = vmatmul.mubr.msk.bf16.gmra.mrb[16].mxu0 %vm2118_vm3, %v19389_v42  ;;  %v19537_v59 = vld [vmem:[#allocation80_spill] sm:$0xff] }
 0x3fb   : > { %13296 = vmatprep.mubr.msk.bf16.mxu1 %vm2118_vm3, %v17464_v37  ;;  %13882 = vmatprep.mubr.msk.bf16.mxu0 %vm2118_vm3, %v19390_v22  ;;  %v19538_v37 = vld [vmem:[#allocation109_spill] sm:$0xff]  ;;  %v19545_v42 = vld [vmem:[#allocation88_spill] sm:$0xff] }
 0x3fc   : > { %v19546_v22 = vld [vmem:[#allocation113_spill] sm:$0xff] }
 0x402   : > { %13297 = vmatmul.mubr.msk.bf16.gmra.mrb[84].mxu1 %vm2118_vm3, %v17476_v41  ;;  %13883 = vmatmul.mubr.msk.bf16.gmra.mrb[20].mxu0 %vm2118_vm3, %v19391_v11  ;;  %v19539_v41 = vld [vmem:[#allocation81_spill] sm:$0xff]  ;;  %v19547_v11 = vld [vmem:[#allocation90_spill] sm:$0xff] }
 0x403   : > { %13300 = vmatprep.mubr.msk.bf16.mxu1 %vm2118_vm3, %v17480_v24  ;;  %13886 = vmatprep.mubr.msk.bf16.mxu0 %vm2118_vm3, %v19392_v40 }
 0x40a   : > { %13301 = vmatmul.mubr.msk.bf16.gmra.mrb[88].mxu1 %vm2118_vm3, %v17492_v55  ;;  %13887 = vmatmul.mubr.msk.bf16.gmra.mrb[24].mxu0 %vm2118_vm3, %v19393_v8 }
 0x40b   : > { %13304 = vmatprep.mubr.msk.bf16.mxu1 %vm2118_vm3, %v17496_v32  ;;  %13890 = vmatprep.mubr.msk.bf16.mxu0 %vm2118_vm3, %v19394_v15 }
 0x412   : > { %13305 = vmatmul.mubr.msk.bf16.gmra.mrb[92].mxu1 %vm2118_vm3, %v17508_v38  ;;  %13891 = vmatmul.mubr.msk.bf16.gmra.mrb[28].mxu0 %vm2118_vm3, %v19395_v6  ;;  %v19533_v6 = vld [vmem:[#allocation75_spill] sm:$0xff] }
 0x413   : > { %13308 = vmatprep.mubr.msk.bf16.mxu1 %vm2118_vm3, %v19526_v12  ;;  %13894 = vmatprep.mubr.msk.bf16.mxu0 %vm2118_vm3, %v19527_v10  ;;  %v19560_v12 = vld [vmem:[#allocation39_spill] sm:$0xff]  ;;  %v19561_v10 = vld [vmem:[#allocation124_spill] sm:$0xff] }
 0x41a   : > { %13309 = vmatmul.mubr.msk.bf16.gmra.mrb[96].mxu1 %vm2118_vm3, %v19528_v57  ;;  %13895 = vmatmul.mubr.msk.bf16.gmra.mrb[32].mxu0 %vm2118_vm3, %v19529_v51  ;;  %v19562_v57 = vld [vmem:[#allocation42_spill] sm:$0xff] }
 0x41b   : > { %13312 = vmatprep.mubr.msk.bf16.mxu1 %vm2118_vm3, %v19530_v25  ;;  %13898 = vmatprep.mubr.msk.bf16.mxu0 %vm2118_vm3, %v19531_v4  ;;  %v19563_v51 = vld [vmem:[#allocation126_spill] sm:$0xff] }
 0x422   : > { %13313 = vmatmul.mubr.msk.bf16.gmra.mrb[100].mxu1 %vm2118_vm3, %v19532_v19  ;;  %13899 = vmatmul.mubr.msk.bf16.gmra.mrb[36].mxu0 %vm2118_vm3, %v19533_v6 }
 0x423   : > { %13316 = vmatprep.mubr.msk.bf16.mxu1 %vm2118_vm3, %v19534_v45  ;;  %13902 = vmatprep.mubr.msk.bf16.mxu0 %vm2118_vm3, %v19535_v16  ;;  %v19564_v45 = vld [vmem:[#allocation44_spill] sm:$0xff] }
 0x424   : > { %v19565_v16 = vld [vmem:[#allocation132_spill] sm:$0xff] }
 0x42a   : > { %13317 = vmatmul.mubr.msk.bf16.gmra.mrb[104].mxu1 %vm2118_vm3, %v19536_v2  ;;  %13903 = vmatmul.mubr.msk.bf16.gmra.mrb[40].mxu0 %vm2118_vm3, %v19537_v59  ;;  %v19566_v2 = vld [vmem:[#allocation45_spill] sm:$0xff]  ;;  %v19567_v59 = vld [vmem:[#allocation134_spill] sm:$0xff] }
 0x42b   : > { %13320 = vmatprep.mubr.msk.bf16.mxu1 %vm2118_vm3, %v19538_v37  ;;  %13906 = vmatprep.mubr.msk.bf16.mxu0 %vm2118_vm3, %v19539_v41 }
 0x42d   : > { %v18190_v24 = vpop.f32.mrb[0].mxu1 }
 0x42e   : > { %v18192_v55 = vpop.f32.mrb[1].mxu1 }
 0x42f   : > { %v18194_v32 = vpop.f32.mrb[2].mxu1 }
 0x430   : > { %v18196_v38 = vpop.f32.mrb[3].mxu1 }
 0x432   : > { %13321 = vmatmul.mubr.msk.bf16.gmra.mrb[108].mxu1 %vm2118_vm3, %v19540_v49  ;;  %13907 = vmatmul.mubr.msk.bf16.gmra.mrb[44].mxu0 %vm2118_vm3, %v19541_v31 }
 0x433   : > { %13324 = vmatprep.mubr.msk.bf16.mxu1 %vm2118_vm3, %v19542_v52  ;;  %13910 = vmatprep.mubr.msk.bf16.mxu0 %vm2118_vm3, %v19543_v13  ;;  %v19568_v52 = vld [vmem:[#allocation47_spill] sm:$0xff]  ;;  %v19569_v13 = vld [vmem:[#allocation140_spill] sm:$0xff] }
 0x435   : > { %v18206_v63 = vpop.f32.mrb[4].mxu1 }
 0x436   : > { %v18208_v9 = vpop.f32.mrb[5].mxu1 }
 0x437   : > { %v18210_v36 = vpop.f32.mrb[6].mxu1 }
 0x438   : > { %v18212_v23 = vpop.f32.mrb[7].mxu1 }
 0x43a   : > { %13325 = vmatmul.mubr.msk.bf16.gmra.mrb[112].mxu1 %vm2118_vm3, %v19544_v30  ;;  %13911 = vmatmul.mubr.msk.bf16.gmra.mrb[48].mxu0 %vm2118_vm3, %v19545_v42  ;;  %v19570_v30 = vld [vmem:[#allocation50_spill] sm:$0xff] }
 0x43b   : > { %13328 = vmatprep.mubr.msk.bf16.mxu1 %vm2118_vm3, %v19546_v22  ;;  %13914 = vmatprep.mubr.msk.bf16.mxu0 %vm2118_vm3, %v19547_v11  ;;  %v19571_v42 = vld [vmem:[#allocation142_spill] sm:$0xff] }
 0x43d   : > { %v18222_v40 = vpop.f32.mrb[8].mxu1 }
 0x43e   : > { %v18224_v8 = vpop.f32.mrb[9].mxu1 }
 0x43f   : > { %v18226_v15 = vpop.f32.mrb[10].mxu1 }
 0x440   : > { %v18228_v47 = vpop.f32.mrb[11].mxu1 }
 0x442   : > { %13329 = vmatmul.mubr.msk.bf16.gmra.mrb[116].mxu1 %vm2118_vm3, %v19548_v54  ;;  %13915 = vmatmul.mubr.msk.bf16.gmra.mrb[52].mxu0 %vm2118_vm3, %v19549_v58 }
 0x443   : > { %13332 = vmatprep.mubr.msk.bf16.mxu1 %vm2118_vm3, %v19550_v21  ;;  %13918 = vmatprep.mubr.msk.bf16.mxu0 %vm2118_vm3, %v19551_v39  ;;  %v19572_v21 = vld [vmem:[#allocation52_spill] sm:$0xff] }
 0x444   : > { %v19573_v39 = vld [vmem:[#allocation148_spill] sm:$0xff] }
 0x445   : > { %v18238_v28 = vpop.f32.mrb[12].mxu1 }
 0x446   : > { %v18240_v14 = vpop.f32.mrb[13].mxu1 }
 0x447   : > { %v18242_v44 = vpop.f32.mrb[14].mxu1 }
 0x448   : > { %v18244_v56 = vpop.f32.mrb[15].mxu1 }
 0x44a   : > { %13333 = vmatmul.mubr.msk.bf16.gmra.mrb[120].mxu1 %vm2118_vm3, %v19552_v60  ;;  %13919 = vmatmul.mubr.msk.bf16.gmra.mrb[56].mxu0 %vm2118_vm3, %v19553_v46  ;;  %v19574_v60 = vld [vmem:[#allocation53_spill] sm:$0xff]  ;;  %v19575_v46 = vld [vmem:[#allocation150_spill] sm:$0xff] }
 0x44b   : > { %13336 = vmatprep.mubr.msk.bf16.mxu1 %vm2118_vm3, %v19554_v62  ;;  %13922 = vmatprep.mubr.msk.bf16.mxu0 %vm2118_vm3, %v19555_v0 }
 0x44d   : > { %v18254_v34 = vpop.f32.mrb[16].mxu1 }
 0x44e   : > { %v18256_v53 = vpop.f32.mrb[17].mxu1 }
 0x44f   : > { %v18258_v29 = vpop.f32.mrb[18].mxu1 }
 0x450   : > { %v18260_v26 = vpop.f32.mrb[19].mxu1 }
 0x452   : > { %13337 = vmatmul.mubr.msk.bf16.gmra.mrb[124].mxu1 %vm2118_vm3, %v19556_v17  ;;  %13923 = vmatmul.mubr.msk.bf16.gmra.mrb[60].mxu0 %vm2118_vm3, %v19557_v27 }
 0x453   : > { %13406 = vmatprep.mubr.msk.bf16.mxu1 %vm2118_vm3, %v19558_v18  ;;  %13926 = vmatprep.mubr.msk.bf16.mxu0 %vm2118_vm3, %v19559_v5  ;;  %v19576_v18 = vld [vmem:[#allocation55_spill] sm:$0xff]  ;;  %v19577_v5 = vld [vmem:[#allocation156_spill] sm:$0xff] }
 0x455   : > { %v18270_v20 = vpop.f32.mrb[20].mxu1 }
 0x456   : > { %v18272_v48 = vpop.f32.mrb[21].mxu1 }
 0x457   : > { %v18274_v33 = vpop.f32.mrb[22].mxu1 }
 0x458   : > { %v18276_v61 = vpop.f32.mrb[23].mxu1 }
 0x45a   : > { %13407 = vmatmul.mubr.msk.bf16.vlgmr.msra.gmra.mrb[64].mxu1 %vm2118_vm3, %v19560_v12  ;;  %13927 = vmatmul.mubr.msk.bf16.gmra.mrb[64].mxu0 %vm2118_vm3, %v19561_v10  ;;  %v19578_v12 = vld [vmem:[#allocation58_spill] sm:$0xff] }
 0x45b   : > { %13410 = vmatprep.mubr.msk.bf16.mxu1 %vm2118_vm3, %v19562_v57  ;;  %13930 = vmatprep.mubr.msk.bf16.mxu0 %vm2118_vm3, %v19563_v51  ;;  %v19579_v10 = vld [vmem:[#allocation158_spill] sm:$0xff] }
 0x45d   : > { %v18286_v25 = vpop.f32.mrb[24].mxu1 }
 0x45e   : > { %v18288_v4 = vpop.f32.mrb[25].mxu1 }
 0x45f   : > { %v18290_v19 = vpop.f32.mrb[26].mxu1 }
 0x460   : > { %v18292_v6 = vpop.f32.mrb[27].mxu1 }
 0x462   : > { %13411 = vmatmul.mubr.msk.bf16.gmra.mrb[68].mxu1 %vm2118_vm3, %v19564_v45  ;;  %13931 = vmatmul.mubr.msk.bf16.gmra.mrb[68].mxu0 %vm2118_vm3, %v19565_v16 }
 0x463   : > { %13414 = vmatprep.mubr.msk.bf16.mxu1 %vm2118_vm3, %v19566_v2  ;;  %13934 = vmatprep.mubr.msk.bf16.mxu0 %vm2118_vm3, %v19567_v59  ;;  %v19580_v2 = vld [vmem:[#allocation60_spill] sm:$0xff] }
 0x464   : > { %v19581_v59 = vld [vmem:[#allocation164_spill] sm:$0xff] }
 0x465   : > { %v18302_v37 = vpop.f32.mrb[28].mxu1 }
 0x466   : > { %v18304_v41 = vpop.f32.mrb[29].mxu1 }
 0x467   : > { %v18306_v49 = vpop.f32.mrb[30].mxu1 }
 0x468   : > { %v18308_v31 = vpop.f32.mrb[31].mxu1 }
 0x46a   : > { %13415 = vmatmul.mubr.msk.bf16.gmra.mrb[72].mxu1 %vm2118_vm3, %v19568_v52  ;;  %13935 = vmatmul.mubr.msk.bf16.gmra.mrb[72].mxu0 %vm2118_vm3, %v19569_v13  ;;  %v19582_v52 = vld [vmem:[#allocation61_spill] sm:$0xff]  ;;  %v19583_v13 = vld [vmem:[#allocation166_spill] sm:$0xff] }
 0x46b   : > { %13418 = vmatprep.mubr.msk.bf16.mxu1 %vm2118_vm3, %v19570_v30  ;;  %13938 = vmatprep.mubr.msk.bf16.mxu0 %vm2118_vm3, %v19571_v42 }
 0x46d   : > { %v18318_v22 = vpop.f32.mrb[32].mxu1 }
 0x46e   : > { %v18320_v11 = vpop.f32.mrb[33].mxu1 }
 0x46f   : > { %v18322_v54 = vpop.f32.mrb[34].mxu1 }
 0x470   : > { %v18324_v58 = vpop.f32.mrb[35].mxu1 }
 0x472   : > { %13419 = vmatmul.mubr.msk.bf16.gmra.mrb[76].mxu1 %vm2118_vm3, %v19572_v21  ;;  %13939 = vmatmul.mubr.msk.bf16.gmra.mrb[76].mxu0 %vm2118_vm3, %v19573_v39 }
 0x473   : > { %13422 = vmatprep.mubr.msk.bf16.mxu1 %vm2118_vm3, %v19574_v60  ;;  %13942 = vmatprep.mubr.msk.bf16.mxu0 %vm2118_vm3, %v19575_v46  ;;  %v19587_v60 = vld [vmem:[#allocation63_spill] sm:$0xff]  ;;  %v19588_v46 = vld [vmem:[#allocation172_spill] sm:$0xff] }
 0x475   : > { %v18334_v62 = vpop.f32.mrb[36].mxu1 }
 0x476   : > { %v18336_v0 = vpop.f32.mrb[37].mxu1 }
 0x477   : > { %v18338_v17 = vpop.f32.mrb[38].mxu1 }
 0x478   : > { %v18340_v27 = vpop.f32.mrb[39].mxu1 }
 0x47a   : > { %13423 = vmatmul.mubr.msk.bf16.gmra.mrb[80].mxu1 %vm2118_vm3, %v19576_v18  ;;  %13943 = vmatmul.mubr.msk.bf16.gmra.mrb[80].mxu0 %vm2118_vm3, %v19577_v5  ;;  %v19589_v18 = vld [vmem:[#allocation66_spill] sm:$0xff] }
 0x47b   : > { %13426 = vmatprep.mubr.msk.bf16.mxu1 %vm2118_vm3, %v19578_v12  ;;  %13946 = vmatprep.mubr.msk.bf16.mxu0 %vm2118_vm3, %v19579_v10  ;;  %v19590_v5 = vld [vmem:[#allocation174_spill] sm:$0xff] }
 0x47d   : > { %v18350_v57 = vpop.f32.mrb[40].mxu1 }
 0x47e   : > { %v18352_v51 = vpop.f32.mrb[41].mxu1 }
 0x47f   : > { %v18354_v45 = vpop.f32.mrb[42].mxu1 }
 0x480   : > { %v18356_v16 = vpop.f32.mrb[43].mxu1 }
 0x482   : > { %13427 = vmatmul.mubr.msk.bf16.gmra.mrb[84].mxu1 %vm2118_vm3, %v19580_v2  ;;  %13947 = vmatmul.mubr.msk.bf16.gmra.mrb[84].mxu0 %vm2118_vm3, %v19581_v59 }
 0x483   : > { %13430 = vmatprep.mubr.msk.bf16.mxu1 %vm2118_vm3, %v19582_v52  ;;  %13950 = vmatprep.mubr.msk.bf16.mxu0 %vm2118_vm3, %v19583_v13  ;;  %v19595_v52 = vld [vmem:[#allocation68_spill] sm:$0xff]  ;;  %v19596_v13 = vld [vmem:[#allocation178_spill] sm:$0xff] }
 0x485   : > { %v18366_v30 = vpop.f32.mrb[44].mxu1 }
 0x486   : > { %v18368_v42 = vpop.f32.mrb[45].mxu1 }
 0x487   : > { %19584 = vst [vmem:[#allocation130_spill] sm:$0xff] %v18368_v42  ;;  %v18370_v21 = vpop.f32.mrb[46].mxu1  ;;  %v19623_v42 = vld [vmem:[#allocation84_spill] sm:$0xff] }
 0x488   : > { %19585 = vst [vmem:[#allocation135_spill] sm:$0xff] %v18370_v21  ;;  %v18372_v39 = vpop.f32.mrb[47].mxu1 }
 0x489   : > { %19586 = vst [vmem:[#allocation137_spill] sm:$0xff] %v18372_v39 }
 0x48a   : > { %13431 = vmatmul.mubr.msk.bf16.gmra.mrb[88].mxu1 %vm2118_vm3, %v19587_v60  ;;  %13951 = vmatmul.mubr.msk.bf16.gmra.mrb[88].mxu0 %vm2118_vm3, %v19588_v46  ;;  %v19597_v60 = vld [vmem:[#allocation69_spill] sm:$0xff]  ;;  %v19598_v46 = vld [vmem:[#allocation180_spill] sm:$0xff] }
 0x48b   : > { %13434 = vmatprep.mubr.msk.bf16.mxu1 %vm2118_vm3, %v19589_v18  ;;  %13954 = vmatprep.mubr.msk.bf16.mxu0 %vm2118_vm3, %v19590_v5 }
 0x48d   : > { %v18382_v12 = vpop.f32.mrb[48].mxu1 }
 0x48e   : > { %19591 = vst [vmem:[#allocation136_spill] sm:$0xff] %v18382_v12  ;;  %v18384_v10 = vpop.f32.mrb[49].mxu1 }
 0x48f   : > { %19592 = vst [vmem:[#allocation138_spill] sm:$0xff] %v18384_v10  ;;  %v18386_v2 = vpop.f32.mrb[50].mxu1 }
 0x490   : > { %19593 = vst [vmem:[#allocation143_spill] sm:$0xff] %v18386_v2  ;;  %v18388_v59 = vpop.f32.mrb[51].mxu1 }
 0x491   : > { %19594 = vst [vmem:[#allocation145_spill] sm:$0xff] %v18388_v59  ;;  %v19603_v59 = vld [vmem:[#allocation71_spill] sm:$0xff] }
 0x492   : > { %13435 = vmatmul.mubr.msk.bf16.gmra.mrb[92].mxu1 %vm2118_vm3, %v19595_v52  ;;  %13955 = vmatmul.mubr.msk.bf16.gmra.mrb[92].mxu0 %vm2118_vm3, %v19596_v13  ;;  %v19604_v52 = vld [vmem:[#allocation182_spill] sm:$0xff] }
 0x493   : > { %13438 = vmatprep.mubr.msk.bf16.mxu1 %vm2118_vm3, %v19597_v60  ;;  %13958 = vmatprep.mubr.msk.bf16.mxu0 %vm2118_vm3, %v19598_v46  ;;  %v19605_v13 = vld [vmem:[#allocation74_spill] sm:$0xff]  ;;  %v19606_v60 = vld [vmem:[#allocation184_spill] sm:$0xff] }
 0x495   : > { %v18398_v18 = vpop.f32.mrb[52].mxu1 }
 0x496   : > { %19599 = vst [vmem:[#allocation144_spill] sm:$0xff] %v18398_v18  ;;  %v18400_v5 = vpop.f32.mrb[53].mxu1 }
 0x497   : > { %19600 = vst [vmem:[#allocation146_spill] sm:$0xff] %v18400_v5  ;;  %v18402_v10 = vpop.f32.mrb[54].mxu1 }
 0x498   : > { %19601 = vst [vmem:[#allocation151_spill] sm:$0xff] %v18402_v10  ;;  %v18404_v2 = vpop.f32.mrb[55].mxu1 }
 0x499   : > { %19602 = vst [vmem:[#allocation153_spill] sm:$0xff] %v18404_v2  ;;  %v19611_v2 = vld [vmem:[#allocation76_spill] sm:$0xff] }
 0x49a   : > { %13439 = vmatmul.mubr.msk.bf16.gmra.mrb[96].mxu1 %vm2118_vm3, %v19603_v59  ;;  %13959 = vmatmul.mubr.msk.bf16.gmra.mrb[96].mxu0 %vm2118_vm3, %v19604_v52  ;;  %v19612_v59 = vld [vmem:[#allocation186_spill] sm:$0xff]  ;;  %v19613_v52 = vld [vmem:[#allocation77_spill] sm:$0xff] }
 0x49b   : > { %13442 = vmatprep.mubr.msk.bf16.mxu1 %vm2118_vm3, %v19605_v13  ;;  %13962 = vmatprep.mubr.msk.bf16.mxu0 %vm2118_vm3, %v19606_v60  ;;  %v19614_v13 = vld [vmem:[#allocation188_spill] sm:$0xff] }
 0x49d   : > { %v18414_v46 = vpop.f32.mrb[56].mxu1 }
 0x49e   : > { %19607 = vst [vmem:[#allocation152_spill] sm:$0xff] %v18414_v46  ;;  %v18416_v18 = vpop.f32.mrb[57].mxu1 }
 0x49f   : > { %19608 = vst [vmem:[#allocation154_spill] sm:$0xff] %v18416_v18  ;;  %v18418_v5 = vpop.f32.mrb[58].mxu1 }
 0x4a0   : > { %19609 = vst [vmem:[#allocation159_spill] sm:$0xff] %v18418_v5  ;;  %v18420_v10 = vpop.f32.mrb[59].mxu1 }
 0x4a1   : > { %19610 = vst [vmem:[#allocation161_spill] sm:$0xff] %v18420_v10  ;;  %v19619_v10 = vld [vmem:[#allocation79_spill] sm:$0xff] }
 0x4a2   : > { %13443 = vmatmul.mubr.msk.bf16.gmra.mrb[100].mxu1 %vm2118_vm3, %v19611_v2  ;;  %13963 = vmatmul.mubr.msk.bf16.gmra.mrb[100].mxu0 %vm2118_vm3, %v19612_v59  ;;  %v19620_v2 = vld [vmem:[#allocation190_spill] sm:$0xff] }
 0x4a3   : > { %13446 = vmatprep.mubr.msk.bf16.mxu1 %vm2118_vm3, %v19613_v52  ;;  %13966 = vmatprep.mubr.msk.bf16.mxu0 %vm2118_vm3, %v19614_v13  ;;  %v19621_v59 = vld [vmem:[#allocation82_spill] sm:$0xff]  ;;  %v19622_v52 = vld [vmem:[#allocation192_spill] sm:$0xff] }
 0x4a5   : > { %v18430_v60 = vpop.f32.mrb[60].mxu1 }
 0x4a6   : > { %19615 = vst [vmem:[#allocation160_spill] sm:$0xff] %v18430_v60  ;;  %v18432_v46 = vpop.f32.mrb[61].mxu1 }
 0x4a7   : > { %19616 = vst [vmem:[#allocation162_spill] sm:$0xff] %v18432_v46  ;;  %v18434_v18 = vpop.f32.mrb[62].mxu1 }
 0x4a8   : > { %19617 = vst [vmem:[#allocation167_spill] sm:$0xff] %v18434_v18  ;;  %v18436_v5 = vpop.f32.mrb[63].mxu1  ;;  %v18449_v18 = vld [vmem:[%s18777_s3] ss:$0 sm:$0xff] }
 0x4a9   : > { %19618 = vst [vmem:[#allocation169_spill] sm:$0xff] %v18436_v5 }
 0x4aa   : > { %13447 = vmatmul.mubr.msk.bf16.gmra.mrb[104].mxu1 %vm2118_vm3, %v19619_v10  ;;  %13967 = vmatmul.mubr.msk.bf16.gmra.mrb[104].mxu0 %vm2118_vm3, %v19620_v2 }
 0x4ab   : > { %13450 = vmatprep.mubr.msk.bf16.mxu1 %vm2118_vm3, %v19621_v59  ;;  %13970 = vmatprep.mubr.msk.bf16.mxu0 %vm2118_vm3, %v19622_v52 }
 0x4ad   : > { %v13864_v13 = vpop.f32.mrb[0].mxu0 }
 0x4ae   : > { %v13992_v5 = vadd.f32 %v13864_v13, %v18190_v24  ;;  %v9058_v46 = vpop.f32.mrb[1].mxu0  ;;  %v19624_v24 = vld [vmem:[#allocation194_spill] sm:$0xff] }
 0x4af   : > { %v13993_v10 = vadd.f32 %v9058_v46, %v18192_v55  ;;  %v13865_v60 = vpop.f32.mrb[2].mxu0  ;;  %v19625_v46 = vld [vmem:[#allocation85_spill] sm:$0xff] }
 0x4b0   : > { %v9706_v2 = vadd.f32 %v13992_v5, %v18449_v18  ;;  %v13994_v12 = vadd.f32 %v13865_v60, %v18194_v32  ;;  %v9061_v59 = vpop.f32.mrb[3].mxu0  ;;  %v19626_v32 = vld [vmem:[#allocation196_spill] sm:$0xff] }
 0x4b1   : > { %v9704_v39 = vadd.f32 %v13993_v10, %v18449_v18  ;;  %v13995_v52 = vadd.f32 %v9061_v59, %v18196_v38 }
 0x4b2   : > { %v9707_v21 = vadd.f32 %v13994_v12, %v18449_v18  ;;  %13451 = vmatmul.mubr.msk.bf16.gmra.mrb[108].mxu1 %vm2118_vm3, %v19623_v42  ;;  %13971 = vmatmul.mubr.msk.bf16.gmra.mrb[108].mxu0 %vm2118_vm3, %v19624_v24  ;;  %v9834_v5 = vmax.f32 %v9706_v2, 0.0 }
 0x4b3   : > { %v9705_v55 = vadd.f32 %v13995_v52, %v18449_v18  ;;  %13454 = vmatprep.mubr.msk.bf16.mxu1 %vm2118_vm3, %v19625_v46  ;;  %13974 = vmatprep.mubr.msk.bf16.mxu0 %vm2118_vm3, %v19626_v32  ;;  %v9832_v38 = vmax.f32 %v9704_v39, 0.0 }
 0x4b4   : > { %v9835_v60 = vmax.f32 %v9707_v21, 0.0 }
 0x4b5   : > { %v9833_v42 = vmax.f32 %v9705_v55, 0.0  ;;  %v13868_v12 = vpop.f32.mrb[4].mxu0 }
 0x4b6   : > { %v11860_v13 = vpack.c.bf16 %v9835_v60, %v9834_v5  ;;  %v13996_v10 = vadd.f32 %v13868_v12, %v18206_v63  ;;  %v9074_v59 = vpop.f32.mrb[5].mxu0  ;;  %v19627_v60 = vld [vmem:[#allocation87_spill] sm:$0xff]  ;;  %v19628_v63 = vld [vmem:[#allocation198_spill] sm:$0xff] }
 0x4b7   : > { %v11855_v52 = vpack.c.bf16 %v9833_v42, %v9832_v38  ;;  %v13997_v24 = vadd.f32 %v9074_v59, %v18208_v9  ;;  %v13869_v46 = vpop.f32.mrb[6].mxu0  ;;  %v19629_v38 = vld [vmem:[#allocation91_spill] sm:$0xff] }
 0x4b8   : > { %12172 = vst [vmem:[%s18471_s5 + $0x8] sm:$0xff] %v11860_v13   ;;  %v9710_v21 = vadd.f32 %v13996_v10, %v18449_v18  ;;  %v13998_v39 = vadd.f32 %v13869_v46, %v18210_v36  ;;  %v9077_v2 = vpop.f32.mrb[7].mxu0  ;;  %v19630_v36 = vld [vmem:[#allocation200_spill] sm:$0xff] }
 0x4b9   : > { %11856 = vst [vmem:[%s18471_s5] sm:$0xff] %v11855_v52   ;;  %v9708_v32 = vadd.f32 %v13997_v24, %v18449_v18  ;;  %v13999_v55 = vadd.f32 %v9077_v2, %v18212_v23  ;;  %v19631_v23 = vld [vmem:[#allocation129_spill] sm:$0xff] }
 0x4ba   : > { %v9711_v5 = vadd.f32 %v13998_v39, %v18449_v18  ;;  %13455 = vmatmul.mubr.msk.bf16.gmra.mrb[112].mxu1 %vm2118_vm3, %v19627_v60  ;;  %13975 = vmatmul.mubr.msk.bf16.gmra.mrb[112].mxu0 %vm2118_vm3, %v19628_v63  ;;  %v9838_v42 = vmax.f32 %v9710_v21, 0.0  ;;  %v8996_v13 = vrot.slane %v19631_v23, 5  ;;  %v8999_v63 = vrot.slane %v17790_v1, 5  ;;  %v19634_v1 = vld [vmem:[#allocation203_spill] sm:$0xff] }
 0x4bb   : > { %v9709_v9 = vadd.f32 %v13999_v55, %v18449_v18  ;;  %13458 = vmatprep.mubr.msk.bf16.mxu1 %vm2118_vm3, %v19629_v38  ;;  %13978 = vmatprep.mubr.msk.bf16.mxu0 %vm2118_vm3, %v19630_v36  ;;  %v9836_v10 = vmax.f32 %v9708_v32, 0.0  ;;  %v19632_v32 = vld [vmem:[#allocation127_spill] sm:$0xff]  ;;  %v9002_v23 = vrot.slane %v17793_v43, 5 }
 0x4bc   : > { %v9839_v12 = vmax.f32 %v9711_v5, 0.0  ;;  %v11522_v36 = vrot.slane %v19632_v32, 9  ;;  %v9001_v32 = vrot.slane %v8999_v63, 4 }
 0x4bd   : > { %v9837_v59 = vmax.f32 %v9709_v9, 0.0  ;;  %v13872_v52 = vpop.f32.mrb[8].mxu0  ;;  %v8998_v9 = vrot.slane %v8996_v13, 4 }
 0x4be   : > { %v11870_v24 = vpack.c.bf16 %v9839_v12, %v9838_v42  ;;  %v14000_v46 = vadd.f32 %v13872_v52, %v18222_v40  ;;  %v9090_v39 = vpop.f32.mrb[9].mxu0 }
 0x4bf   : > { %v11865_v2 = vpack.c.bf16 %v9837_v59, %v9836_v10  ;;  %v14001_v55 = vadd.f32 %v9090_v39, %v18224_v8  ;;  %v13873_v60 = vpop.f32.mrb[10].mxu0  ;;  %v19633_v8 = vld [vmem:[#allocation93_spill] sm:$0xff]  ;;  %v9000_v39 = vsel %vm15832_vm7, %v8998_v9, %v8999_v63 }
 0x4c0   : > { %12174 = vst [vmem:[%s18471_s5 + $0x18] sm:$0xff] %v11870_v24   ;;  %v9714_v21 = vadd.f32 %v14000_v46, %v18449_v18  ;;  %v14002_v5 = vadd.f32 %v13873_v60, %v18226_v15  ;;  %v9093_v38 = vpop.f32.mrb[11].mxu0  ;;  %v19635_v10 = vld [vmem:[#allocation97_spill] sm:$0xff]  ;;  %v8997_v46 = vsel %vm15832_vm7, %v11522_v36, %v8996_v13  ;;  %v9005_v13 = vrot.slane %v18063_v7, 5 }
 0x4c1   : > { %12173 = vst [vmem:[%s18471_s5 + $0x10] sm:$0xff] %v11865_v2   ;;  %v9712_v42 = vadd.f32 %v14001_v55, %v18449_v18  ;;  %v14003_v40 = vadd.f32 %v9093_v38, %v18228_v47  ;;  %v19636_v59 = vld [vmem:[#allocation205_spill] sm:$0xff] }
 0x4c2   : > { %v9715_v12 = vadd.f32 %v14002_v5, %v18449_v18  ;;  %13459 = vmatmul.mubr.msk.bf16.gmra.mrb[116].mxu1 %vm2118_vm3, %v19633_v8  ;;  %13979 = vmatmul.mubr.msk.bf16.gmra.mrb[116].mxu0 %vm2118_vm3, %v19634_v1  ;;  %v9842_v52 = vmax.f32 %v9714_v21, 0.0  ;;  %v11524_v1 = vcombine.low %v8997_v46, %v9000_v39 }
 0x4c3   : > { %v9713_v15 = vadd.f32 %v14003_v40, %v18449_v18  ;;  %13462 = vmatprep.mubr.msk.bf16.mxu1 %vm2118_vm3, %v19635_v10  ;;  %13982 = vmatprep.mubr.msk.bf16.mxu0 %vm2118_vm3, %v19636_v59  ;;  %v9840_v2 = vmax.f32 %v9712_v42, 0.0  ;;  %v9004_v40 = vrot.slane %v9002_v23, 4 }
 0x4c4   : > { %v9843_v47 = vmax.f32 %v9715_v12, 0.0 }
 0x4c5   : > { %v9841_v55 = vmax.f32 %v9713_v15, 0.0  ;;  %v13876_v43 = vpop.f32.mrb[12].mxu0 }
 0x4c6   : > { %v11880_v60 = vpack.c.bf16 %v9843_v47, %v9842_v52  ;;  %v14004_v5 = vadd.f32 %v13876_v43, %v18238_v28  ;;  %v9106_v38 = vpop.f32.mrb[13].mxu0 }
 0x4c7   : > { %v11875_v8 = vpack.c.bf16 %v9841_v55, %v9840_v2  ;;  %v14005_v21 = vadd.f32 %v9106_v38, %v18240_v14  ;;  %v13877_v12 = vpop.f32.mrb[14].mxu0  ;;  %v19638_v14 = vld [vmem:[#allocation206_spill] sm:$0xff] }
 0x4c8   : > { %12176 = vst [vmem:[%s18471_s5 + $0x28] sm:$0xff] %v11880_v60   ;;  %v9718_v36 = vadd.f32 %v14004_v5, %v18449_v18  ;;  %v14006_v9 = vadd.f32 %v13877_v12, %v18242_v44  ;;  %v9109_v42 = vpop.f32.mrb[15].mxu0  ;;  %v9003_v44 = vsel %vm15832_vm7, %v9001_v32, %v9002_v23 }
 0x4c9   : > { %12175 = vst [vmem:[%s18471_s5 + $0x20] sm:$0xff] %v11875_v8   ;;  %v9716_v15 = vadd.f32 %v14005_v21, %v18449_v18  ;;  %v14007_v28 = vadd.f32 %v9109_v42, %v18244_v56  ;;  %v9006_v56 = vsel %vm15832_vm7, %v9004_v40, %v9005_v13 }
 0x4ca   : > { %v9719_v63 = vadd.f32 %v14006_v9, %v18449_v18  ;;  %13463 = vmatmul.mubr.msk.bf16.gmra.mrb[120].mxu1 %vm2118_vm3, %v19521_v3  ;;  %13983 = vmatmul.mubr.msk.bf16.gmra.mrb[120].mxu0 %vm2118_vm3, %v19638_v14  ;;  %v9846_v10 = vmax.f32 %v9718_v36, 0.0 }
 0x4cb   : > { %v9717_v7 = vadd.f32 %v14007_v28, %v18449_v18  ;;  %13466 = vmatprep.mubr.msk.bf16.mxu1 %vm2118_vm3, %v18060_v35  ;;  %13986 = vmatprep.mubr.msk.bf16.mxu0 %vm2118_vm3, %v11524_v1  ;;  %v9844_v59 = vmax.f32 %v9716_v15, 0.0  ;;  %v11525_v35 = vcombine.low %v9003_v44, %v9006_v56 }
 0x4cc   : > { %v9847_v3 = vmax.f32 %v9719_v63, 0.0 }
 0x4cd   : > { %v9845_v52 = vmax.f32 %v9717_v7, 0.0  ;;  %v13880_v47 = vpop.f32.mrb[16].mxu0 }
 0x4ce   : > { %v11890_v46 = vpack.c.bf16 %v9847_v3, %v9846_v10  ;;  %v14008_v39 = vadd.f32 %v13880_v47, %v18254_v34  ;;  %v9122_v2 = vpop.f32.mrb[17].mxu0 }
 0x4cf   : > { %v11885_v55 = vpack.c.bf16 %v9845_v52, %v9844_v59  ;;  %v14009_v43 = vadd.f32 %v9122_v2, %v18256_v53  ;;  %v13881_v60 = vpop.f32.mrb[18].mxu0 }
 0x4d0   : > { %12178 = vst [vmem:[%s18471_s5 + $0x38] sm:$0xff] %v11890_v46   ;;  %v9722_v23 = vadd.f32 %v14008_v39, %v18449_v18  ;;  %v14010_v24 = vadd.f32 %v13881_v60, %v18258_v29  ;;  %v9125_v5 = vpop.f32.mrb[19].mxu0 }
 0x4d1   : > { %12177 = vst [vmem:[%s18471_s5 + $0x30] sm:$0xff] %v11885_v55   ;;  %v9720_v38 = vadd.f32 %v14009_v43, %v18449_v18  ;;  %v14011_v32 = vadd.f32 %v9125_v5, %v18260_v26 }
 0x4d2   : > { %v9723_v34 = vadd.f32 %v14010_v24, %v18449_v18  ;;  %13467 = vmatmul.mubr.msk.bf16.gmra.mrb[124].mxu1 %vm2118_vm3, %v18082_v50  ;;  %13987 = vmatmul.mubr.msk.bf16.gmra.mrb[124].mxu0 %vm2118_vm3, %v11525_v35  ;;  %v9850_v40 = vmax.f32 %v9722_v23, 0.0 }
 0x4d3   : > { %v9721_v53 = vadd.f32 %v14011_v32, %v18449_v18  ;;  %v9848_v29 = vmax.f32 %v9720_v38, 0.0 }
 0x4d4   : > { %v9851_v8 = vmax.f32 %v9723_v34, 0.0 }
 0x4d5   : > { %v9849_v21 = vmax.f32 %v9721_v53, 0.0  ;;  %v13884_v12 = vpop.f32.mrb[20].mxu0 }
 0x4d6   : > { %v11900_v1 = vpack.c.bf16 %v9851_v8, %v9850_v40  ;;  %v14012_v13 = vadd.f32 %v13884_v12, %v18270_v20  ;;  %v9138_v26 = vpop.f32.mrb[21].mxu0 }
 0x4d7   : > { %v11895_v36 = vpack.c.bf16 %v9849_v21, %v9848_v29  ;;  %v14013_v9 = vadd.f32 %v9138_v26, %v18272_v48  ;;  %v13885_v42 = vpop.f32.mrb[22].mxu0 }
 0x4d8   : > { %12180 = vst [vmem:[%s18471_s5 + $0x48] sm:$0xff] %v11900_v1   ;;  %v9726_v50 = vadd.f32 %v14012_v13, %v18449_v18  ;;  %v14014_v15 = vadd.f32 %v13885_v42, %v18274_v33  ;;  %v9141_v28 = vpop.f32.mrb[23].mxu0 }
 0x4d9   : > { %12179 = vst [vmem:[%s18471_s5 + $0x40] sm:$0xff] %v11895_v36   ;;  %v9724_v63 = vadd.f32 %v14013_v9, %v18449_v18  ;;  %v14015_v14 = vadd.f32 %v9141_v28, %v18276_v61 }
 0x4da   : > { %v9727_v7 = vadd.f32 %v14014_v15, %v18449_v18  ;;  %v9854_v44 = vmax.f32 %v9726_v50, 0.0 }
 0x4db   : > { %v9725_v20 = vadd.f32 %v14015_v14, %v18449_v18  ;;  %v9852_v56 = vmax.f32 %v9724_v63, 0.0 }
 0x4dc   : > { %v9855_v48 = vmax.f32 %v9727_v7, 0.0 }
 0x4dd   : > { %v9853_v10 = vmax.f32 %v9725_v20, 0.0  ;;  %v13888_v3 = vpop.f32.mrb[24].mxu0 }
 0x4de   : > { %v11910_v59 = vpack.c.bf16 %v9855_v48, %v9854_v44  ;;  %v14016_v33 = vadd.f32 %v13888_v3, %v18286_v25  ;;  %v9154_v52 = vpop.f32.mrb[25].mxu0 }
 0x4df   : > { %v11905_v47 = vpack.c.bf16 %v9853_v10, %v9852_v56  ;;  %v14017_v46 = vadd.f32 %v9154_v52, %v18288_v4  ;;  %v13889_v39 = vpop.f32.mrb[26].mxu0 }
 0x4e0   : > { %12182 = vst [vmem:[%s18471_s5 + $0x58] sm:$0xff] %v11910_v59   ;;  %v9730_v61 = vadd.f32 %v14016_v33, %v18449_v18  ;;  %v14018_v2 = vadd.f32 %v13889_v39, %v18290_v19  ;;  %v9157_v35 = vpop.f32.mrb[27].mxu0 }
 0x4e1   : > { %12181 = vst [vmem:[%s18471_s5 + $0x50] sm:$0xff] %v11905_v47   ;;  %v9728_v55 = vadd.f32 %v14017_v46, %v18449_v18  ;;  %v14019_v43 = vadd.f32 %v9157_v35, %v18292_v6 }
 0x4e2   : > { %v9731_v60 = vadd.f32 %v14018_v2, %v18449_v18  ;;  %v9858_v23 = vmax.f32 %v9730_v61, 0.0 }
 0x4e3   : > { %v9729_v25 = vadd.f32 %v14019_v43, %v18449_v18  ;;  %v9856_v24 = vmax.f32 %v9728_v55, 0.0 }
 0x4e4   : > { %v9859_v4 = vmax.f32 %v9731_v60, 0.0 }
 0x4e5   : > { %v9857_v5 = vmax.f32 %v9729_v25, 0.0  ;;  %v13892_v38 = vpop.f32.mrb[28].mxu0 }
 0x4e6   : > { %v11920_v32 = vpack.c.bf16 %v9859_v4, %v9858_v23  ;;  %v14020_v19 = vadd.f32 %v13892_v38, %v18302_v37  ;;  %v9170_v34 = vpop.f32.mrb[29].mxu0 }
 0x4e7   : > { %v11915_v53 = vpack.c.bf16 %v9857_v5, %v9856_v24  ;;  %v14021_v40 = vadd.f32 %v9170_v34, %v18304_v41  ;;  %v13893_v8 = vpop.f32.mrb[30].mxu0 }
 0x4e8   : > { %12184 = vst [vmem:[%s18471_s5 + $0x68] sm:$0xff] %v11920_v32   ;;  %v9734_v6 = vadd.f32 %v14020_v19, %v18449_v18  ;;  %v14022_v29 = vadd.f32 %v13893_v8, %v18306_v49  ;;  %v9173_v21 = vpop.f32.mrb[31].mxu0 }
 0x4e9   : > { %12183 = vst [vmem:[%s18471_s5 + $0x60] sm:$0xff] %v11915_v53   ;;  %v9732_v12 = vadd.f32 %v14021_v40, %v18449_v18  ;;  %v14023_v1 = vadd.f32 %v9173_v21, %v18308_v31 }
 0x4ea   : > { %v9735_v13 = vadd.f32 %v14022_v29, %v18449_v18  ;;  %v9862_v26 = vmax.f32 %v9734_v6, 0.0 }
 0x4eb   : > { %v9733_v37 = vadd.f32 %v14023_v1, %v18449_v18  ;;  %v9860_v36 = vmax.f32 %v9732_v12, 0.0 }
 0x4ec   : > { %v9863_v41 = vmax.f32 %v9735_v13, 0.0 }
 0x4ed   : > { %v9861_v9 = vmax.f32 %v9733_v37, 0.0  ;;  %v13896_v42 = vpop.f32.mrb[32].mxu0 }
 0x4ee   : > { %v11930_v50 = vpack.c.bf16 %v9863_v41, %v9862_v26  ;;  %v14024_v49 = vadd.f32 %v13896_v42, %v18318_v22  ;;  %v9186_v15 = vpop.f32.mrb[33].mxu0 }
 0x4ef   : > { %v11925_v28 = vpack.c.bf16 %v9861_v9, %v9860_v36  ;;  %v14025_v63 = vadd.f32 %v9186_v15, %v18320_v11  ;;  %v13897_v14 = vpop.f32.mrb[34].mxu0  ;;  %v19639_v36 = vld [vmem:[#allocation130_spill] sm:$0xff] }
 0x4f0   : > { %12186 = vst [vmem:[%s18471_s5 + $0x78] sm:$0xff] %v11930_v50   ;;  %v9738_v31 = vadd.f32 %v14024_v49, %v18449_v18  ;;  %v14026_v7 = vadd.f32 %v13897_v14, %v18322_v54  ;;  %v9189_v20 = vpop.f32.mrb[35].mxu0  ;;  %v19640_v50 = vld [vmem:[#allocation135_spill] sm:$0xff] }
 0x4f1   : > { %12185 = vst [vmem:[%s18471_s5 + $0x70] sm:$0xff] %v11925_v28   ;;  %v9736_v44 = vadd.f32 %v14025_v63, %v18449_v18  ;;  %v14027_v48 = vadd.f32 %v9189_v20, %v18324_v58  ;;  %v19641_v63 = vld [vmem:[#allocation137_spill] sm:$0xff] }
 0x4f2   : > { %v9739_v56 = vadd.f32 %v14026_v7, %v18449_v18  ;;  %v9866_v10 = vmax.f32 %v9738_v31, 0.0 }
 0x4f3   : > { %v9737_v22 = vadd.f32 %v14027_v48, %v18449_v18  ;;  %v9864_v3 = vmax.f32 %v9736_v44, 0.0 }
 0x4f4   : > { %v9867_v11 = vmax.f32 %v9739_v56, 0.0 }
 0x4f5   : > { %v9865_v59 = vmax.f32 %v9737_v22, 0.0  ;;  %v13900_v33 = vpop.f32.mrb[36].mxu0 }
 0x4f6   : > { %v11940_v52 = vpack.c.bf16 %v9867_v11, %v9866_v10  ;;  %v14028_v54 = vadd.f32 %v13900_v33, %v18334_v62  ;;  %v9202_v47 = vpop.f32.mrb[37].mxu0  ;;  %v19642_v10 = vld [vmem:[#allocation136_spill] sm:$0xff]  ;;  %v19643_v33 = vld [vmem:[#allocation138_spill] sm:$0xff] }
 0x4f7   : > { %v11935_v46 = vpack.c.bf16 %v9865_v59, %v9864_v3  ;;  %v14029_v39 = vadd.f32 %v9202_v47, %v18336_v0  ;;  %v13901_v61 = vpop.f32.mrb[38].mxu0 }
 0x4f8   : > { %12188 = vst [vmem:[%s18471_s5 + $0x88] sm:$0xff] %v11940_v52   ;;  %v9742_v58 = vadd.f32 %v14028_v54, %v18449_v18  ;;  %v14030_v2 = vadd.f32 %v13901_v61, %v18338_v17  ;;  %v9205_v35 = vpop.f32.mrb[39].mxu0 }
 0x4f9   : > { %12187 = vst [vmem:[%s18471_s5 + $0x80] sm:$0xff] %v11935_v46   ;;  %v9740_v55 = vadd.f32 %v14029_v39, %v18449_v18  ;;  %v14031_v43 = vadd.f32 %v9205_v35, %v18340_v27  ;;  %v19644_v46 = vld [vmem:[#allocation143_spill] sm:$0xff] }
 0x4fa   : > { %v9743_v60 = vadd.f32 %v14030_v2, %v18449_v18  ;;  %v9870_v25 = vmax.f32 %v9742_v58, 0.0  ;;  %v19645_v2 = vld [vmem:[#allocation145_spill] sm:$0xff] }
 0x4fb   : > { %v9741_v62 = vadd.f32 %v14031_v43, %v18449_v18  ;;  %v9868_v23 = vmax.f32 %v9740_v55, 0.0 }
 0x4fc   : > { %v9871_v0 = vmax.f32 %v9743_v60, 0.0 }
 0x4fd   : > { %v9869_v4 = vmax.f32 %v9741_v62, 0.0  ;;  %v13904_v24 = vpop.f32.mrb[40].mxu0 }
 0x4fe   : > { %v11950_v5 = vpack.c.bf16 %v9871_v0, %v9870_v25  ;;  %v14032_v17 = vadd.f32 %v13904_v24, %v18350_v57  ;;  %v9218_v38 = vpop.f32.mrb[41].mxu0  ;;  %v19646_v24 = vld [vmem:[#allocation144_spill] sm:$0xff] }
 0x4ff   : > { %v11945_v32 = vpack.c.bf16 %v9869_v4, %v9868_v23  ;;  %v14033_v19 = vadd.f32 %v9218_v38, %v18352_v51  ;;  %v13905_v34 = vpop.f32.mrb[42].mxu0 }
 0x500   : > { %12190 = vst [vmem:[%s18471_s5 + $0x98] sm:$0xff] %v11950_v5   ;;  %v9746_v27 = vadd.f32 %v14032_v17, %v18449_v18  ;;  %v14034_v53 = vadd.f32 %v13905_v34, %v18354_v45  ;;  %v9221_v40 = vpop.f32.mrb[43].mxu0 }
 0x501   : > { %12189 = vst [vmem:[%s18471_s5 + $0x90] sm:$0xff] %v11945_v32   ;;  %v9744_v8 = vadd.f32 %v14033_v19, %v18449_v18  ;;  %v14035_v6 = vadd.f32 %v9221_v40, %v18356_v16  ;;  %v19647_v32 = vld [vmem:[#allocation146_spill] sm:$0xff] }
 0x502   : > { %v9747_v29 = vadd.f32 %v14034_v53, %v18449_v18  ;;  %v9874_v21 = vmax.f32 %v9746_v27, 0.0  ;;  %v19648_v53 = vld [vmem:[#allocation151_spill] sm:$0xff] }
 0x503   : > { %v9745_v57 = vadd.f32 %v14035_v6, %v18449_v18  ;;  %v9872_v12 = vmax.f32 %v9744_v8, 0.0 }
 0x504   : > { %v9875_v51 = vmax.f32 %v9747_v29, 0.0  ;;  %v19649_v29 = vld [vmem:[#allocation153_spill] sm:$0xff] }
 0x505   : > { %v9873_v1 = vmax.f32 %v9745_v57, 0.0  ;;  %v13908_v13 = vpop.f32.mrb[44].mxu0 }
 0x506   : > { %v11960_v37 = vpack.c.bf16 %v9875_v51, %v9874_v21  ;;  %v14036_v45 = vadd.f32 %v13908_v13, %v18366_v30  ;;  %v9234_v26 = vpop.f32.mrb[45].mxu0 }
 0x507   : > { %v11955_v41 = vpack.c.bf16 %v9873_v1, %v9872_v12  ;;  %v14037_v9 = vadd.f32 %v9234_v26, %v19639_v36  ;;  %v13909_v42 = vpop.f32.mrb[46].mxu0 }
 0x508   : > { %12192 = vst [vmem:[%s18471_s5 + $0xa8] sm:$0xff] %v11960_v37   ;;  %v9750_v16 = vadd.f32 %v14036_v45, %v18449_v18  ;;  %v14038_v49 = vadd.f32 %v13909_v42, %v19640_v50  ;;  %v9237_v15 = vpop.f32.mrb[47].mxu0 }
 0x509   : > { %12191 = vst [vmem:[%s18471_s5 + $0xa0] sm:$0xff] %v11955_v41   ;;  %v9748_v28 = vadd.f32 %v14037_v9, %v18449_v18  ;;  %v14039_v14 = vadd.f32 %v9237_v15, %v19641_v63  ;;  %v19650_v41 = vld [vmem:[#allocation152_spill] sm:$0xff] }
 0x50a   : > { %v9751_v31 = vadd.f32 %v14038_v49, %v18449_v18  ;;  %v9878_v7 = vmax.f32 %v9750_v16, 0.0  ;;  %v19651_v16 = vld [vmem:[#allocation154_spill] sm:$0xff] }
 0x50b   : > { %v9749_v30 = vadd.f32 %v14039_v14, %v18449_v18  ;;  %v9876_v44 = vmax.f32 %v9748_v28, 0.0  ;;  %v19652_v28 = vld [vmem:[#allocation159_spill] sm:$0xff] }
 0x50c   : > { %v9879_v20 = vmax.f32 %v9751_v31, 0.0 }
 0x50d   : > { %v9877_v48 = vmax.f32 %v9749_v30, 0.0  ;;  %v13912_v56 = vpop.f32.mrb[48].mxu0  ;;  %v19653_v30 = vld [vmem:[#allocation161_spill] sm:$0xff] }
 0x50e   : > { %v11970_v22 = vpack.c.bf16 %v9879_v20, %v9878_v7  ;;  %v14040_v11 = vadd.f32 %v13912_v56, %v19642_v10  ;;  %v9250_v3 = vpop.f32.mrb[49].mxu0 }
 0x50f   : > { %v11965_v59 = vpack.c.bf16 %v9877_v48, %v9876_v44  ;;  %v14041_v52 = vadd.f32 %v9250_v3, %v19643_v33  ;;  %v13913_v54 = vpop.f32.mrb[50].mxu0 }
 0x510   : > { %12194 = vst [vmem:[%s18471_s5 + $0xb8] sm:$0xff] %v11970_v22   ;;  %v9754_v47 = vadd.f32 %v14040_v11, %v18449_v18  ;;  %v14042_v39 = vadd.f32 %v13913_v54, %v19644_v46  ;;  %v9253_v61 = vpop.f32.mrb[51].mxu0 }
 0x511   : > { %12193 = vst [vmem:[%s18471_s5 + $0xb0] sm:$0xff] %v11965_v59   ;;  %v9752_v58 = vadd.f32 %v14041_v52, %v18449_v18  ;;  %v14043_v35 = vadd.f32 %v9253_v61, %v19645_v2  ;;  %v19654_v59 = vld [vmem:[#allocation160_spill] sm:$0xff] }
 0x512   : > { %v9755_v55 = vadd.f32 %v14042_v39, %v18449_v18  ;;  %v9882_v60 = vmax.f32 %v9754_v47, 0.0  ;;  %v19655_v47 = vld [vmem:[#allocation162_spill] sm:$0xff] }
 0x513   : > { %v9753_v43 = vadd.f32 %v14043_v35, %v18449_v18  ;;  %v9880_v25 = vmax.f32 %v9752_v58, 0.0  ;;  %v19656_v58 = vld [vmem:[#allocation167_spill] sm:$0xff] }
 0x514   : > { %v9883_v62 = vmax.f32 %v9755_v55, 0.0 }
 0x515   : > { %v9881_v0 = vmax.f32 %v9753_v43, 0.0  ;;  %v13916_v23 = vpop.f32.mrb[52].mxu0  ;;  %v19657_v43 = vld [vmem:[#allocation169_spill] sm:$0xff] }
 0x516   : > { %v11980_v4 = vpack.c.bf16 %v9883_v62, %v9882_v60  ;;  %v14044_v5 = vadd.f32 %v13916_v23, %v19646_v24  ;;  %v9266_v17 = vpop.f32.mrb[53].mxu0 }
 0x517   : > { %v11975_v38 = vpack.c.bf16 %v9881_v0, %v9880_v25  ;;  %v14045_v19 = vadd.f32 %v9266_v17, %v19647_v32  ;;  %v13917_v34 = vpop.f32.mrb[54].mxu0 }
 0x518   : > { %12196 = vst [vmem:[%s18471_s5 + $0xc8] sm:$0xff] %v11980_v4   ;;  %v9758_v27 = vadd.f32 %v14044_v5, %v18449_v18  ;;  %v14046_v40 = vadd.f32 %v13917_v34, %v19648_v53  ;;  %v9269_v8 = vpop.f32.mrb[55].mxu0 }
 0x519   : > { %12195 = vst [vmem:[%s18471_s5 + $0xc0] sm:$0xff] %v11975_v38   ;;  %v9756_v6 = vadd.f32 %v14045_v19, %v18449_v18  ;;  %v14047_v57 = vadd.f32 %v9269_v8, %v19649_v29 }
 0x51a   : > { %v9759_v21 = vadd.f32 %v14046_v40, %v18449_v18  ;;  %v9886_v12 = vmax.f32 %v9758_v27, 0.0 }
 0x51b   : > { %v9757_v51 = vadd.f32 %v14047_v57, %v18449_v18  ;;  %v9884_v13 = vmax.f32 %v9756_v6, 0.0 }
 0x51c   : > { %v9887_v1 = vmax.f32 %v9759_v21, 0.0 }
 0x51d   : > { %v9885_v37 = vmax.f32 %v9757_v51, 0.0  ;;  %v13920_v45 = vpop.f32.mrb[56].mxu0 }
 0x51e   : > { %v11990_v26 = vpack.c.bf16 %v9887_v1, %v9886_v12  ;;  %v14048_v36 = vadd.f32 %v13920_v45, %v19650_v41  ;;  %v9282_v9 = vpop.f32.mrb[57].mxu0 }
 0x51f   : > { %v11985_v42 = vpack.c.bf16 %v9885_v37, %v9884_v13  ;;  %v14049_v50 = vadd.f32 %v9282_v9, %v19651_v16  ;;  %v13921_v49 = vpop.f32.mrb[58].mxu0 }
 0x520   : > { %12198 = vst [vmem:[%s18471_s5 + $0xd8] sm:$0xff] %v11990_v26   ;;  %v9762_v15 = vadd.f32 %v14048_v36, %v18449_v18  ;;  %v14050_v63 = vadd.f32 %v13921_v49, %v19652_v28  ;;  %v9285_v14 = vpop.f32.mrb[59].mxu0 }
 0x521   : > { %12197 = vst [vmem:[%s18471_s5 + $0xd0] sm:$0xff] %v11985_v42   ;;  %v9760_v31 = vadd.f32 %v14049_v50, %v18449_v18  ;;  %v14051_v7 = vadd.f32 %v9285_v14, %v19653_v30 }
 0x522   : > { %v9763_v20 = vadd.f32 %v14050_v63, %v18449_v18  ;;  %v9890_v48 = vmax.f32 %v9762_v15, 0.0 }
 0x523   : > { %v9761_v44 = vadd.f32 %v14051_v7, %v18449_v18  ;;  %v9888_v22 = vmax.f32 %v9760_v31, 0.0 }
 0x524   : > { %v9891_v56 = vmax.f32 %v9763_v20, 0.0 }
 0x525   : > { %v9889_v10 = vmax.f32 %v9761_v44, 0.0  ;;  %v13924_v11 = vpop.f32.mrb[60].mxu0 }
 0x526   : > { %v12000_v3 = vpack.c.bf16 %v9891_v56, %v9890_v48  ;;  %v14052_v33 = vadd.f32 %v13924_v11, %v19654_v59  ;;  %v9298_v52 = vpop.f32.mrb[61].mxu0 }
 0x527   : > { %v11995_v54 = vpack.c.bf16 %v9889_v10, %v9888_v22  ;;  %v14053_v46 = vadd.f32 %v9298_v52, %v19655_v47  ;;  %v13925_v39 = vpop.f32.mrb[62].mxu0 }
 0x528   : > { %12200 = vst [vmem:[%s18471_s5 + $0xe8] sm:$0xff] %v12000_v3   ;;  %v9766_v61 = vadd.f32 %v14052_v33, %v18449_v18  ;;  %v14054_v2 = vadd.f32 %v13925_v39, %v19656_v58  ;;  %v9301_v35 = vpop.f32.mrb[63].mxu0 }
 0x529   : > { %12199 = vst [vmem:[%s18471_s5 + $0xe0] sm:$0xff] %v11995_v54   ;;  %v9764_v55 = vadd.f32 %v14053_v46, %v18449_v18  ;;  %v14055_v60 = vadd.f32 %v9301_v35, %v19657_v43 }
 0x52a   : > { %v9767_v62 = vadd.f32 %v14054_v2, %v18449_v18  ;;  %v9894_v0 = vmax.f32 %v9766_v61, 0.0 }
 0x52b   : > { %v9765_v25 = vadd.f32 %v14055_v60, %v18449_v18  ;;  %v9892_v4 = vmax.f32 %v9764_v55, 0.0 }
 0x52c   : > { %v9895_v23 = vmax.f32 %v9767_v62, 0.0 }
 0x52d   : > { %v9893_v24 = vmax.f32 %v9765_v25, 0.0  ;;  %v13408_v5 = vpop.f32.mrb[64].mxu1  ;;  %v13928_v17 = vpop.f32.mrb[64].mxu0 }
 0x52e   : > { %v12010_v38 = vpack.c.bf16 %v9895_v23, %v9894_v0  ;;  %v14056_v32 = vadd.f32 %v13928_v17, %v13408_v5  ;;  %v6478_v19 = vpop.f32.mrb[65].mxu1  ;;  %v9314_v34 = vpop.f32.mrb[65].mxu0 }
 0x52f   : > { %v12005_v27 = vpack.c.bf16 %v9893_v24, %v9892_v4  ;;  %v14057_v53 = vadd.f32 %v9314_v34, %v6478_v19  ;;  %v13409_v40 = vpop.f32.mrb[66].mxu1  ;;  %v13929_v8 = vpop.f32.mrb[66].mxu0 }
 0x530   : > { %12202 = vst [vmem:[%s18471_s5 + $0xf8] sm:$0xff] %v12010_v38   ;;  %v9770_v6 = vadd.f32 %v14056_v32, %v18449_v18  ;;  %v14058_v29 = vadd.f32 %v13929_v8, %v13409_v40  ;;  %v6481_v57 = vpop.f32.mrb[67].mxu1  ;;  %v9317_v21 = vpop.f32.mrb[67].mxu0 }
 0x531   : > { %12201 = vst [vmem:[%s18471_s5 + $0xf0] sm:$0xff] %v12005_v27   ;;  %v9768_v51 = vadd.f32 %v14057_v53, %v18449_v18  ;;  %v14059_v12 = vadd.f32 %v9317_v21, %v6481_v57 }
 0x532   : > { %v9771_v1 = vadd.f32 %v14058_v29, %v18449_v18  ;;  %v9898_v37 = vmax.f32 %v9770_v6, 0.0 }
 0x533   : > { %v9769_v13 = vadd.f32 %v14059_v12, %v18449_v18  ;;  %v9896_v26 = vmax.f32 %v9768_v51, 0.0 }
 0x534   : > { %v9899_v45 = vmax.f32 %v9771_v1, 0.0 }
 0x535   : > { %v9897_v41 = vmax.f32 %v9769_v13, 0.0  ;;  %v13412_v36 = vpop.f32.mrb[68].mxu1  ;;  %v13932_v9 = vpop.f32.mrb[68].mxu0 }
 0x536   : > { %v12020_v42 = vpack.c.bf16 %v9899_v45, %v9898_v37  ;;  %v14060_v16 = vadd.f32 %v13932_v9, %v13412_v36  ;;  %v6494_v50 = vpop.f32.mrb[69].mxu1  ;;  %v9330_v49 = vpop.f32.mrb[69].mxu0 }
 0x537   : > { %v12015_v15 = vpack.c.bf16 %v9897_v41, %v9896_v26  ;;  %v14061_v28 = vadd.f32 %v9330_v49, %v6494_v50  ;;  %v13413_v63 = vpop.f32.mrb[70].mxu1  ;;  %v13933_v14 = vpop.f32.mrb[70].mxu0 }
 0x538   : > { %12204 = vst [vmem:[%s18471_s5 + $0x108] sm:$0xff] %v12020_v42   ;;  %v9774_v31 = vadd.f32 %v14060_v16, %v18449_v18  ;;  %v14062_v30 = vadd.f32 %v13933_v14, %v13413_v63  ;;  %v6497_v7 = vpop.f32.mrb[71].mxu1  ;;  %v9333_v20 = vpop.f32.mrb[71].mxu0 }
 0x539   : > { %12203 = vst [vmem:[%s18471_s5 + $0x100] sm:$0xff] %v12015_v15   ;;  %v9772_v44 = vadd.f32 %v14061_v28, %v18449_v18  ;;  %v14063_v48 = vadd.f32 %v9333_v20, %v6497_v7 }
 0x53a   : > { %v9775_v56 = vadd.f32 %v14062_v30, %v18449_v18  ;;  %v9902_v10 = vmax.f32 %v9774_v31, 0.0 }
 0x53b   : > { %v9773_v22 = vadd.f32 %v14063_v48, %v18449_v18  ;;  %v9900_v3 = vmax.f32 %v9772_v44, 0.0 }
 0x53c   : > { %v9903_v11 = vmax.f32 %v9775_v56, 0.0 }
 0x53d   : > { %v9901_v59 = vmax.f32 %v9773_v22, 0.0  ;;  %v13416_v33 = vpop.f32.mrb[72].mxu1  ;;  %v13936_v52 = vpop.f32.mrb[72].mxu0 }
 0x53e   : > { %v12030_v54 = vpack.c.bf16 %v9903_v11, %v9902_v10  ;;  %v14064_v47 = vadd.f32 %v13936_v52, %v13416_v33  ;;  %v6510_v46 = vpop.f32.mrb[73].mxu1  ;;  %v9346_v39 = vpop.f32.mrb[73].mxu0 }
 0x53f   : > { %v12025_v61 = vpack.c.bf16 %v9901_v59, %v9900_v3  ;;  %v14065_v58 = vadd.f32 %v9346_v39, %v6510_v46  ;;  %v13417_v2 = vpop.f32.mrb[74].mxu1  ;;  %v13937_v35 = vpop.f32.mrb[74].mxu0 }
 0x540   : > { %12206 = vst [vmem:[%s18471_s5 + $0x118] sm:$0xff] %v12030_v54   ;;  %v9778_v55 = vadd.f32 %v14064_v47, %v18449_v18  ;;  %v14066_v43 = vadd.f32 %v13937_v35, %v13417_v2  ;;  %v6513_v60 = vpop.f32.mrb[75].mxu1  ;;  %v9349_v62 = vpop.f32.mrb[75].mxu0 }
 0x541   : > { %12205 = vst [vmem:[%s18471_s5 + $0x110] sm:$0xff] %v12025_v61   ;;  %v9776_v25 = vadd.f32 %v14065_v58, %v18449_v18  ;;  %v14067_v0 = vadd.f32 %v9349_v62, %v6513_v60 }
 0x542   : > { %v9779_v23 = vadd.f32 %v14066_v43, %v18449_v18  ;;  %v9906_v24 = vmax.f32 %v9778_v55, 0.0 }
 0x543   : > { %v9777_v4 = vadd.f32 %v14067_v0, %v18449_v18  ;;  %v9904_v17 = vmax.f32 %v9776_v25, 0.0 }
 0x544   : > { %v9907_v5 = vmax.f32 %v9779_v23, 0.0 }
 0x545   : > { %v9905_v38 = vmax.f32 %v9777_v4, 0.0  ;;  %v13420_v32 = vpop.f32.mrb[76].mxu1  ;;  %v13940_v19 = vpop.f32.mrb[76].mxu0 }
 0x546   : > { %v12040_v34 = vpack.c.bf16 %v9907_v5, %v9906_v24  ;;  %v14068_v27 = vadd.f32 %v13940_v19, %v13420_v32  ;;  %v6526_v53 = vpop.f32.mrb[77].mxu1  ;;  %v9362_v40 = vpop.f32.mrb[77].mxu0 }
 0x547   : > { %v12035_v8 = vpack.c.bf16 %v9905_v38, %v9904_v17  ;;  %v14069_v6 = vadd.f32 %v9362_v40, %v6526_v53  ;;  %v13421_v29 = vpop.f32.mrb[78].mxu1  ;;  %v13941_v57 = vpop.f32.mrb[78].mxu0 }
 0x548   : > { %12208 = vst [vmem:[%s18471_s5 + $0x128] sm:$0xff] %v12040_v34   ;;  %v9782_v21 = vadd.f32 %v14068_v27, %v18449_v18  ;;  %v14070_v51 = vadd.f32 %v13941_v57, %v13421_v29  ;;  %v6529_v12 = vpop.f32.mrb[79].mxu1  ;;  %v9365_v1 = vpop.f32.mrb[79].mxu0 }
 0x549   : > { %12207 = vst [vmem:[%s18471_s5 + $0x120] sm:$0xff] %v12035_v8   ;;  %v9780_v13 = vadd.f32 %v14069_v6, %v18449_v18  ;;  %v14071_v37 = vadd.f32 %v9365_v1, %v6529_v12 }
 0x54a   : > { %v9783_v45 = vadd.f32 %v14070_v51, %v18449_v18  ;;  %v9910_v41 = vmax.f32 %v9782_v21, 0.0 }
 0x54b   : > { %v9781_v26 = vadd.f32 %v14071_v37, %v18449_v18  ;;  %v9908_v9 = vmax.f32 %v9780_v13, 0.0 }
 0x54c   : > { %v9911_v36 = vmax.f32 %v9783_v45, 0.0 }
 0x54d   : > { %v9909_v42 = vmax.f32 %v9781_v26, 0.0  ;;  %v13424_v16 = vpop.f32.mrb[80].mxu1  ;;  %v13944_v50 = vpop.f32.mrb[80].mxu0 }
 0x54e   : > { %v12050_v49 = vpack.c.bf16 %v9911_v36, %v9910_v41  ;;  %v14072_v15 = vadd.f32 %v13944_v50, %v13424_v16  ;;  %v6542_v28 = vpop.f32.mrb[81].mxu1  ;;  %v9378_v63 = vpop.f32.mrb[81].mxu0  ;;  %v18705_v36 = vld [vmem:[%s18777_s3] ss:$0 sm:$0xff] }
 0x54f   : > { %v12045_v14 = vpack.c.bf16 %v9909_v42, %v9908_v9  ;;  %v14073_v31 = vadd.f32 %v9378_v63, %v6542_v28  ;;  %v13425_v30 = vpop.f32.mrb[82].mxu1  ;;  %v13945_v7 = vpop.f32.mrb[82].mxu0 }
 0x550   : > { %12210 = vst [vmem:[%s18471_s5 + $0x138] sm:$0xff] %v12050_v49   ;;  %v9786_v20 = vadd.f32 %v14072_v15, %v18449_v18  ;;  %v14074_v44 = vadd.f32 %v13945_v7, %v13425_v30  ;;  %v6545_v48 = vpop.f32.mrb[83].mxu1  ;;  %v9381_v56 = vpop.f32.mrb[83].mxu0 }
 0x551   : > { %12209 = vst [vmem:[%s18471_s5 + $0x130] sm:$0xff] %v12045_v14   ;;  %v9784_v22 = vadd.f32 %v14073_v31, %v18449_v18  ;;  %v14075_v10 = vadd.f32 %v9381_v56, %v6545_v48 }
 0x552   : > { %v9787_v11 = vadd.f32 %v14074_v44, %v18449_v18  ;;  %v9914_v59 = vmax.f32 %v9786_v20, 0.0 }
 0x553   : > { %v9785_v3 = vadd.f32 %v14075_v10, %v18449_v18  ;;  %v9912_v52 = vmax.f32 %v9784_v22, 0.0 }
 0x554   : > { %v9915_v33 = vmax.f32 %v9787_v11, 0.0 }
 0x555   : > { %v9913_v54 = vmax.f32 %v9785_v3, 0.0  ;;  %v13428_v47 = vpop.f32.mrb[84].mxu1  ;;  %v13948_v46 = vpop.f32.mrb[84].mxu0 }
 0x556   : > { %v12060_v39 = vpack.c.bf16 %v9915_v33, %v9914_v59  ;;  %v14076_v61 = vadd.f32 %v13948_v46, %v13428_v47  ;;  %v6558_v58 = vpop.f32.mrb[85].mxu1  ;;  %v9394_v2 = vpop.f32.mrb[85].mxu0 }
 0x557   : > { %v12055_v35 = vpack.c.bf16 %v9913_v54, %v9912_v52  ;;  %v14077_v55 = vadd.f32 %v9394_v2, %v6558_v58  ;;  %v13429_v43 = vpop.f32.mrb[86].mxu1  ;;  %v13949_v60 = vpop.f32.mrb[86].mxu0 }
 0x558   : > { %12212 = vst [vmem:[%s18471_s5 + $0x148] sm:$0xff] %v12060_v39   ;;  %v9790_v62 = vadd.f32 %v14076_v61, %v18449_v18  ;;  %v14078_v25 = vadd.f32 %v13949_v60, %v13429_v43  ;;  %v6561_v0 = vpop.f32.mrb[87].mxu1  ;;  %v9397_v23 = vpop.f32.mrb[87].mxu0 }
 0x559   : > { %12211 = vst [vmem:[%s18471_s5 + $0x140] sm:$0xff] %v12055_v35   ;;  %v9788_v4 = vadd.f32 %v14077_v55, %v18449_v18  ;;  %v14079_v24 = vadd.f32 %v9397_v23, %v6561_v0 }
 0x55a   : > { %v9791_v5 = vadd.f32 %v14078_v25, %v18449_v18  ;;  %v9918_v38 = vmax.f32 %v9790_v62, 0.0 }
 0x55b   : > { %v9789_v17 = vadd.f32 %v14079_v24, %v18449_v18  ;;  %v9916_v19 = vmax.f32 %v9788_v4, 0.0 }
 0x55c   : > { %v9919_v32 = vmax.f32 %v9791_v5, 0.0 }
 0x55d   : > { %v9917_v34 = vmax.f32 %v9789_v17, 0.0  ;;  %v13432_v27 = vpop.f32.mrb[88].mxu1  ;;  %v13952_v53 = vpop.f32.mrb[88].mxu0 }
 0x55e   : > { %v12070_v40 = vpack.c.bf16 %v9919_v32, %v9918_v38  ;;  %v14080_v8 = vadd.f32 %v13952_v53, %v13432_v27  ;;  %v6574_v6 = vpop.f32.mrb[89].mxu1  ;;  %v9410_v29 = vpop.f32.mrb[89].mxu0 }
 0x55f   : > { %v12065_v57 = vpack.c.bf16 %v9917_v34, %v9916_v19  ;;  %v14081_v21 = vadd.f32 %v9410_v29, %v6574_v6  ;;  %v13433_v51 = vpop.f32.mrb[90].mxu1  ;;  %v13953_v12 = vpop.f32.mrb[90].mxu0 }
 0x560   : > { %12214 = vst [vmem:[%s18471_s5 + $0x158] sm:$0xff] %v12070_v40   ;;  %v9794_v1 = vadd.f32 %v14080_v8, %v18449_v18  ;;  %v14082_v13 = vadd.f32 %v13953_v12, %v13433_v51  ;;  %v6577_v37 = vpop.f32.mrb[91].mxu1  ;;  %v9413_v45 = vpop.f32.mrb[91].mxu0 }
 0x561   : > { %12213 = vst [vmem:[%s18471_s5 + $0x150] sm:$0xff] %v12065_v57   ;;  %v9792_v26 = vadd.f32 %v14081_v21, %v18449_v18  ;;  %v14083_v41 = vadd.f32 %v9413_v45, %v6577_v37 }
 0x562   : > { %v9795_v9 = vadd.f32 %v18705_v36, %v14082_v13  ;;  %v9922_v16 = vmax.f32 %v9794_v1, 0.0 }
 0x563   : > { %v9793_v42 = vadd.f32 %v18705_v36, %v14083_v41  ;;  %v9920_v49 = vmax.f32 %v9792_v26, 0.0 }
 0x564   : > { %v9923_v50 = vmax.f32 %v9795_v9, 0.0 }
 0x565   : > { %v9921_v15 = vmax.f32 %v9793_v42, 0.0  ;;  %v13436_v28 = vpop.f32.mrb[92].mxu1  ;;  %v13956_v63 = vpop.f32.mrb[92].mxu0 }
 0x566   : > { %v12080_v14 = vpack.c.bf16 %v9923_v50, %v9922_v16  ;;  %v14084_v18 = vadd.f32 %v13956_v63, %v13436_v28  ;;  %v6590_v31 = vpop.f32.mrb[93].mxu1  ;;  %v9426_v30 = vpop.f32.mrb[93].mxu0 }
 0x567   : > { %v12075_v7 = vpack.c.bf16 %v9921_v15, %v9920_v49  ;;  %v14085_v20 = vadd.f32 %v9426_v30, %v6590_v31  ;;  %v13437_v44 = vpop.f32.mrb[94].mxu1  ;;  %v13957_v48 = vpop.f32.mrb[94].mxu0 }
 0x568   : > { %12216 = vst [vmem:[%s18471_s5 + $0x168] sm:$0xff] %v12080_v14   ;;  %v9798_v56 = vadd.f32 %v18705_v36, %v14084_v18  ;;  %v14086_v22 = vadd.f32 %v13957_v48, %v13437_v44  ;;  %v6593_v10 = vpop.f32.mrb[95].mxu1  ;;  %v9429_v11 = vpop.f32.mrb[95].mxu0 }
 0x569   : > { %12215 = vst [vmem:[%s18471_s5 + $0x160] sm:$0xff] %v12075_v7   ;;  %v9796_v3 = vadd.f32 %v18705_v36, %v14085_v20  ;;  %v14087_v59 = vadd.f32 %v9429_v11, %v6593_v10 }
 0x56a   : > { %v9799_v33 = vadd.f32 %v18705_v36, %v14086_v22  ;;  %v9926_v54 = vmax.f32 %v9798_v56, 0.0 }
 0x56b   : > { %v9797_v52 = vadd.f32 %v18705_v36, %v14087_v59  ;;  %v9924_v46 = vmax.f32 %v9796_v3, 0.0 }
 0x56c   : > { %v9927_v47 = vmax.f32 %v9799_v33, 0.0 }
 0x56d   : > { %v9925_v39 = vmax.f32 %v9797_v52, 0.0  ;;  %v13440_v61 = vpop.f32.mrb[96].mxu1  ;;  %v13960_v58 = vpop.f32.mrb[96].mxu0 }
 0x56e   : > { %v12090_v2 = vpack.c.bf16 %v9927_v47, %v9926_v54  ;;  %v14088_v35 = vadd.f32 %v13960_v58, %v13440_v61  ;;  %v6606_v55 = vpop.f32.mrb[97].mxu1  ;;  %v9442_v43 = vpop.f32.mrb[97].mxu0 }
 0x56f   : > { %v12085_v60 = vpack.c.bf16 %v9925_v39, %v9924_v46  ;;  %v14089_v62 = vadd.f32 %v9442_v43, %v6606_v55  ;;  %v13441_v25 = vpop.f32.mrb[98].mxu1  ;;  %v13961_v0 = vpop.f32.mrb[98].mxu0 }
 0x570   : > { %12218 = vst [vmem:[%s18471_s5 + $0x178] sm:$0xff] %v12090_v2   ;;  %v9802_v23 = vadd.f32 %v18705_v36, %v14088_v35  ;;  %v14090_v4 = vadd.f32 %v13961_v0, %v13441_v25  ;;  %v6609_v24 = vpop.f32.mrb[99].mxu1  ;;  %v9445_v5 = vpop.f32.mrb[99].mxu0 }
 0x571   : > { %12217 = vst [vmem:[%s18471_s5 + $0x170] sm:$0xff] %v12085_v60   ;;  %v9800_v17 = vadd.f32 %v18705_v36, %v14089_v62  ;;  %v14091_v38 = vadd.f32 %v9445_v5, %v6609_v24 }
 0x572   : > { %v9803_v32 = vadd.f32 %v18705_v36, %v14090_v4  ;;  %v9930_v34 = vmax.f32 %v9802_v23, 0.0 }
 0x573   : > { %v9801_v19 = vadd.f32 %v18705_v36, %v14091_v38  ;;  %v9928_v53 = vmax.f32 %v9800_v17, 0.0 }
 0x574   : > { %v9931_v27 = vmax.f32 %v9803_v32, 0.0 }
 0x575   : > { %v9929_v40 = vmax.f32 %v9801_v19, 0.0  ;;  %v13444_v8 = vpop.f32.mrb[100].mxu1  ;;  %v13964_v6 = vpop.f32.mrb[100].mxu0 }
 0x576   : > { %v12100_v29 = vpack.c.bf16 %v9931_v27, %v9930_v34  ;;  %v14092_v57 = vadd.f32 %v13964_v6, %v13444_v8  ;;  %v6622_v21 = vpop.f32.mrb[101].mxu1  ;;  %v9458_v51 = vpop.f32.mrb[101].mxu0 }
 0x577   : > { %v12095_v12 = vpack.c.bf16 %v9929_v40, %v9928_v53  ;;  %v14093_v1 = vadd.f32 %v9458_v51, %v6622_v21  ;;  %v13445_v13 = vpop.f32.mrb[102].mxu1  ;;  %v13965_v37 = vpop.f32.mrb[102].mxu0 }
 0x578   : > { %12220 = vst [vmem:[%s18471_s5 + $0x188] sm:$0xff] %v12100_v29   ;;  %v9806_v45 = vadd.f32 %v18705_v36, %v14092_v57  ;;  %v14094_v26 = vadd.f32 %v13965_v37, %v13445_v13  ;;  %v6625_v41 = vpop.f32.mrb[103].mxu1  ;;  %v9461_v9 = vpop.f32.mrb[103].mxu0 }
 0x579   : > { %12219 = vst [vmem:[%s18471_s5 + $0x180] sm:$0xff] %v12095_v12   ;;  %v9804_v42 = vadd.f32 %v18705_v36, %v14093_v1  ;;  %v14095_v16 = vadd.f32 %v9461_v9, %v6625_v41 }
 0x57a   : > { %v9807_v50 = vadd.f32 %v18705_v36, %v14094_v26  ;;  %v9934_v15 = vmax.f32 %v9806_v45, 0.0 }
 0x57b   : > { %v9805_v49 = vadd.f32 %v18705_v36, %v14095_v16  ;;  %v9932_v63 = vmax.f32 %v9804_v42, 0.0 }
 0x57c   : > { %v9935_v28 = vmax.f32 %v9807_v50, 0.0 }
 0x57d   : > { %v9933_v14 = vmax.f32 %v9805_v49, 0.0  ;;  %v13448_v18 = vpop.f32.mrb[104].mxu1  ;;  %v13968_v31 = vpop.f32.mrb[104].mxu0 }
 0x57e   : > { %v12110_v30 = vpack.c.bf16 %v9935_v28, %v9934_v15  ;;  %v14096_v7 = vadd.f32 %v13968_v31, %v13448_v18  ;;  %v6638_v20 = vpop.f32.mrb[105].mxu1  ;;  %v9474_v44 = vpop.f32.mrb[105].mxu0 }
 0x57f   : > { %v12105_v48 = vpack.c.bf16 %v9933_v14, %v9932_v63  ;;  %v14097_v56 = vadd.f32 %v9474_v44, %v6638_v20  ;;  %v13449_v22 = vpop.f32.mrb[106].mxu1  ;;  %v13969_v10 = vpop.f32.mrb[106].mxu0 }
 0x580   : > { %12222 = vst [vmem:[%s18471_s5 + $0x198] sm:$0xff] %v12110_v30   ;;  %v9810_v11 = vadd.f32 %v18705_v36, %v14096_v7  ;;  %v14098_v3 = vadd.f32 %v13969_v10, %v13449_v22  ;;  %v6641_v59 = vpop.f32.mrb[107].mxu1  ;;  %v9477_v33 = vpop.f32.mrb[107].mxu0 }
 0x581   : > { %12221 = vst [vmem:[%s18471_s5 + $0x190] sm:$0xff] %v12105_v48   ;;  %v9808_v52 = vadd.f32 %v18705_v36, %v14097_v56  ;;  %v14099_v54 = vadd.f32 %v9477_v33, %v6641_v59 }
 0x582   : > { %v9811_v47 = vadd.f32 %v18705_v36, %v14098_v3  ;;  %v9938_v39 = vmax.f32 %v9810_v11, 0.0 }
 0x583   : > { %v9809_v46 = vadd.f32 %v18705_v36, %v14099_v54  ;;  %v9936_v58 = vmax.f32 %v9808_v52, 0.0 }
 0x584   : > { %v9939_v61 = vmax.f32 %v9811_v47, 0.0 }
 0x585   : > { %v9937_v2 = vmax.f32 %v9809_v46, 0.0  ;;  %v13452_v35 = vpop.f32.mrb[108].mxu1  ;;  %v13972_v55 = vpop.f32.mrb[108].mxu0 }
 0x586   : > { %v12120_v43 = vpack.c.bf16 %v9939_v61, %v9938_v39  ;;  %v14100_v60 = vadd.f32 %v13972_v55, %v13452_v35  ;;  %v6654_v62 = vpop.f32.mrb[109].mxu1  ;;  %v9490_v25 = vpop.f32.mrb[109].mxu0 }
 0x587   : > { %v12115_v0 = vpack.c.bf16 %v9937_v2, %v9936_v58  ;;  %v14101_v23 = vadd.f32 %v9490_v25, %v6654_v62  ;;  %v13453_v4 = vpop.f32.mrb[110].mxu1  ;;  %v13973_v24 = vpop.f32.mrb[110].mxu0 }
 0x588   : > { %12224 = vst [vmem:[%s18471_s5 + $0x1a8] sm:$0xff] %v12120_v43   ;;  %v9814_v5 = vadd.f32 %v18705_v36, %v14100_v60  ;;  %v14102_v17 = vadd.f32 %v13973_v24, %v13453_v4  ;;  %v6657_v38 = vpop.f32.mrb[111].mxu1  ;;  %v9493_v32 = vpop.f32.mrb[111].mxu0 }
 0x589   : > { %12223 = vst [vmem:[%s18471_s5 + $0x1a0] sm:$0xff] %v12115_v0   ;;  %v9812_v19 = vadd.f32 %v18705_v36, %v14101_v23  ;;  %v14103_v34 = vadd.f32 %v9493_v32, %v6657_v38 }
 0x58a   : > { %v9815_v27 = vadd.f32 %v18705_v36, %v14102_v17  ;;  %v9942_v40 = vmax.f32 %v9814_v5, 0.0 }
 0x58b   : > { %v9813_v53 = vadd.f32 %v18705_v36, %v14103_v34  ;;  %v9940_v6 = vmax.f32 %v9812_v19, 0.0 }
 0x58c   : > { %v9943_v8 = vmax.f32 %v9815_v27, 0.0 }
 0x58d   : > { %v9941_v29 = vmax.f32 %v9813_v53, 0.0  ;;  %v13456_v57 = vpop.f32.mrb[112].mxu1  ;;  %v13976_v21 = vpop.f32.mrb[112].mxu0 }
 0x58e   : > { %v12130_v51 = vpack.c.bf16 %v9943_v8, %v9942_v40  ;;  %v14104_v12 = vadd.f32 %v13976_v21, %v13456_v57  ;;  %v6670_v1 = vpop.f32.mrb[113].mxu1  ;;  %v9506_v13 = vpop.f32.mrb[113].mxu0 }
 0x58f   : > { %v12125_v37 = vpack.c.bf16 %v9941_v29, %v9940_v6  ;;  %v14105_v45 = vadd.f32 %v9506_v13, %v6670_v1  ;;  %v13457_v26 = vpop.f32.mrb[114].mxu1  ;;  %v13977_v41 = vpop.f32.mrb[114].mxu0 }
 0x590   : > { %12226 = vst [vmem:[%s18471_s5 + $0x1b8] sm:$0xff] %v12130_v51   ;;  %v9818_v9 = vadd.f32 %v18705_v36, %v14104_v12  ;;  %v14106_v42 = vadd.f32 %v13977_v41, %v13457_v26  ;;  %v6673_v16 = vpop.f32.mrb[115].mxu1  ;;  %v9509_v50 = vpop.f32.mrb[115].mxu0 }
 0x591   : > { %12225 = vst [vmem:[%s18471_s5 + $0x1b0] sm:$0xff] %v12125_v37   ;;  %v9816_v49 = vadd.f32 %v18705_v36, %v14105_v45  ;;  %v14107_v15 = vadd.f32 %v9509_v50, %v6673_v16 }
 0x592   : > { %v9819_v28 = vadd.f32 %v18705_v36, %v14106_v42  ;;  %v9946_v14 = vmax.f32 %v9818_v9, 0.0 }
 0x593   : > { %v9817_v63 = vadd.f32 %v18705_v36, %v14107_v15  ;;  %v9944_v31 = vmax.f32 %v9816_v49, 0.0 }
 0x594   : > { %v9947_v18 = vmax.f32 %v9819_v28, 0.0 }
 0x595   : > { %v9945_v30 = vmax.f32 %v9817_v63, 0.0  ;;  %v13460_v7 = vpop.f32.mrb[116].mxu1  ;;  %v13980_v20 = vpop.f32.mrb[116].mxu0 }
 0x596   : > { %v12140_v44 = vpack.c.bf16 %v9947_v18, %v9946_v14  ;;  %v14108_v48 = vadd.f32 %v13980_v20, %v13460_v7  ;;  %v6686_v56 = vpop.f32.mrb[117].mxu1  ;;  %v9522_v22 = vpop.f32.mrb[117].mxu0 }
 0x597   : > { %v12135_v10 = vpack.c.bf16 %v9945_v30, %v9944_v31  ;;  %v14109_v11 = vadd.f32 %v9522_v22, %v6686_v56  ;;  %v13461_v3 = vpop.f32.mrb[118].mxu1  ;;  %v13981_v59 = vpop.f32.mrb[118].mxu0 }
 0x598   : > { %12228 = vst [vmem:[%s18471_s5 + $0x1c8] sm:$0xff] %v12140_v44   ;;  %v9822_v33 = vadd.f32 %v18705_v36, %v14108_v48  ;;  %v14110_v52 = vadd.f32 %v13981_v59, %v13461_v3  ;;  %v6689_v54 = vpop.f32.mrb[119].mxu1  ;;  %v9525_v47 = vpop.f32.mrb[119].mxu0 }
 0x599   : > { %12227 = vst [vmem:[%s18471_s5 + $0x1c0] sm:$0xff] %v12135_v10   ;;  %v9820_v46 = vadd.f32 %v18705_v36, %v14109_v11  ;;  %v14111_v39 = vadd.f32 %v9525_v47, %v6689_v54 }
 0x59a   : > { %v9823_v61 = vadd.f32 %v18705_v36, %v14110_v52  ;;  %v9950_v2 = vmax.f32 %v9822_v33, 0.0 }
 0x59b   : > { %v9821_v58 = vadd.f32 %v18705_v36, %v14111_v39  ;;  %v9948_v55 = vmax.f32 %v9820_v46, 0.0 }
 0x59c   : > { %v9951_v35 = vmax.f32 %v9823_v61, 0.0 }
 0x59d   : > { %v9949_v43 = vmax.f32 %v9821_v58, 0.0  ;;  %v13464_v60 = vpop.f32.mrb[120].mxu1  ;;  %v13984_v62 = vpop.f32.mrb[120].mxu0 }
 0x59e   : > { %v12150_v25 = vpack.c.bf16 %v9951_v35, %v9950_v2  ;;  %v14112_v0 = vadd.f32 %v13984_v62, %v13464_v60  ;;  %v6702_v23 = vpop.f32.mrb[121].mxu1  ;;  %v9538_v4 = vpop.f32.mrb[121].mxu0 }
 0x59f   : > { %v12145_v24 = vpack.c.bf16 %v9949_v43, %v9948_v55  ;;  %v14113_v5 = vadd.f32 %v9538_v4, %v6702_v23  ;;  %v13465_v17 = vpop.f32.mrb[122].mxu1  ;;  %v13985_v38 = vpop.f32.mrb[122].mxu0 }
 0x5a0   : > { %12230 = vst [vmem:[%s18471_s5 + $0x1d8] sm:$0xff] %v12150_v25   ;;  %v9826_v32 = vadd.f32 %v18705_v36, %v14112_v0  ;;  %v14114_v19 = vadd.f32 %v13985_v38, %v13465_v17  ;;  %v6705_v34 = vpop.f32.mrb[123].mxu1  ;;  %v9541_v27 = vpop.f32.mrb[123].mxu0 }
 0x5a1   : > { %12229 = vst [vmem:[%s18471_s5 + $0x1d0] sm:$0xff] %v12145_v24   ;;  %v9824_v53 = vadd.f32 %v18705_v36, %v14113_v5  ;;  %v14115_v40 = vadd.f32 %v9541_v27, %v6705_v34 }
 0x5a2   : > { %v9827_v8 = vadd.f32 %v18705_v36, %v14114_v19  ;;  %v9954_v29 = vmax.f32 %v9826_v32, 0.0 }
 0x5a3   : > { %v9825_v6 = vadd.f32 %v18705_v36, %v14115_v40  ;;  %v9952_v21 = vmax.f32 %v9824_v53, 0.0 }
 0x5a4   : > { %v9955_v57 = vmax.f32 %v9827_v8, 0.0 }
 0x5a5   : > { %v9953_v51 = vmax.f32 %v9825_v6, 0.0  ;;  %v13468_v12 = vpop.f32.mrb[124].mxu1  ;;  %v13988_v1 = vpop.f32.mrb[124].mxu0 }
 0x5a6   : > { %v12160_v13 = vpack.c.bf16 %v9955_v57, %v9954_v29  ;;  %v14116_v37 = vadd.f32 %v13988_v1, %v13468_v12  ;;  %v6718_v45 = vpop.f32.mrb[125].mxu1  ;;  %v9554_v26 = vpop.f32.mrb[125].mxu0 }
 0x5a7   : > { %v12155_v41 = vpack.c.bf16 %v9953_v51, %v9952_v21  ;;  %v14117_v9 = vadd.f32 %v9554_v26, %v6718_v45  ;;  %v13469_v42 = vpop.f32.mrb[126].mxu1  ;;  %v13989_v16 = vpop.f32.mrb[126].mxu0 }
 0x5a8   : > { %12232 = vst [vmem:[%s18471_s5 + $0x1e8] sm:$0xff] %v12160_v13   ;;  %v9830_v50 = vadd.f32 %v18705_v36, %v14116_v37  ;;  %v14118_v49 = vadd.f32 %v13989_v16, %v13469_v42  ;;  %v6721_v15 = vpop.f32.mrb[127].mxu1  ;;  %v9557_v28 = vpop.f32.mrb[127].mxu0 }
 0x5a9   : > { %12231 = vst [vmem:[%s18471_s5 + $0x1e0] sm:$0xff] %v12155_v41   ;;  %v9828_v63 = vadd.f32 %v18705_v36, %v14117_v9  ;;  %v14119_v14 = vadd.f32 %v9557_v28, %v6721_v15 }
 0x5aa   : > { %v9831_v18 = vadd.f32 %v18705_v36, %v14118_v49  ;;  %v9958_v30 = vmax.f32 %v9830_v50, 0.0 }
 0x5ab   : > { %v9829_v31 = vadd.f32 %v18705_v36, %v14119_v14  ;;  %v9956_v20 = vmax.f32 %v9828_v63, 0.0 }
 0x5ac   : > { %v9959_v7 = vmax.f32 %v9831_v18, 0.0 }
 0x5ad   : > { %v9957_v44 = vmax.f32 %v9829_v31, 0.0 }
 0x5ae   : > { %v12170_v48 = vpack.c.bf16 %v9959_v7, %v9958_v30 }
 0x5af   : > { %v12165_v56 = vpack.c.bf16 %v9957_v44, %v9956_v20 }
 0x5b0   : > { %12234 = vst [vmem:[%s18471_s5 + $0x1f8] sm:$0xff] %v12170_v48  }
 0x5b1   : > { %12233 = vst [vmem:[%s18471_s5 + $0x1f0] sm:$0xff] %v12165_v56  }
 0x5b2 PF: > { %s14_s17 = sadd.s32 1, %s15340_s17   ;;  %s19658_s15 = smov %s15336_s16 }
 0x5b3   : > { %p11_p5 = scmp.ge.s32.totalorder %s14_s17, 4   ;;  %s19659_s16 = smov %s19661_s18 }
 0x5b5   :  { %13 = sbr.rel (!%p11_p5) target bundleno = 2 (0x2), region = 83 }

</bundles_post_ra>
